<compile_context>
chip_gen: v7x
topology: tpu7x:2x2x1
jax: 0.10.0
libtpu: 0.0.40
codegen_flags: <defaults>
</compile_context>

<pallas_src>
import jax
import jax.numpy as jnp
from jax.experimental import pallas as pl
from jax.experimental.pallas import tpu as pltpu

CONDITION_SIZE = 7
NUM_CHANNEL = 3
IMG_SIZE = 56 * 56 * NUM_CHANNEL          # 9408
IN_FEATURES = IMG_SIZE + CONDITION_SIZE   # 9415
H3 = 1024   # hidden_size3
H2 = 512    # hidden_size2
H1 = 256    # hidden_size1
OUT = 1

TK = 2432                                         # reduction tile, = 19 * 128
K_PAD = ((IN_FEATURES + TK - 1) // TK) * TK       # 9728 = 4 * TK
N_K = K_PAD // TK                                 # 4 K-steps
MAX_TB = 256                                      # batch rows per block


def _leaky_relu(x, slope=0.2):
    return jnp.where(x > 0, x, slope * x)


def discriminator_kernel(x_ref, w1_ref, b1_ref, w2_ref, b2_ref,
                         w3_ref, b3_ref, w4_ref, b4_ref,
                         out_ref, acc_ref):
    k = pl.program_id(1)

    @pl.when(k == 0)
    def _():
        acc_ref[...] = jnp.zeros_like(acc_ref)

    # One K-tile of the first linear layer on the MXU: bf16 operands, f32 acc.
    acc_ref[...] += jnp.dot(x_ref[...], w1_ref[...],
                            preferred_element_type=jnp.float32)

    @pl.when(k == pl.num_programs(1) - 1)
    def _():
        h1 = _leaky_relu(acc_ref[...] + b1_ref[...])
        h2 = _leaky_relu(
            jnp.dot(h1.astype(jnp.bfloat16), w2_ref[...],
                    preferred_element_type=jnp.float32) + b2_ref[...])
        h3 = _leaky_relu(
            jnp.dot(h2.astype(jnp.bfloat16), w3_ref[...],
                    preferred_element_type=jnp.float32) + b3_ref[...])
        # Layer 4 (N=1) as a VPU reduction instead of a degenerate MXU matmul.
        logit = jnp.sum(h3 * w4_ref[...], axis=-1, keepdims=True) + b4_ref[...]
        out_ref[...] = jax.nn.sigmoid(logit)


def _vmem_limit_bytes(tb):
    """Working-set estimate (double-buffered inputs/outputs) + headroom."""
    x_tile = tb * TK * 2            # bf16
    w1_tile = TK * H3 * 2           # bf16
    w2 = H3 * H2 * 2                # bf16
    w3 = H2 * H1 * 2                # bf16
    small = (H3 + H2 + H1 + 1) * 4 + H1 * 4          # biases + w4 row (f32)
    out = tb * 128 * 4              # OUT lane-padded to 128
    acc = tb * H3 * 4
    streamed = 2 * (x_tile + w1_tile + w2 + w3 + small + out)
    return min(64 << 20, streamed + acc + (8 << 20))


@jax.jit
def discriminator_forward(x, w1_p, b1r, w2, b2r, w3, b3r, w4r, b4r):
    """x: [B, IN_FEATURES] f32. Weights are kernel-ready (see prepare_params)."""
    B = x.shape[0]
    if B <= MAX_TB:
        Bp = max(16, ((B + 15) // 16) * 16)            # bf16 sublane packing
        TB = Bp
    else:
        Bp = ((B + MAX_TB - 1) // MAX_TB) * MAX_TB
        TB = MAX_TB

    # Fused pad + bf16 cast of x (removes the per-step in-kernel cast).
    x_p = jnp.pad(x, ((0, Bp - B), (0, K_PAD - IN_FEATURES))).astype(jnp.bfloat16)

    grid_spec = pltpu.PrefetchScalarGridSpec(
        num_scalar_prefetch=0,
        grid=(Bp // TB, N_K),
        in_specs=[
            pl.BlockSpec((TB, TK), lambda b, k: (b, k)),    # x tile (streamed, bf16)
            pl.BlockSpec((TK, H3), lambda b, k: (k, 0)),    # W1 tile (streamed, bf16)
            pl.BlockSpec((1, H3), lambda b, k: (0, 0)),     # b1 (resident)
            pl.BlockSpec((H3, H2), lambda b, k: (0, 0)),    # W2 (resident, bf16)
            pl.BlockSpec((1, H2), lambda b, k: (0, 0)),     # b2
            pl.BlockSpec((H2, H1), lambda b, k: (0, 0)),    # W3 (resident, bf16)
            pl.BlockSpec((1, H1), lambda b, k: (0, 0)),     # b3
            pl.BlockSpec((1, H1), lambda b, k: (0, 0)),     # w4 row (VPU reduce)
            pl.BlockSpec((1, OUT), lambda b, k: (0, 0)),    # b4
        ],
        out_specs=pl.BlockSpec((TB, OUT), lambda b, k: (b, 0)),
        scratch_shapes=[pltpu.VMEM((TB, H3), jnp.float32)],
    )

    out = pl.pallas_call(
        discriminator_kernel,
        out_shape=jax.ShapeDtypeStruct((Bp, OUT), jnp.float32),
        grid_spec=grid_spec,
        compiler_params=pltpu.CompilerParams(
            dimension_semantics=("parallel", "arbitrary"),
            vmem_limit_bytes=_vmem_limit_bytes(TB),
        ),
    )(x_p, w1_p, b1r, w2, b2r, w3, b3r, w4r, b4r)

    return out[:B]


def init_params(key):
    """PyTorch-like uniform fan-in init; weights stored [in_features, out_features]."""
    ks = jax.random.split(key, 8)

    def lin(kw, kb, fan_in, fan_out):
        bound = 1.0 / jnp.sqrt(fan_in)
        w = jax.random.uniform(kw, (fan_in, fan_out), jnp.float32, -bound, bound)
        b = jax.random.uniform(kb, (fan_out,), jnp.float32, -bound, bound)
        return w, b

    w1, b1 = lin(ks[0], ks[1], IN_FEATURES, H3)
    w2, b2 = lin(ks[2], ks[3], H3, H2)
    w3, b3 = lin(ks[4], ks[5], H2, H1)
    w4, b4 = lin(ks[6], ks[7], H1, OUT)
    return w1, b1, w2, b2, w3, b3, w4, b4


def prepare_params(w1, b1, w2, b2, w3, b3, w4, b4):
    """One-time prep: pad + bf16-cast streamed/resident weights; biases as rows."""
    w1_p = jnp.pad(w1, ((0, K_PAD - IN_FEATURES), (0, 0))).astype(jnp.bfloat16)
    return (w1_p,
            b1.reshape(1, H3),
            w2.astype(jnp.bfloat16), b2.reshape(1, H2),
            w3.astype(jnp.bfloat16), b3.reshape(1, H1),
            w4.reshape(1, H1),       b4.reshape(1, OUT))


def reference_forward(x, w1, b1, w2, b2, w3, b3, w4, b4):
    h = _leaky_relu(x @ w1 + b1)
    h = _leaky_relu(h @ w2 + b2)
    h = _leaky_relu(h @ w3 + b3)
    return jax.nn.sigmoid(h @ w4 + b4)


if __name__ == "__main__":
    key = jax.random.PRNGKey(0)
    k_x, k_p = jax.random.split(key)

    B = 8
    x = jax.random.normal(k_x, (B, IN_FEATURES), jnp.float32)

    raw_params = init_params(k_p)
    kernel_params = prepare_params(*raw_params)   # done once, outside the call path

    out = jax.block_until_ready(discriminator_forward(x, *kernel_params))

    ref = reference_forward(x, *raw_params)
    assert out.shape == (B, OUT), out.shape
    max_err = float(jnp.max(jnp.abs(out - ref)))
    # bf16 operands for layers 1-3 (f32 MXU accumulation) vs full-f32 reference.
    assert max_err < 2e-2, max_err

    print("KERNEL_OK")
</pallas_src>

<mosaic_0001>
module attributes {stable_mosaic.version = 11 : i64} {
  func.func @discriminator_kernel(%arg0: i32, %arg1: i32, %arg2: memref<16x2432xbf16, #tpu.memory_space<vmem>>, %arg3: memref<2432x1024xbf16, #tpu.memory_space<vmem>>, %arg4: memref<1x1024xf32, #tpu.memory_space<vmem>>, %arg5: memref<1024x512xbf16, #tpu.memory_space<vmem>>, %arg6: memref<1x512xf32, #tpu.memory_space<vmem>>, %arg7: memref<512x256xbf16, #tpu.memory_space<vmem>>, %arg8: memref<1x256xf32, #tpu.memory_space<vmem>>, %arg9: memref<1x256xf32, #tpu.memory_space<vmem>>, %arg10: memref<1x1xf32, #tpu.memory_space<vmem>>, %arg11: memref<16x1xf32, #tpu.memory_space<vmem>>, %arg12: memref<16x1024xf32, #tpu.memory_space<vmem>>) attributes {dimension_semantics = [#tpu.dimension_semantics<parallel>, #tpu.dimension_semantics<arbitrary>], iteration_bounds = array<i64: 1, 4>, scalar_prefetch = 0 : i64, scratch_operands = 1 : i64, tpu.core_type = #tpu.core_type<tc>, window_params = [{transform_indices = @transform_0, window_bounds = array<i64: 16, 2432>}, {transform_indices = @transform_1, window_bounds = array<i64: 2432, 1024>}, {pipeline_mode = #tpu.pipeline_mode<synchronous>, transform_indices = @transform_2, window_bounds = array<i64: 1, 1024>}, {pipeline_mode = #tpu.pipeline_mode<synchronous>, transform_indices = @transform_3, window_bounds = array<i64: 1024, 512>}, {pipeline_mode = #tpu.pipeline_mode<synchronous>, transform_indices = @transform_4, window_bounds = array<i64: 1, 512>}, {pipeline_mode = #tpu.pipeline_mode<synchronous>, transform_indices = @transform_5, window_bounds = array<i64: 512, 256>}, {pipeline_mode = #tpu.pipeline_mode<synchronous>, transform_indices = @transform_6, window_bounds = array<i64: 1, 256>}, {pipeline_mode = #tpu.pipeline_mode<synchronous>, transform_indices = @transform_7, window_bounds = array<i64: 1, 256>}, {pipeline_mode = #tpu.pipeline_mode<synchronous>, transform_indices = @transform_8, window_bounds = array<i64: 1, 1>}, {transform_indices = @transform_9, window_bounds = array<i64: 16, 1>}]} {
    %c0_i32 = arith.constant 0 : i32
    %0 = arith.cmpi eq, %arg1, %c0_i32 : i32
    %1 = arith.extui %0 : i1 to i32
    %c0_i32_0 = arith.constant 0 : i32
    %2 = arith.cmpi ne, %1, %c0_i32_0 : i32
    scf.if %2 {
      %cst_9 = arith.constant 0.000000e+00 : f32
      %12 = vector.broadcast %cst_9 : f32 to vector<16x1024xf32>
      %c0_10 = arith.constant 0 : index
      %c0_11 = arith.constant 0 : index
      %13 = vector.load %arg12[%c0_10, %c0_11] : memref<16x1024xf32, #tpu.memory_space<vmem>>, vector<16x1024xf32>
      tpu.vector_store %arg12[%c0_10, %c0_11], %12 {strides = array<i32>} : memref<16x1024xf32, #tpu.memory_space<vmem>>, vector<16x1024xf32>,
    } else {
    }
    %c0 = arith.constant 0 : index
    %c0_1 = arith.constant 0 : index
    %3 = vector.load %arg12[%c0, %c0_1] : memref<16x1024xf32, #tpu.memory_space<vmem>>, vector<16x1024xf32>
    %c0_2 = arith.constant 0 : index
    %c0_3 = arith.constant 0 : index
    %4 = vector.load %arg2[%c0_2, %c0_3] : memref<16x2432xbf16, #tpu.memory_space<vmem>>, vector<16x2432xbf16>
    %c0_4 = arith.constant 0 : index
    %c0_5 = arith.constant 0 : index
    %5 = vector.load %arg3[%c0_4, %c0_5] : memref<2432x1024xbf16, #tpu.memory_space<vmem>>, vector<2432x1024xbf16>
    %cst = arith.constant dense<0.000000e+00> : vector<16x1024xf32>
    %6 = tpu.matmul %4, %5, %cst {dimension_numbers = #tpu.dot_dimension_numbers<[1], [0], [0], [1], [0, 0, 1, 1], [], []>} : vector<16x2432xbf16>, vector<2432x1024xbf16>, vector<16x1024xf32> -> vector<16x1024xf32>
    %7 = arith.addf %3, %6 : vector<16x1024xf32>
    %c0_6 = arith.constant 0 : index
    %c0_7 = arith.constant 0 : index
    %8 = vector.load %arg12[%c0_6, %c0_7] : memref<16x1024xf32, #tpu.memory_space<vmem>>, vector<16x1024xf32>
    tpu.vector_store %arg12[%c0_6, %c0_7], %7 {strides = array<i32>} : memref<16x1024xf32, #tpu.memory_space<vmem>>, vector<16x1024xf32>,
    %c3_i32 = arith.constant 3 : i32
    %9 = arith.cmpi eq, %arg1, %c3_i32 : i32
    %10 = arith.extui %9 : i1 to i32
    %c0_i32_8 = arith.constant 0 : i32
    %11 = arith.cmpi ne, %10, %c0_i32_8 : i32
    scf.if %11 {
      %c0_9 = arith.constant 0 : index
      %c0_10 = arith.constant 0 : index
      %12 = vector.load %arg12[%c0_9, %c0_10] : memref<16x1024xf32, #tpu.memory_space<vmem>>, vector<16x1024xf32>
      %c0_11 = arith.constant 0 : index
      %c0_12 = arith.constant 0 : index
      %13 = vector.load %arg4[%c0_11, %c0_12] : memref<1x1024xf32, #tpu.memory_space<vmem>>, vector<1x1024xf32>
      %14 = vector.broadcast %13 : vector<1x1024xf32> to vector<16x1024xf32>
      %15 = arith.addf %12, %14 : vector<16x1024xf32>
      %cst_13 = arith.constant 0.000000e+00 : f32
      %16 = vector.broadcast %cst_13 : f32 to vector<16x1024xf32>
      %17 = arith.cmpf ogt, %15, %16 : vector<16x1024xf32>
      %cst_14 = arith.constant 2.000000e-01 : f32
      %18 = vector.broadcast %cst_14 : f32 to vector<16x1024xf32>
      %19 = arith.mulf %18, %15 : vector<16x1024xf32>
      %20 = arith.select %17, %15, %19 : vector<16x1024xi1>, vector<16x1024xf32>
      %21 = arith.truncf %20 : vector<16x1024xf32> to vector<16x1024xbf16>
      %c0_15 = arith.constant 0 : index
      %c0_16 = arith.constant 0 : index
      %22 = vector.load %arg5[%c0_15, %c0_16] : memref<1024x512xbf16, #tpu.memory_space<vmem>>, vector<1024x512xbf16>
      %cst_17 = arith.constant dense<0.000000e+00> : vector<16x512xf32>
      %23 = tpu.matmul %21, %22, %cst_17 {dimension_numbers = #tpu.dot_dimension_numbers<[1], [0], [0], [1], [0, 0, 1, 1], [], []>} : vector<16x1024xbf16>, vector<1024x512xbf16>, vector<16x512xf32> -> vector<16x512xf32>
      %c0_18 = arith.constant 0 : index
      %c0_19 = arith.constant 0 : index
      %24 = vector.load %arg6[%c0_18, %c0_19] : memref<1x512xf32, #tpu.memory_space<vmem>>, vector<1x512xf32>
      %25 = vector.broadcast %24 : vector<1x512xf32> to vector<16x512xf32>
      %26 = arith.addf %23, %25 : vector<16x512xf32>
      %cst_20 = arith.constant 0.000000e+00 : f32
      %27 = vector.broadcast %cst_20 : f32 to vector<16x512xf32>
      %28 = arith.cmpf ogt, %26, %27 : vector<16x512xf32>
      %cst_21 = arith.constant 2.000000e-01 : f32
      %29 = vector.broadcast %cst_21 : f32 to vector<16x512xf32>
      %30 = arith.mulf %29, %26 : vector<16x512xf32>
      %31 = arith.select %28, %26, %30 : vector<16x512xi1>, vector<16x512xf32>
      %32 = arith.truncf %31 : vector<16x512xf32> to vector<16x512xbf16>
      %c0_22 = arith.constant 0 : index
      %c0_23 = arith.constant 0 : index
      %33 = vector.load %arg7[%c0_22, %c0_23] : memref<512x256xbf16, #tpu.memory_space<vmem>>, vector<512x256xbf16>
      %cst_24 = arith.constant dense<0.000000e+00> : vector<16x256xf32>
      %34 = tpu.matmul %32, %33, %cst_24 {dimension_numbers = #tpu.dot_dimension_numbers<[1], [0], [0], [1], [0, 0, 1, 1], [], []>} : vector<16x512xbf16>, vector<512x256xbf16>, vector<16x256xf32> -> vector<16x256xf32>
      %c0_25 = arith.constant 0 : index
      %c0_26 = arith.constant 0 : index
      %35 = vector.load %arg8[%c0_25, %c0_26] : memref<1x256xf32, #tpu.memory_space<vmem>>, vector<1x256xf32>
      %36 = vector.broadcast %35 : vector<1x256xf32> to vector<16x256xf32>
      %37 = arith.addf %34, %36 : vector<16x256xf32>
      %cst_27 = arith.constant 0.000000e+00 : f32
      %38 = vector.broadcast %cst_27 : f32 to vector<16x256xf32>
      %39 = arith.cmpf ogt, %37, %38 : vector<16x256xf32>
      %cst_28 = arith.constant 2.000000e-01 : f32
      %40 = vector.broadcast %cst_28 : f32 to vector<16x256xf32>
      %41 = arith.mulf %40, %37 : vector<16x256xf32>
      %42 = arith.select %39, %37, %41 : vector<16x256xi1>, vector<16x256xf32>
      %c0_29 = arith.constant 0 : index
      %c0_30 = arith.constant 0 : index
      %43 = vector.load %arg9[%c0_29, %c0_30] : memref<1x256xf32, #tpu.memory_space<vmem>>, vector<1x256xf32>
      %44 = vector.broadcast %43 : vector<1x256xf32> to vector<16x256xf32>
      %45 = arith.mulf %42, %44 : vector<16x256xf32>
      %cst_31 = arith.constant dense<0.000000e+00> : vector<16xf32>
      %46 = vector.multi_reduction <add>, %45, %cst_31 [1] : vector<16x256xf32> to vector<16xf32>
      %47 = vector.shape_cast %46 : vector<16xf32> to vector<16x1xf32>
      %c0_32 = arith.constant 0 : index
      %c0_33 = arith.constant 0 : index
      %48 = vector.load %arg10[%c0_32, %c0_33] : memref<1x1xf32, #tpu.memory_space<vmem>>, vector<1x1xf32>
      %49 = vector.broadcast %48 : vector<1x1xf32> to vector<16x1xf32>
      %50 = arith.addf %47, %49 : vector<16x1xf32>
      %51 = arith.negf %50 : vector<16x1xf32>
      %52 = math.exp %51 : vector<16x1xf32>
      %cst_34 = arith.constant 1.000000e+00 : f32
      %53 = vector.broadcast %cst_34 : f32 to vector<16x1xf32>
      %54 = arith.addf %53, %52 : vector<16x1xf32>
      %55 = arith.divf %53, %54 : vector<16x1xf32>
      %c0_35 = arith.constant 0 : index
      %c0_36 = arith.constant 0 : index
      %56 = vector.load %arg11[%c0_35, %c0_36] : memref<16x1xf32, #tpu.memory_space<vmem>>, vector<16x1xf32>
      tpu.vector_store %arg11[%c0_35, %c0_36], %55 {strides = array<i32>} : memref<16x1xf32, #tpu.memory_space<vmem>>, vector<16x1xf32>,
    } else {
    }
    return
  }
  func.func @transform_0(%arg0: i32, %arg1: i32) -> (i32, i32) {
    %c0_i32 = arith.constant 0 : i32
    return %arg0, %arg1 : i32, i32
  }
  func.func @transform_1(%arg0: i32, %arg1: i32) -> (i32, i32) {
    %c0_i32 = arith.constant 0 : i32
    %c0_i32_0 = arith.constant 0 : i32
    return %arg1, %c0_i32 : i32, i32
  }
  func.func @transform_2(%arg0: i32, %arg1: i32) -> (i32, i32) {
    %c0_i32 = arith.constant 0 : i32
    %c0_i32_0 = arith.constant 0 : i32
    %c0_i32_1 = arith.constant 0 : i32
    return %c0_i32, %c0_i32_0 : i32, i32
  }
  func.func @transform_3(%arg0: i32, %arg1: i32) -> (i32, i32) {
    %c0_i32 = arith.constant 0 : i32
    %c0_i32_0 = arith.constant 0 : i32
    %c0_i32_1 = arith.constant 0 : i32
    return %c0_i32, %c0_i32_0 : i32, i32
  }
  func.func @transform_4(%arg0: i32, %arg1: i32) -> (i32, i32) {
    %c0_i32 = arith.constant 0 : i32
    %c0_i32_0 = arith.constant 0 : i32
    %c0_i32_1 = arith.constant 0 : i32
    return %c0_i32, %c0_i32_0 : i32, i32
  }
  func.func @transform_5(%arg0: i32, %arg1: i32) -> (i32, i32) {
    %c0_i32 = arith.constant 0 : i32
    %c0_i32_0 = arith.constant 0 : i32
    %c0_i32_1 = arith.constant 0 : i32
    return %c0_i32, %c0_i32_0 : i32, i32
  }
  func.func @transform_6(%arg0: i32, %arg1: i32) -> (i32, i32) {
    %c0_i32 = arith.constant 0 : i32
    %c0_i32_0 = arith.constant 0 : i32
    %c0_i32_1 = arith.constant 0 : i32
    return %c0_i32, %c0_i32_0 : i32, i32
  }
  func.func @transform_7(%arg0: i32, %arg1: i32) -> (i32, i32) {
    %c0_i32 = arith.constant 0 : i32
    %c0_i32_0 = arith.constant 0 : i32
    %c0_i32_1 = arith.constant 0 : i32
    return %c0_i32, %c0_i32_0 : i32, i32
  }
  func.func @transform_8(%arg0: i32, %arg1: i32) -> (i32, i32) {
    %c0_i32 = arith.constant 0 : i32
    %c0_i32_0 = arith.constant 0 : i32
    %c0_i32_1 = arith.constant 0 : i32
    return %c0_i32, %c0_i32_0 : i32, i32
  }
  func.func @transform_9(%arg0: i32, %arg1: i32) -> (i32, i32) {
    %c0_i32 = arith.constant 0 : i32
    %c0_i32_0 = arith.constant 0 : i32
    return %arg0, %c0_i32 : i32, i32
  }
}

</mosaic_0001>

<bundles_post_ra>
// kernel: discriminator_forward.1
= control target key start
LH: loop header
LB: loop body
LE: loop exit
PB: predicated region body
PF: predicated region fallthrough
CT: control target
= control target key end

     0   :  { %s16943_s0 = inlined_call_operand.vmem [shape: bf16[16,9728], index: 0, kind: input, shape index: {}]   ;;  %s16944_s1 = inlined_call_operand.hbm [shape: bf16[9728,1024], index: 1, kind: input, shape index: {}]   ;;  %s16945_s2 = inlined_call_operand.hbm [shape: f32[1,1024], index: 2, kind: input, shape index: {}]   ;;  %s16946_s3 = inlined_call_operand.hbm [shape: bf16[1024,512], index: 3, kind: input, shape index: {}]   ;;  %s16947_s4 = inlined_call_operand.hbm [shape: f32[1,512], index: 4, kind: input, shape index: {}]   ;;  %s16948_s5 = inlined_call_operand.hbm [shape: bf16[512,256], index: 5, kind: input, shape index: {}]   ;;  %s16949_s6 = inlined_call_operand.hbm [shape: f32[1,256], index: 6, kind: input, shape index: {}]   ;;  %s16950_s7 = inlined_call_operand.hbm [shape: f32[1,256], index: 7, kind: input, shape index: {}]   ;;  %s16951_s8 = inlined_call_operand.<no memory space> [shape: f32[1,1], index: 8, kind: input, shape index: {}]   ;;  %s16952_s9 = inlined_call_operand.vmem [shape: f32[16,1], index: 9, kind: output, shape index: {}]  }
   0x1   :  { %16960 = sst [smem:[#allocation22_spill]] %s16945_s2  ;;  %v14_v0 = vstv %s16951_s8 }
   0x2   :  { %16961 = sst [smem:[#allocation23_spill]] %s16947_s4  ;;  %15 = vst [vmem:[#allocation3] sm:$0x1] %v14_v0 }
   0x3   :  { %16962 = sst [smem:[#allocation24_spill]] %s16952_s9 }
   0x4   :  { %16 = vsyncpa [#allocation6], 0 }
   0x5   :  { %18 = vsyncpa [#allocation6 + $0x1], 0 }
   0x6   :  { %19 = vsyncpa [#allocation8], 0 }
   0x7   :  { %20 = vsyncpa [#allocation11], 0 }
   0x8   :  { %21 = vsyncpa [#allocation14], 0  ;;  %s15264_s11 = smov 0   ;;  %s15266_s12 = smov 0  }
   0x9   :  { %s15268_s13 = smov 0   ;;  %s15270_s14 = smov 0  }
   0xa   :  { %s15272_s15 = smov 0   ;;  %s15274_s16 = smov 0  }
   0xb LB: > { %s12503_s8 = sadd.s32 4294967295, %s15194_s16   ;;  %s36_s17 = sadd.s32 1, %s15190_s15  ;;  %s15194_s16 = sphi %s15274_s16, %s27_s16   ;;  %s15190_s15 = sphi %s15272_s15, %s16985_s15   ;;  %s15186_s14 = sphi %s15270_s14, %s16984_s14   ;;  %s15182_s13 = sphi %s15268_s13, %s16983_s13   ;;  %s15178_s12 = sphi %s15266_s12, %s16982_s12   ;;  %s15174_s11 = sphi %s15264_s11, %s16981_s11  }
   0xc   : > { %p37_p0 = scmp.ge.s32.totalorder %s36_s17, 4  ;;  %s48_s18 = sadd.s32 1, %s15182_s13 }
   0xd   : > { %p55_p1 = scmp.ne.s32.totalorder %s15182_s13, %s15178_s12  ;;  %p56_p2 = scmp.eq.s32.totalorder %s15194_s16, 0 }
   0xe   : > { %s16987_s17 = smov (%p37_p0, %s36_s17), 0  ;;  %p87_p4 = scmp.ne.s32.totalorder %s15178_s12, %s15174_s11 }
   0xf   : > { %16963 = sst [smem:[#allocation20_spill]] %s16987_s17  ;;  %p15300_p3 = por %p56_p2, %p55_p1 }
  0x10   : > { %s44_s20 = ssub.s32 %s15190_s15, %s16987_s17  ;;  %p15307_p5 = scmp.eq.s32.totalorder %s12503_s8, 0 }
  0x11   : > { %s16964_s19 = scalar_select %p15300_p3, 1, 0 }
  0x12   : > { %s16965_s21 = scalar_select %p15307_p5, 1, 0 }
  0x13   : > { %p46_p6 = scmp.eq.s32.totalorder %s44_s20, 0  ;;  %p12504_p7 = scmp.ge.s32.totalorder %s15194_s16, 1 }
  0x14   : > { %p15314_p8 = por %p15307_p5, %p87_p4  ;;  %p271_p9 = scmp.lt.s32.totalorder %s15194_s16, 5 }
  0x15   : > { %s15320_s23 = scalar_select %p46_p6, %s15182_s13, %s48_s18  }
  0x16   : > { %s16966_s22 = scalar_select %p15314_p8, 1, 0 }
  0x17   : > { %16967 = sst [smem:[#allocation21_spill]] %s15320_s23  ;;  %p15322_p10 = pnand %p12504_p7, %p271_p9 }
  0x18   : > { %s15196_s25 = smov [#allocation7]   ;;  %s15197_s27 = smov [#allocation10]  }
  0x19   : > { %s16968_s24 = scalar_select %p15322_p10, 1, 0 }
  0x1a   : > { %p14308_p11 = pneg %p15322_p10  ;;  %s284_s26 = sshll.u32 %s15196_s25, 4  ;;  %s285_s26 = int_to_ptr.vmem [resolvable:$true] %s284_s26 }
  0x1b   : > { %s308_s28 = sshll.u32 %s15197_s27, 4  ;;  %s15198_s30 = smov [#allocation13]   ;;  %s15334_s28 = int_to_ptr.vmem [resolvable:$true] %s308_s28 }
  0x1c   : > { %p15330_p12 = pnand %p14308_p11, %p15307_p5  ;;  %s15336_s10 = sshll.u32 %s15198_s30, 4  ;;  %s333_s10 = int_to_ptr.vmem [resolvable:$true] %s15336_s10 }
  0x1d   : > { %s16970_s2 = sld [smem:[#allocation22_spill]] }
  0x1e   : > { %p15346_p0 = pneg %p15330_p12 }
  0x23   : > { %s14936_s18 = scalar_lea.hbm %s16970_s2, 128 }
  0x24   : > { %p14937_p13 = scmp.ne.s32.totalorder %s16970_s2, %s14936_s18  ;;  %p14943_p4 = scmp.lt.u32.totalorder %s14936_s18, %s16970_s2 }
  0x26   : > { %p14939_p1 = pnand %p15346_p0, %p14937_p13 }
  0x28   : > { %p14940_p2 = pneg %p14939_p1 }
  0x2a   : > { %p14945_p6 = pnand %p14943_p4, %p14940_p2 }
  0x2c   : > { %14948 = shalt.err (!%p14945_p6)
}
  0x2d   : > { %s14949_s11 = scalar_lea.vmem %s285_s26, 128  ;;  %p14957_p5 = scmp.lt.s32.totalorder %s285_s26, %s285_s26 }
  0x2e   : > { %p14950_p7 = scmp.ne.s32.totalorder %s285_s26, %s14949_s11  ;;  %p14958_p8 = scmp.lt.s32.totalorder %s14949_s11, %s14949_s11 }
  0x30   : > { %p14952_p9 = pnand %p14950_p7, %p15346_p0  ;;  %p14959_p10 = por %p14958_p8, %p14957_p5 }
  0x32   : > { %p14953_p11 = pneg %p14952_p9 }
  0x34   : > { %p14960_p3 = pnand %p14959_p10, %p14953_p11 }
  0x36   : > { %14963 = shalt.err (!%p14960_p3)
}
  0x37   : > { %14311 = dma.hbm_to_vmem [thread:$0]  (!%p15330_p12), %s16970_s2, 128, %s285_s26, [#allocation8]  }
  0x38   : > { %s16972_s4 = sld [smem:[#allocation23_spill]] }
  0x3e   : > { %s14964_s25 = scalar_lea.hbm %s16972_s4, 64 }
  0x3f   : > { %p14965_p13 = scmp.ne.s32.totalorder %s16972_s4, %s14964_s25  ;;  %p14971_p3 = scmp.lt.u32.totalorder %s14964_s25, %s16972_s4 }
  0x41   : > { %p14967_p1 = pnand %p14965_p13, %p15346_p0 }
  0x43   : > { %p14968_p5 = pneg %p14967_p1 }
  0x45   : > { %p14973_p8 = pnand %p14971_p3, %p14968_p5 }
  0x47   : > { %14976 = shalt.err (!%p14973_p8)
}
  0x48   : > { %s14977_s26 = scalar_lea.vmem %s15334_s28, 64  ;;  %p14985_p6 = scmp.lt.s32.totalorder %s15334_s28, %s15334_s28 }
  0x49   : > { %p14978_p10 = scmp.ne.s32.totalorder %s15334_s28, %s14977_s26  ;;  %p14986_p7 = scmp.lt.s32.totalorder %s14977_s26, %s14977_s26 }
  0x4b   : > { %p14980_p2 = pnand %p14978_p10, %p15346_p0  ;;  %p14987_p9 = por %p14986_p7, %p14985_p6 }
  0x4d   : > { %p14981_p4 = pneg %p14980_p2 }
  0x4f   : > { %p14988_p11 = pnand %p14987_p9, %p14981_p4 }
  0x51   : > { %14991 = shalt.err (!%p14988_p11)
}
  0x52   : > { %14317 = dma.hbm_to_vmem [thread:$0]  (!%p15330_p12), %s16972_s4, 64, %s15334_s28, [#allocation11]  }
  0x53   : > { %s15199_s8 = smov [#allocation9]   ;;  %s14992_s25 = scalar_lea.hbm %s16949_s6, 32 }
  0x54   : > { %s294_s20 = sshll.u32 %s15199_s8, 4  ;;  %p14993_p13 = scmp.ne.s32.totalorder %s16949_s6, %s14992_s25  ;;  %s295_s20 = int_to_ptr.vmem [resolvable:$true] %s294_s20 }
  0x55   : > { %p14999_p3 = scmp.lt.u32.totalorder %s14992_s25, %s16949_s6 }
  0x56   : > { %p14995_p1 = pnand %p14993_p13, %p15346_p0 }
  0x58   : > { %p14996_p5 = pneg %p14995_p1 }
  0x5a   : > { %p15001_p8 = pnand %p14999_p3, %p14996_p5 }
  0x5c   : > { %15004 = shalt.err (!%p15001_p8)
}
  0x5d   : > { %s15005_s28 = scalar_lea.vmem %s333_s10, 32  ;;  %p15013_p6 = scmp.lt.s32.totalorder %s333_s10, %s333_s10 }
  0x5e   : > { %p15006_p10 = scmp.ne.s32.totalorder %s333_s10, %s15005_s28  ;;  %p15014_p7 = scmp.lt.s32.totalorder %s15005_s28, %s15005_s28 }
  0x60   : > { %p15008_p2 = pnand %p15006_p10, %p15346_p0  ;;  %p15015_p9 = por %p15014_p7, %p15013_p6 }
  0x62   : > { %p15009_p4 = pneg %p15008_p2 }
  0x64   : > { %p15016_p11 = pnand %p15015_p9, %p15009_p4 }
  0x66   : > { %15019 = shalt.err (!%p15016_p11)
}
  0x67   : > { %14323 = dma.hbm_to_vmem [thread:$0]  (!%p15330_p12), %s16949_s6, 32, %s333_s10, [#allocation14]  }
  0x68   : > { %s15020_s17 = scalar_lea.hbm %s16946_s3, 32768 }
  0x69   : > { %p15021_p13 = scmp.ne.s32.totalorder %s16946_s3, %s15020_s17  ;;  %p15027_p3 = scmp.lt.u32.totalorder %s15020_s17, %s16946_s3 }
  0x6b   : > { %p15023_p1 = pnand %p15021_p13, %p15346_p0 }
  0x6d   : > { %p15024_p5 = pneg %p15023_p1 }
  0x6f   : > { %p15029_p8 = pnand %p15027_p3, %p15024_p5 }
  0x71   : > { %15032 = shalt.err (!%p15029_p8)
}
  0x72   : > { %s15033_s26 = scalar_lea.vmem %s295_s20, 32768  ;;  %p15041_p6 = scmp.lt.s32.totalorder %s295_s20, %s295_s20 }
  0x73   : > { %p15034_p10 = scmp.ne.s32.totalorder %s295_s20, %s15033_s26  ;;  %p15042_p7 = scmp.lt.s32.totalorder %s15033_s26, %s15033_s26 }
  0x75   : > { %p15036_p2 = pnand %p15034_p10, %p15346_p0  ;;  %p15043_p9 = por %p15042_p7, %p15041_p6 }
  0x77   : > { %p15037_p4 = pneg %p15036_p2 }
  0x79   : > { %p15044_p11 = pnand %p15043_p9, %p15037_p4 }
  0x7b   : > { %15047 = shalt.err (!%p15044_p11)
}
  0x7c   : > { %s15200_s10 = smov 256   ;;  %s15201_s28 = smov 16  }
  0x7d   : > { %14314 = dma.hbm_to_vmem [thread:$0]  (!%p15330_p12), %s16946_s3, 32768, %s295_s20, [#allocation8], %s15200_s10, %s15200_s10, %s15201_s28  }
  0x7e   : > { %s15202_s2 = smov [#allocation12]   ;;  %s15048_s25 = scalar_lea.hbm %s16948_s5, 8192 }
  0x7f   : > { %s318_s8 = sshll.u32 %s15202_s2, 4  ;;  %p15049_p13 = scmp.ne.s32.totalorder %s16948_s5, %s15048_s25  ;;  %s319_s8 = int_to_ptr.vmem [resolvable:$true] %s318_s8 }
  0x80   : > { %p15055_p3 = scmp.lt.u32.totalorder %s15048_s25, %s16948_s5 }
  0x81   : > { %p15051_p1 = pnand %p15049_p13, %p15346_p0 }
  0x83   : > { %p15052_p5 = pneg %p15051_p1 }
  0x85   : > { %p15057_p8 = pnand %p15055_p3, %p15052_p5 }
  0x87   : > { %15060 = shalt.err (!%p15057_p8)
}
  0x88   : > { %s15061_s20 = scalar_lea.vmem %s319_s8, 8192  ;;  %p15069_p6 = scmp.lt.s32.totalorder %s319_s8, %s319_s8 }
  0x89   : > { %p15062_p10 = scmp.ne.s32.totalorder %s319_s8, %s15061_s20  ;;  %p15070_p7 = scmp.lt.s32.totalorder %s15061_s20, %s15061_s20 }
  0x8b   : > { %p15064_p2 = pnand %p15062_p10, %p15346_p0  ;;  %p15071_p9 = por %p15070_p7, %p15069_p6 }
  0x8d   : > { %p15065_p4 = pneg %p15064_p2 }
  0x8f   : > { %p15072_p11 = pnand %p15071_p9, %p15065_p4 }
  0x91   : > { %15075 = shalt.err (!%p15072_p11)
}
  0x92   : > { %s15203_s10 = smov 128   ;;  %s15204_s28 = smov 8  }
  0x93   : > { %14320 = dma.hbm_to_vmem [thread:$0]  (!%p15330_p12), %s16948_s5, 8192, %s319_s8, [#allocation11], %s15203_s10, %s15203_s10, %s15204_s28  }
  0x94   : > { %s15205_s23 = smov [#allocation15]   ;;  %s15076_s25 = scalar_lea.hbm %s16950_s7, 32 }
  0x95   : > { %s343_s2 = sshll.u32 %s15205_s23, 4  ;;  %p15077_p13 = scmp.ne.s32.totalorder %s16950_s7, %s15076_s25  ;;  %s344_s2 = int_to_ptr.vmem [resolvable:$true] %s343_s2 }
  0x96   : > { %p15083_p3 = scmp.lt.u32.totalorder %s15076_s25, %s16950_s7 }
  0x97   : > { %p15079_p1 = pnand %p15077_p13, %p15346_p0 }
  0x99   : > { %p15080_p5 = pneg %p15079_p1 }
  0x9b   : > { %p15085_p8 = pnand %p15083_p3, %p15080_p5 }
  0x9d   : > { %15088 = shalt.err (!%p15085_p8)
}
  0x9e   : > { %s15089_s8 = scalar_lea.vmem %s344_s2, 32  ;;  %p15097_p6 = scmp.lt.s32.totalorder %s344_s2, %s344_s2 }
  0x9f   : > { %p15090_p10 = scmp.ne.s32.totalorder %s344_s2, %s15089_s8  ;;  %p15098_p7 = scmp.lt.s32.totalorder %s15089_s8, %s15089_s8 }
  0xa1   : > { %p15092_p2 = pnand %p15090_p10, %p15346_p0  ;;  %p15099_p9 = por %p15098_p7, %p15097_p6 }
  0xa3   : > { %p15093_p4 = pneg %p15092_p2 }
  0xa5   : > { %p15100_p11 = pnand %p15099_p9, %p15093_p4 }
  0xa7   : > { %15103 = shalt.err (!%p15100_p11)
}
  0xa8   : > { %14326 = dma.hbm_to_vmem [thread:$0]  (!%p15330_p12), %s16950_s7, 32, %s344_s2, [#allocation14]  }
  0xa9   : > { %p12511_p13 = scmp.ge.s32.totalorder %s15194_s16, 4 }
  0xaa   : > { %p16973_p1 = scmp.ne.s32.totalorder (!%p12511_p13), %s16964_s19, 0 }
  0xab   : > { %353 = sbr.rel (%p12511_p13) target bundleno = 220 (0xdc), region = 44 }
  0xb2   : > { %356 = sbr.rel (!%p16973_p1) target bundleno = 193 (0xc1), region = 48  ;;  %s358_s27 = sand.u32 (%p16973_p1), 1, %s15182_s13  }
  0xb3   : > { %s14090_s4 = smul.u32 (%p16973_p1), 76, %s15190_s15 }
  0xb4   : > { %s14278_s9 = smul.u32 (%p16973_p1), 152, %s358_s27 }
  0xb5   : > { %s15466_s18 = scalar_lea.vmem (%p16973_p1), %s16943_s0, %s14090_s4 }
  0xb6   : > { %v381_v1 = vld [vmem:[%s15466_s18] sm:$0xff] (%p16973_p1)  ;;  %v383_v2 = vld [vmem:[%s15466_s18 + $0x8] sm:$0xff] (%p16973_p1)  ;;  %v385_v3 = vld [vmem:[%s15466_s18 + $0x10] sm:$0xff] (%p16973_p1)  ;;  %s15471_s29 = scalar_lea.vmem (%p16973_p1), [#allocation4], %s14278_s9 }
  0xb7   : > { %382 = vst [vmem:[%s15471_s29] sm:$0xff] (%p16973_p1), %v381_v1  ;;  %384 = vst [vmem:[%s15471_s29 + $0x8] sm:$0xff] (%p16973_p1), %v383_v2  ;;  %v387_v4 = vld [vmem:[%s15466_s18 + $0x18] sm:$0xff] (%p16973_p1)  ;;  %v389_v5 = vld [vmem:[%s15466_s18 + $0x20] sm:$0xff] (%p16973_p1) }
  0xb8   : > { %386 = vst [vmem:[%s15471_s29 + $0x10] sm:$0xff] (%p16973_p1), %v385_v3  ;;  %v391_v6 = vld [vmem:[%s15466_s18 + $0x28] sm:$0xff] (%p16973_p1)  ;;  %388 = vst [vmem:[%s15471_s29 + $0x18] sm:$0xff] (%p16973_p1), %v387_v4  ;;  %v393_v7 = vld [vmem:[%s15466_s18 + $0x30] sm:$0xff] (%p16973_p1) }
  0xb9   : > { %390 = vst [vmem:[%s15471_s29 + $0x20] sm:$0xff] %v389_v5  ;;  %392 = vst [vmem:[%s15471_s29 + $0x28] sm:$0xff] %v391_v6  ;;  %v395_v8 = vld [vmem:[%s15466_s18 + $0x38] sm:$0xff]  ;;  %v397_v9 = vld [vmem:[%s15466_s18 + $0x40] sm:$0xff] }
  0xba   : > { %394 = vst [vmem:[%s15471_s29 + $0x30] sm:$0xff] %v393_v7  ;;  %396 = vst [vmem:[%s15471_s29 + $0x38] sm:$0xff] %v395_v8  ;;  %v399_v10 = vld [vmem:[%s15466_s18 + $0x130] sm:$0xff]  ;;  %v401_v11 = vld [vmem:[%s15466_s18 + $0x138] sm:$0xff] }
  0xbb   : > { %398 = vst [vmem:[%s15471_s29 + $0x40] sm:$0xff] %v397_v9  ;;  %v403_v12 = vld [vmem:[%s15466_s18 + $0x140] sm:$0xff]  ;;  %400 = vst [vmem:[%s15471_s29 + $0x4c] sm:$0xff] %v399_v10  ;;  %v405_v13 = vld [vmem:[%s15466_s18 + $0x148] sm:$0xff] }
  0xbc   : > { %402 = vst [vmem:[%s15471_s29 + $0x54] sm:$0xff] %v401_v11  ;;  %404 = vst [vmem:[%s15471_s29 + $0x5c] sm:$0xff] %v403_v12  ;;  %v407_v14 = vld [vmem:[%s15466_s18 + $0x150] sm:$0xff]  ;;  %v409_v15 = vld [vmem:[%s15466_s18 + $0x158] sm:$0xff] }
  0xbd   : > { %406 = vst [vmem:[%s15471_s29 + $0x64] sm:$0xff] %v405_v13  ;;  %408 = vst [vmem:[%s15471_s29 + $0x6c] sm:$0xff] %v407_v14  ;;  %v411_v16 = vld [vmem:[%s15466_s18 + $0x160] sm:$0xff]  ;;  %v413_v17 = vld [vmem:[%s15466_s18 + $0x168] sm:$0xff] }
  0xbe   : > { %410 = vst [vmem:[%s15471_s29 + $0x74] sm:$0xff] %v409_v15  ;;  %v415_v18 = vld [vmem:[%s15466_s18 + $0x170] sm:$0xff]  ;;  %412 = vst [vmem:[%s15471_s29 + $0x7c] sm:$0xff] %v411_v16  ;;  %v12513_v19 = vld [vmem:[%s15466_s18 + $0x48] sm:$0xf] }
  0xbf   : > { %414 = vst [vmem:[%s15471_s29 + $0x84] sm:$0xff] %v413_v17  ;;  %416 = vst [vmem:[%s15471_s29 + $0x8c] sm:$0xff] %v415_v18  ;;  %v12515_v20 = vld [vmem:[%s15466_s18 + $0x178] sm:$0xf] }
  0xc0   : > { %12514 = vst [vmem:[%s15471_s29 + $0x48] sm:$0xf] %v12513_v19  ;;  %12516 = vst [vmem:[%s15471_s29 + $0x94] sm:$0xf] %v12515_v20 }
  0xc1 PF: > { %s434_s2 = sand.u32 1, %s15182_s13   ;;  %s14093_s25 = smul.u32 155648, %s15190_s15 }
  0xc2   : > { %s14279_s30 = smul.u32 9728, %s434_s2  ;;  %s15519_s28 = scalar_lea.sflag [#allocation6], %s434_s2 }
  0xc3   : > { %s15515_s20 = scalar_lea.hbm %s16944_s1, %s14093_s25  ;;  %p16974_p0 = scmp.ne.s32.totalorder %s16964_s19, 0 }
  0xc4   : > { %s438_s8 = scalar_lea.vmem [#allocation5], %s14279_s30  ;;  %s15104_s27 = scalar_lea.hbm %s15515_s20, 155648 }
  0xc5   : > { %s446_s10 = sshll.u32 %s438_s8, 4  ;;  %p15105_p12 = scmp.ne.s32.totalorder %s15515_s20, %s15104_s27  ;;  %s15517_s10 = int_to_ptr.vmem [resolvable:$true] %s446_s10 }
  0xc6   : > { %s15108_s23 = scalar_lea.hbm %s16944_s1, 622592  ;;  %p15109_p8 = scmp.lt.u32.totalorder %s15515_s20, %s16944_s1 }
  0xc7   : > { %p15106_p5 = pnand %p15105_p12, %p16974_p0  ;;  %p15110_p10 = scmp.lt.u32.totalorder %s15108_s23, %s15104_s27 }
  0xc8   : > { %p15112_p4 = scmp.lt.u32.totalorder %s15104_s27, %s15515_s20 }
  0xc9   : > { %p15107_p3 = pneg %p15106_p5  ;;  %p15111_p2 = por %p15110_p10, %p15109_p8 }
  0xcb   : > { %p15113_p6 = por %p15112_p4, %p15111_p2 }
  0xcd   : > { %p15114_p7 = pnand %p15113_p6, %p15107_p3 }
  0xcf   : > { %15117 = shalt.err (!%p15114_p7)
}
  0xd0   : > { %s15118_s29 = scalar_lea.vmem %s15517_s10, 155648  ;;  %s15206_s2 = smov [#allocation5]  }
  0xd1   : > { %p15119_p9 = scmp.ne.s32.totalorder %s15517_s10, %s15118_s29  ;;  %s15122_s25 = sshll.u32 %s15206_s2, 4  ;;  %s15123_s25 = int_to_ptr.vmem [resolvable:$false] %s15122_s25 }
  0xd2   : > { %s15124_s30 = scalar_lea.vmem %s15123_s25, 311296  ;;  %p15125_p1 = scmp.lt.s32.totalorder %s15517_s10, %s15123_s25 }
  0xd3   : > { %p15120_p11 = pnand %p15119_p9, %p16974_p0  ;;  %p15126_p12 = scmp.lt.s32.totalorder %s15124_s30, %s15118_s29 }
  0xd5   : > { %p15121_p13 = pneg %p15120_p11  ;;  %p15127_p5 = por %p15126_p12, %p15125_p1 }
  0xd7   : > { %p15128_p8 = pnand %p15127_p5, %p15121_p13 }
  0xd9   : > { %15131 = shalt.err (!%p15128_p8)
}
  0xda   : > { %s15207_s11 = smov 512   ;;  %s15208_s26 = smov 32  }
  0xdb   : > { %14294 = dma.hbm_to_vmem [thread:$0]  (%p16974_p0), %s15515_s20, 155648, %s15517_s10, %s15519_s28, %s15207_s11, %s15207_s11, %s15208_s26  }
  0xdc PF: > { %p16975_p3 = scmp.ne.s32.totalorder %s16968_s24, 0 }
  0xdd   : > { %s461_s8 = sand.u32 (!%p16975_p3), 1, %s15178_s12   ;;  %p16976_p10 = scmp.ne.s32.totalorder (!%p16975_p3), %s16966_s22, 0 }
  0xde   : > { %458 = sbr.rel (%p16975_p3) target bundleno = 2581 (0xa15), region = 78  ;;  %s468_s23 = scalar_lea.sflag (!%p16975_p3), [#allocation6], %s461_s8 }
  0xdf   : > { %s14280_s27 = smul.u32 (!%p16975_p3), 152, %s461_s8 }
  0xe0   : > { %s14281_s4 = smul.u32 (!%p16975_p3), 9728, %s461_s8 }
  0xe1   : > { %s15546_s9 = scalar_lea.vmem (!%p16975_p3), [#allocation4], %s14280_s27 }
  0xe2   : > { %s15548_s17 = scalar_lea.vmem (!%p16975_p3), [#allocation5], %s14281_s4 }
  0xe5   : > { %15157 = dma.done.wait (%p16976_p10), %s468_s23, 155648  }
  0xe6   : > { %15159 = vsyncadd (%p16976_p10), %s468_s23, 4294811648  ;;  %p16977_p0 = scmp.ne.s32.totalorder %s16965_s21, 0 }
  0xe8   : > { %15161 = dma.done.wait (%p16977_p0), [#allocation8], 32896  }
  0xe9   : > { %15163 = vsyncadd (%p16977_p0), [#allocation8], 4294934400 }
  0xea   : > { %15165 = dma.done.wait (%p16977_p0), [#allocation11], 8256  }
  0xeb   : > { %15167 = vsyncadd (%p16977_p0), [#allocation11], 4294959040 }
  0xec   : > { %15169 = dma.done.wait (%p16977_p0), [#allocation14], 64  }
  0xed   : > { %15171 = vsyncadd (%p16977_p0), [#allocation14], 4294967232  ;;  %p12526_p2 = scmp.ne.s32.totalorder %s15186_s14, 0 }
  0xee   : > { %v15209_v21 = vmov (!%p12526_p2), 0.0  }
  0xef   : > { %547 = sbr.rel (%p12526_p2) target bundleno = 247 (0xf7), region = 114  ;;  %548 = vst [vmem:[#allocation2] sm:$0xff] (!%p12526_p2), %v15209_v21  ;;  %549 = vst [vmem:[#allocation2 + $0x8] sm:$0xff] (!%p12526_p2), %v15209_v21 }
  0xf0   : > { %550 = vst [vmem:[#allocation2 + $0x10] sm:$0xff] (!%p12526_p2), %v15209_v21  ;;  %551 = vst [vmem:[#allocation2 + $0x18] sm:$0xff] (!%p12526_p2), %v15209_v21 }
  0xf1   : > { %552 = vst [vmem:[#allocation2 + $0x20] sm:$0xff] (!%p12526_p2), %v15209_v21  ;;  %553 = vst [vmem:[#allocation2 + $0x28] sm:$0xff] (!%p12526_p2), %v15209_v21 }
  0xf2   : > { %554 = vst [vmem:[#allocation2 + $0x30] sm:$0xff] (!%p12526_p2), %v15209_v21  ;;  %555 = vst [vmem:[#allocation2 + $0x38] sm:$0xff] (!%p12526_p2), %v15209_v21 }
  0xf3   : > { %556 = vst [vmem:[#allocation2 + $0x40] sm:$0xff] (!%p12526_p2), %v15209_v21  ;;  %557 = vst [vmem:[#allocation2 + $0x48] sm:$0xff] (!%p12526_p2), %v15209_v21 }
  0xf4   : > { %558 = vst [vmem:[#allocation2 + $0x50] sm:$0xff] (!%p12526_p2), %v15209_v21  ;;  %559 = vst [vmem:[#allocation2 + $0x58] sm:$0xff] (!%p12526_p2), %v15209_v21 }
  0xf5   : > { %560 = vst [vmem:[#allocation2 + $0x60] sm:$0xff] (!%p12526_p2), %v15209_v21  ;;  %561 = vst [vmem:[#allocation2 + $0x68] sm:$0xff] (!%p12526_p2), %v15209_v21 }
  0xf6   : > { %562 = vst [vmem:[#allocation2 + $0x70] sm:$0xff] %v15209_v21  ;;  %563 = vst [vmem:[#allocation2 + $0x78] sm:$0xff] %v15209_v21 }
  0xf7 PF: > { %v600_v22 = vld [vmem:[%s15548_s17] sm:$0xff]  ;;  %v601_v24 = vld [vmem:[%s15548_s17 + $0x8] sm:$0xff]  ;;  %p13762_p4 = scmp.ne.s32.totalorder %s15186_s14, 3 }
  0xf8   : > { %v604_v23 = vld [vmem:[%s15548_s17 + $0x20] sm:$0xff]  ;;  %v605_v26 = vld [vmem:[%s15548_s17 + $0x28] sm:$0xff]  ;;  %s16978_s21 = sld [smem:[#allocation24_spill]] (!%p13762_p4) }
  0xf9   : > { %v12547_v25 = vcombine.high %v600_v22, %v604_v23  ;;  %v12546_v27 = vcombine.low %v600_v22, %v604_v23  ;;  %v608_v28 = vld [vmem:[%s15548_s17 + $0x40] sm:$0xff]  ;;  %v12549_v30 = vcombine.high %v601_v24, %v605_v26  ;;  %v12548_v31 = vcombine.low %v601_v24, %v605_v26  ;;  %v609_v33 = vld [vmem:[%s15548_s17 + $0x48] sm:$0xff] }
  0xfa   : > { %v612_v29 = vld [vmem:[%s15548_s17 + $0x60] sm:$0xff]  ;;  %v613_v34 = vld [vmem:[%s15548_s17 + $0x68] sm:$0xff] }
  0xfb   : > { %v12555_v32 = vcombine.high %v608_v28, %v612_v29  ;;  %v616_v35 = vld [vmem:[%s15548_s17 + $0x80] sm:$0xff]  ;;  %7992 = vmatprep.subr.bf16.mxu0 %v12547_v25  ;;  %v12557_v36 = vcombine.high %v609_v33, %v613_v34  ;;  %v617_v38 = vld [vmem:[%s15548_s17 + $0x88] sm:$0xff]  ;;  %8422 = vmatprep.subr.bf16.mxu1 %v12549_v30  ;;  %v12554_v40 = vcombine.low %v608_v28, %v612_v29 }
  0xfc   : > { %v620_v37 = vld [vmem:[%s15548_s17 + $0xa0] sm:$0xff]  ;;  %v621_v39 = vld [vmem:[%s15548_s17 + $0xa8] sm:$0xff]  ;;  %7993 = vmatpush1.bf16.msra.mxu0 %v12546_v27  ;;  %8423 = vmatpush1.bf16.msra.mxu1 %v12548_v31  ;;  %v12556_v41 = vcombine.low %v609_v33, %v613_v34 }
  0xfd   : > { %7994 = vmatprep.subr.bf16.mxu0 %v12555_v32  ;;  %v12563_v42 = vcombine.high %v616_v35, %v620_v37  ;;  %8424 = vmatprep.subr.bf16.mxu1 %v12557_v36  ;;  %v12565_v43 = vcombine.high %v617_v38, %v621_v39  ;;  %v624_v44 = vld [vmem:[%s15548_s17 + $0xc0] sm:$0xff]  ;;  %v625_v46 = vld [vmem:[%s15548_s17 + $0xc8] sm:$0xff]  ;;  %v12562_v48 = vcombine.low %v616_v35, %v620_v37 }
  0xfe   : > { %v628_v45 = vld [vmem:[%s15548_s17 + $0xe0] sm:$0xff]  ;;  %v629_v47 = vld [vmem:[%s15548_s17 + $0xe8] sm:$0xff]  ;;  %v12564_v49 = vcombine.low %v617_v38, %v621_v39 }
  0xff   : > { %v12571_v50 = vcombine.high %v624_v44, %v628_v45  ;;  %v12573_v51 = vcombine.high %v625_v46, %v629_v47  ;;  %v632_v52 = vld [vmem:[%s15548_s17 + $0x100] sm:$0xff]  ;;  %v633_v54 = vld [vmem:[%s15548_s17 + $0x108] sm:$0xff]  ;;  %v12570_v56 = vcombine.low %v624_v44, %v628_v45  ;;  %v12572_v57 = vcombine.low %v625_v46, %v629_v47 }
 0x100   : > { %7995 = vmatpush1.bf16.msra.mxu0 %v12554_v40  ;;  %8425 = vmatpush1.bf16.msra.mxu1 %v12556_v41  ;;  %v636_v53 = vld [vmem:[%s15548_s17 + $0x120] sm:$0xff]  ;;  %v637_v55 = vld [vmem:[%s15548_s17 + $0x128] sm:$0xff] }
 0x101   : > { %7996 = vmatprep.subr.bf16.mxu0 %v12563_v42  ;;  %8426 = vmatprep.subr.bf16.mxu1 %v12565_v43  ;;  %v12579_v58 = vcombine.high %v632_v52, %v636_v53  ;;  %v12581_v59 = vcombine.high %v633_v54, %v637_v55  ;;  %v640_v60 = vld [vmem:[%s15548_s17 + $0x140] sm:$0xff]  ;;  %v641_v62 = vld [vmem:[%s15548_s17 + $0x148] sm:$0xff]  ;;  %v12578_v0 = vcombine.low %v632_v52, %v636_v53 }
 0x102   : > { %v644_v61 = vld [vmem:[%s15548_s17 + $0x160] sm:$0xff]  ;;  %v645_v63 = vld [vmem:[%s15548_s17 + $0x168] sm:$0xff]  ;;  %v12580_v1 = vcombine.low %v633_v54, %v637_v55 }
 0x103   : > { %v12587_v2 = vcombine.high %v640_v60, %v644_v61  ;;  %v12589_v3 = vcombine.high %v641_v62, %v645_v63  ;;  %v648_v4 = vld [vmem:[%s15548_s17 + $0x180] sm:$0xff]  ;;  %v649_v6 = vld [vmem:[%s15548_s17 + $0x188] sm:$0xff]  ;;  %v12586_v8 = vcombine.low %v640_v60, %v644_v61  ;;  %v12588_v9 = vcombine.low %v641_v62, %v645_v63 }
 0x104   : > { %7997 = vmatpush1.bf16.msra.mxu0 %v12562_v48  ;;  %8427 = vmatpush1.bf16.msra.mxu1 %v12564_v49  ;;  %v652_v5 = vld [vmem:[%s15548_s17 + $0x1a0] sm:$0xff]  ;;  %v653_v7 = vld [vmem:[%s15548_s17 + $0x1a8] sm:$0xff] }
 0x105   : > { %7998 = vmatprep.subr.bf16.mxu0 %v12571_v50  ;;  %8428 = vmatprep.subr.bf16.mxu1 %v12573_v51  ;;  %v12595_v10 = vcombine.high %v648_v4, %v652_v5  ;;  %v12597_v11 = vcombine.high %v649_v6, %v653_v7  ;;  %v656_v12 = vld [vmem:[%s15548_s17 + $0x1c0] sm:$0xff]  ;;  %v657_v15 = vld [vmem:[%s15548_s17 + $0x1c8] sm:$0xff]  ;;  %v12594_v17 = vcombine.low %v648_v4, %v652_v5 }
 0x106   : > { %v660_v13 = vld [vmem:[%s15548_s17 + $0x1e0] sm:$0xff]  ;;  %v661_v16 = vld [vmem:[%s15548_s17 + $0x1e8] sm:$0xff]  ;;  %v12596_v18 = vcombine.low %v649_v6, %v653_v7 }
 0x107   : > { %v14401_v14 = vld [vmem:[%s15546_s9 + $0x4] ss:$76 sps:$4 sm:$0xff]   ;;  %v12603_v19 = vcombine.high %v656_v12, %v660_v13  ;;  %v12605_v20 = vcombine.high %v657_v15, %v661_v16  ;;  %v12602_v25 = vcombine.low %v656_v12, %v660_v13  ;;  %v12604_v26 = vcombine.low %v657_v15, %v661_v16 }
 0x108   : > { %7999 = vmatpush1.bf16.msra.mxu0 %v12570_v56  ;;  %8429 = vmatpush1.bf16.msra.mxu1 %v12572_v57  ;;  %v664_v21 = vld [vmem:[%s15548_s17 + $0x200] sm:$0xff]  ;;  %v665_v23 = vld [vmem:[%s15548_s17 + $0x208] sm:$0xff] }
 0x109   : > { %8000 = vmatprep.subr.bf16.mxu0 %v12579_v58  ;;  %8430 = vmatprep.subr.bf16.mxu1 %v12581_v59  ;;  %v668_v22 = vld [vmem:[%s15548_s17 + $0x220] sm:$0xff]  ;;  %v669_v24 = vld [vmem:[%s15548_s17 + $0x228] sm:$0xff] }
 0x10a   : > { %8024 = vmatprep.mubr.bf16.mxu0 %v14401_v14  ;;  %8454 = vmatprep.mubr.bf16.mxu1 %v14401_v14  ;;  %v12611_v27 = vcombine.high %v664_v21, %v668_v22  ;;  %v12613_v28 = vcombine.high %v665_v23, %v669_v24  ;;  %v672_v29 = vld [vmem:[%s15548_s17 + $0x240] sm:$0xff]  ;;  %v673_v31 = vld [vmem:[%s15548_s17 + $0x248] sm:$0xff]  ;;  %v12610_v33 = vcombine.low %v664_v21, %v668_v22 }
 0x10b   : > { %v676_v30 = vld [vmem:[%s15548_s17 + $0x260] sm:$0xff]  ;;  %v677_v32 = vld [vmem:[%s15548_s17 + $0x268] sm:$0xff]  ;;  %v12612_v34 = vcombine.low %v665_v23, %v669_v24 }
 0x10c   : > { %8001 = vmatpush1.bf16.msra.mxu0 %v12578_v0  ;;  %8431 = vmatpush1.bf16.msra.mxu1 %v12580_v1  ;;  %v12619_v35 = vcombine.high %v672_v29, %v676_v30  ;;  %v12621_v36 = vcombine.high %v673_v31, %v677_v32  ;;  %v680_v37 = vld [vmem:[%s15548_s17 + $0x280] sm:$0xff]  ;;  %v681_v39 = vld [vmem:[%s15548_s17 + $0x288] sm:$0xff]  ;;  %v12618_v41 = vcombine.low %v672_v29, %v676_v30 }
 0x10d   : > { %8002 = vmatprep.subr.bf16.mxu0 %v12587_v2  ;;  %8432 = vmatprep.subr.bf16.mxu1 %v12589_v3  ;;  %v684_v38 = vld [vmem:[%s15548_s17 + $0x2a0] sm:$0xff]  ;;  %v685_v40 = vld [vmem:[%s15548_s17 + $0x2a8] sm:$0xff]  ;;  %v12620_v42 = vcombine.low %v673_v31, %v677_v32 }
 0x10e   : > { %v12627_v43 = vcombine.high %v680_v37, %v684_v38  ;;  %v12629_v44 = vcombine.high %v681_v39, %v685_v40  ;;  %v688_v45 = vld [vmem:[%s15548_s17 + $0x2c0] sm:$0xff]  ;;  %v689_v47 = vld [vmem:[%s15548_s17 + $0x2c8] sm:$0xff]  ;;  %v12626_v49 = vcombine.low %v680_v37, %v684_v38  ;;  %v12628_v50 = vcombine.low %v681_v39, %v685_v40 }
 0x10f   : > { %v692_v46 = vld [vmem:[%s15548_s17 + $0x2e0] sm:$0xff]  ;;  %v693_v48 = vld [vmem:[%s15548_s17 + $0x2e8] sm:$0xff] }
 0x110   : > { %8003 = vmatpush1.bf16.msra.mxu0 %v12586_v8  ;;  %8433 = vmatpush1.bf16.msra.mxu1 %v12588_v9  ;;  %v12635_v51 = vcombine.high %v688_v45, %v692_v46  ;;  %v12637_v52 = vcombine.high %v689_v47, %v693_v48  ;;  %v696_v53 = vld [vmem:[%s15548_s17 + $0x300] sm:$0xff]  ;;  %v697_v55 = vld [vmem:[%s15548_s17 + $0x308] sm:$0xff]  ;;  %v12634_v57 = vcombine.low %v688_v45, %v692_v46 }
 0x111   : > { %8004 = vmatprep.subr.bf16.mxu0 %v12595_v10  ;;  %8434 = vmatprep.subr.bf16.mxu1 %v12597_v11  ;;  %v700_v54 = vld [vmem:[%s15548_s17 + $0x320] sm:$0xff]  ;;  %v701_v56 = vld [vmem:[%s15548_s17 + $0x328] sm:$0xff]  ;;  %v12636_v58 = vcombine.low %v689_v47, %v693_v48 }
 0x112   : > { %v12643_v59 = vcombine.high %v696_v53, %v700_v54  ;;  %v12645_v60 = vcombine.high %v697_v55, %v701_v56  ;;  %v704_v61 = vld [vmem:[%s15548_s17 + $0x340] sm:$0xff]  ;;  %v705_v63 = vld [vmem:[%s15548_s17 + $0x348] sm:$0xff]  ;;  %v12642_v1 = vcombine.low %v696_v53, %v700_v54  ;;  %v12644_v2 = vcombine.low %v697_v55, %v701_v56 }
 0x113   : > { %v708_v62 = vld [vmem:[%s15548_s17 + $0x360] sm:$0xff]  ;;  %v709_v0 = vld [vmem:[%s15548_s17 + $0x368] sm:$0xff] }
 0x114   : > { %8005 = vmatpush1.bf16.msra.mxu0 %v12594_v17  ;;  %8435 = vmatpush1.bf16.msra.mxu1 %v12596_v18  ;;  %v12651_v3 = vcombine.high %v704_v61, %v708_v62  ;;  %v12653_v4 = vcombine.high %v705_v63, %v709_v0  ;;  %v712_v5 = vld [vmem:[%s15548_s17 + $0x380] sm:$0xff]  ;;  %v713_v7 = vld [vmem:[%s15548_s17 + $0x388] sm:$0xff]  ;;  %v12650_v9 = vcombine.low %v704_v61, %v708_v62 }
 0x115   : > { %8006 = vmatprep.subr.bf16.mxu0 %v12603_v19  ;;  %8436 = vmatprep.subr.bf16.mxu1 %v12605_v20  ;;  %v716_v6 = vld [vmem:[%s15548_s17 + $0x3a0] sm:$0xff]  ;;  %v717_v8 = vld [vmem:[%s15548_s17 + $0x3a8] sm:$0xff]  ;;  %v12652_v10 = vcombine.low %v705_v63, %v709_v0 }
 0x116   : > { %v12659_v11 = vcombine.high %v712_v5, %v716_v6  ;;  %v12661_v12 = vcombine.high %v713_v7, %v717_v8  ;;  %v720_v13 = vld [vmem:[%s15548_s17 + $0x3c0] sm:$0xff]  ;;  %v721_v15 = vld [vmem:[%s15548_s17 + $0x3c8] sm:$0xff]  ;;  %v12658_v17 = vcombine.low %v712_v5, %v716_v6  ;;  %v12660_v18 = vcombine.low %v713_v7, %v717_v8 }
 0x117   : > { %v724_v14 = vld [vmem:[%s15548_s17 + $0x3e0] sm:$0xff]  ;;  %v725_v16 = vld [vmem:[%s15548_s17 + $0x3e8] sm:$0xff] }
 0x118   : > { %8007 = vmatpush1.bf16.msra.mxu0 %v12602_v25  ;;  %8437 = vmatpush1.bf16.msra.mxu1 %v12604_v26  ;;  %v12667_v19 = vcombine.high %v720_v13, %v724_v14  ;;  %v12669_v20 = vcombine.high %v721_v15, %v725_v16  ;;  %v728_v21 = vld [vmem:[%s15548_s17 + $0x400] sm:$0xff]  ;;  %v729_v23 = vld [vmem:[%s15548_s17 + $0x408] sm:$0xff]  ;;  %v12666_v25 = vcombine.low %v720_v13, %v724_v14 }
 0x119   : > { %8008 = vmatprep.subr.bf16.mxu0 %v12611_v27  ;;  %8438 = vmatprep.subr.bf16.mxu1 %v12613_v28  ;;  %v732_v22 = vld [vmem:[%s15548_s17 + $0x420] sm:$0xff]  ;;  %v733_v24 = vld [vmem:[%s15548_s17 + $0x428] sm:$0xff]  ;;  %v12668_v26 = vcombine.low %v721_v15, %v725_v16 }
 0x11a   : > { %v12675_v27 = vcombine.high %v728_v21, %v732_v22  ;;  %v12677_v28 = vcombine.high %v729_v23, %v733_v24  ;;  %v736_v29 = vld [vmem:[%s15548_s17 + $0x440] sm:$0xff]  ;;  %v14403_v31 = vld [vmem:[%s15546_s9] ss:$76 sps:$4 sm:$0xff]  }
 0x11b   : > { %v740_v30 = vld [vmem:[%s15548_s17 + $0x460] sm:$0xff]  ;;  %v737_v32 = vld [vmem:[%s15548_s17 + $0x448] sm:$0xff] }
 0x11c   : > { %8009 = vmatpush1.bf16.msra.mxu0 %v12610_v33  ;;  %8439 = vmatpush1.bf16.msra.mxu1 %v12612_v34  ;;  %v741_v33 = vld [vmem:[%s15548_s17 + $0x468] sm:$0xff]  ;;  %v12674_v34 = vcombine.low %v728_v21, %v732_v22  ;;  %v744_v37 = vld [vmem:[%s15548_s17 + $0x480] sm:$0xff] }
 0x11d   : > { %8010 = vmatprep.subr.bf16.mxu0 %v12619_v35  ;;  %8440 = vmatprep.subr.bf16.mxu1 %v12621_v36  ;;  %v12676_v35 = vcombine.low %v729_v23, %v733_v24  ;;  %v12683_v36 = vcombine.high %v736_v29, %v740_v30  ;;  %v12685_v38 = vcombine.high %v737_v32, %v741_v33  ;;  %v748_v39 = vld [vmem:[%s15548_s17 + $0x4a0] sm:$0xff]  ;;  %v761_v56 = vld [vmem:[%s15548_s17 + $0x508] sm:$0xff] }
 0x11e   : > { %v14404_v40 = vld [vmem:[%s15546_s9 + $0xc] ss:$76 sps:$4 sm:$0xff]   ;;  %v12691_v45 = vcombine.high %v744_v37, %v748_v39 }
 0x11f   : > { %v752_v46 = vld [vmem:[%s15548_s17 + $0x4c0] sm:$0xff] }
 0x120   : > { %8011 = vmatpush1.bf16.msra.mxu0 %v12618_v41  ;;  %8441 = vmatpush1.bf16.msra.mxu1 %v12620_v42  ;;  %v745_v41 = vld [vmem:[%s15548_s17 + $0x488] sm:$0xff]  ;;  %v756_v47 = vld [vmem:[%s15548_s17 + $0x4e0] sm:$0xff] }
 0x121   : > { %8012 = vmatprep.subr.bf16.mxu0 %v12627_v43  ;;  %8442 = vmatprep.subr.bf16.mxu1 %v12629_v44  ;;  %v749_v42 = vld [vmem:[%s15548_s17 + $0x4a8] sm:$0xff]  ;;  %v12682_v43 = vcombine.low %v736_v29, %v740_v30  ;;  %v12684_v44 = vcombine.low %v737_v32, %v741_v33  ;;  %v12699_v53 = vcombine.high %v752_v46, %v756_v47  ;;  %v760_v54 = vld [vmem:[%s15548_s17 + $0x500] sm:$0xff] }
 0x122   : > { %v12693_v48 = vcombine.high %v745_v41, %v749_v42  ;;  %v764_v55 = vld [vmem:[%s15548_s17 + $0x520] sm:$0xff]  ;;  %v801_v33 = vld [vmem:[%s15548_s17 + $0x648] sm:$0xff] }
 0x123   : > { %v12707_v61 = vcombine.high %v760_v54, %v764_v55  ;;  %v768_v63 = vld [vmem:[%s15548_s17 + $0x540] sm:$0xff] }
 0x124   : > { %8013 = vmatpush1.bf16.msra.mxu0 %v12626_v49  ;;  %8443 = vmatpush1.bf16.msra.mxu1 %v12628_v50  ;;  %v753_v49 = vld [vmem:[%s15548_s17 + $0x4c8] sm:$0xff]  ;;  %v772_v0 = vld [vmem:[%s15548_s17 + $0x560] sm:$0xff] }
 0x125   : > { %8014 = vmatprep.subr.bf16.mxu0 %v12635_v51  ;;  %8444 = vmatprep.subr.bf16.mxu1 %v12637_v52  ;;  %v757_v50 = vld [vmem:[%s15548_s17 + $0x4e8] sm:$0xff]  ;;  %v12690_v51 = vcombine.low %v744_v37, %v748_v39  ;;  %v12692_v52 = vcombine.low %v745_v41, %v749_v42  ;;  %v12715_v5 = vcombine.high %v768_v63, %v772_v0  ;;  %v776_v7 = vld [vmem:[%s15548_s17 + $0x580] sm:$0xff] }
 0x126   : > { %v780_v8 = vld [vmem:[%s15548_s17 + $0x5a0] sm:$0xff]  ;;  %v809_v41 = vld [vmem:[%s15548_s17 + $0x688] sm:$0xff] }
 0x127   : > { %v12723_v13 = vcombine.high %v776_v7, %v780_v8  ;;  %v784_v15 = vld [vmem:[%s15548_s17 + $0x5c0] sm:$0xff]  ;;  %v813_v42 = vld [vmem:[%s15548_s17 + $0x6a8] sm:$0xff] }
 0x128   : > { %8015 = vmatpush1.bf16.msra.mxu0 %v12634_v57  ;;  %8445 = vmatpush1.bf16.msra.mxu1 %v12636_v58  ;;  %v12701_v57 = vcombine.high %v753_v49, %v757_v50  ;;  %v765_v58 = vld [vmem:[%s15548_s17 + $0x528] sm:$0xff]  ;;  %v788_v16 = vld [vmem:[%s15548_s17 + $0x5e0] sm:$0xff] }
 0x129   : > { %8016 = vmatprep.subr.bf16.mxu0 %v12643_v59  ;;  %8446 = vmatprep.subr.bf16.mxu1 %v12645_v60  ;;  %v12698_v59 = vcombine.low %v752_v46, %v756_v47  ;;  %v12700_v60 = vcombine.low %v753_v49, %v757_v50  ;;  %v12709_v62 = vcombine.high %v761_v56, %v765_v58  ;;  %v792_v23 = vld [vmem:[%s15548_s17 + $0x600] sm:$0xff]  ;;  %v817_v49 = vld [vmem:[%s15548_s17 + $0x6c8] sm:$0xff] }
 0x12a   : > { %v12731_v21 = vcombine.high %v784_v15, %v788_v16  ;;  %v796_v24 = vld [vmem:[%s15548_s17 + $0x620] sm:$0xff]  ;;  %v12757_v46 = vcombine.high %v809_v41, %v813_v42  ;;  %v821_v50 = vld [vmem:[%s15548_s17 + $0x6e8] sm:$0xff] }
 0x12b   : > { %v12739_v29 = vcombine.high %v792_v23, %v796_v24  ;;  %v804_v32 = vld [vmem:[%s15548_s17 + $0x660] sm:$0xff] }
 0x12c   : > { %8017 = vmatpush1.bf16.msra.mxu0 %v12642_v1  ;;  %8447 = vmatpush1.bf16.msra.mxu1 %v12644_v2  ;;  %v769_v1 = vld [vmem:[%s15548_s17 + $0x548] sm:$0xff]  ;;  %v808_v39 = vld [vmem:[%s15548_s17 + $0x680] sm:$0xff] }
 0x12d   : > { %8018 = vmatprep.subr.bf16.mxu0 %v12651_v3  ;;  %8448 = vmatprep.subr.bf16.mxu1 %v12653_v4  ;;  %v773_v2 = vld [vmem:[%s15548_s17 + $0x568] sm:$0xff]  ;;  %v12706_v3 = vcombine.low %v760_v54, %v764_v55  ;;  %v12708_v4 = vcombine.low %v761_v56, %v765_v58  ;;  %v816_v47 = vld [vmem:[%s15548_s17 + $0x6c0] sm:$0xff]  ;;  %v12765_v54 = vcombine.high %v817_v49, %v821_v50 }
 0x12e   : > { %v12717_v6 = vcombine.high %v769_v1, %v773_v2  ;;  %v824_v55 = vld [vmem:[%s15548_s17 + $0x700] sm:$0xff]  ;;  %v829_v58 = vld [vmem:[%s15548_s17 + $0x728] sm:$0xff] }
 0x12f   : > { %v828_v56 = vld [vmem:[%s15548_s17 + $0x720] sm:$0xff] }
 0x130   : > { %8019 = vmatpush1.bf16.msra.mxu0 %v12650_v9  ;;  %8449 = vmatpush1.bf16.msra.mxu1 %v12652_v10  ;;  %v777_v9 = vld [vmem:[%s15548_s17 + $0x588] sm:$0xff] }
 0x131   : > { %8020 = vmatprep.subr.bf16.mxu0 %v12659_v11  ;;  %8450 = vmatprep.subr.bf16.mxu1 %v12661_v12  ;;  %v781_v10 = vld [vmem:[%s15548_s17 + $0x5a8] sm:$0xff]  ;;  %v12714_v11 = vcombine.low %v768_v63, %v772_v0  ;;  %v12716_v12 = vcombine.low %v769_v1, %v773_v2  ;;  %v832_v63 = vld [vmem:[%s15548_s17 + $0x740] sm:$0xff] }
 0x132   : > { %v12725_v14 = vcombine.high %v777_v9, %v781_v10  ;;  %v836_v0 = vld [vmem:[%s15548_s17 + $0x760] sm:$0xff]  ;;  %v833_v1 = vld [vmem:[%s15548_s17 + $0x748] sm:$0xff] }
 0x133   : > { %v837_v2 = vld [vmem:[%s15548_s17 + $0x768] sm:$0xff] }
 0x134   : > { %8021 = vmatpush1.bf16.msra.mxu0 %v12658_v17  ;;  %8451 = vmatpush1.bf16.msra.mxu1 %v12660_v18  ;;  %v785_v17 = vld [vmem:[%s15548_s17 + $0x5c8] sm:$0xff] }
 0x135   : > { %8022 = vmatprep.subr.bf16.mxu0 %v12667_v19  ;;  %8452 = vmatprep.subr.bf16.mxu1 %v12669_v20  ;;  %v789_v18 = vld [vmem:[%s15548_s17 + $0x5e8] sm:$0xff]  ;;  %v12722_v19 = vcombine.low %v776_v7, %v780_v8  ;;  %v12724_v20 = vcombine.low %v777_v9, %v781_v10  ;;  %v840_v7 = vld [vmem:[%s15548_s17 + $0x780] sm:$0xff] }
 0x136   : > { %v12733_v22 = vcombine.high %v785_v17, %v789_v18  ;;  %v844_v8 = vld [vmem:[%s15548_s17 + $0x7a0] sm:$0xff]  ;;  %v841_v9 = vld [vmem:[%s15548_s17 + $0x788] sm:$0xff] }
 0x137   : > { %v845_v10 = vld [vmem:[%s15548_s17 + $0x7a8] sm:$0xff] }
 0x138   : > { %8023 = vmatpush1.bf16.msra.mxu0 %v12666_v25  ;;  %8453 = vmatpush1.bf16.msra.mxu1 %v12668_v26  ;;  %v793_v25 = vld [vmem:[%s15548_s17 + $0x608] sm:$0xff] }
 0x139   : > { %8035 = vmatprep.subr.bf16.mxu0 %v12675_v27  ;;  %8465 = vmatprep.subr.bf16.mxu1 %v12677_v28  ;;  %v797_v26 = vld [vmem:[%s15548_s17 + $0x628] sm:$0xff]  ;;  %v12730_v27 = vcombine.low %v784_v15, %v788_v16  ;;  %v12732_v28 = vcombine.low %v785_v17, %v789_v18  ;;  %v848_v15 = vld [vmem:[%s15548_s17 + $0x7c0] sm:$0xff] }
 0x13a   : > { %v12741_v30 = vcombine.high %v793_v25, %v797_v26  ;;  %v852_v16 = vld [vmem:[%s15548_s17 + $0x7e0] sm:$0xff]  ;;  %v849_v17 = vld [vmem:[%s15548_s17 + $0x7c8] sm:$0xff] }
 0x13b   : > { %8025 = vmatmul.mubr.bf16.vlgmr.msra.gmra.mrb[0].mxu0 %v14403_v31  ;;  %8455 = vmatmul.mubr.bf16.vlgmr.msra.gmra.mrb[0].mxu1 %v14403_v31  ;;  %v800_v31 = vld [vmem:[%s15548_s17 + $0x640] sm:$0xff]  ;;  %v853_v18 = vld [vmem:[%s15548_s17 + $0x7e8] sm:$0xff] }
 0x13c   : > { %8036 = vmatpush1.bf16.msra.mxu0 %v12674_v34  ;;  %8466 = vmatpush1.bf16.msra.mxu1 %v12676_v35  ;;  %v805_v34 = vld [vmem:[%s15548_s17 + $0x668] sm:$0xff]  ;;  %v12738_v35 = vcombine.low %v792_v23, %v796_v24  ;;  %v12747_v37 = vcombine.high %v800_v31, %v804_v32  ;;  %v856_v23 = vld [vmem:[%s15548_s17 + $0x800] sm:$0xff] }
 0x13d   : > { %8037 = vmatprep.subr.bf16.mxu0 %v12683_v36  ;;  %8467 = vmatprep.subr.bf16.mxu1 %v12685_v38  ;;  %v12740_v36 = vcombine.low %v793_v25, %v797_v26  ;;  %v12749_v38 = vcombine.high %v801_v33, %v805_v34  ;;  %v860_v24 = vld [vmem:[%s15548_s17 + $0x820] sm:$0xff]  ;;  %v857_v25 = vld [vmem:[%s15548_s17 + $0x808] sm:$0xff] }
 0x13e   : > { %8067 = vmatprep.mubr.bf16.mxu0 %v14404_v40  ;;  %8497 = vmatprep.mubr.bf16.mxu1 %v14404_v40  ;;  %v812_v40 = vld [vmem:[%s15548_s17 + $0x6a0] sm:$0xff]  ;;  %v861_v26 = vld [vmem:[%s15548_s17 + $0x828] sm:$0xff] }
 0x140   : > { %8038 = vmatpush1.bf16.msra.mxu0 %v12682_v43  ;;  %8468 = vmatpush1.bf16.msra.mxu1 %v12684_v44  ;;  %v12746_v43 = vcombine.low %v800_v31, %v804_v32  ;;  %v12748_v44 = vcombine.low %v801_v33, %v805_v34  ;;  %v864_v31 = vld [vmem:[%s15548_s17 + $0x840] sm:$0xff]  ;;  %v865_v34 = vld [vmem:[%s15548_s17 + $0x848] sm:$0xff] }
 0x141   : > { %8039 = vmatprep.subr.bf16.mxu0 %v12691_v45  ;;  %8469 = vmatprep.subr.bf16.mxu1 %v12693_v48  ;;  %v12755_v45 = vcombine.high %v808_v39, %v812_v40  ;;  %v820_v48 = vld [vmem:[%s15548_s17 + $0x6e0] sm:$0xff] }
 0x142   : > { %v868_v32 = vld [vmem:[%s15548_s17 + $0x860] sm:$0xff] }
 0x143   : > { %v14406_v33 = vld [vmem:[%s15546_s9 + $0x8] ss:$76 sps:$4 sm:$0xff]  }
 0x144   : > { %8040 = vmatpush1.bf16.msra.mxu0 %v12690_v51  ;;  %8470 = vmatpush1.bf16.msra.mxu1 %v12692_v52  ;;  %v12754_v51 = vcombine.low %v808_v39, %v812_v40  ;;  %v12756_v52 = vcombine.low %v809_v41, %v813_v42  ;;  %v872_v40 = vld [vmem:[%s15548_s17 + $0x880] sm:$0xff] }
 0x145   : > { %8041 = vmatprep.subr.bf16.mxu0 %v12699_v53  ;;  %8471 = vmatprep.subr.bf16.mxu1 %v12701_v57  ;;  %v12763_v53 = vcombine.high %v816_v47, %v820_v48  ;;  %v825_v57 = vld [vmem:[%s15548_s17 + $0x708] sm:$0xff]  ;;  %v876_v41 = vld [vmem:[%s15548_s17 + $0x8a0] sm:$0xff] }
 0x146   : > { %v14407_v42 = vld [vmem:[%s15546_s9 + $0x14] ss:$76 sps:$4 sm:$0xff]  }
 0x148   : > { %8042 = vmatpush1.bf16.msra.mxu0 %v12698_v59  ;;  %8472 = vmatpush1.bf16.msra.mxu1 %v12700_v60  ;;  %v12762_v59 = vcombine.low %v816_v47, %v820_v48  ;;  %v12764_v60 = vcombine.low %v817_v49, %v821_v50  ;;  %v12819_v47 = vcombine.high %v872_v40, %v876_v41  ;;  %v880_v49 = vld [vmem:[%s15548_s17 + $0x8c0] sm:$0xff] }
 0x149   : > { %8043 = vmatprep.subr.bf16.mxu0 %v12707_v61  ;;  %8473 = vmatprep.subr.bf16.mxu1 %v12709_v62  ;;  %v12771_v61 = vcombine.high %v824_v55, %v828_v56  ;;  %v12773_v62 = vcombine.high %v825_v57, %v829_v58  ;;  %v884_v50 = vld [vmem:[%s15548_s17 + $0x8e0] sm:$0xff] }
 0x14c   : > { %8044 = vmatpush1.bf16.msra.mxu0 %v12706_v3  ;;  %8474 = vmatpush1.bf16.msra.mxu1 %v12708_v4  ;;  %v12770_v3 = vcombine.low %v824_v55, %v828_v56  ;;  %v12772_v4 = vcombine.low %v825_v57, %v829_v58  ;;  %v12827_v55 = vcombine.high %v880_v49, %v884_v50  ;;  %v888_v57 = vld [vmem:[%s15548_s17 + $0x900] sm:$0xff] }
 0x14d   : > { %8045 = vmatprep.subr.bf16.mxu0 %v12715_v5  ;;  %8475 = vmatprep.subr.bf16.mxu1 %v12717_v6  ;;  %v12779_v5 = vcombine.high %v832_v63, %v836_v0  ;;  %v12781_v6 = vcombine.high %v833_v1, %v837_v2  ;;  %v892_v58 = vld [vmem:[%s15548_s17 + $0x920] sm:$0xff] }
 0x150   : > { %8046 = vmatpush1.bf16.msra.mxu0 %v12714_v11  ;;  %8476 = vmatpush1.bf16.msra.mxu1 %v12716_v12  ;;  %v12778_v11 = vcombine.low %v832_v63, %v836_v0  ;;  %v12780_v12 = vcombine.low %v833_v1, %v837_v2  ;;  %v12835_v63 = vcombine.high %v888_v57, %v892_v58  ;;  %v896_v1 = vld [vmem:[%s15548_s17 + $0x940] sm:$0xff] }
 0x151   : > { %8047 = vmatprep.subr.bf16.mxu0 %v12723_v13  ;;  %8477 = vmatprep.subr.bf16.mxu1 %v12725_v14  ;;  %v12787_v13 = vcombine.high %v840_v7, %v844_v8  ;;  %v12789_v14 = vcombine.high %v841_v9, %v845_v10  ;;  %v900_v2 = vld [vmem:[%s15548_s17 + $0x960] sm:$0xff] }
 0x154   : > { %8048 = vmatpush1.bf16.msra.mxu0 %v12722_v19  ;;  %8478 = vmatpush1.bf16.msra.mxu1 %v12724_v20  ;;  %v12786_v19 = vcombine.low %v840_v7, %v844_v8  ;;  %v12788_v20 = vcombine.low %v841_v9, %v845_v10  ;;  %v12843_v7 = vcombine.high %v896_v1, %v900_v2  ;;  %v904_v9 = vld [vmem:[%s15548_s17 + $0x980] sm:$0xff] }
 0x155   : > { %8049 = vmatprep.subr.bf16.mxu0 %v12731_v21  ;;  %8479 = vmatprep.subr.bf16.mxu1 %v12733_v22  ;;  %v12795_v21 = vcombine.high %v848_v15, %v852_v16  ;;  %v12797_v22 = vcombine.high %v849_v17, %v853_v18  ;;  %v908_v10 = vld [vmem:[%s15548_s17 + $0x9a0] sm:$0xff] }
 0x158   : > { %8050 = vmatpush1.bf16.msra.mxu0 %v12730_v27  ;;  %8480 = vmatpush1.bf16.msra.mxu1 %v12732_v28  ;;  %v12794_v27 = vcombine.low %v848_v15, %v852_v16  ;;  %v12796_v28 = vcombine.low %v849_v17, %v853_v18  ;;  %v12851_v15 = vcombine.high %v904_v9, %v908_v10  ;;  %v912_v17 = vld [vmem:[%s15548_s17 + $0x9c0] sm:$0xff] }
 0x159   : > { %8051 = vmatprep.subr.bf16.mxu0 %v12739_v29  ;;  %8481 = vmatprep.subr.bf16.mxu1 %v12741_v30  ;;  %v12803_v29 = vcombine.high %v856_v23, %v860_v24  ;;  %v12805_v30 = vcombine.high %v857_v25, %v861_v26  ;;  %v916_v18 = vld [vmem:[%s15548_s17 + $0x9e0] sm:$0xff] }
 0x15c   : > { %8052 = vmatpush1.bf16.msra.mxu0 %v12738_v35  ;;  %8482 = vmatpush1.bf16.msra.mxu1 %v12740_v36  ;;  %v869_v35 = vld [vmem:[%s15548_s17 + $0x868] sm:$0xff]  ;;  %v12802_v36 = vcombine.low %v856_v23, %v860_v24  ;;  %v12859_v23 = vcombine.high %v912_v17, %v916_v18 }
 0x15d   : > { %8053 = vmatprep.subr.bf16.mxu0 %v12747_v37  ;;  %8483 = vmatprep.subr.bf16.mxu1 %v12749_v38  ;;  %v12804_v37 = vcombine.low %v857_v25, %v861_v26  ;;  %v12811_v38 = vcombine.high %v864_v31, %v868_v32  ;;  %v12813_v39 = vcombine.high %v865_v34, %v869_v35  ;;  %v920_v25 = vld [vmem:[%s15548_s17 + $0xa00] sm:$0xff] }
 0x15e   : > { %v924_v26 = vld [vmem:[%s15548_s17 + $0xa20] sm:$0xff] }
 0x160   : > { %8054 = vmatpush1.bf16.msra.mxu0 %v12746_v43  ;;  %8484 = vmatpush1.bf16.msra.mxu1 %v12748_v44  ;;  %v873_v43 = vld [vmem:[%s15548_s17 + $0x888] sm:$0xff] }
 0x161   : > { %8055 = vmatprep.subr.bf16.mxu0 %v12755_v45  ;;  %8485 = vmatprep.subr.bf16.mxu1 %v12757_v46  ;;  %v877_v44 = vld [vmem:[%s15548_s17 + $0x8a8] sm:$0xff]  ;;  %v12810_v45 = vcombine.low %v864_v31, %v868_v32  ;;  %v12812_v46 = vcombine.low %v865_v34, %v869_v35  ;;  %v12867_v31 = vcombine.high %v920_v25, %v924_v26  ;;  %v932_v34 = vld [vmem:[%s15548_s17 + $0xa60] sm:$0xff] }
 0x162   : > { %v12821_v48 = vcombine.high %v873_v43, %v877_v44  ;;  %v929_v35 = vld [vmem:[%s15548_s17 + $0xa48] sm:$0xff] }
 0x164   : > { %8056 = vmatpush1.bf16.msra.mxu0 %v12754_v51  ;;  %8486 = vmatpush1.bf16.msra.mxu1 %v12756_v52  ;;  %v881_v51 = vld [vmem:[%s15548_s17 + $0x8c8] sm:$0xff] }
 0x165   : > { %8057 = vmatprep.subr.bf16.mxu0 %v12763_v53  ;;  %8487 = vmatprep.subr.bf16.mxu1 %v12765_v54  ;;  %v885_v52 = vld [vmem:[%s15548_s17 + $0x8e8] sm:$0xff]  ;;  %v12818_v53 = vcombine.low %v872_v40, %v876_v41  ;;  %v12820_v54 = vcombine.low %v873_v43, %v877_v44  ;;  %v936_v41 = vld [vmem:[%s15548_s17 + $0xa80] sm:$0xff] }
 0x166   : > { %v12829_v56 = vcombine.high %v881_v51, %v885_v52  ;;  %v937_v43 = vld [vmem:[%s15548_s17 + $0xa88] sm:$0xff] }
 0x167   : > { %v941_v44 = vld [vmem:[%s15548_s17 + $0xaa8] sm:$0xff] }
 0x168   : > { %8058 = vmatpush1.bf16.msra.mxu0 %v12762_v59  ;;  %8488 = vmatpush1.bf16.msra.mxu1 %v12764_v60  ;;  %v889_v59 = vld [vmem:[%s15548_s17 + $0x908] sm:$0xff] }
 0x169   : > { %8059 = vmatprep.subr.bf16.mxu0 %v12771_v61  ;;  %8489 = vmatprep.subr.bf16.mxu1 %v12773_v62  ;;  %v893_v60 = vld [vmem:[%s15548_s17 + $0x928] sm:$0xff]  ;;  %v12826_v61 = vcombine.low %v880_v49, %v884_v50  ;;  %v12828_v62 = vcombine.low %v881_v51, %v885_v52  ;;  %v944_v49 = vld [vmem:[%s15548_s17 + $0xac0] sm:$0xff] }
 0x16a   : > { %v12837_v0 = vcombine.high %v889_v59, %v893_v60  ;;  %v948_v50 = vld [vmem:[%s15548_s17 + $0xae0] sm:$0xff]  ;;  %v945_v51 = vld [vmem:[%s15548_s17 + $0xac8] sm:$0xff] }
 0x16b   : > { %v949_v52 = vld [vmem:[%s15548_s17 + $0xae8] sm:$0xff] }
 0x16c   : > { %8060 = vmatpush1.bf16.msra.mxu0 %v12770_v3  ;;  %8490 = vmatpush1.bf16.msra.mxu1 %v12772_v4  ;;  %v897_v3 = vld [vmem:[%s15548_s17 + $0x948] sm:$0xff] }
 0x16d   : > { %8061 = vmatprep.subr.bf16.mxu0 %v12779_v5  ;;  %8491 = vmatprep.subr.bf16.mxu1 %v12781_v6  ;;  %v901_v4 = vld [vmem:[%s15548_s17 + $0x968] sm:$0xff]  ;;  %v12834_v5 = vcombine.low %v888_v57, %v892_v58  ;;  %v12836_v6 = vcombine.low %v889_v59, %v893_v60  ;;  %v952_v57 = vld [vmem:[%s15548_s17 + $0xb00] sm:$0xff] }
 0x16e   : > { %v12845_v8 = vcombine.high %v897_v3, %v901_v4  ;;  %v956_v58 = vld [vmem:[%s15548_s17 + $0xb20] sm:$0xff]  ;;  %v953_v59 = vld [vmem:[%s15548_s17 + $0xb08] sm:$0xff] }
 0x16f   : > { %v957_v60 = vld [vmem:[%s15548_s17 + $0xb28] sm:$0xff] }
 0x170   : > { %8062 = vmatpush1.bf16.msra.mxu0 %v12778_v11  ;;  %8492 = vmatpush1.bf16.msra.mxu1 %v12780_v12  ;;  %v905_v11 = vld [vmem:[%s15548_s17 + $0x988] sm:$0xff] }
 0x171   : > { %8063 = vmatprep.subr.bf16.mxu0 %v12787_v13  ;;  %8493 = vmatprep.subr.bf16.mxu1 %v12789_v14  ;;  %v909_v12 = vld [vmem:[%s15548_s17 + $0x9a8] sm:$0xff]  ;;  %v12842_v13 = vcombine.low %v896_v1, %v900_v2  ;;  %v12844_v14 = vcombine.low %v897_v3, %v901_v4  ;;  %v960_v1 = vld [vmem:[%s15548_s17 + $0xb40] sm:$0xff] }
 0x172   : > { %v12853_v16 = vcombine.high %v905_v11, %v909_v12  ;;  %v964_v2 = vld [vmem:[%s15548_s17 + $0xb60] sm:$0xff]  ;;  %v961_v3 = vld [vmem:[%s15548_s17 + $0xb48] sm:$0xff] }
 0x173   : > { %v965_v4 = vld [vmem:[%s15548_s17 + $0xb68] sm:$0xff] }
 0x174   : > { %8064 = vmatpush1.bf16.msra.mxu0 %v12786_v19  ;;  %8494 = vmatpush1.bf16.msra.mxu1 %v12788_v20  ;;  %v913_v19 = vld [vmem:[%s15548_s17 + $0x9c8] sm:$0xff] }
 0x175   : > { %8065 = vmatprep.subr.bf16.mxu0 %v12795_v21  ;;  %8495 = vmatprep.subr.bf16.mxu1 %v12797_v22  ;;  %v917_v20 = vld [vmem:[%s15548_s17 + $0x9e8] sm:$0xff]  ;;  %v12850_v21 = vcombine.low %v904_v9, %v908_v10  ;;  %v12852_v22 = vcombine.low %v905_v11, %v909_v12  ;;  %v968_v9 = vld [vmem:[%s15548_s17 + $0xb80] sm:$0xff] }
 0x176   : > { %v12861_v24 = vcombine.high %v913_v19, %v917_v20  ;;  %v972_v10 = vld [vmem:[%s15548_s17 + $0xba0] sm:$0xff]  ;;  %v969_v11 = vld [vmem:[%s15548_s17 + $0xb88] sm:$0xff] }
 0x177   : > { %v973_v12 = vld [vmem:[%s15548_s17 + $0xba8] sm:$0xff] }
 0x178   : > { %8066 = vmatpush1.bf16.msra.mxu0 %v12794_v27  ;;  %8496 = vmatpush1.bf16.msra.mxu1 %v12796_v28  ;;  %v921_v27 = vld [vmem:[%s15548_s17 + $0xa08] sm:$0xff] }
 0x179   : > { %8078 = vmatprep.subr.bf16.mxu0 %v12803_v29  ;;  %8508 = vmatprep.subr.bf16.mxu1 %v12805_v30  ;;  %v925_v28 = vld [vmem:[%s15548_s17 + $0xa28] sm:$0xff]  ;;  %v12858_v29 = vcombine.low %v912_v17, %v916_v18  ;;  %v12860_v30 = vcombine.low %v913_v19, %v917_v20  ;;  %v976_v17 = vld [vmem:[%s15548_s17 + $0xbc0] sm:$0xff] }
 0x17a   : > { %v12869_v32 = vcombine.high %v921_v27, %v925_v28  ;;  %v980_v18 = vld [vmem:[%s15548_s17 + $0xbe0] sm:$0xff]  ;;  %v977_v19 = vld [vmem:[%s15548_s17 + $0xbc8] sm:$0xff] }
 0x17b   : > { %8068 = vmatmul.mubr.bf16.vlgmr.msra.gmra.mrb[0].mxu0 %v14406_v33  ;;  %8498 = vmatmul.mubr.bf16.vlgmr.msra.gmra.mrb[0].mxu1 %v14406_v33  ;;  %v928_v33 = vld [vmem:[%s15548_s17 + $0xa40] sm:$0xff]  ;;  %v981_v20 = vld [vmem:[%s15548_s17 + $0xbe8] sm:$0xff] }
 0x17c   : > { %8079 = vmatpush1.bf16.msra.mxu0 %v12802_v36  ;;  %8509 = vmatpush1.bf16.msra.mxu1 %v12804_v37  ;;  %v933_v36 = vld [vmem:[%s15548_s17 + $0xa68] sm:$0xff]  ;;  %v12866_v37 = vcombine.low %v920_v25, %v924_v26  ;;  %v984_v25 = vld [vmem:[%s15548_s17 + $0xc00] sm:$0xff] }
 0x17d   : > { %8080 = vmatprep.subr.bf16.mxu0 %v12811_v38  ;;  %8510 = vmatprep.subr.bf16.mxu1 %v12813_v39  ;;  %v12868_v38 = vcombine.low %v921_v27, %v925_v28  ;;  %v12875_v39 = vcombine.high %v928_v33, %v932_v34  ;;  %v12877_v40 = vcombine.high %v929_v35, %v933_v36  ;;  %v988_v26 = vld [vmem:[%s15548_s17 + $0xc20] sm:$0xff]  ;;  %v985_v27 = vld [vmem:[%s15548_s17 + $0xc08] sm:$0xff] }
 0x17e   : > { %8110 = vmatprep.mubr.bf16.mxu0 %v14407_v42  ;;  %8540 = vmatprep.mubr.bf16.mxu1 %v14407_v42  ;;  %v940_v42 = vld [vmem:[%s15548_s17 + $0xaa0] sm:$0xff]  ;;  %v989_v28 = vld [vmem:[%s15548_s17 + $0xc28] sm:$0xff] }
 0x180   : > { %8081 = vmatpush1.bf16.msra.mxu0 %v12810_v45  ;;  %8511 = vmatpush1.bf16.msra.mxu1 %v12812_v46  ;;  %v12874_v45 = vcombine.low %v928_v33, %v932_v34  ;;  %v12876_v46 = vcombine.low %v929_v35, %v933_v36  ;;  %v992_v33 = vld [vmem:[%s15548_s17 + $0xc40] sm:$0xff]  ;;  %v993_v36 = vld [vmem:[%s15548_s17 + $0xc48] sm:$0xff] }
 0x181   : > { %8082 = vmatprep.subr.bf16.mxu0 %v12819_v47  ;;  %8512 = vmatprep.subr.bf16.mxu1 %v12821_v48  ;;  %v12883_v47 = vcombine.high %v936_v41, %v940_v42  ;;  %v12885_v48 = vcombine.high %v937_v43, %v941_v44  ;;  %v996_v34 = vld [vmem:[%s15548_s17 + $0xc60] sm:$0xff] }
 0x182   : > { %v14409_v35 = vld [vmem:[%s15546_s9 + $0x10] ss:$76 sps:$4 sm:$0xff]  }
 0x184   : > { %8083 = vmatpush1.bf16.msra.mxu0 %v12818_v53  ;;  %8513 = vmatpush1.bf16.msra.mxu1 %v12820_v54  ;;  %v12882_v53 = vcombine.low %v936_v41, %v940_v42  ;;  %v12884_v54 = vcombine.low %v937_v43, %v941_v44  ;;  %v1000_v42 = vld [vmem:[%s15548_s17 + $0xc80] sm:$0xff] }
 0x185   : > { %8084 = vmatprep.subr.bf16.mxu0 %v12827_v55  ;;  %8514 = vmatprep.subr.bf16.mxu1 %v12829_v56  ;;  %v12891_v55 = vcombine.high %v944_v49, %v948_v50  ;;  %v12893_v56 = vcombine.high %v945_v51, %v949_v52  ;;  %v1004_v43 = vld [vmem:[%s15548_s17 + $0xca0] sm:$0xff] }
 0x186   : > { %v14410_v44 = vld [vmem:[%s15546_s9 + $0x1c] ss:$76 sps:$4 sm:$0xff]  }
 0x188   : > { %8085 = vmatpush1.bf16.msra.mxu0 %v12826_v61  ;;  %8515 = vmatpush1.bf16.msra.mxu1 %v12828_v62  ;;  %v12890_v61 = vcombine.low %v944_v49, %v948_v50  ;;  %v12892_v62 = vcombine.low %v945_v51, %v949_v52  ;;  %v12947_v49 = vcombine.high %v1000_v42, %v1004_v43  ;;  %v1008_v51 = vld [vmem:[%s15548_s17 + $0xcc0] sm:$0xff] }
 0x189   : > { %8086 = vmatprep.subr.bf16.mxu0 %v12835_v63  ;;  %8516 = vmatprep.subr.bf16.mxu1 %v12837_v0  ;;  %v12899_v63 = vcombine.high %v952_v57, %v956_v58  ;;  %v12901_v0 = vcombine.high %v953_v59, %v957_v60  ;;  %v1012_v52 = vld [vmem:[%s15548_s17 + $0xce0] sm:$0xff] }
 0x18c   : > { %8087 = vmatpush1.bf16.msra.mxu0 %v12834_v5  ;;  %8517 = vmatpush1.bf16.msra.mxu1 %v12836_v6  ;;  %v12898_v5 = vcombine.low %v952_v57, %v956_v58  ;;  %v12900_v6 = vcombine.low %v953_v59, %v957_v60  ;;  %v12955_v57 = vcombine.high %v1008_v51, %v1012_v52  ;;  %v1016_v59 = vld [vmem:[%s15548_s17 + $0xd00] sm:$0xff] }
 0x18d   : > { %8088 = vmatprep.subr.bf16.mxu0 %v12843_v7  ;;  %8518 = vmatprep.subr.bf16.mxu1 %v12845_v8  ;;  %v12907_v7 = vcombine.high %v960_v1, %v964_v2  ;;  %v12909_v8 = vcombine.high %v961_v3, %v965_v4  ;;  %v1020_v60 = vld [vmem:[%s15548_s17 + $0xd20] sm:$0xff] }
 0x190   : > { %8089 = vmatpush1.bf16.msra.mxu0 %v12842_v13  ;;  %8519 = vmatpush1.bf16.msra.mxu1 %v12844_v14  ;;  %v12906_v13 = vcombine.low %v960_v1, %v964_v2  ;;  %v12908_v14 = vcombine.low %v961_v3, %v965_v4  ;;  %v12963_v1 = vcombine.high %v1016_v59, %v1020_v60  ;;  %v1024_v3 = vld [vmem:[%s15548_s17 + $0xd40] sm:$0xff] }
 0x191   : > { %8090 = vmatprep.subr.bf16.mxu0 %v12851_v15  ;;  %8520 = vmatprep.subr.bf16.mxu1 %v12853_v16  ;;  %v12915_v15 = vcombine.high %v968_v9, %v972_v10  ;;  %v12917_v16 = vcombine.high %v969_v11, %v973_v12  ;;  %v1028_v4 = vld [vmem:[%s15548_s17 + $0xd60] sm:$0xff] }
 0x194   : > { %8091 = vmatpush1.bf16.msra.mxu0 %v12850_v21  ;;  %8521 = vmatpush1.bf16.msra.mxu1 %v12852_v22  ;;  %v12914_v21 = vcombine.low %v968_v9, %v972_v10  ;;  %v12916_v22 = vcombine.low %v969_v11, %v973_v12  ;;  %v12971_v9 = vcombine.high %v1024_v3, %v1028_v4  ;;  %v1032_v11 = vld [vmem:[%s15548_s17 + $0xd80] sm:$0xff] }
 0x195   : > { %8092 = vmatprep.subr.bf16.mxu0 %v12859_v23  ;;  %8522 = vmatprep.subr.bf16.mxu1 %v12861_v24  ;;  %v12923_v23 = vcombine.high %v976_v17, %v980_v18  ;;  %v12925_v24 = vcombine.high %v977_v19, %v981_v20  ;;  %v1036_v12 = vld [vmem:[%s15548_s17 + $0xda0] sm:$0xff] }
 0x198   : > { %8093 = vmatpush1.bf16.msra.mxu0 %v12858_v29  ;;  %8523 = vmatpush1.bf16.msra.mxu1 %v12860_v30  ;;  %v12922_v29 = vcombine.low %v976_v17, %v980_v18  ;;  %v12924_v30 = vcombine.low %v977_v19, %v981_v20  ;;  %v12979_v17 = vcombine.high %v1032_v11, %v1036_v12  ;;  %v1040_v19 = vld [vmem:[%s15548_s17 + $0xdc0] sm:$0xff] }
 0x199   : > { %8094 = vmatprep.subr.bf16.mxu0 %v12867_v31  ;;  %8524 = vmatprep.subr.bf16.mxu1 %v12869_v32  ;;  %v12931_v31 = vcombine.high %v984_v25, %v988_v26  ;;  %v12933_v32 = vcombine.high %v985_v27, %v989_v28  ;;  %v1044_v20 = vld [vmem:[%s15548_s17 + $0xde0] sm:$0xff] }
 0x19c   : > { %8095 = vmatpush1.bf16.msra.mxu0 %v12866_v37  ;;  %8525 = vmatpush1.bf16.msra.mxu1 %v12868_v38  ;;  %v997_v37 = vld [vmem:[%s15548_s17 + $0xc68] sm:$0xff]  ;;  %v12930_v38 = vcombine.low %v984_v25, %v988_v26  ;;  %v12987_v25 = vcombine.high %v1040_v19, %v1044_v20 }
 0x19d   : > { %8096 = vmatprep.subr.bf16.mxu0 %v12875_v39  ;;  %8526 = vmatprep.subr.bf16.mxu1 %v12877_v40  ;;  %v12932_v39 = vcombine.low %v985_v27, %v989_v28  ;;  %v12939_v40 = vcombine.high %v992_v33, %v996_v34  ;;  %v12941_v41 = vcombine.high %v993_v36, %v997_v37  ;;  %v1048_v27 = vld [vmem:[%s15548_s17 + $0xe00] sm:$0xff] }
 0x19e   : > { %v1052_v28 = vld [vmem:[%s15548_s17 + $0xe20] sm:$0xff] }
 0x1a0   : > { %8097 = vmatpush1.bf16.msra.mxu0 %v12874_v45  ;;  %8527 = vmatpush1.bf16.msra.mxu1 %v12876_v46  ;;  %v1001_v45 = vld [vmem:[%s15548_s17 + $0xc88] sm:$0xff] }
 0x1a1   : > { %8098 = vmatprep.subr.bf16.mxu0 %v12883_v47  ;;  %8528 = vmatprep.subr.bf16.mxu1 %v12885_v48  ;;  %v1005_v46 = vld [vmem:[%s15548_s17 + $0xca8] sm:$0xff]  ;;  %v12938_v47 = vcombine.low %v992_v33, %v996_v34  ;;  %v12940_v48 = vcombine.low %v993_v36, %v997_v37  ;;  %v12995_v33 = vcombine.high %v1048_v27, %v1052_v28  ;;  %v1060_v36 = vld [vmem:[%s15548_s17 + $0xe60] sm:$0xff] }
 0x1a2   : > { %v12949_v50 = vcombine.high %v1001_v45, %v1005_v46  ;;  %v1057_v37 = vld [vmem:[%s15548_s17 + $0xe48] sm:$0xff] }
 0x1a4   : > { %8099 = vmatpush1.bf16.msra.mxu0 %v12882_v53  ;;  %8529 = vmatpush1.bf16.msra.mxu1 %v12884_v54  ;;  %v1009_v53 = vld [vmem:[%s15548_s17 + $0xcc8] sm:$0xff] }
 0x1a5   : > { %8100 = vmatprep.subr.bf16.mxu0 %v12891_v55  ;;  %8530 = vmatprep.subr.bf16.mxu1 %v12893_v56  ;;  %v1013_v54 = vld [vmem:[%s15548_s17 + $0xce8] sm:$0xff]  ;;  %v12946_v55 = vcombine.low %v1000_v42, %v1004_v43  ;;  %v12948_v56 = vcombine.low %v1001_v45, %v1005_v46  ;;  %v1064_v43 = vld [vmem:[%s15548_s17 + $0xe80] sm:$0xff] }
 0x1a6   : > { %v12957_v58 = vcombine.high %v1009_v53, %v1013_v54  ;;  %v1065_v45 = vld [vmem:[%s15548_s17 + $0xe88] sm:$0xff] }
 0x1a7   : > { %v1069_v46 = vld [vmem:[%s15548_s17 + $0xea8] sm:$0xff] }
 0x1a8   : > { %8101 = vmatpush1.bf16.msra.mxu0 %v12890_v61  ;;  %8531 = vmatpush1.bf16.msra.mxu1 %v12892_v62  ;;  %v1017_v61 = vld [vmem:[%s15548_s17 + $0xd08] sm:$0xff] }
 0x1a9   : > { %8102 = vmatprep.subr.bf16.mxu0 %v12899_v63  ;;  %8532 = vmatprep.subr.bf16.mxu1 %v12901_v0  ;;  %v1021_v62 = vld [vmem:[%s15548_s17 + $0xd28] sm:$0xff]  ;;  %v12954_v63 = vcombine.low %v1008_v51, %v1012_v52  ;;  %v12956_v0 = vcombine.low %v1009_v53, %v1013_v54  ;;  %v1072_v51 = vld [vmem:[%s15548_s17 + $0xec0] sm:$0xff] }
 0x1aa   : > { %v12965_v2 = vcombine.high %v1017_v61, %v1021_v62  ;;  %v1076_v52 = vld [vmem:[%s15548_s17 + $0xee0] sm:$0xff]  ;;  %v1073_v53 = vld [vmem:[%s15548_s17 + $0xec8] sm:$0xff] }
 0x1ab   : > { %v1077_v54 = vld [vmem:[%s15548_s17 + $0xee8] sm:$0xff] }
 0x1ac   : > { %8103 = vmatpush1.bf16.msra.mxu0 %v12898_v5  ;;  %8533 = vmatpush1.bf16.msra.mxu1 %v12900_v6  ;;  %v1025_v5 = vld [vmem:[%s15548_s17 + $0xd48] sm:$0xff] }
 0x1ad   : > { %8104 = vmatprep.subr.bf16.mxu0 %v12907_v7  ;;  %8534 = vmatprep.subr.bf16.mxu1 %v12909_v8  ;;  %v1029_v6 = vld [vmem:[%s15548_s17 + $0xd68] sm:$0xff]  ;;  %v12962_v7 = vcombine.low %v1016_v59, %v1020_v60  ;;  %v12964_v8 = vcombine.low %v1017_v61, %v1021_v62  ;;  %v1080_v59 = vld [vmem:[%s15548_s17 + $0xf00] sm:$0xff] }
 0x1ae   : > { %v12973_v10 = vcombine.high %v1025_v5, %v1029_v6  ;;  %v1084_v60 = vld [vmem:[%s15548_s17 + $0xf20] sm:$0xff]  ;;  %v1081_v61 = vld [vmem:[%s15548_s17 + $0xf08] sm:$0xff] }
 0x1af   : > { %v1085_v62 = vld [vmem:[%s15548_s17 + $0xf28] sm:$0xff] }
 0x1b0   : > { %8105 = vmatpush1.bf16.msra.mxu0 %v12906_v13  ;;  %8535 = vmatpush1.bf16.msra.mxu1 %v12908_v14  ;;  %v1033_v13 = vld [vmem:[%s15548_s17 + $0xd88] sm:$0xff] }
 0x1b1   : > { %8106 = vmatprep.subr.bf16.mxu0 %v12915_v15  ;;  %8536 = vmatprep.subr.bf16.mxu1 %v12917_v16  ;;  %v1037_v14 = vld [vmem:[%s15548_s17 + $0xda8] sm:$0xff]  ;;  %v12970_v15 = vcombine.low %v1024_v3, %v1028_v4  ;;  %v12972_v16 = vcombine.low %v1025_v5, %v1029_v6  ;;  %v1088_v3 = vld [vmem:[%s15548_s17 + $0xf40] sm:$0xff] }
 0x1b2   : > { %v12981_v18 = vcombine.high %v1033_v13, %v1037_v14  ;;  %v1092_v4 = vld [vmem:[%s15548_s17 + $0xf60] sm:$0xff]  ;;  %v1089_v5 = vld [vmem:[%s15548_s17 + $0xf48] sm:$0xff] }
 0x1b3   : > { %v1093_v6 = vld [vmem:[%s15548_s17 + $0xf68] sm:$0xff] }
 0x1b4   : > { %8107 = vmatpush1.bf16.msra.mxu0 %v12914_v21  ;;  %8537 = vmatpush1.bf16.msra.mxu1 %v12916_v22  ;;  %v1041_v21 = vld [vmem:[%s15548_s17 + $0xdc8] sm:$0xff] }
 0x1b5   : > { %8108 = vmatprep.subr.bf16.mxu0 %v12923_v23  ;;  %8538 = vmatprep.subr.bf16.mxu1 %v12925_v24  ;;  %v1045_v22 = vld [vmem:[%s15548_s17 + $0xde8] sm:$0xff]  ;;  %v12978_v23 = vcombine.low %v1032_v11, %v1036_v12  ;;  %v12980_v24 = vcombine.low %v1033_v13, %v1037_v14  ;;  %v1096_v11 = vld [vmem:[%s15548_s17 + $0xf80] sm:$0xff] }
 0x1b6   : > { %v12989_v26 = vcombine.high %v1041_v21, %v1045_v22  ;;  %v1100_v12 = vld [vmem:[%s15548_s17 + $0xfa0] sm:$0xff]  ;;  %v1097_v13 = vld [vmem:[%s15548_s17 + $0xf88] sm:$0xff] }
 0x1b7   : > { %v1101_v14 = vld [vmem:[%s15548_s17 + $0xfa8] sm:$0xff] }
 0x1b8   : > { %8109 = vmatpush1.bf16.msra.mxu0 %v12922_v29  ;;  %8539 = vmatpush1.bf16.msra.mxu1 %v12924_v30  ;;  %v1049_v29 = vld [vmem:[%s15548_s17 + $0xe08] sm:$0xff] }
 0x1b9   : > { %8121 = vmatprep.subr.bf16.mxu0 %v12931_v31  ;;  %8551 = vmatprep.subr.bf16.mxu1 %v12933_v32  ;;  %v1053_v30 = vld [vmem:[%s15548_s17 + $0xe28] sm:$0xff]  ;;  %v12986_v31 = vcombine.low %v1040_v19, %v1044_v20  ;;  %v12988_v32 = vcombine.low %v1041_v21, %v1045_v22  ;;  %v1104_v19 = vld [vmem:[%s15548_s17 + $0xfc0] sm:$0xff] }
 0x1ba   : > { %v12997_v34 = vcombine.high %v1049_v29, %v1053_v30  ;;  %v1108_v20 = vld [vmem:[%s15548_s17 + $0xfe0] sm:$0xff]  ;;  %v1105_v21 = vld [vmem:[%s15548_s17 + $0xfc8] sm:$0xff] }
 0x1bb   : > { %8111 = vmatmul.mubr.bf16.vlgmr.msra.gmra.mrb[0].mxu0 %v14409_v35  ;;  %8541 = vmatmul.mubr.bf16.vlgmr.msra.gmra.mrb[0].mxu1 %v14409_v35  ;;  %v1056_v35 = vld [vmem:[%s15548_s17 + $0xe40] sm:$0xff]  ;;  %v1109_v22 = vld [vmem:[%s15548_s17 + $0xfe8] sm:$0xff] }
 0x1bc   : > { %8122 = vmatpush1.bf16.msra.mxu0 %v12930_v38  ;;  %8552 = vmatpush1.bf16.msra.mxu1 %v12932_v39  ;;  %v1061_v38 = vld [vmem:[%s15548_s17 + $0xe68] sm:$0xff]  ;;  %v12994_v39 = vcombine.low %v1048_v27, %v1052_v28  ;;  %v1112_v27 = vld [vmem:[%s15548_s17 + $0x1000] sm:$0xff] }
 0x1bd   : > { %8123 = vmatprep.subr.bf16.mxu0 %v12939_v40  ;;  %8553 = vmatprep.subr.bf16.mxu1 %v12941_v41  ;;  %v12996_v40 = vcombine.low %v1049_v29, %v1053_v30  ;;  %v13003_v41 = vcombine.high %v1056_v35, %v1060_v36  ;;  %v13005_v42 = vcombine.high %v1057_v37, %v1061_v38  ;;  %v1116_v28 = vld [vmem:[%s15548_s17 + $0x1020] sm:$0xff]  ;;  %v1113_v29 = vld [vmem:[%s15548_s17 + $0x1008] sm:$0xff] }
 0x1be   : > { %8153 = vmatprep.mubr.bf16.mxu0 %v14410_v44  ;;  %8583 = vmatprep.mubr.bf16.mxu1 %v14410_v44  ;;  %v1068_v44 = vld [vmem:[%s15548_s17 + $0xea0] sm:$0xff]  ;;  %v1117_v30 = vld [vmem:[%s15548_s17 + $0x1028] sm:$0xff] }
 0x1c0   : > { %8124 = vmatpush1.bf16.msra.mxu0 %v12938_v47  ;;  %8554 = vmatpush1.bf16.msra.mxu1 %v12940_v48  ;;  %v13002_v47 = vcombine.low %v1056_v35, %v1060_v36  ;;  %v13004_v48 = vcombine.low %v1057_v37, %v1061_v38  ;;  %v1120_v35 = vld [vmem:[%s15548_s17 + $0x1040] sm:$0xff]  ;;  %v1121_v38 = vld [vmem:[%s15548_s17 + $0x1048] sm:$0xff] }
 0x1c1   : > { %8125 = vmatprep.subr.bf16.mxu0 %v12947_v49  ;;  %8555 = vmatprep.subr.bf16.mxu1 %v12949_v50  ;;  %v13011_v49 = vcombine.high %v1064_v43, %v1068_v44  ;;  %v13013_v50 = vcombine.high %v1065_v45, %v1069_v46  ;;  %v1124_v36 = vld [vmem:[%s15548_s17 + $0x1060] sm:$0xff] }
 0x1c2   : > { %v14412_v37 = vld [vmem:[%s15546_s9 + $0x18] ss:$76 sps:$4 sm:$0xff]  }
 0x1c4   : > { %8126 = vmatpush1.bf16.msra.mxu0 %v12946_v55  ;;  %8556 = vmatpush1.bf16.msra.mxu1 %v12948_v56  ;;  %v13010_v55 = vcombine.low %v1064_v43, %v1068_v44  ;;  %v13012_v56 = vcombine.low %v1065_v45, %v1069_v46  ;;  %v1128_v44 = vld [vmem:[%s15548_s17 + $0x1080] sm:$0xff] }
 0x1c5   : > { %8127 = vmatprep.subr.bf16.mxu0 %v12955_v57  ;;  %8557 = vmatprep.subr.bf16.mxu1 %v12957_v58  ;;  %v13019_v57 = vcombine.high %v1072_v51, %v1076_v52  ;;  %v13021_v58 = vcombine.high %v1073_v53, %v1077_v54  ;;  %v1132_v45 = vld [vmem:[%s15548_s17 + $0x10a0] sm:$0xff] }
 0x1c6   : > { %v14413_v46 = vld [vmem:[%s15546_s9 + $0x24] ss:$76 sps:$4 sm:$0xff]  }
 0x1c8   : > { %8128 = vmatpush1.bf16.msra.mxu0 %v12954_v63  ;;  %8558 = vmatpush1.bf16.msra.mxu1 %v12956_v0  ;;  %v13018_v63 = vcombine.low %v1072_v51, %v1076_v52  ;;  %v13020_v0 = vcombine.low %v1073_v53, %v1077_v54  ;;  %v13075_v51 = vcombine.high %v1128_v44, %v1132_v45  ;;  %v1136_v53 = vld [vmem:[%s15548_s17 + $0x10c0] sm:$0xff] }
 0x1c9   : > { %8129 = vmatprep.subr.bf16.mxu0 %v12963_v1  ;;  %8559 = vmatprep.subr.bf16.mxu1 %v12965_v2  ;;  %v13027_v1 = vcombine.high %v1080_v59, %v1084_v60  ;;  %v13029_v2 = vcombine.high %v1081_v61, %v1085_v62  ;;  %v1140_v54 = vld [vmem:[%s15548_s17 + $0x10e0] sm:$0xff] }
 0x1cc   : > { %8130 = vmatpush1.bf16.msra.mxu0 %v12962_v7  ;;  %8560 = vmatpush1.bf16.msra.mxu1 %v12964_v8  ;;  %v13026_v7 = vcombine.low %v1080_v59, %v1084_v60  ;;  %v13028_v8 = vcombine.low %v1081_v61, %v1085_v62  ;;  %v13083_v59 = vcombine.high %v1136_v53, %v1140_v54  ;;  %v1144_v61 = vld [vmem:[%s15548_s17 + $0x1100] sm:$0xff] }
 0x1cd   : > { %8131 = vmatprep.subr.bf16.mxu0 %v12971_v9  ;;  %8561 = vmatprep.subr.bf16.mxu1 %v12973_v10  ;;  %v13035_v9 = vcombine.high %v1088_v3, %v1092_v4  ;;  %v13037_v10 = vcombine.high %v1089_v5, %v1093_v6  ;;  %v1148_v62 = vld [vmem:[%s15548_s17 + $0x1120] sm:$0xff] }
 0x1d0   : > { %8132 = vmatpush1.bf16.msra.mxu0 %v12970_v15  ;;  %8562 = vmatpush1.bf16.msra.mxu1 %v12972_v16  ;;  %v13034_v15 = vcombine.low %v1088_v3, %v1092_v4  ;;  %v13036_v16 = vcombine.low %v1089_v5, %v1093_v6  ;;  %v13091_v3 = vcombine.high %v1144_v61, %v1148_v62  ;;  %v1152_v5 = vld [vmem:[%s15548_s17 + $0x1140] sm:$0xff] }
 0x1d1   : > { %8133 = vmatprep.subr.bf16.mxu0 %v12979_v17  ;;  %8563 = vmatprep.subr.bf16.mxu1 %v12981_v18  ;;  %v13043_v17 = vcombine.high %v1096_v11, %v1100_v12  ;;  %v13045_v18 = vcombine.high %v1097_v13, %v1101_v14  ;;  %v1156_v6 = vld [vmem:[%s15548_s17 + $0x1160] sm:$0xff] }
 0x1d4   : > { %8134 = vmatpush1.bf16.msra.mxu0 %v12978_v23  ;;  %8564 = vmatpush1.bf16.msra.mxu1 %v12980_v24  ;;  %v13042_v23 = vcombine.low %v1096_v11, %v1100_v12  ;;  %v13044_v24 = vcombine.low %v1097_v13, %v1101_v14  ;;  %v13099_v11 = vcombine.high %v1152_v5, %v1156_v6  ;;  %v1160_v13 = vld [vmem:[%s15548_s17 + $0x1180] sm:$0xff] }
 0x1d5   : > { %8135 = vmatprep.subr.bf16.mxu0 %v12987_v25  ;;  %8565 = vmatprep.subr.bf16.mxu1 %v12989_v26  ;;  %v13051_v25 = vcombine.high %v1104_v19, %v1108_v20  ;;  %v13053_v26 = vcombine.high %v1105_v21, %v1109_v22  ;;  %v1164_v14 = vld [vmem:[%s15548_s17 + $0x11a0] sm:$0xff] }
 0x1d8   : > { %8136 = vmatpush1.bf16.msra.mxu0 %v12986_v31  ;;  %8566 = vmatpush1.bf16.msra.mxu1 %v12988_v32  ;;  %v13050_v31 = vcombine.low %v1104_v19, %v1108_v20  ;;  %v13052_v32 = vcombine.low %v1105_v21, %v1109_v22  ;;  %v13107_v19 = vcombine.high %v1160_v13, %v1164_v14  ;;  %v1168_v21 = vld [vmem:[%s15548_s17 + $0x11c0] sm:$0xff] }
 0x1d9   : > { %8137 = vmatprep.subr.bf16.mxu0 %v12995_v33  ;;  %8567 = vmatprep.subr.bf16.mxu1 %v12997_v34  ;;  %v13059_v33 = vcombine.high %v1112_v27, %v1116_v28  ;;  %v13061_v34 = vcombine.high %v1113_v29, %v1117_v30  ;;  %v1172_v22 = vld [vmem:[%s15548_s17 + $0x11e0] sm:$0xff] }
 0x1dc   : > { %8138 = vmatpush1.bf16.msra.mxu0 %v12994_v39  ;;  %8568 = vmatpush1.bf16.msra.mxu1 %v12996_v40  ;;  %v1125_v39 = vld [vmem:[%s15548_s17 + $0x1068] sm:$0xff]  ;;  %v13058_v40 = vcombine.low %v1112_v27, %v1116_v28  ;;  %v13115_v27 = vcombine.high %v1168_v21, %v1172_v22 }
 0x1dd   : > { %8139 = vmatprep.subr.bf16.mxu0 %v13003_v41  ;;  %8569 = vmatprep.subr.bf16.mxu1 %v13005_v42  ;;  %v13060_v41 = vcombine.low %v1113_v29, %v1117_v30  ;;  %v13067_v42 = vcombine.high %v1120_v35, %v1124_v36  ;;  %v13069_v43 = vcombine.high %v1121_v38, %v1125_v39  ;;  %v1176_v29 = vld [vmem:[%s15548_s17 + $0x1200] sm:$0xff] }
 0x1de   : > { %v1180_v30 = vld [vmem:[%s15548_s17 + $0x1220] sm:$0xff] }
 0x1e0   : > { %8140 = vmatpush1.bf16.msra.mxu0 %v13002_v47  ;;  %8570 = vmatpush1.bf16.msra.mxu1 %v13004_v48  ;;  %v1129_v47 = vld [vmem:[%s15548_s17 + $0x1088] sm:$0xff] }
 0x1e1   : > { %8141 = vmatprep.subr.bf16.mxu0 %v13011_v49  ;;  %8571 = vmatprep.subr.bf16.mxu1 %v13013_v50  ;;  %v1133_v48 = vld [vmem:[%s15548_s17 + $0x10a8] sm:$0xff]  ;;  %v13066_v49 = vcombine.low %v1120_v35, %v1124_v36  ;;  %v13068_v50 = vcombine.low %v1121_v38, %v1125_v39  ;;  %v13123_v35 = vcombine.high %v1176_v29, %v1180_v30  ;;  %v1188_v38 = vld [vmem:[%s15548_s17 + $0x1260] sm:$0xff] }
 0x1e2   : > { %v13077_v52 = vcombine.high %v1129_v47, %v1133_v48  ;;  %v1185_v39 = vld [vmem:[%s15548_s17 + $0x1248] sm:$0xff] }
 0x1e4   : > { %8142 = vmatpush1.bf16.msra.mxu0 %v13010_v55  ;;  %8572 = vmatpush1.bf16.msra.mxu1 %v13012_v56  ;;  %v1137_v55 = vld [vmem:[%s15548_s17 + $0x10c8] sm:$0xff] }
 0x1e5   : > { %8143 = vmatprep.subr.bf16.mxu0 %v13019_v57  ;;  %8573 = vmatprep.subr.bf16.mxu1 %v13021_v58  ;;  %v1141_v56 = vld [vmem:[%s15548_s17 + $0x10e8] sm:$0xff]  ;;  %v13074_v57 = vcombine.low %v1128_v44, %v1132_v45  ;;  %v13076_v58 = vcombine.low %v1129_v47, %v1133_v48  ;;  %v1192_v45 = vld [vmem:[%s15548_s17 + $0x1280] sm:$0xff] }
 0x1e6   : > { %v13085_v60 = vcombine.high %v1137_v55, %v1141_v56  ;;  %v1193_v47 = vld [vmem:[%s15548_s17 + $0x1288] sm:$0xff] }
 0x1e7   : > { %v1197_v48 = vld [vmem:[%s15548_s17 + $0x12a8] sm:$0xff] }
 0x1e8   : > { %8144 = vmatpush1.bf16.msra.mxu0 %v13018_v63  ;;  %8574 = vmatpush1.bf16.msra.mxu1 %v13020_v0  ;;  %v1145_v63 = vld [vmem:[%s15548_s17 + $0x1108] sm:$0xff] }
 0x1e9   : > { %8145 = vmatprep.subr.bf16.mxu0 %v13027_v1  ;;  %8575 = vmatprep.subr.bf16.mxu1 %v13029_v2  ;;  %v1149_v0 = vld [vmem:[%s15548_s17 + $0x1128] sm:$0xff]  ;;  %v13082_v1 = vcombine.low %v1136_v53, %v1140_v54  ;;  %v13084_v2 = vcombine.low %v1137_v55, %v1141_v56  ;;  %v1200_v53 = vld [vmem:[%s15548_s17 + $0x12c0] sm:$0xff] }
 0x1ea   : > { %v13093_v4 = vcombine.high %v1145_v63, %v1149_v0  ;;  %v1204_v54 = vld [vmem:[%s15548_s17 + $0x12e0] sm:$0xff]  ;;  %v1201_v55 = vld [vmem:[%s15548_s17 + $0x12c8] sm:$0xff] }
 0x1eb   : > { %v1205_v56 = vld [vmem:[%s15548_s17 + $0x12e8] sm:$0xff] }
 0x1ec   : > { %8146 = vmatpush1.bf16.msra.mxu0 %v13026_v7  ;;  %8576 = vmatpush1.bf16.msra.mxu1 %v13028_v8  ;;  %v1153_v7 = vld [vmem:[%s15548_s17 + $0x1148] sm:$0xff] }
 0x1ed   : > { %8147 = vmatprep.subr.bf16.mxu0 %v13035_v9  ;;  %8577 = vmatprep.subr.bf16.mxu1 %v13037_v10  ;;  %v1157_v8 = vld [vmem:[%s15548_s17 + $0x1168] sm:$0xff]  ;;  %v13090_v9 = vcombine.low %v1144_v61, %v1148_v62  ;;  %v13092_v10 = vcombine.low %v1145_v63, %v1149_v0  ;;  %v1208_v61 = vld [vmem:[%s15548_s17 + $0x1300] sm:$0xff] }
 0x1ee   : > { %v13101_v12 = vcombine.high %v1153_v7, %v1157_v8  ;;  %v1212_v62 = vld [vmem:[%s15548_s17 + $0x1320] sm:$0xff]  ;;  %v1209_v63 = vld [vmem:[%s15548_s17 + $0x1308] sm:$0xff] }
 0x1ef   : > { %v1213_v0 = vld [vmem:[%s15548_s17 + $0x1328] sm:$0xff] }
 0x1f0   : > { %8148 = vmatpush1.bf16.msra.mxu0 %v13034_v15  ;;  %8578 = vmatpush1.bf16.msra.mxu1 %v13036_v16  ;;  %v1161_v15 = vld [vmem:[%s15548_s17 + $0x1188] sm:$0xff] }
 0x1f1   : > { %8149 = vmatprep.subr.bf16.mxu0 %v13043_v17  ;;  %8579 = vmatprep.subr.bf16.mxu1 %v13045_v18  ;;  %v1165_v16 = vld [vmem:[%s15548_s17 + $0x11a8] sm:$0xff]  ;;  %v13098_v17 = vcombine.low %v1152_v5, %v1156_v6  ;;  %v13100_v18 = vcombine.low %v1153_v7, %v1157_v8  ;;  %v1216_v5 = vld [vmem:[%s15548_s17 + $0x1340] sm:$0xff] }
 0x1f2   : > { %v13109_v20 = vcombine.high %v1161_v15, %v1165_v16  ;;  %v1220_v6 = vld [vmem:[%s15548_s17 + $0x1360] sm:$0xff]  ;;  %v1217_v7 = vld [vmem:[%s15548_s17 + $0x1348] sm:$0xff] }
 0x1f3   : > { %v1221_v8 = vld [vmem:[%s15548_s17 + $0x1368] sm:$0xff] }
 0x1f4   : > { %8150 = vmatpush1.bf16.msra.mxu0 %v13042_v23  ;;  %8580 = vmatpush1.bf16.msra.mxu1 %v13044_v24  ;;  %v1169_v23 = vld [vmem:[%s15548_s17 + $0x11c8] sm:$0xff] }
 0x1f5   : > { %8151 = vmatprep.subr.bf16.mxu0 %v13051_v25  ;;  %8581 = vmatprep.subr.bf16.mxu1 %v13053_v26  ;;  %v1173_v24 = vld [vmem:[%s15548_s17 + $0x11e8] sm:$0xff]  ;;  %v13106_v25 = vcombine.low %v1160_v13, %v1164_v14  ;;  %v13108_v26 = vcombine.low %v1161_v15, %v1165_v16  ;;  %v1224_v13 = vld [vmem:[%s15548_s17 + $0x1380] sm:$0xff] }
 0x1f6   : > { %v13117_v28 = vcombine.high %v1169_v23, %v1173_v24  ;;  %v1228_v14 = vld [vmem:[%s15548_s17 + $0x13a0] sm:$0xff]  ;;  %v1225_v15 = vld [vmem:[%s15548_s17 + $0x1388] sm:$0xff] }
 0x1f7   : > { %v1229_v16 = vld [vmem:[%s15548_s17 + $0x13a8] sm:$0xff] }
 0x1f8   : > { %8152 = vmatpush1.bf16.msra.mxu0 %v13050_v31  ;;  %8582 = vmatpush1.bf16.msra.mxu1 %v13052_v32  ;;  %v1177_v31 = vld [vmem:[%s15548_s17 + $0x1208] sm:$0xff] }
 0x1f9   : > { %8164 = vmatprep.subr.bf16.mxu0 %v13059_v33  ;;  %8594 = vmatprep.subr.bf16.mxu1 %v13061_v34  ;;  %v1181_v32 = vld [vmem:[%s15548_s17 + $0x1228] sm:$0xff]  ;;  %v13114_v33 = vcombine.low %v1168_v21, %v1172_v22  ;;  %v13116_v34 = vcombine.low %v1169_v23, %v1173_v24  ;;  %v1232_v21 = vld [vmem:[%s15548_s17 + $0x13c0] sm:$0xff] }
 0x1fa   : > { %v13125_v36 = vcombine.high %v1177_v31, %v1181_v32  ;;  %v1236_v22 = vld [vmem:[%s15548_s17 + $0x13e0] sm:$0xff]  ;;  %v1233_v23 = vld [vmem:[%s15548_s17 + $0x13c8] sm:$0xff] }
 0x1fb   : > { %8154 = vmatmul.mubr.bf16.vlgmr.msra.gmra.mrb[0].mxu0 %v14412_v37  ;;  %8584 = vmatmul.mubr.bf16.vlgmr.msra.gmra.mrb[0].mxu1 %v14412_v37  ;;  %v1184_v37 = vld [vmem:[%s15548_s17 + $0x1240] sm:$0xff]  ;;  %v1237_v24 = vld [vmem:[%s15548_s17 + $0x13e8] sm:$0xff] }
 0x1fc   : > { %8165 = vmatpush1.bf16.msra.mxu0 %v13058_v40  ;;  %8595 = vmatpush1.bf16.msra.mxu1 %v13060_v41  ;;  %v1189_v40 = vld [vmem:[%s15548_s17 + $0x1268] sm:$0xff]  ;;  %v13122_v41 = vcombine.low %v1176_v29, %v1180_v30  ;;  %v1240_v29 = vld [vmem:[%s15548_s17 + $0x1400] sm:$0xff] }
 0x1fd   : > { %8166 = vmatprep.subr.bf16.mxu0 %v13067_v42  ;;  %8596 = vmatprep.subr.bf16.mxu1 %v13069_v43  ;;  %v13124_v42 = vcombine.low %v1177_v31, %v1181_v32  ;;  %v13131_v43 = vcombine.high %v1184_v37, %v1188_v38  ;;  %v13133_v44 = vcombine.high %v1185_v39, %v1189_v40  ;;  %v1244_v30 = vld [vmem:[%s15548_s17 + $0x1420] sm:$0xff]  ;;  %v1241_v31 = vld [vmem:[%s15548_s17 + $0x1408] sm:$0xff] }
 0x1fe   : > { %8196 = vmatprep.mubr.bf16.mxu0 %v14413_v46  ;;  %8626 = vmatprep.mubr.bf16.mxu1 %v14413_v46  ;;  %v1196_v46 = vld [vmem:[%s15548_s17 + $0x12a0] sm:$0xff]  ;;  %v1245_v32 = vld [vmem:[%s15548_s17 + $0x1428] sm:$0xff] }
 0x200   : > { %8167 = vmatpush1.bf16.msra.mxu0 %v13066_v49  ;;  %8597 = vmatpush1.bf16.msra.mxu1 %v13068_v50  ;;  %v13130_v49 = vcombine.low %v1184_v37, %v1188_v38  ;;  %v13132_v50 = vcombine.low %v1185_v39, %v1189_v40  ;;  %v1248_v37 = vld [vmem:[%s15548_s17 + $0x1440] sm:$0xff]  ;;  %v14415_v39 = vld [vmem:[%s15546_s9 + $0x20] ss:$76 sps:$4 sm:$0xff]  }
 0x201   : > { %8168 = vmatprep.subr.bf16.mxu0 %v13075_v51  ;;  %8598 = vmatprep.subr.bf16.mxu1 %v13077_v52  ;;  %v13139_v51 = vcombine.high %v1192_v45, %v1196_v46  ;;  %v13141_v52 = vcombine.high %v1193_v47, %v1197_v48  ;;  %v1252_v38 = vld [vmem:[%s15548_s17 + $0x1460] sm:$0xff]  ;;  %v1249_v40 = vld [vmem:[%s15548_s17 + $0x1448] sm:$0xff] }
 0x204   : > { %8169 = vmatpush1.bf16.msra.mxu0 %v13074_v57  ;;  %8599 = vmatpush1.bf16.msra.mxu1 %v13076_v58  ;;  %v13138_v57 = vcombine.low %v1192_v45, %v1196_v46  ;;  %v13140_v58 = vcombine.low %v1193_v47, %v1197_v48  ;;  %v1256_v46 = vld [vmem:[%s15548_s17 + $0x1480] sm:$0xff] }
 0x205   : > { %8170 = vmatprep.subr.bf16.mxu0 %v13083_v59  ;;  %8600 = vmatprep.subr.bf16.mxu1 %v13085_v60  ;;  %v13147_v59 = vcombine.high %v1200_v53, %v1204_v54  ;;  %v13149_v60 = vcombine.high %v1201_v55, %v1205_v56  ;;  %v1260_v47 = vld [vmem:[%s15548_s17 + $0x14a0] sm:$0xff] }
 0x206   : > { %v14416_v48 = vld [vmem:[%s15546_s9 + $0x2c] ss:$76 sps:$4 sm:$0xff]  }
 0x208   : > { %8171 = vmatpush1.bf16.msra.mxu0 %v13082_v1  ;;  %8601 = vmatpush1.bf16.msra.mxu1 %v13084_v2  ;;  %v13146_v1 = vcombine.low %v1200_v53, %v1204_v54  ;;  %v13148_v2 = vcombine.low %v1201_v55, %v1205_v56  ;;  %v13203_v53 = vcombine.high %v1256_v46, %v1260_v47  ;;  %v1264_v55 = vld [vmem:[%s15548_s17 + $0x14c0] sm:$0xff] }
 0x209   : > { %8172 = vmatprep.subr.bf16.mxu0 %v13091_v3  ;;  %8602 = vmatprep.subr.bf16.mxu1 %v13093_v4  ;;  %v13155_v3 = vcombine.high %v1208_v61, %v1212_v62  ;;  %v13157_v4 = vcombine.high %v1209_v63, %v1213_v0  ;;  %v1268_v56 = vld [vmem:[%s15548_s17 + $0x14e0] sm:$0xff] }
 0x20c   : > { %8173 = vmatpush1.bf16.msra.mxu0 %v13090_v9  ;;  %8603 = vmatpush1.bf16.msra.mxu1 %v13092_v10  ;;  %v13154_v9 = vcombine.low %v1208_v61, %v1212_v62  ;;  %v13156_v10 = vcombine.low %v1209_v63, %v1213_v0  ;;  %v13211_v61 = vcombine.high %v1264_v55, %v1268_v56  ;;  %v1272_v63 = vld [vmem:[%s15548_s17 + $0x1500] sm:$0xff] }
 0x20d   : > { %8174 = vmatprep.subr.bf16.mxu0 %v13099_v11  ;;  %8604 = vmatprep.subr.bf16.mxu1 %v13101_v12  ;;  %v13163_v11 = vcombine.high %v1216_v5, %v1220_v6  ;;  %v13165_v12 = vcombine.high %v1217_v7, %v1221_v8  ;;  %v1276_v0 = vld [vmem:[%s15548_s17 + $0x1520] sm:$0xff] }
 0x210   : > { %8175 = vmatpush1.bf16.msra.mxu0 %v13098_v17  ;;  %8605 = vmatpush1.bf16.msra.mxu1 %v13100_v18  ;;  %v13162_v17 = vcombine.low %v1216_v5, %v1220_v6  ;;  %v13164_v18 = vcombine.low %v1217_v7, %v1221_v8  ;;  %v13219_v5 = vcombine.high %v1272_v63, %v1276_v0  ;;  %v1280_v7 = vld [vmem:[%s15548_s17 + $0x1540] sm:$0xff] }
 0x211   : > { %8176 = vmatprep.subr.bf16.mxu0 %v13107_v19  ;;  %8606 = vmatprep.subr.bf16.mxu1 %v13109_v20  ;;  %v13171_v19 = vcombine.high %v1224_v13, %v1228_v14  ;;  %v13173_v20 = vcombine.high %v1225_v15, %v1229_v16  ;;  %v1284_v8 = vld [vmem:[%s15548_s17 + $0x1560] sm:$0xff] }
 0x214   : > { %8177 = vmatpush1.bf16.msra.mxu0 %v13106_v25  ;;  %8607 = vmatpush1.bf16.msra.mxu1 %v13108_v26  ;;  %v13170_v25 = vcombine.low %v1224_v13, %v1228_v14  ;;  %v13172_v26 = vcombine.low %v1225_v15, %v1229_v16  ;;  %v13227_v13 = vcombine.high %v1280_v7, %v1284_v8  ;;  %v1288_v15 = vld [vmem:[%s15548_s17 + $0x1580] sm:$0xff] }
 0x215   : > { %8178 = vmatprep.subr.bf16.mxu0 %v13115_v27  ;;  %8608 = vmatprep.subr.bf16.mxu1 %v13117_v28  ;;  %v13179_v27 = vcombine.high %v1232_v21, %v1236_v22  ;;  %v13181_v28 = vcombine.high %v1233_v23, %v1237_v24  ;;  %v1292_v16 = vld [vmem:[%s15548_s17 + $0x15a0] sm:$0xff] }
 0x218   : > { %8179 = vmatpush1.bf16.msra.mxu0 %v13114_v33  ;;  %8609 = vmatpush1.bf16.msra.mxu1 %v13116_v34  ;;  %v13178_v33 = vcombine.low %v1232_v21, %v1236_v22  ;;  %v13180_v34 = vcombine.low %v1233_v23, %v1237_v24  ;;  %v13235_v21 = vcombine.high %v1288_v15, %v1292_v16  ;;  %v1296_v23 = vld [vmem:[%s15548_s17 + $0x15c0] sm:$0xff] }
 0x219   : > { %8180 = vmatprep.subr.bf16.mxu0 %v13123_v35  ;;  %8610 = vmatprep.subr.bf16.mxu1 %v13125_v36  ;;  %v13187_v35 = vcombine.high %v1240_v29, %v1244_v30  ;;  %v13189_v36 = vcombine.high %v1241_v31, %v1245_v32  ;;  %v1300_v24 = vld [vmem:[%s15548_s17 + $0x15e0] sm:$0xff] }
 0x21c   : > { %8181 = vmatpush1.bf16.msra.mxu0 %v13122_v41  ;;  %8611 = vmatpush1.bf16.msra.mxu1 %v13124_v42  ;;  %v1253_v41 = vld [vmem:[%s15548_s17 + $0x1468] sm:$0xff]  ;;  %v13186_v42 = vcombine.low %v1240_v29, %v1244_v30  ;;  %v13243_v29 = vcombine.high %v1296_v23, %v1300_v24 }
 0x21d   : > { %8182 = vmatprep.subr.bf16.mxu0 %v13131_v43  ;;  %8612 = vmatprep.subr.bf16.mxu1 %v13133_v44  ;;  %v13188_v43 = vcombine.low %v1241_v31, %v1245_v32  ;;  %v13195_v44 = vcombine.high %v1248_v37, %v1252_v38  ;;  %v13197_v45 = vcombine.high %v1249_v40, %v1253_v41  ;;  %v1304_v31 = vld [vmem:[%s15548_s17 + $0x1600] sm:$0xff] }
 0x21e   : > { %v1308_v32 = vld [vmem:[%s15548_s17 + $0x1620] sm:$0xff] }
 0x220   : > { %8183 = vmatpush1.bf16.msra.mxu0 %v13130_v49  ;;  %8613 = vmatpush1.bf16.msra.mxu1 %v13132_v50  ;;  %v1257_v49 = vld [vmem:[%s15548_s17 + $0x1488] sm:$0xff] }
 0x221   : > { %8184 = vmatprep.subr.bf16.mxu0 %v13139_v51  ;;  %8614 = vmatprep.subr.bf16.mxu1 %v13141_v52  ;;  %v1261_v50 = vld [vmem:[%s15548_s17 + $0x14a8] sm:$0xff]  ;;  %v13194_v51 = vcombine.low %v1248_v37, %v1252_v38  ;;  %v13196_v52 = vcombine.low %v1249_v40, %v1253_v41  ;;  %v13251_v37 = vcombine.high %v1304_v31, %v1308_v32  ;;  %v1316_v40 = vld [vmem:[%s15548_s17 + $0x1660] sm:$0xff] }
 0x222   : > { %v13205_v54 = vcombine.high %v1257_v49, %v1261_v50  ;;  %v1313_v41 = vld [vmem:[%s15548_s17 + $0x1648] sm:$0xff] }
 0x224   : > { %8185 = vmatpush1.bf16.msra.mxu0 %v13138_v57  ;;  %8615 = vmatpush1.bf16.msra.mxu1 %v13140_v58  ;;  %v1265_v57 = vld [vmem:[%s15548_s17 + $0x14c8] sm:$0xff] }
 0x225   : > { %8186 = vmatprep.subr.bf16.mxu0 %v13147_v59  ;;  %8616 = vmatprep.subr.bf16.mxu1 %v13149_v60  ;;  %v1269_v58 = vld [vmem:[%s15548_s17 + $0x14e8] sm:$0xff]  ;;  %v13202_v59 = vcombine.low %v1256_v46, %v1260_v47  ;;  %v13204_v60 = vcombine.low %v1257_v49, %v1261_v50  ;;  %v1320_v47 = vld [vmem:[%s15548_s17 + $0x1680] sm:$0xff] }
 0x226   : > { %v13213_v62 = vcombine.high %v1265_v57, %v1269_v58  ;;  %v1321_v49 = vld [vmem:[%s15548_s17 + $0x1688] sm:$0xff] }
 0x227   : > { %v1325_v50 = vld [vmem:[%s15548_s17 + $0x16a8] sm:$0xff] }
 0x228   : > { %8187 = vmatpush1.bf16.msra.mxu0 %v13146_v1  ;;  %8617 = vmatpush1.bf16.msra.mxu1 %v13148_v2  ;;  %v1273_v1 = vld [vmem:[%s15548_s17 + $0x1508] sm:$0xff] }
 0x229   : > { %8188 = vmatprep.subr.bf16.mxu0 %v13155_v3  ;;  %8618 = vmatprep.subr.bf16.mxu1 %v13157_v4  ;;  %v1277_v2 = vld [vmem:[%s15548_s17 + $0x1528] sm:$0xff]  ;;  %v13210_v3 = vcombine.low %v1264_v55, %v1268_v56  ;;  %v13212_v4 = vcombine.low %v1265_v57, %v1269_v58  ;;  %v1328_v55 = vld [vmem:[%s15548_s17 + $0x16c0] sm:$0xff] }
 0x22a   : > { %v13221_v6 = vcombine.high %v1273_v1, %v1277_v2  ;;  %v1332_v56 = vld [vmem:[%s15548_s17 + $0x16e0] sm:$0xff]  ;;  %v1329_v57 = vld [vmem:[%s15548_s17 + $0x16c8] sm:$0xff] }
 0x22b   : > { %v1333_v58 = vld [vmem:[%s15548_s17 + $0x16e8] sm:$0xff] }
 0x22c   : > { %8189 = vmatpush1.bf16.msra.mxu0 %v13154_v9  ;;  %8619 = vmatpush1.bf16.msra.mxu1 %v13156_v10  ;;  %v1281_v9 = vld [vmem:[%s15548_s17 + $0x1548] sm:$0xff] }
 0x22d   : > { %8190 = vmatprep.subr.bf16.mxu0 %v13163_v11  ;;  %8620 = vmatprep.subr.bf16.mxu1 %v13165_v12  ;;  %v1285_v10 = vld [vmem:[%s15548_s17 + $0x1568] sm:$0xff]  ;;  %v13218_v11 = vcombine.low %v1272_v63, %v1276_v0  ;;  %v13220_v12 = vcombine.low %v1273_v1, %v1277_v2  ;;  %v1336_v63 = vld [vmem:[%s15548_s17 + $0x1700] sm:$0xff] }
 0x22e   : > { %v13229_v14 = vcombine.high %v1281_v9, %v1285_v10  ;;  %v1340_v0 = vld [vmem:[%s15548_s17 + $0x1720] sm:$0xff]  ;;  %v1337_v1 = vld [vmem:[%s15548_s17 + $0x1708] sm:$0xff] }
 0x22f   : > { %v1341_v2 = vld [vmem:[%s15548_s17 + $0x1728] sm:$0xff] }
 0x230   : > { %8191 = vmatpush1.bf16.msra.mxu0 %v13162_v17  ;;  %8621 = vmatpush1.bf16.msra.mxu1 %v13164_v18  ;;  %v1289_v17 = vld [vmem:[%s15548_s17 + $0x1588] sm:$0xff] }
 0x231   : > { %8192 = vmatprep.subr.bf16.mxu0 %v13171_v19  ;;  %8622 = vmatprep.subr.bf16.mxu1 %v13173_v20  ;;  %v1293_v18 = vld [vmem:[%s15548_s17 + $0x15a8] sm:$0xff]  ;;  %v13226_v19 = vcombine.low %v1280_v7, %v1284_v8  ;;  %v13228_v20 = vcombine.low %v1281_v9, %v1285_v10  ;;  %v1344_v7 = vld [vmem:[%s15548_s17 + $0x1740] sm:$0xff] }
 0x232   : > { %v13237_v22 = vcombine.high %v1289_v17, %v1293_v18  ;;  %v1348_v8 = vld [vmem:[%s15548_s17 + $0x1760] sm:$0xff]  ;;  %v1345_v9 = vld [vmem:[%s15548_s17 + $0x1748] sm:$0xff] }
 0x233   : > { %v1349_v10 = vld [vmem:[%s15548_s17 + $0x1768] sm:$0xff] }
 0x234   : > { %8193 = vmatpush1.bf16.msra.mxu0 %v13170_v25  ;;  %8623 = vmatpush1.bf16.msra.mxu1 %v13172_v26  ;;  %v1297_v25 = vld [vmem:[%s15548_s17 + $0x15c8] sm:$0xff] }
 0x235   : > { %8194 = vmatprep.subr.bf16.mxu0 %v13179_v27  ;;  %8624 = vmatprep.subr.bf16.mxu1 %v13181_v28  ;;  %v1301_v26 = vld [vmem:[%s15548_s17 + $0x15e8] sm:$0xff]  ;;  %v13234_v27 = vcombine.low %v1288_v15, %v1292_v16  ;;  %v13236_v28 = vcombine.low %v1289_v17, %v1293_v18  ;;  %v1352_v15 = vld [vmem:[%s15548_s17 + $0x1780] sm:$0xff] }
 0x236   : > { %v13245_v30 = vcombine.high %v1297_v25, %v1301_v26  ;;  %v1356_v16 = vld [vmem:[%s15548_s17 + $0x17a0] sm:$0xff]  ;;  %v1353_v17 = vld [vmem:[%s15548_s17 + $0x1788] sm:$0xff] }
 0x237   : > { %v1357_v18 = vld [vmem:[%s15548_s17 + $0x17a8] sm:$0xff] }
 0x238   : > { %8195 = vmatpush1.bf16.msra.mxu0 %v13178_v33  ;;  %8625 = vmatpush1.bf16.msra.mxu1 %v13180_v34  ;;  %v1305_v33 = vld [vmem:[%s15548_s17 + $0x1608] sm:$0xff] }
 0x239   : > { %8207 = vmatprep.subr.bf16.mxu0 %v13187_v35  ;;  %8637 = vmatprep.subr.bf16.mxu1 %v13189_v36  ;;  %v1309_v34 = vld [vmem:[%s15548_s17 + $0x1628] sm:$0xff]  ;;  %v13242_v35 = vcombine.low %v1296_v23, %v1300_v24  ;;  %v13244_v36 = vcombine.low %v1297_v25, %v1301_v26  ;;  %v1360_v23 = vld [vmem:[%s15548_s17 + $0x17c0] sm:$0xff] }
 0x23a   : > { %v13253_v38 = vcombine.high %v1305_v33, %v1309_v34  ;;  %v1364_v24 = vld [vmem:[%s15548_s17 + $0x17e0] sm:$0xff]  ;;  %v1361_v25 = vld [vmem:[%s15548_s17 + $0x17c8] sm:$0xff] }
 0x23b   : > { %8197 = vmatmul.mubr.bf16.vlgmr.msra.gmra.mrb[0].mxu0 %v14415_v39  ;;  %8627 = vmatmul.mubr.bf16.vlgmr.msra.gmra.mrb[0].mxu1 %v14415_v39  ;;  %v1312_v39 = vld [vmem:[%s15548_s17 + $0x1640] sm:$0xff]  ;;  %v1365_v26 = vld [vmem:[%s15548_s17 + $0x17e8] sm:$0xff] }
 0x23c   : > { %8208 = vmatpush1.bf16.msra.mxu0 %v13186_v42  ;;  %8638 = vmatpush1.bf16.msra.mxu1 %v13188_v43  ;;  %v1317_v42 = vld [vmem:[%s15548_s17 + $0x1668] sm:$0xff]  ;;  %v13250_v43 = vcombine.low %v1304_v31, %v1308_v32  ;;  %v1368_v31 = vld [vmem:[%s15548_s17 + $0x1800] sm:$0xff] }
 0x23d   : > { %8209 = vmatprep.subr.bf16.mxu0 %v13195_v44  ;;  %8639 = vmatprep.subr.bf16.mxu1 %v13197_v45  ;;  %v13252_v44 = vcombine.low %v1305_v33, %v1309_v34  ;;  %v13259_v45 = vcombine.high %v1312_v39, %v1316_v40  ;;  %v13261_v46 = vcombine.high %v1313_v41, %v1317_v42  ;;  %v1372_v32 = vld [vmem:[%s15548_s17 + $0x1820] sm:$0xff]  ;;  %v1369_v33 = vld [vmem:[%s15548_s17 + $0x1808] sm:$0xff] }
 0x23e   : > { %8239 = vmatprep.mubr.bf16.mxu0 %v14416_v48  ;;  %8669 = vmatprep.mubr.bf16.mxu1 %v14416_v48  ;;  %v1324_v48 = vld [vmem:[%s15548_s17 + $0x16a0] sm:$0xff]  ;;  %v1373_v34 = vld [vmem:[%s15548_s17 + $0x1828] sm:$0xff] }
 0x240   : > { %8210 = vmatpush1.bf16.msra.mxu0 %v13194_v51  ;;  %8640 = vmatpush1.bf16.msra.mxu1 %v13196_v52  ;;  %v13258_v51 = vcombine.low %v1312_v39, %v1316_v40  ;;  %v13260_v52 = vcombine.low %v1313_v41, %v1317_v42  ;;  %v1376_v39 = vld [vmem:[%s15548_s17 + $0x1840] sm:$0xff]  ;;  %v1377_v42 = vld [vmem:[%s15548_s17 + $0x1848] sm:$0xff] }
 0x241   : > { %8211 = vmatprep.subr.bf16.mxu0 %v13203_v53  ;;  %8641 = vmatprep.subr.bf16.mxu1 %v13205_v54  ;;  %v13267_v53 = vcombine.high %v1320_v47, %v1324_v48  ;;  %v13269_v54 = vcombine.high %v1321_v49, %v1325_v50  ;;  %v1380_v40 = vld [vmem:[%s15548_s17 + $0x1860] sm:$0xff] }
 0x242   : > { %v14418_v41 = vld [vmem:[%s15546_s9 + $0x28] ss:$76 sps:$4 sm:$0xff]  }
 0x244   : > { %8212 = vmatpush1.bf16.msra.mxu0 %v13202_v59  ;;  %8642 = vmatpush1.bf16.msra.mxu1 %v13204_v60  ;;  %v13266_v59 = vcombine.low %v1320_v47, %v1324_v48  ;;  %v13268_v60 = vcombine.low %v1321_v49, %v1325_v50  ;;  %v1384_v48 = vld [vmem:[%s15548_s17 + $0x1880] sm:$0xff] }
 0x245   : > { %8213 = vmatprep.subr.bf16.mxu0 %v13211_v61  ;;  %8643 = vmatprep.subr.bf16.mxu1 %v13213_v62  ;;  %v13275_v61 = vcombine.high %v1328_v55, %v1332_v56  ;;  %v13277_v62 = vcombine.high %v1329_v57, %v1333_v58  ;;  %v1388_v49 = vld [vmem:[%s15548_s17 + $0x18a0] sm:$0xff] }
 0x246   : > { %v14419_v50 = vld [vmem:[%s15546_s9 + $0x34] ss:$76 sps:$4 sm:$0xff]  }
 0x248   : > { %8214 = vmatpush1.bf16.msra.mxu0 %v13210_v3  ;;  %8644 = vmatpush1.bf16.msra.mxu1 %v13212_v4  ;;  %v13274_v3 = vcombine.low %v1328_v55, %v1332_v56  ;;  %v13276_v4 = vcombine.low %v1329_v57, %v1333_v58  ;;  %v13331_v55 = vcombine.high %v1384_v48, %v1388_v49  ;;  %v1392_v57 = vld [vmem:[%s15548_s17 + $0x18c0] sm:$0xff] }
 0x249   : > { %8215 = vmatprep.subr.bf16.mxu0 %v13219_v5  ;;  %8645 = vmatprep.subr.bf16.mxu1 %v13221_v6  ;;  %v13283_v5 = vcombine.high %v1336_v63, %v1340_v0  ;;  %v13285_v6 = vcombine.high %v1337_v1, %v1341_v2  ;;  %v1396_v58 = vld [vmem:[%s15548_s17 + $0x18e0] sm:$0xff] }
 0x24c   : > { %8216 = vmatpush1.bf16.msra.mxu0 %v13218_v11  ;;  %8646 = vmatpush1.bf16.msra.mxu1 %v13220_v12  ;;  %v13282_v11 = vcombine.low %v1336_v63, %v1340_v0  ;;  %v13284_v12 = vcombine.low %v1337_v1, %v1341_v2  ;;  %v13339_v63 = vcombine.high %v1392_v57, %v1396_v58  ;;  %v1400_v1 = vld [vmem:[%s15548_s17 + $0x1900] sm:$0xff] }
 0x24d   : > { %8217 = vmatprep.subr.bf16.mxu0 %v13227_v13  ;;  %8647 = vmatprep.subr.bf16.mxu1 %v13229_v14  ;;  %v13291_v13 = vcombine.high %v1344_v7, %v1348_v8  ;;  %v13293_v14 = vcombine.high %v1345_v9, %v1349_v10  ;;  %v1404_v2 = vld [vmem:[%s15548_s17 + $0x1920] sm:$0xff] }
 0x250   : > { %8218 = vmatpush1.bf16.msra.mxu0 %v13226_v19  ;;  %8648 = vmatpush1.bf16.msra.mxu1 %v13228_v20  ;;  %v13290_v19 = vcombine.low %v1344_v7, %v1348_v8  ;;  %v13292_v20 = vcombine.low %v1345_v9, %v1349_v10  ;;  %v13347_v7 = vcombine.high %v1400_v1, %v1404_v2  ;;  %v1408_v9 = vld [vmem:[%s15548_s17 + $0x1940] sm:$0xff] }
 0x251   : > { %8219 = vmatprep.subr.bf16.mxu0 %v13235_v21  ;;  %8649 = vmatprep.subr.bf16.mxu1 %v13237_v22  ;;  %v13299_v21 = vcombine.high %v1352_v15, %v1356_v16  ;;  %v13301_v22 = vcombine.high %v1353_v17, %v1357_v18  ;;  %v1412_v10 = vld [vmem:[%s15548_s17 + $0x1960] sm:$0xff] }
 0x254   : > { %8220 = vmatpush1.bf16.msra.mxu0 %v13234_v27  ;;  %8650 = vmatpush1.bf16.msra.mxu1 %v13236_v28  ;;  %v13298_v27 = vcombine.low %v1352_v15, %v1356_v16  ;;  %v13300_v28 = vcombine.low %v1353_v17, %v1357_v18  ;;  %v13355_v15 = vcombine.high %v1408_v9, %v1412_v10  ;;  %v1416_v17 = vld [vmem:[%s15548_s17 + $0x1980] sm:$0xff] }
 0x255   : > { %8221 = vmatprep.subr.bf16.mxu0 %v13243_v29  ;;  %8651 = vmatprep.subr.bf16.mxu1 %v13245_v30  ;;  %v13307_v29 = vcombine.high %v1360_v23, %v1364_v24  ;;  %v13309_v30 = vcombine.high %v1361_v25, %v1365_v26  ;;  %v1420_v18 = vld [vmem:[%s15548_s17 + $0x19a0] sm:$0xff] }
 0x258   : > { %8222 = vmatpush1.bf16.msra.mxu0 %v13242_v35  ;;  %8652 = vmatpush1.bf16.msra.mxu1 %v13244_v36  ;;  %v13306_v35 = vcombine.low %v1360_v23, %v1364_v24  ;;  %v13308_v36 = vcombine.low %v1361_v25, %v1365_v26  ;;  %v13363_v23 = vcombine.high %v1416_v17, %v1420_v18  ;;  %v1424_v25 = vld [vmem:[%s15548_s17 + $0x19c0] sm:$0xff] }
 0x259   : > { %8223 = vmatprep.subr.bf16.mxu0 %v13251_v37  ;;  %8653 = vmatprep.subr.bf16.mxu1 %v13253_v38  ;;  %v13315_v37 = vcombine.high %v1368_v31, %v1372_v32  ;;  %v13317_v38 = vcombine.high %v1369_v33, %v1373_v34  ;;  %v1428_v26 = vld [vmem:[%s15548_s17 + $0x19e0] sm:$0xff] }
 0x25c   : > { %8224 = vmatpush1.bf16.msra.mxu0 %v13250_v43  ;;  %8654 = vmatpush1.bf16.msra.mxu1 %v13252_v44  ;;  %v1381_v43 = vld [vmem:[%s15548_s17 + $0x1868] sm:$0xff]  ;;  %v13314_v44 = vcombine.low %v1368_v31, %v1372_v32  ;;  %v13371_v31 = vcombine.high %v1424_v25, %v1428_v26 }
 0x25d   : > { %8225 = vmatprep.subr.bf16.mxu0 %v13259_v45  ;;  %8655 = vmatprep.subr.bf16.mxu1 %v13261_v46  ;;  %v13316_v45 = vcombine.low %v1369_v33, %v1373_v34  ;;  %v13323_v46 = vcombine.high %v1376_v39, %v1380_v40  ;;  %v13325_v47 = vcombine.high %v1377_v42, %v1381_v43  ;;  %v1432_v33 = vld [vmem:[%s15548_s17 + $0x1a00] sm:$0xff] }
 0x25e   : > { %v1436_v34 = vld [vmem:[%s15548_s17 + $0x1a20] sm:$0xff] }
 0x260   : > { %8226 = vmatpush1.bf16.msra.mxu0 %v13258_v51  ;;  %8656 = vmatpush1.bf16.msra.mxu1 %v13260_v52  ;;  %v1385_v51 = vld [vmem:[%s15548_s17 + $0x1888] sm:$0xff] }
 0x261   : > { %8227 = vmatprep.subr.bf16.mxu0 %v13267_v53  ;;  %8657 = vmatprep.subr.bf16.mxu1 %v13269_v54  ;;  %v1389_v52 = vld [vmem:[%s15548_s17 + $0x18a8] sm:$0xff]  ;;  %v13322_v53 = vcombine.low %v1376_v39, %v1380_v40  ;;  %v13324_v54 = vcombine.low %v1377_v42, %v1381_v43  ;;  %v13379_v39 = vcombine.high %v1432_v33, %v1436_v34  ;;  %v1444_v42 = vld [vmem:[%s15548_s17 + $0x1a60] sm:$0xff] }
 0x262   : > { %v13333_v56 = vcombine.high %v1385_v51, %v1389_v52  ;;  %v1441_v43 = vld [vmem:[%s15548_s17 + $0x1a48] sm:$0xff] }
 0x264   : > { %8228 = vmatpush1.bf16.msra.mxu0 %v13266_v59  ;;  %8658 = vmatpush1.bf16.msra.mxu1 %v13268_v60  ;;  %v1393_v59 = vld [vmem:[%s15548_s17 + $0x18c8] sm:$0xff] }
 0x265   : > { %8229 = vmatprep.subr.bf16.mxu0 %v13275_v61  ;;  %8659 = vmatprep.subr.bf16.mxu1 %v13277_v62  ;;  %v1397_v60 = vld [vmem:[%s15548_s17 + $0x18e8] sm:$0xff]  ;;  %v13330_v61 = vcombine.low %v1384_v48, %v1388_v49  ;;  %v13332_v62 = vcombine.low %v1385_v51, %v1389_v52  ;;  %v1448_v49 = vld [vmem:[%s15548_s17 + $0x1a80] sm:$0xff] }
 0x266   : > { %v13341_v0 = vcombine.high %v1393_v59, %v1397_v60  ;;  %v1449_v51 = vld [vmem:[%s15548_s17 + $0x1a88] sm:$0xff] }
 0x267   : > { %v1453_v52 = vld [vmem:[%s15548_s17 + $0x1aa8] sm:$0xff] }
 0x268   : > { %8230 = vmatpush1.bf16.msra.mxu0 %v13274_v3  ;;  %8660 = vmatpush1.bf16.msra.mxu1 %v13276_v4  ;;  %v1401_v3 = vld [vmem:[%s15548_s17 + $0x1908] sm:$0xff] }
 0x269   : > { %8231 = vmatprep.subr.bf16.mxu0 %v13283_v5  ;;  %8661 = vmatprep.subr.bf16.mxu1 %v13285_v6  ;;  %v1405_v4 = vld [vmem:[%s15548_s17 + $0x1928] sm:$0xff]  ;;  %v13338_v5 = vcombine.low %v1392_v57, %v1396_v58  ;;  %v13340_v6 = vcombine.low %v1393_v59, %v1397_v60  ;;  %v1456_v57 = vld [vmem:[%s15548_s17 + $0x1ac0] sm:$0xff] }
 0x26a   : > { %v13349_v8 = vcombine.high %v1401_v3, %v1405_v4  ;;  %v1460_v58 = vld [vmem:[%s15548_s17 + $0x1ae0] sm:$0xff]  ;;  %v1457_v59 = vld [vmem:[%s15548_s17 + $0x1ac8] sm:$0xff] }
 0x26b   : > { %v1461_v60 = vld [vmem:[%s15548_s17 + $0x1ae8] sm:$0xff] }
 0x26c   : > { %8232 = vmatpush1.bf16.msra.mxu0 %v13282_v11  ;;  %8662 = vmatpush1.bf16.msra.mxu1 %v13284_v12  ;;  %v1409_v11 = vld [vmem:[%s15548_s17 + $0x1948] sm:$0xff] }
 0x26d   : > { %8233 = vmatprep.subr.bf16.mxu0 %v13291_v13  ;;  %8663 = vmatprep.subr.bf16.mxu1 %v13293_v14  ;;  %v1413_v12 = vld [vmem:[%s15548_s17 + $0x1968] sm:$0xff]  ;;  %v13346_v13 = vcombine.low %v1400_v1, %v1404_v2  ;;  %v13348_v14 = vcombine.low %v1401_v3, %v1405_v4  ;;  %v1464_v1 = vld [vmem:[%s15548_s17 + $0x1b00] sm:$0xff] }
 0x26e   : > { %v13357_v16 = vcombine.high %v1409_v11, %v1413_v12  ;;  %v1468_v2 = vld [vmem:[%s15548_s17 + $0x1b20] sm:$0xff]  ;;  %v1465_v3 = vld [vmem:[%s15548_s17 + $0x1b08] sm:$0xff] }
 0x26f   : > { %v1469_v4 = vld [vmem:[%s15548_s17 + $0x1b28] sm:$0xff] }
 0x270   : > { %8234 = vmatpush1.bf16.msra.mxu0 %v13290_v19  ;;  %8664 = vmatpush1.bf16.msra.mxu1 %v13292_v20  ;;  %v1417_v19 = vld [vmem:[%s15548_s17 + $0x1988] sm:$0xff] }
 0x271   : > { %8235 = vmatprep.subr.bf16.mxu0 %v13299_v21  ;;  %8665 = vmatprep.subr.bf16.mxu1 %v13301_v22  ;;  %v1421_v20 = vld [vmem:[%s15548_s17 + $0x19a8] sm:$0xff]  ;;  %v13354_v21 = vcombine.low %v1408_v9, %v1412_v10  ;;  %v13356_v22 = vcombine.low %v1409_v11, %v1413_v12  ;;  %v1472_v9 = vld [vmem:[%s15548_s17 + $0x1b40] sm:$0xff] }
 0x272   : > { %v13365_v24 = vcombine.high %v1417_v19, %v1421_v20  ;;  %v1476_v10 = vld [vmem:[%s15548_s17 + $0x1b60] sm:$0xff]  ;;  %v1473_v11 = vld [vmem:[%s15548_s17 + $0x1b48] sm:$0xff] }
 0x273   : > { %v1477_v12 = vld [vmem:[%s15548_s17 + $0x1b68] sm:$0xff] }
 0x274   : > { %8236 = vmatpush1.bf16.msra.mxu0 %v13298_v27  ;;  %8666 = vmatpush1.bf16.msra.mxu1 %v13300_v28  ;;  %v1425_v27 = vld [vmem:[%s15548_s17 + $0x19c8] sm:$0xff] }
 0x275   : > { %8237 = vmatprep.subr.bf16.mxu0 %v13307_v29  ;;  %8667 = vmatprep.subr.bf16.mxu1 %v13309_v30  ;;  %v1429_v28 = vld [vmem:[%s15548_s17 + $0x19e8] sm:$0xff]  ;;  %v13362_v29 = vcombine.low %v1416_v17, %v1420_v18  ;;  %v13364_v30 = vcombine.low %v1417_v19, %v1421_v20  ;;  %v1480_v17 = vld [vmem:[%s15548_s17 + $0x1b80] sm:$0xff] }
 0x276   : > { %v13373_v32 = vcombine.high %v1425_v27, %v1429_v28  ;;  %v1484_v18 = vld [vmem:[%s15548_s17 + $0x1ba0] sm:$0xff]  ;;  %v1481_v19 = vld [vmem:[%s15548_s17 + $0x1b88] sm:$0xff] }
 0x277   : > { %v1485_v20 = vld [vmem:[%s15548_s17 + $0x1ba8] sm:$0xff] }
 0x278   : > { %8238 = vmatpush1.bf16.msra.mxu0 %v13306_v35  ;;  %8668 = vmatpush1.bf16.msra.mxu1 %v13308_v36  ;;  %v1433_v35 = vld [vmem:[%s15548_s17 + $0x1a08] sm:$0xff] }
 0x279   : > { %8250 = vmatprep.subr.bf16.mxu0 %v13315_v37  ;;  %8680 = vmatprep.subr.bf16.mxu1 %v13317_v38  ;;  %v1437_v36 = vld [vmem:[%s15548_s17 + $0x1a28] sm:$0xff]  ;;  %v13370_v37 = vcombine.low %v1424_v25, %v1428_v26  ;;  %v13372_v38 = vcombine.low %v1425_v27, %v1429_v28  ;;  %v1488_v25 = vld [vmem:[%s15548_s17 + $0x1bc0] sm:$0xff] }
 0x27a   : > { %v13381_v40 = vcombine.high %v1433_v35, %v1437_v36  ;;  %v1492_v26 = vld [vmem:[%s15548_s17 + $0x1be0] sm:$0xff]  ;;  %v1489_v27 = vld [vmem:[%s15548_s17 + $0x1bc8] sm:$0xff] }
 0x27b   : > { %8240 = vmatmul.mubr.bf16.vlgmr.msra.gmra.mrb[0].mxu0 %v14418_v41  ;;  %8670 = vmatmul.mubr.bf16.vlgmr.msra.gmra.mrb[0].mxu1 %v14418_v41  ;;  %v1440_v41 = vld [vmem:[%s15548_s17 + $0x1a40] sm:$0xff]  ;;  %v1493_v28 = vld [vmem:[%s15548_s17 + $0x1be8] sm:$0xff] }
 0x27c   : > { %8251 = vmatpush1.bf16.msra.mxu0 %v13314_v44  ;;  %8681 = vmatpush1.bf16.msra.mxu1 %v13316_v45  ;;  %v1445_v44 = vld [vmem:[%s15548_s17 + $0x1a68] sm:$0xff]  ;;  %v13378_v45 = vcombine.low %v1432_v33, %v1436_v34  ;;  %v1496_v33 = vld [vmem:[%s15548_s17 + $0x1c00] sm:$0xff] }
 0x27d   : > { %8252 = vmatprep.subr.bf16.mxu0 %v13323_v46  ;;  %8682 = vmatprep.subr.bf16.mxu1 %v13325_v47  ;;  %v13380_v46 = vcombine.low %v1433_v35, %v1437_v36  ;;  %v13387_v47 = vcombine.high %v1440_v41, %v1444_v42  ;;  %v13389_v48 = vcombine.high %v1441_v43, %v1445_v44  ;;  %v1500_v34 = vld [vmem:[%s15548_s17 + $0x1c20] sm:$0xff]  ;;  %v1497_v35 = vld [vmem:[%s15548_s17 + $0x1c08] sm:$0xff] }
 0x27e   : > { %8282 = vmatprep.mubr.bf16.mxu0 %v14419_v50  ;;  %8712 = vmatprep.mubr.bf16.mxu1 %v14419_v50  ;;  %v1452_v50 = vld [vmem:[%s15548_s17 + $0x1aa0] sm:$0xff]  ;;  %v1501_v36 = vld [vmem:[%s15548_s17 + $0x1c28] sm:$0xff] }
 0x280   : > { %8253 = vmatpush1.bf16.msra.mxu0 %v13322_v53  ;;  %8683 = vmatpush1.bf16.msra.mxu1 %v13324_v54  ;;  %v13386_v53 = vcombine.low %v1440_v41, %v1444_v42  ;;  %v13388_v54 = vcombine.low %v1441_v43, %v1445_v44  ;;  %v1504_v41 = vld [vmem:[%s15548_s17 + $0x1c40] sm:$0xff]  ;;  %v1505_v44 = vld [vmem:[%s15548_s17 + $0x1c48] sm:$0xff] }
 0x281   : > { %8254 = vmatprep.subr.bf16.mxu0 %v13331_v55  ;;  %8684 = vmatprep.subr.bf16.mxu1 %v13333_v56  ;;  %v13395_v55 = vcombine.high %v1448_v49, %v1452_v50  ;;  %v13397_v56 = vcombine.high %v1449_v51, %v1453_v52  ;;  %v1508_v42 = vld [vmem:[%s15548_s17 + $0x1c60] sm:$0xff] }
 0x282   : > { %v14421_v43 = vld [vmem:[%s15546_s9 + $0x30] ss:$76 sps:$4 sm:$0xff]  }
 0x284   : > { %8255 = vmatpush1.bf16.msra.mxu0 %v13330_v61  ;;  %8685 = vmatpush1.bf16.msra.mxu1 %v13332_v62  ;;  %v13394_v61 = vcombine.low %v1448_v49, %v1452_v50  ;;  %v13396_v62 = vcombine.low %v1449_v51, %v1453_v52  ;;  %v1512_v50 = vld [vmem:[%s15548_s17 + $0x1c80] sm:$0xff] }
 0x285   : > { %8256 = vmatprep.subr.bf16.mxu0 %v13339_v63  ;;  %8686 = vmatprep.subr.bf16.mxu1 %v13341_v0  ;;  %v13403_v63 = vcombine.high %v1456_v57, %v1460_v58  ;;  %v13405_v0 = vcombine.high %v1457_v59, %v1461_v60  ;;  %v1516_v51 = vld [vmem:[%s15548_s17 + $0x1ca0] sm:$0xff] }
 0x286   : > { %v14422_v52 = vld [vmem:[%s15546_s9 + $0x3c] ss:$76 sps:$4 sm:$0xff]  }
 0x288   : > { %8257 = vmatpush1.bf16.msra.mxu0 %v13338_v5  ;;  %8687 = vmatpush1.bf16.msra.mxu1 %v13340_v6  ;;  %v13402_v5 = vcombine.low %v1456_v57, %v1460_v58  ;;  %v13404_v6 = vcombine.low %v1457_v59, %v1461_v60  ;;  %v13459_v57 = vcombine.high %v1512_v50, %v1516_v51  ;;  %v1520_v59 = vld [vmem:[%s15548_s17 + $0x1cc0] sm:$0xff] }
 0x289   : > { %8258 = vmatprep.subr.bf16.mxu0 %v13347_v7  ;;  %8688 = vmatprep.subr.bf16.mxu1 %v13349_v8  ;;  %v13411_v7 = vcombine.high %v1464_v1, %v1468_v2  ;;  %v13413_v8 = vcombine.high %v1465_v3, %v1469_v4  ;;  %v1524_v60 = vld [vmem:[%s15548_s17 + $0x1ce0] sm:$0xff] }
 0x28c   : > { %8259 = vmatpush1.bf16.msra.mxu0 %v13346_v13  ;;  %8689 = vmatpush1.bf16.msra.mxu1 %v13348_v14  ;;  %v13410_v13 = vcombine.low %v1464_v1, %v1468_v2  ;;  %v13412_v14 = vcombine.low %v1465_v3, %v1469_v4  ;;  %v13467_v1 = vcombine.high %v1520_v59, %v1524_v60  ;;  %v1528_v3 = vld [vmem:[%s15548_s17 + $0x1d00] sm:$0xff] }
 0x28d   : > { %8260 = vmatprep.subr.bf16.mxu0 %v13355_v15  ;;  %8690 = vmatprep.subr.bf16.mxu1 %v13357_v16  ;;  %v13419_v15 = vcombine.high %v1472_v9, %v1476_v10  ;;  %v13421_v16 = vcombine.high %v1473_v11, %v1477_v12  ;;  %v1532_v4 = vld [vmem:[%s15548_s17 + $0x1d20] sm:$0xff] }
 0x290   : > { %8261 = vmatpush1.bf16.msra.mxu0 %v13354_v21  ;;  %8691 = vmatpush1.bf16.msra.mxu1 %v13356_v22  ;;  %v13418_v21 = vcombine.low %v1472_v9, %v1476_v10  ;;  %v13420_v22 = vcombine.low %v1473_v11, %v1477_v12  ;;  %v13475_v9 = vcombine.high %v1528_v3, %v1532_v4  ;;  %v1536_v11 = vld [vmem:[%s15548_s17 + $0x1d40] sm:$0xff] }
 0x291   : > { %8262 = vmatprep.subr.bf16.mxu0 %v13363_v23  ;;  %8692 = vmatprep.subr.bf16.mxu1 %v13365_v24  ;;  %v13427_v23 = vcombine.high %v1480_v17, %v1484_v18  ;;  %v13429_v24 = vcombine.high %v1481_v19, %v1485_v20  ;;  %v1540_v12 = vld [vmem:[%s15548_s17 + $0x1d60] sm:$0xff] }
 0x294   : > { %8263 = vmatpush1.bf16.msra.mxu0 %v13362_v29  ;;  %8693 = vmatpush1.bf16.msra.mxu1 %v13364_v30  ;;  %v13426_v29 = vcombine.low %v1480_v17, %v1484_v18  ;;  %v13428_v30 = vcombine.low %v1481_v19, %v1485_v20  ;;  %v13483_v17 = vcombine.high %v1536_v11, %v1540_v12  ;;  %v1544_v19 = vld [vmem:[%s15548_s17 + $0x1d80] sm:$0xff] }
 0x295   : > { %8264 = vmatprep.subr.bf16.mxu0 %v13371_v31  ;;  %8694 = vmatprep.subr.bf16.mxu1 %v13373_v32  ;;  %v13435_v31 = vcombine.high %v1488_v25, %v1492_v26  ;;  %v13437_v32 = vcombine.high %v1489_v27, %v1493_v28  ;;  %v1548_v20 = vld [vmem:[%s15548_s17 + $0x1da0] sm:$0xff] }
 0x298   : > { %8265 = vmatpush1.bf16.msra.mxu0 %v13370_v37  ;;  %8695 = vmatpush1.bf16.msra.mxu1 %v13372_v38  ;;  %v13434_v37 = vcombine.low %v1488_v25, %v1492_v26  ;;  %v13436_v38 = vcombine.low %v1489_v27, %v1493_v28  ;;  %v13491_v25 = vcombine.high %v1544_v19, %v1548_v20  ;;  %v1552_v27 = vld [vmem:[%s15548_s17 + $0x1dc0] sm:$0xff] }
 0x299   : > { %8266 = vmatprep.subr.bf16.mxu0 %v13379_v39  ;;  %8696 = vmatprep.subr.bf16.mxu1 %v13381_v40  ;;  %v13443_v39 = vcombine.high %v1496_v33, %v1500_v34  ;;  %v13445_v40 = vcombine.high %v1497_v35, %v1501_v36  ;;  %v1556_v28 = vld [vmem:[%s15548_s17 + $0x1de0] sm:$0xff] }
 0x29c   : > { %8267 = vmatpush1.bf16.msra.mxu0 %v13378_v45  ;;  %8697 = vmatpush1.bf16.msra.mxu1 %v13380_v46  ;;  %v1509_v45 = vld [vmem:[%s15548_s17 + $0x1c68] sm:$0xff]  ;;  %v13442_v46 = vcombine.low %v1496_v33, %v1500_v34  ;;  %v13499_v33 = vcombine.high %v1552_v27, %v1556_v28 }
 0x29d   : > { %8268 = vmatprep.subr.bf16.mxu0 %v13387_v47  ;;  %8698 = vmatprep.subr.bf16.mxu1 %v13389_v48  ;;  %v13444_v47 = vcombine.low %v1497_v35, %v1501_v36  ;;  %v13451_v48 = vcombine.high %v1504_v41, %v1508_v42  ;;  %v13453_v49 = vcombine.high %v1505_v44, %v1509_v45  ;;  %v1560_v35 = vld [vmem:[%s15548_s17 + $0x1e00] sm:$0xff] }
 0x29e   : > { %v1564_v36 = vld [vmem:[%s15548_s17 + $0x1e20] sm:$0xff] }
 0x2a0   : > { %8269 = vmatpush1.bf16.msra.mxu0 %v13386_v53  ;;  %8699 = vmatpush1.bf16.msra.mxu1 %v13388_v54  ;;  %v1513_v53 = vld [vmem:[%s15548_s17 + $0x1c88] sm:$0xff] }
 0x2a1   : > { %8270 = vmatprep.subr.bf16.mxu0 %v13395_v55  ;;  %8700 = vmatprep.subr.bf16.mxu1 %v13397_v56  ;;  %v1517_v54 = vld [vmem:[%s15548_s17 + $0x1ca8] sm:$0xff]  ;;  %v13450_v55 = vcombine.low %v1504_v41, %v1508_v42  ;;  %v13452_v56 = vcombine.low %v1505_v44, %v1509_v45  ;;  %v13507_v41 = vcombine.high %v1560_v35, %v1564_v36  ;;  %v1572_v44 = vld [vmem:[%s15548_s17 + $0x1e60] sm:$0xff] }
 0x2a2   : > { %v13461_v58 = vcombine.high %v1513_v53, %v1517_v54  ;;  %v1569_v45 = vld [vmem:[%s15548_s17 + $0x1e48] sm:$0xff] }
 0x2a4   : > { %8271 = vmatpush1.bf16.msra.mxu0 %v13394_v61  ;;  %8701 = vmatpush1.bf16.msra.mxu1 %v13396_v62  ;;  %v1521_v61 = vld [vmem:[%s15548_s17 + $0x1cc8] sm:$0xff] }
 0x2a5   : > { %8272 = vmatprep.subr.bf16.mxu0 %v13403_v63  ;;  %8702 = vmatprep.subr.bf16.mxu1 %v13405_v0  ;;  %v1525_v62 = vld [vmem:[%s15548_s17 + $0x1ce8] sm:$0xff]  ;;  %v13458_v63 = vcombine.low %v1512_v50, %v1516_v51  ;;  %v13460_v0 = vcombine.low %v1513_v53, %v1517_v54  ;;  %v1576_v51 = vld [vmem:[%s15548_s17 + $0x1e80] sm:$0xff] }
 0x2a6   : > { %v13469_v2 = vcombine.high %v1521_v61, %v1525_v62  ;;  %v1577_v53 = vld [vmem:[%s15548_s17 + $0x1e88] sm:$0xff] }
 0x2a7   : > { %v1581_v54 = vld [vmem:[%s15548_s17 + $0x1ea8] sm:$0xff] }
 0x2a8   : > { %8273 = vmatpush1.bf16.msra.mxu0 %v13402_v5  ;;  %8703 = vmatpush1.bf16.msra.mxu1 %v13404_v6  ;;  %v1529_v5 = vld [vmem:[%s15548_s17 + $0x1d08] sm:$0xff] }
 0x2a9   : > { %8274 = vmatprep.subr.bf16.mxu0 %v13411_v7  ;;  %8704 = vmatprep.subr.bf16.mxu1 %v13413_v8  ;;  %v1533_v6 = vld [vmem:[%s15548_s17 + $0x1d28] sm:$0xff]  ;;  %v13466_v7 = vcombine.low %v1520_v59, %v1524_v60  ;;  %v13468_v8 = vcombine.low %v1521_v61, %v1525_v62  ;;  %v1584_v59 = vld [vmem:[%s15548_s17 + $0x1ec0] sm:$0xff] }
 0x2aa   : > { %v13477_v10 = vcombine.high %v1529_v5, %v1533_v6  ;;  %v1588_v60 = vld [vmem:[%s15548_s17 + $0x1ee0] sm:$0xff]  ;;  %v1585_v61 = vld [vmem:[%s15548_s17 + $0x1ec8] sm:$0xff] }
 0x2ab   : > { %v1589_v62 = vld [vmem:[%s15548_s17 + $0x1ee8] sm:$0xff] }
 0x2ac   : > { %8275 = vmatpush1.bf16.msra.mxu0 %v13410_v13  ;;  %8705 = vmatpush1.bf16.msra.mxu1 %v13412_v14  ;;  %v1537_v13 = vld [vmem:[%s15548_s17 + $0x1d48] sm:$0xff] }
 0x2ad   : > { %8276 = vmatprep.subr.bf16.mxu0 %v13419_v15  ;;  %8706 = vmatprep.subr.bf16.mxu1 %v13421_v16  ;;  %v1541_v14 = vld [vmem:[%s15548_s17 + $0x1d68] sm:$0xff]  ;;  %v13474_v15 = vcombine.low %v1528_v3, %v1532_v4  ;;  %v13476_v16 = vcombine.low %v1529_v5, %v1533_v6  ;;  %v1592_v3 = vld [vmem:[%s15548_s17 + $0x1f00] sm:$0xff] }
 0x2ae   : > { %v13485_v18 = vcombine.high %v1537_v13, %v1541_v14  ;;  %v1596_v4 = vld [vmem:[%s15548_s17 + $0x1f20] sm:$0xff]  ;;  %v1593_v5 = vld [vmem:[%s15548_s17 + $0x1f08] sm:$0xff] }
 0x2af   : > { %v1597_v6 = vld [vmem:[%s15548_s17 + $0x1f28] sm:$0xff] }
 0x2b0   : > { %8277 = vmatpush1.bf16.msra.mxu0 %v13418_v21  ;;  %8707 = vmatpush1.bf16.msra.mxu1 %v13420_v22  ;;  %v1545_v21 = vld [vmem:[%s15548_s17 + $0x1d88] sm:$0xff] }
 0x2b1   : > { %8278 = vmatprep.subr.bf16.mxu0 %v13427_v23  ;;  %8708 = vmatprep.subr.bf16.mxu1 %v13429_v24  ;;  %v1549_v22 = vld [vmem:[%s15548_s17 + $0x1da8] sm:$0xff]  ;;  %v13482_v23 = vcombine.low %v1536_v11, %v1540_v12  ;;  %v13484_v24 = vcombine.low %v1537_v13, %v1541_v14  ;;  %v1600_v11 = vld [vmem:[%s15548_s17 + $0x1f40] sm:$0xff] }
 0x2b2   : > { %v13493_v26 = vcombine.high %v1545_v21, %v1549_v22  ;;  %v1604_v12 = vld [vmem:[%s15548_s17 + $0x1f60] sm:$0xff]  ;;  %v1601_v13 = vld [vmem:[%s15548_s17 + $0x1f48] sm:$0xff] }
 0x2b3   : > { %v1605_v14 = vld [vmem:[%s15548_s17 + $0x1f68] sm:$0xff] }
 0x2b4   : > { %8279 = vmatpush1.bf16.msra.mxu0 %v13426_v29  ;;  %8709 = vmatpush1.bf16.msra.mxu1 %v13428_v30  ;;  %v1553_v29 = vld [vmem:[%s15548_s17 + $0x1dc8] sm:$0xff] }
 0x2b5   : > { %8280 = vmatprep.subr.bf16.mxu0 %v13435_v31  ;;  %8710 = vmatprep.subr.bf16.mxu1 %v13437_v32  ;;  %v1557_v30 = vld [vmem:[%s15548_s17 + $0x1de8] sm:$0xff]  ;;  %v13490_v31 = vcombine.low %v1544_v19, %v1548_v20  ;;  %v13492_v32 = vcombine.low %v1545_v21, %v1549_v22  ;;  %v1608_v19 = vld [vmem:[%s15548_s17 + $0x1f80] sm:$0xff] }
 0x2b6   : > { %v13501_v34 = vcombine.high %v1553_v29, %v1557_v30  ;;  %v1612_v20 = vld [vmem:[%s15548_s17 + $0x1fa0] sm:$0xff]  ;;  %v1609_v21 = vld [vmem:[%s15548_s17 + $0x1f88] sm:$0xff] }
 0x2b7   : > { %v1613_v22 = vld [vmem:[%s15548_s17 + $0x1fa8] sm:$0xff] }
 0x2b8   : > { %8281 = vmatpush1.bf16.msra.mxu0 %v13434_v37  ;;  %8711 = vmatpush1.bf16.msra.mxu1 %v13436_v38  ;;  %v1561_v37 = vld [vmem:[%s15548_s17 + $0x1e08] sm:$0xff] }
 0x2b9   : > { %8293 = vmatprep.subr.bf16.mxu0 %v13443_v39  ;;  %8723 = vmatprep.subr.bf16.mxu1 %v13445_v40  ;;  %v1565_v38 = vld [vmem:[%s15548_s17 + $0x1e28] sm:$0xff]  ;;  %v13498_v39 = vcombine.low %v1552_v27, %v1556_v28  ;;  %v13500_v40 = vcombine.low %v1553_v29, %v1557_v30  ;;  %v1616_v27 = vld [vmem:[%s15548_s17 + $0x1fc0] sm:$0xff] }
 0x2ba   : > { %v13509_v42 = vcombine.high %v1561_v37, %v1565_v38  ;;  %v1620_v28 = vld [vmem:[%s15548_s17 + $0x1fe0] sm:$0xff]  ;;  %v1617_v29 = vld [vmem:[%s15548_s17 + $0x1fc8] sm:$0xff] }
 0x2bb   : > { %8283 = vmatmul.mubr.bf16.vlgmr.msra.gmra.mrb[0].mxu0 %v14421_v43  ;;  %8713 = vmatmul.mubr.bf16.vlgmr.msra.gmra.mrb[0].mxu1 %v14421_v43  ;;  %v1568_v43 = vld [vmem:[%s15548_s17 + $0x1e40] sm:$0xff]  ;;  %v1621_v30 = vld [vmem:[%s15548_s17 + $0x1fe8] sm:$0xff] }
 0x2bc   : > { %8294 = vmatpush1.bf16.msra.mxu0 %v13442_v46  ;;  %8724 = vmatpush1.bf16.msra.mxu1 %v13444_v47  ;;  %v1573_v46 = vld [vmem:[%s15548_s17 + $0x1e68] sm:$0xff]  ;;  %v13506_v47 = vcombine.low %v1560_v35, %v1564_v36  ;;  %v1624_v35 = vld [vmem:[%s15548_s17 + $0x2000] sm:$0xff] }
 0x2bd   : > { %8295 = vmatprep.subr.bf16.mxu0 %v13451_v48  ;;  %8725 = vmatprep.subr.bf16.mxu1 %v13453_v49  ;;  %v13508_v48 = vcombine.low %v1561_v37, %v1565_v38  ;;  %v13515_v49 = vcombine.high %v1568_v43, %v1572_v44  ;;  %v13517_v50 = vcombine.high %v1569_v45, %v1573_v46  ;;  %v1628_v36 = vld [vmem:[%s15548_s17 + $0x2020] sm:$0xff]  ;;  %v1625_v37 = vld [vmem:[%s15548_s17 + $0x2008] sm:$0xff] }
 0x2be   : > { %8325 = vmatprep.mubr.bf16.mxu0 %v14422_v52  ;;  %8755 = vmatprep.mubr.bf16.mxu1 %v14422_v52  ;;  %v1580_v52 = vld [vmem:[%s15548_s17 + $0x1ea0] sm:$0xff]  ;;  %v1629_v38 = vld [vmem:[%s15548_s17 + $0x2028] sm:$0xff] }
 0x2c0   : > { %8296 = vmatpush1.bf16.msra.mxu0 %v13450_v55  ;;  %8726 = vmatpush1.bf16.msra.mxu1 %v13452_v56  ;;  %v13514_v55 = vcombine.low %v1568_v43, %v1572_v44  ;;  %v13516_v56 = vcombine.low %v1569_v45, %v1573_v46  ;;  %v1632_v43 = vld [vmem:[%s15548_s17 + $0x2040] sm:$0xff]  ;;  %v1633_v46 = vld [vmem:[%s15548_s17 + $0x2048] sm:$0xff] }
 0x2c1   : > { %8297 = vmatprep.subr.bf16.mxu0 %v13459_v57  ;;  %8727 = vmatprep.subr.bf16.mxu1 %v13461_v58  ;;  %v13523_v57 = vcombine.high %v1576_v51, %v1580_v52  ;;  %v13525_v58 = vcombine.high %v1577_v53, %v1581_v54  ;;  %v1636_v44 = vld [vmem:[%s15548_s17 + $0x2060] sm:$0xff] }
 0x2c2   : > { %v14424_v45 = vld [vmem:[%s15546_s9 + $0x38] ss:$76 sps:$4 sm:$0xff]  }
 0x2c4   : > { %8298 = vmatpush1.bf16.msra.mxu0 %v13458_v63  ;;  %8728 = vmatpush1.bf16.msra.mxu1 %v13460_v0  ;;  %v13522_v63 = vcombine.low %v1576_v51, %v1580_v52  ;;  %v13524_v0 = vcombine.low %v1577_v53, %v1581_v54  ;;  %v1640_v52 = vld [vmem:[%s15548_s17 + $0x2080] sm:$0xff] }
 0x2c5   : > { %8299 = vmatprep.subr.bf16.mxu0 %v13467_v1  ;;  %8729 = vmatprep.subr.bf16.mxu1 %v13469_v2  ;;  %v13531_v1 = vcombine.high %v1584_v59, %v1588_v60  ;;  %v13533_v2 = vcombine.high %v1585_v61, %v1589_v62  ;;  %v1644_v53 = vld [vmem:[%s15548_s17 + $0x20a0] sm:$0xff] }
 0x2c6   : > { %v14425_v54 = vld [vmem:[%s15546_s9 + $0x44] ss:$76 sps:$4 sm:$0xff]  }
 0x2c8   : > { %8300 = vmatpush1.bf16.msra.mxu0 %v13466_v7  ;;  %8730 = vmatpush1.bf16.msra.mxu1 %v13468_v8  ;;  %v13530_v7 = vcombine.low %v1584_v59, %v1588_v60  ;;  %v13532_v8 = vcombine.low %v1585_v61, %v1589_v62  ;;  %v13587_v59 = vcombine.high %v1640_v52, %v1644_v53  ;;  %v1648_v61 = vld [vmem:[%s15548_s17 + $0x20c0] sm:$0xff] }
 0x2c9   : > { %8301 = vmatprep.subr.bf16.mxu0 %v13475_v9  ;;  %8731 = vmatprep.subr.bf16.mxu1 %v13477_v10  ;;  %v13539_v9 = vcombine.high %v1592_v3, %v1596_v4  ;;  %v13541_v10 = vcombine.high %v1593_v5, %v1597_v6  ;;  %v1652_v62 = vld [vmem:[%s15548_s17 + $0x20e0] sm:$0xff] }
 0x2cc   : > { %8302 = vmatpush1.bf16.msra.mxu0 %v13474_v15  ;;  %8732 = vmatpush1.bf16.msra.mxu1 %v13476_v16  ;;  %v13538_v15 = vcombine.low %v1592_v3, %v1596_v4  ;;  %v13540_v16 = vcombine.low %v1593_v5, %v1597_v6  ;;  %v13595_v3 = vcombine.high %v1648_v61, %v1652_v62  ;;  %v1656_v5 = vld [vmem:[%s15548_s17 + $0x2100] sm:$0xff] }
 0x2cd   : > { %8303 = vmatprep.subr.bf16.mxu0 %v13483_v17  ;;  %8733 = vmatprep.subr.bf16.mxu1 %v13485_v18  ;;  %v13547_v17 = vcombine.high %v1600_v11, %v1604_v12  ;;  %v13549_v18 = vcombine.high %v1601_v13, %v1605_v14  ;;  %v1660_v6 = vld [vmem:[%s15548_s17 + $0x2120] sm:$0xff] }
 0x2d0   : > { %8304 = vmatpush1.bf16.msra.mxu0 %v13482_v23  ;;  %8734 = vmatpush1.bf16.msra.mxu1 %v13484_v24  ;;  %v13546_v23 = vcombine.low %v1600_v11, %v1604_v12  ;;  %v13548_v24 = vcombine.low %v1601_v13, %v1605_v14  ;;  %v13603_v11 = vcombine.high %v1656_v5, %v1660_v6  ;;  %v1664_v13 = vld [vmem:[%s15548_s17 + $0x2140] sm:$0xff] }
 0x2d1   : > { %8305 = vmatprep.subr.bf16.mxu0 %v13491_v25  ;;  %8735 = vmatprep.subr.bf16.mxu1 %v13493_v26  ;;  %v13555_v25 = vcombine.high %v1608_v19, %v1612_v20  ;;  %v13557_v26 = vcombine.high %v1609_v21, %v1613_v22  ;;  %v1668_v14 = vld [vmem:[%s15548_s17 + $0x2160] sm:$0xff] }
 0x2d4   : > { %8306 = vmatpush1.bf16.msra.mxu0 %v13490_v31  ;;  %8736 = vmatpush1.bf16.msra.mxu1 %v13492_v32  ;;  %v13554_v31 = vcombine.low %v1608_v19, %v1612_v20  ;;  %v13556_v32 = vcombine.low %v1609_v21, %v1613_v22  ;;  %v13611_v19 = vcombine.high %v1664_v13, %v1668_v14  ;;  %v1672_v21 = vld [vmem:[%s15548_s17 + $0x2180] sm:$0xff] }
 0x2d5   : > { %8307 = vmatprep.subr.bf16.mxu0 %v13499_v33  ;;  %8737 = vmatprep.subr.bf16.mxu1 %v13501_v34  ;;  %v13563_v33 = vcombine.high %v1616_v27, %v1620_v28  ;;  %v13565_v34 = vcombine.high %v1617_v29, %v1621_v30  ;;  %v1676_v22 = vld [vmem:[%s15548_s17 + $0x21a0] sm:$0xff] }
 0x2d8   : > { %8308 = vmatpush1.bf16.msra.mxu0 %v13498_v39  ;;  %8738 = vmatpush1.bf16.msra.mxu1 %v13500_v40  ;;  %v13562_v39 = vcombine.low %v1616_v27, %v1620_v28  ;;  %v13564_v40 = vcombine.low %v1617_v29, %v1621_v30  ;;  %v13619_v27 = vcombine.high %v1672_v21, %v1676_v22  ;;  %v1680_v29 = vld [vmem:[%s15548_s17 + $0x21c0] sm:$0xff] }
 0x2d9   : > { %8309 = vmatprep.subr.bf16.mxu0 %v13507_v41  ;;  %8739 = vmatprep.subr.bf16.mxu1 %v13509_v42  ;;  %v13571_v41 = vcombine.high %v1624_v35, %v1628_v36  ;;  %v13573_v42 = vcombine.high %v1625_v37, %v1629_v38  ;;  %v1684_v30 = vld [vmem:[%s15548_s17 + $0x21e0] sm:$0xff] }
 0x2dc   : > { %8310 = vmatpush1.bf16.msra.mxu0 %v13506_v47  ;;  %8740 = vmatpush1.bf16.msra.mxu1 %v13508_v48  ;;  %v1637_v47 = vld [vmem:[%s15548_s17 + $0x2068] sm:$0xff]  ;;  %v13570_v48 = vcombine.low %v1624_v35, %v1628_v36  ;;  %v13627_v35 = vcombine.high %v1680_v29, %v1684_v30 }
 0x2dd   : > { %8311 = vmatprep.subr.bf16.mxu0 %v13515_v49  ;;  %8741 = vmatprep.subr.bf16.mxu1 %v13517_v50  ;;  %v13572_v49 = vcombine.low %v1625_v37, %v1629_v38  ;;  %v13579_v50 = vcombine.high %v1632_v43, %v1636_v44  ;;  %v13581_v51 = vcombine.high %v1633_v46, %v1637_v47  ;;  %v1688_v37 = vld [vmem:[%s15548_s17 + $0x2200] sm:$0xff] }
 0x2de   : > { %v1692_v38 = vld [vmem:[%s15548_s17 + $0x2220] sm:$0xff] }
 0x2e0   : > { %8312 = vmatpush1.bf16.msra.mxu0 %v13514_v55  ;;  %8742 = vmatpush1.bf16.msra.mxu1 %v13516_v56  ;;  %v1641_v55 = vld [vmem:[%s15548_s17 + $0x2088] sm:$0xff] }
 0x2e1   : > { %8313 = vmatprep.subr.bf16.mxu0 %v13523_v57  ;;  %8743 = vmatprep.subr.bf16.mxu1 %v13525_v58  ;;  %v1645_v56 = vld [vmem:[%s15548_s17 + $0x20a8] sm:$0xff]  ;;  %v13578_v57 = vcombine.low %v1632_v43, %v1636_v44  ;;  %v13580_v58 = vcombine.low %v1633_v46, %v1637_v47  ;;  %v13635_v43 = vcombine.high %v1688_v37, %v1692_v38  ;;  %v1700_v46 = vld [vmem:[%s15548_s17 + $0x2260] sm:$0xff] }
 0x2e2   : > { %v13589_v60 = vcombine.high %v1641_v55, %v1645_v56  ;;  %v1697_v47 = vld [vmem:[%s15548_s17 + $0x2248] sm:$0xff] }
 0x2e4   : > { %8314 = vmatpush1.bf16.msra.mxu0 %v13522_v63  ;;  %8744 = vmatpush1.bf16.msra.mxu1 %v13524_v0  ;;  %v1649_v63 = vld [vmem:[%s15548_s17 + $0x20c8] sm:$0xff] }
 0x2e5   : > { %8315 = vmatprep.subr.bf16.mxu0 %v13531_v1  ;;  %8745 = vmatprep.subr.bf16.mxu1 %v13533_v2  ;;  %v1653_v0 = vld [vmem:[%s15548_s17 + $0x20e8] sm:$0xff]  ;;  %v13586_v1 = vcombine.low %v1640_v52, %v1644_v53  ;;  %v13588_v2 = vcombine.low %v1641_v55, %v1645_v56  ;;  %v1704_v53 = vld [vmem:[%s15548_s17 + $0x2280] sm:$0xff] }
 0x2e6   : > { %v13597_v4 = vcombine.high %v1649_v63, %v1653_v0  ;;  %v1705_v55 = vld [vmem:[%s15548_s17 + $0x2288] sm:$0xff] }
 0x2e7   : > { %v1709_v56 = vld [vmem:[%s15548_s17 + $0x22a8] sm:$0xff] }
 0x2e8   : > { %8316 = vmatpush1.bf16.msra.mxu0 %v13530_v7  ;;  %8746 = vmatpush1.bf16.msra.mxu1 %v13532_v8  ;;  %v1657_v7 = vld [vmem:[%s15548_s17 + $0x2108] sm:$0xff] }
 0x2e9   : > { %8317 = vmatprep.subr.bf16.mxu0 %v13539_v9  ;;  %8747 = vmatprep.subr.bf16.mxu1 %v13541_v10  ;;  %v1661_v8 = vld [vmem:[%s15548_s17 + $0x2128] sm:$0xff]  ;;  %v13594_v9 = vcombine.low %v1648_v61, %v1652_v62  ;;  %v13596_v10 = vcombine.low %v1649_v63, %v1653_v0  ;;  %v1712_v61 = vld [vmem:[%s15548_s17 + $0x22c0] sm:$0xff] }
 0x2ea   : > { %v13605_v12 = vcombine.high %v1657_v7, %v1661_v8  ;;  %v1716_v62 = vld [vmem:[%s15548_s17 + $0x22e0] sm:$0xff]  ;;  %v1713_v63 = vld [vmem:[%s15548_s17 + $0x22c8] sm:$0xff] }
 0x2eb   : > { %v1717_v0 = vld [vmem:[%s15548_s17 + $0x22e8] sm:$0xff] }
 0x2ec   : > { %8318 = vmatpush1.bf16.msra.mxu0 %v13538_v15  ;;  %8748 = vmatpush1.bf16.msra.mxu1 %v13540_v16  ;;  %v1665_v15 = vld [vmem:[%s15548_s17 + $0x2148] sm:$0xff] }
 0x2ed   : > { %8319 = vmatprep.subr.bf16.mxu0 %v13547_v17  ;;  %8749 = vmatprep.subr.bf16.mxu1 %v13549_v18  ;;  %v1669_v16 = vld [vmem:[%s15548_s17 + $0x2168] sm:$0xff]  ;;  %v13602_v17 = vcombine.low %v1656_v5, %v1660_v6  ;;  %v13604_v18 = vcombine.low %v1657_v7, %v1661_v8  ;;  %v1720_v5 = vld [vmem:[%s15548_s17 + $0x2300] sm:$0xff] }
 0x2ee   : > { %v13613_v20 = vcombine.high %v1665_v15, %v1669_v16  ;;  %v1724_v6 = vld [vmem:[%s15548_s17 + $0x2320] sm:$0xff]  ;;  %v1721_v7 = vld [vmem:[%s15548_s17 + $0x2308] sm:$0xff] }
 0x2ef   : > { %v1725_v8 = vld [vmem:[%s15548_s17 + $0x2328] sm:$0xff] }
 0x2f0   : > { %8320 = vmatpush1.bf16.msra.mxu0 %v13546_v23  ;;  %8750 = vmatpush1.bf16.msra.mxu1 %v13548_v24  ;;  %v1673_v23 = vld [vmem:[%s15548_s17 + $0x2188] sm:$0xff] }
 0x2f1   : > { %8321 = vmatprep.subr.bf16.mxu0 %v13555_v25  ;;  %8751 = vmatprep.subr.bf16.mxu1 %v13557_v26  ;;  %v1677_v24 = vld [vmem:[%s15548_s17 + $0x21a8] sm:$0xff]  ;;  %v13610_v25 = vcombine.low %v1664_v13, %v1668_v14  ;;  %v13612_v26 = vcombine.low %v1665_v15, %v1669_v16  ;;  %v1728_v13 = vld [vmem:[%s15548_s17 + $0x2340] sm:$0xff] }
 0x2f2   : > { %v13621_v28 = vcombine.high %v1673_v23, %v1677_v24  ;;  %v1732_v14 = vld [vmem:[%s15548_s17 + $0x2360] sm:$0xff]  ;;  %v1729_v15 = vld [vmem:[%s15548_s17 + $0x2348] sm:$0xff] }
 0x2f3   : > { %v1733_v16 = vld [vmem:[%s15548_s17 + $0x2368] sm:$0xff] }
 0x2f4   : > { %8322 = vmatpush1.bf16.msra.mxu0 %v13554_v31  ;;  %8752 = vmatpush1.bf16.msra.mxu1 %v13556_v32  ;;  %v1681_v31 = vld [vmem:[%s15548_s17 + $0x21c8] sm:$0xff] }
 0x2f5   : > { %8323 = vmatprep.subr.bf16.mxu0 %v13563_v33  ;;  %8753 = vmatprep.subr.bf16.mxu1 %v13565_v34  ;;  %v1685_v32 = vld [vmem:[%s15548_s17 + $0x21e8] sm:$0xff]  ;;  %v13618_v33 = vcombine.low %v1672_v21, %v1676_v22  ;;  %v13620_v34 = vcombine.low %v1673_v23, %v1677_v24  ;;  %v1736_v21 = vld [vmem:[%s15548_s17 + $0x2380] sm:$0xff] }
 0x2f6   : > { %v13629_v36 = vcombine.high %v1681_v31, %v1685_v32  ;;  %v1740_v22 = vld [vmem:[%s15548_s17 + $0x23a0] sm:$0xff]  ;;  %v1737_v23 = vld [vmem:[%s15548_s17 + $0x2388] sm:$0xff] }
 0x2f7   : > { %v1741_v24 = vld [vmem:[%s15548_s17 + $0x23a8] sm:$0xff] }
 0x2f8   : > { %8324 = vmatpush1.bf16.msra.mxu0 %v13562_v39  ;;  %8754 = vmatpush1.bf16.msra.mxu1 %v13564_v40  ;;  %v1689_v39 = vld [vmem:[%s15548_s17 + $0x2208] sm:$0xff] }
 0x2f9   : > { %8336 = vmatprep.subr.bf16.mxu0 %v13571_v41  ;;  %8766 = vmatprep.subr.bf16.mxu1 %v13573_v42  ;;  %v1693_v40 = vld [vmem:[%s15548_s17 + $0x2228] sm:$0xff]  ;;  %v13626_v41 = vcombine.low %v1680_v29, %v1684_v30  ;;  %v13628_v42 = vcombine.low %v1681_v31, %v1685_v32  ;;  %v1744_v29 = vld [vmem:[%s15548_s17 + $0x23c0] sm:$0xff] }
 0x2fa   : > { %v13637_v44 = vcombine.high %v1689_v39, %v1693_v40  ;;  %v1748_v30 = vld [vmem:[%s15548_s17 + $0x23e0] sm:$0xff]  ;;  %v1745_v31 = vld [vmem:[%s15548_s17 + $0x23c8] sm:$0xff] }
 0x2fb   : > { %8326 = vmatmul.mubr.bf16.vlgmr.msra.gmra.mrb[0].mxu0 %v14424_v45  ;;  %8756 = vmatmul.mubr.bf16.vlgmr.msra.gmra.mrb[0].mxu1 %v14424_v45  ;;  %v1696_v45 = vld [vmem:[%s15548_s17 + $0x2240] sm:$0xff]  ;;  %v1749_v32 = vld [vmem:[%s15548_s17 + $0x23e8] sm:$0xff] }
 0x2fc   : > { %8337 = vmatpush1.bf16.msra.mxu0 %v13570_v48  ;;  %8767 = vmatpush1.bf16.msra.mxu1 %v13572_v49  ;;  %v1701_v48 = vld [vmem:[%s15548_s17 + $0x2268] sm:$0xff]  ;;  %v13634_v49 = vcombine.low %v1688_v37, %v1692_v38  ;;  %v1752_v37 = vld [vmem:[%s15548_s17 + $0x2400] sm:$0xff] }
 0x2fd   : > { %8338 = vmatprep.subr.bf16.mxu0 %v13579_v50  ;;  %8768 = vmatprep.subr.bf16.mxu1 %v13581_v51  ;;  %v13636_v50 = vcombine.low %v1689_v39, %v1693_v40  ;;  %v13643_v51 = vcombine.high %v1696_v45, %v1700_v46  ;;  %v13645_v52 = vcombine.high %v1697_v47, %v1701_v48  ;;  %v1756_v38 = vld [vmem:[%s15548_s17 + $0x2420] sm:$0xff]  ;;  %v1753_v39 = vld [vmem:[%s15548_s17 + $0x2408] sm:$0xff] }
 0x2fe   : > { %8368 = vmatprep.mubr.bf16.mxu0 %v14425_v54  ;;  %8798 = vmatprep.mubr.bf16.mxu1 %v14425_v54  ;;  %v1708_v54 = vld [vmem:[%s15548_s17 + $0x22a0] sm:$0xff]  ;;  %v1757_v40 = vld [vmem:[%s15548_s17 + $0x2428] sm:$0xff] }
 0x300   : > { %8339 = vmatpush1.bf16.msra.mxu0 %v13578_v57  ;;  %8769 = vmatpush1.bf16.msra.mxu1 %v13580_v58  ;;  %v13642_v57 = vcombine.low %v1696_v45, %v1700_v46  ;;  %v13644_v58 = vcombine.low %v1697_v47, %v1701_v48  ;;  %v1760_v45 = vld [vmem:[%s15548_s17 + $0x2440] sm:$0xff]  ;;  %v14427_v47 = vld [vmem:[%s15546_s9 + $0x40] ss:$76 sps:$4 sm:$0xff]  }
 0x301   : > { %8340 = vmatprep.subr.bf16.mxu0 %v13587_v59  ;;  %8770 = vmatprep.subr.bf16.mxu1 %v13589_v60  ;;  %v13651_v59 = vcombine.high %v1704_v53, %v1708_v54  ;;  %v13653_v60 = vcombine.high %v1705_v55, %v1709_v56  ;;  %v1764_v46 = vld [vmem:[%s15548_s17 + $0x2460] sm:$0xff]  ;;  %v1761_v48 = vld [vmem:[%s15548_s17 + $0x2448] sm:$0xff] }
 0x304   : > { %8341 = vmatpush1.bf16.msra.mxu0 %v13586_v1  ;;  %8771 = vmatpush1.bf16.msra.mxu1 %v13588_v2  ;;  %v13650_v1 = vcombine.low %v1704_v53, %v1708_v54  ;;  %v13652_v2 = vcombine.low %v1705_v55, %v1709_v56  ;;  %v1768_v54 = vld [vmem:[%s15548_s17 + $0x2480] sm:$0xff]  ;;  %v1769_v56 = vld [vmem:[%s15548_s17 + $0x2488] sm:$0xff] }
 0x305   : > { %8342 = vmatprep.subr.bf16.mxu0 %v13595_v3  ;;  %8772 = vmatprep.subr.bf16.mxu1 %v13597_v4  ;;  %v13659_v3 = vcombine.high %v1712_v61, %v1716_v62  ;;  %v13661_v4 = vcombine.high %v1713_v63, %v1717_v0  ;;  %v1772_v55 = vld [vmem:[%s15548_s17 + $0x24a0] sm:$0xff] }
 0x308   : > { %8343 = vmatpush1.bf16.msra.mxu0 %v13594_v9  ;;  %8773 = vmatpush1.bf16.msra.mxu1 %v13596_v10  ;;  %v13658_v9 = vcombine.low %v1712_v61, %v1716_v62  ;;  %v13660_v10 = vcombine.low %v1713_v63, %v1717_v0  ;;  %v1776_v62 = vld [vmem:[%s15548_s17 + $0x24c0] sm:$0xff]  ;;  %v15210_v0 = vmov 0  }
 0x309   : > { %8344 = vmatprep.subr.bf16.mxu0 %v13603_v11  ;;  %8774 = vmatprep.subr.bf16.mxu1 %v13605_v12  ;;  %v13667_v11 = vcombine.high %v1720_v5, %v1724_v6  ;;  %v13669_v12 = vcombine.high %v1721_v7, %v1725_v8  ;;  %v1780_v63 = vld [vmem:[%s15548_s17 + $0x24e0] sm:$0xff] }
 0x30c   : > { %8345 = vmatpush1.bf16.msra.mxu0 %v13602_v17  ;;  %8775 = vmatpush1.bf16.msra.mxu1 %v13604_v18  ;;  %v13666_v17 = vcombine.low %v1720_v5, %v1724_v6  ;;  %v13668_v18 = vcombine.low %v1721_v7, %v1725_v8  ;;  %v13723_v5 = vcombine.high %v1776_v62, %v1780_v63  ;;  %v1784_v7 = vld [vmem:[%s15548_s17 + $0x2500] sm:$0xff] }
 0x30d   : > { %8346 = vmatprep.subr.bf16.mxu0 %v13611_v19  ;;  %8776 = vmatprep.subr.bf16.mxu1 %v13613_v20  ;;  %v13675_v19 = vcombine.high %v1728_v13, %v1732_v14  ;;  %v13677_v20 = vcombine.high %v1729_v15, %v1733_v16  ;;  %v1788_v8 = vld [vmem:[%s15548_s17 + $0x2520] sm:$0xff] }
 0x310   : > { %8347 = vmatpush1.bf16.msra.mxu0 %v13610_v25  ;;  %8777 = vmatpush1.bf16.msra.mxu1 %v13612_v26  ;;  %v13674_v25 = vcombine.low %v1728_v13, %v1732_v14  ;;  %v13676_v26 = vcombine.low %v1729_v15, %v1733_v16  ;;  %v13731_v13 = vcombine.high %v1784_v7, %v1788_v8  ;;  %v1792_v15 = vld [vmem:[%s15548_s17 + $0x2540] sm:$0xff] }
 0x311   : > { %8348 = vmatprep.subr.bf16.mxu0 %v13619_v27  ;;  %8778 = vmatprep.subr.bf16.mxu1 %v13621_v28  ;;  %v13683_v27 = vcombine.high %v1736_v21, %v1740_v22  ;;  %v13685_v28 = vcombine.high %v1737_v23, %v1741_v24  ;;  %v1796_v16 = vld [vmem:[%s15548_s17 + $0x2560] sm:$0xff] }
 0x314   : > { %8349 = vmatpush1.bf16.msra.mxu0 %v13618_v33  ;;  %8779 = vmatpush1.bf16.msra.mxu1 %v13620_v34  ;;  %v13682_v33 = vcombine.low %v1736_v21, %v1740_v22  ;;  %v13684_v34 = vcombine.low %v1737_v23, %v1741_v24  ;;  %v13739_v21 = vcombine.high %v1792_v15, %v1796_v16  ;;  %v1800_v23 = vld [vmem:[%s15548_s17 + $0x2580] sm:$0xff] }
 0x315   : > { %8350 = vmatprep.subr.bf16.mxu0 %v13627_v35  ;;  %8780 = vmatprep.subr.bf16.mxu1 %v13629_v36  ;;  %v13691_v35 = vcombine.high %v1744_v29, %v1748_v30  ;;  %v13693_v36 = vcombine.high %v1745_v31, %v1749_v32  ;;  %v1804_v24 = vld [vmem:[%s15548_s17 + $0x25a0] sm:$0xff] }
 0x318   : > { %8351 = vmatpush1.bf16.msra.mxu0 %v13626_v41  ;;  %8781 = vmatpush1.bf16.msra.mxu1 %v13628_v42  ;;  %v13690_v41 = vcombine.low %v1744_v29, %v1748_v30  ;;  %v13692_v42 = vcombine.low %v1745_v31, %v1749_v32  ;;  %v13747_v29 = vcombine.high %v1800_v23, %v1804_v24  ;;  %v1808_v31 = vld [vmem:[%s15548_s17 + $0x25c0] sm:$0xff] }
 0x319   : > { %8352 = vmatprep.subr.bf16.mxu0 %v13635_v43  ;;  %8782 = vmatprep.subr.bf16.mxu1 %v13637_v44  ;;  %v13699_v43 = vcombine.high %v1752_v37, %v1756_v38  ;;  %v13701_v44 = vcombine.high %v1753_v39, %v1757_v40  ;;  %v1812_v32 = vld [vmem:[%s15548_s17 + $0x25e0] sm:$0xff] }
 0x31c   : > { %8353 = vmatpush1.bf16.msra.mxu0 %v13634_v49  ;;  %8783 = vmatpush1.bf16.msra.mxu1 %v13636_v50  ;;  %v1765_v49 = vld [vmem:[%s15548_s17 + $0x2468] sm:$0xff]  ;;  %v13698_v50 = vcombine.low %v1752_v37, %v1756_v38  ;;  %v13755_v37 = vcombine.high %v1808_v31, %v1812_v32 }
 0x31d   : > { %8354 = vmatprep.subr.bf16.mxu0 %v13643_v51  ;;  %8784 = vmatprep.subr.bf16.mxu1 %v13645_v52  ;;  %v13700_v51 = vcombine.low %v1753_v39, %v1757_v40  ;;  %v13707_v52 = vcombine.high %v1760_v45, %v1764_v46  ;;  %v13709_v53 = vcombine.high %v1761_v48, %v1765_v49  ;;  %v602_v39 = vld [vmem:[%s15548_s17 + $0x10] sm:$0xff] }
 0x31e   : > { %v606_v40 = vld [vmem:[%s15548_s17 + $0x30] sm:$0xff] }
 0x320   : > { %8355 = vmatpush1.bf16.msra.mxu0 %v13642_v57  ;;  %8785 = vmatpush1.bf16.msra.mxu1 %v13644_v58  ;;  %v1773_v57 = vld [vmem:[%s15548_s17 + $0x24a8] sm:$0xff]  ;;  %v13706_v58 = vcombine.low %v1760_v45, %v1764_v46  ;;  %v12551_v45 = vcombine.high %v602_v39, %v606_v40 }
 0x321   : > { %8356 = vmatprep.subr.bf16.mxu0 %v13651_v59  ;;  %8786 = vmatprep.subr.bf16.mxu1 %v13653_v60  ;;  %v13708_v59 = vcombine.low %v1761_v48, %v1765_v49  ;;  %v13715_v60 = vcombine.high %v1768_v54, %v1772_v55  ;;  %v13717_v61 = vcombine.high %v1769_v56, %v1773_v57  ;;  %v614_v48 = vld [vmem:[%s15548_s17 + $0x70] sm:$0xff] }
 0x322   : > { %v14428_v49 = vld [vmem:[%s15546_s9 + $0x48] ss:$76 sps:$4 sm:$0xff]  }
 0x324   : > { %8357 = vmatpush1.bf16.msra.mxu0 %v13650_v1  ;;  %8787 = vmatpush1.bf16.msra.mxu1 %v13652_v2  ;;  %v1777_v1 = vld [vmem:[%s15548_s17 + $0x24c8] sm:$0xff] }
 0x325   : > { %8358 = vmatprep.subr.bf16.mxu0 %v13659_v3  ;;  %8788 = vmatprep.subr.bf16.mxu1 %v13661_v4  ;;  %v1781_v2 = vld [vmem:[%s15548_s17 + $0x24e8] sm:$0xff]  ;;  %v13714_v3 = vcombine.low %v1768_v54, %v1772_v55  ;;  %v13716_v4 = vcombine.low %v1769_v56, %v1773_v57  ;;  %v618_v56 = vld [vmem:[%s15548_s17 + $0x90] sm:$0xff] }
 0x326   : > { %v13725_v6 = vcombine.high %v1777_v1, %v1781_v2  ;;  %v622_v57 = vld [vmem:[%s15548_s17 + $0xb0] sm:$0xff] }
 0x328   : > { %8359 = vmatpush1.bf16.msra.mxu0 %v13658_v9  ;;  %8789 = vmatpush1.bf16.msra.mxu1 %v13660_v10  ;;  %v1785_v9 = vld [vmem:[%s15548_s17 + $0x2508] sm:$0xff] }
 0x329   : > { %8360 = vmatprep.subr.bf16.mxu0 %v13667_v11  ;;  %8790 = vmatprep.subr.bf16.mxu1 %v13669_v12  ;;  %v1789_v10 = vld [vmem:[%s15548_s17 + $0x2528] sm:$0xff]  ;;  %v13722_v11 = vcombine.low %v1776_v62, %v1780_v63  ;;  %v13724_v12 = vcombine.low %v1777_v1, %v1781_v2  ;;  %v12567_v62 = vcombine.high %v618_v56, %v622_v57  ;;  %v626_v1 = vld [vmem:[%s15548_s17 + $0xd0] sm:$0xff] }
 0x32a   : > { %v13733_v14 = vcombine.high %v1785_v9, %v1789_v10  ;;  %v630_v2 = vld [vmem:[%s15548_s17 + $0xf0] sm:$0xff] }
 0x32c   : > { %8361 = vmatpush1.bf16.msra.mxu0 %v13666_v17  ;;  %8791 = vmatpush1.bf16.msra.mxu1 %v13668_v18  ;;  %v1793_v17 = vld [vmem:[%s15548_s17 + $0x2548] sm:$0xff] }
 0x32d   : > { %8362 = vmatprep.subr.bf16.mxu0 %v13675_v19  ;;  %8792 = vmatprep.subr.bf16.mxu1 %v13677_v20  ;;  %v1797_v18 = vld [vmem:[%s15548_s17 + $0x2568] sm:$0xff]  ;;  %v13730_v19 = vcombine.low %v1784_v7, %v1788_v8  ;;  %v13732_v20 = vcombine.low %v1785_v9, %v1789_v10  ;;  %v12575_v8 = vcombine.high %v626_v1, %v630_v2  ;;  %v634_v10 = vld [vmem:[%s15548_s17 + $0x110] sm:$0xff] }
 0x32e   : > { %v13741_v22 = vcombine.high %v1793_v17, %v1797_v18 }
 0x330   : > { %8363 = vmatpush1.bf16.msra.mxu0 %v13674_v25  ;;  %8793 = vmatpush1.bf16.msra.mxu1 %v13676_v26  ;;  %v1801_v25 = vld [vmem:[%s15548_s17 + $0x2588] sm:$0xff] }
 0x331   : > { %8364 = vmatprep.subr.bf16.mxu0 %v13683_v27  ;;  %8794 = vmatprep.subr.bf16.mxu1 %v13685_v28  ;;  %v1805_v26 = vld [vmem:[%s15548_s17 + $0x25a8] sm:$0xff]  ;;  %v13738_v27 = vcombine.low %v1792_v15, %v1796_v16  ;;  %v13740_v28 = vcombine.low %v1793_v17, %v1797_v18  ;;  %v642_v18 = vld [vmem:[%s15548_s17 + $0x150] sm:$0xff] }
 0x332   : > { %v13749_v30 = vcombine.high %v1801_v25, %v1805_v26 }
 0x334   : > { %8365 = vmatpush1.bf16.msra.mxu0 %v13682_v33  ;;  %8795 = vmatpush1.bf16.msra.mxu1 %v13684_v34  ;;  %v1809_v33 = vld [vmem:[%s15548_s17 + $0x25c8] sm:$0xff] }
 0x335   : > { %8366 = vmatprep.subr.bf16.mxu0 %v13691_v35  ;;  %8796 = vmatprep.subr.bf16.mxu1 %v13693_v36  ;;  %v1813_v34 = vld [vmem:[%s15548_s17 + $0x25e8] sm:$0xff]  ;;  %v13746_v35 = vcombine.low %v1800_v23, %v1804_v24  ;;  %v13748_v36 = vcombine.low %v1801_v25, %v1805_v26  ;;  %v650_v26 = vld [vmem:[%s15548_s17 + $0x190] sm:$0xff] }
 0x336   : > { %v13757_v38 = vcombine.high %v1809_v33, %v1813_v34 }
 0x338   : > { %8367 = vmatpush1.bf16.msra.mxu0 %v13690_v41  ;;  %8797 = vmatpush1.bf16.msra.mxu1 %v13692_v42  ;;  %v603_v41 = vld [vmem:[%s15548_s17 + $0x18] sm:$0xff] }
 0x339   : > { %8379 = vmatprep.subr.bf16.mxu0 %v13699_v43  ;;  %8809 = vmatprep.subr.bf16.mxu1 %v13701_v44  ;;  %v607_v42 = vld [vmem:[%s15548_s17 + $0x38] sm:$0xff]  ;;  %v13754_v43 = vcombine.low %v1808_v31, %v1812_v32  ;;  %v13756_v44 = vcombine.low %v1809_v33, %v1813_v34  ;;  %v658_v34 = vld [vmem:[%s15548_s17 + $0x1d0] sm:$0xff] }
 0x33a   : > { %v12553_v46 = vcombine.high %v603_v41, %v607_v42 }
 0x33b   : > { %8369 = vmatmul.mubr.bf16.vlgmr.msra.gmra.mrb[0].mxu0 %v14427_v47  ;;  %8799 = vmatmul.mubr.bf16.vlgmr.msra.gmra.mrb[0].mxu1 %v14427_v47  ;;  %v610_v47 = vld [vmem:[%s15548_s17 + $0x50] sm:$0xff] }
 0x33c   : > { %8380 = vmatpush1.bf16.msra.mxu0 %v13698_v50  ;;  %8810 = vmatpush1.bf16.msra.mxu1 %v13700_v51  ;;  %v611_v50 = vld [vmem:[%s15548_s17 + $0x58] sm:$0xff]  ;;  %v12559_v54 = vcombine.high %v610_v47, %v614_v48 }
 0x33d   : > { %8381 = vmatprep.subr.bf16.mxu0 %v13707_v52  ;;  %8811 = vmatprep.subr.bf16.mxu1 %v13709_v53  ;;  %v615_v51 = vld [vmem:[%s15548_s17 + $0x78] sm:$0xff]  ;;  %v12550_v52 = vcombine.low %v602_v39, %v606_v40  ;;  %v12552_v53 = vcombine.low %v603_v41, %v607_v42  ;;  %v666_v42 = vld [vmem:[%s15548_s17 + $0x210] sm:$0xff] }
 0x33e   : > { %8411 = vmatprep.mubr.bf16.mxu0 %v15210_v0  ;;  %8841 = vmatprep.mubr.bf16.mxu1 %v15210_v0  ;;  %v12561_v55 = vcombine.high %v611_v50, %v615_v51 }
 0x340   : > { %8382 = vmatpush1.bf16.msra.mxu0 %v13706_v58  ;;  %8812 = vmatpush1.bf16.msra.mxu1 %v13708_v59  ;;  %v619_v58 = vld [vmem:[%s15548_s17 + $0x98] sm:$0xff] }
 0x341   : > { %8383 = vmatprep.subr.bf16.mxu0 %v13715_v60  ;;  %8813 = vmatprep.subr.bf16.mxu1 %v13717_v61  ;;  %v623_v59 = vld [vmem:[%s15548_s17 + $0xb8] sm:$0xff]  ;;  %v12558_v60 = vcombine.low %v610_v47, %v614_v48  ;;  %v12560_v61 = vcombine.low %v611_v50, %v615_v51  ;;  %v674_v50 = vld [vmem:[%s15548_s17 + $0x250] sm:$0xff] }
 0x342   : > { %v12569_v63 = vcombine.high %v619_v58, %v623_v59  ;;  %v12568_v7 = vcombine.low %v619_v58, %v623_v59  ;;  %v678_v51 = vld [vmem:[%s15548_s17 + $0x270] sm:$0xff] }
 0x343   : > { %v682_v58 = vld [vmem:[%s15548_s17 + $0x290] sm:$0xff] }
 0x344   : > { %8384 = vmatpush1.bf16.msra.mxu0 %v13714_v3  ;;  %8814 = vmatpush1.bf16.msra.mxu1 %v13716_v4  ;;  %v14429_v3 = vld [vmem:[%s15546_s9 + $0x4] ss:$76 sps:$4 sm:$0xff]  }
 0x345   : > { %8385 = vmatprep.subr.bf16.mxu0 %v13723_v5  ;;  %8815 = vmatprep.subr.bf16.mxu1 %v13725_v6  ;;  %v627_v4 = vld [vmem:[%s15548_s17 + $0xd8] sm:$0xff]  ;;  %v12566_v6 = vcombine.low %v618_v56, %v622_v57  ;;  %v12623_v56 = vcombine.high %v674_v50, %v678_v51  ;;  %v686_v59 = vld [vmem:[%s15548_s17 + $0x2b0] sm:$0xff] }
 0x346   : > { %v631_v5 = vld [vmem:[%s15548_s17 + $0xf8] sm:$0xff] }
 0x347   : > { %v12577_v9 = vcombine.high %v627_v4, %v631_v5  ;;  %v12576_v15 = vcombine.low %v627_v4, %v631_v5  ;;  %v694_v4 = vld [vmem:[%s15548_s17 + $0x2f0] sm:$0xff]  ;;  %v691_v5 = vld [vmem:[%s15548_s17 + $0x2d8] sm:$0xff] }
 0x348   : > { %8386 = vmatpush1.bf16.msra.mxu0 %v13722_v11  ;;  %8816 = vmatpush1.bf16.msra.mxu1 %v13724_v12  ;;  %v638_v11 = vld [vmem:[%s15548_s17 + $0x130] sm:$0xff]  ;;  %v635_v12 = vld [vmem:[%s15548_s17 + $0x118] sm:$0xff] }
 0x349   : > { %8387 = vmatprep.subr.bf16.mxu0 %v13731_v13  ;;  %8817 = vmatprep.subr.bf16.mxu1 %v13733_v14  ;;  %v639_v13 = vld [vmem:[%s15548_s17 + $0x138] sm:$0xff]  ;;  %v12574_v14 = vcombine.low %v626_v1, %v630_v2  ;;  %v12583_v16 = vcombine.high %v634_v10, %v638_v11  ;;  %v12631_v1 = vcombine.high %v682_v58, %v686_v59 }
 0x34a   : > { %v12585_v17 = vcombine.high %v635_v12, %v639_v13  ;;  %v12584_v23 = vcombine.low %v635_v12, %v639_v13  ;;  %v702_v12 = vld [vmem:[%s15548_s17 + $0x330] sm:$0xff]  ;;  %v699_v13 = vld [vmem:[%s15548_s17 + $0x318] sm:$0xff] }
 0x34c   : > { %8388 = vmatpush1.bf16.msra.mxu0 %v13730_v19  ;;  %8818 = vmatpush1.bf16.msra.mxu1 %v13732_v20  ;;  %v646_v19 = vld [vmem:[%s15548_s17 + $0x170] sm:$0xff]  ;;  %v643_v20 = vld [vmem:[%s15548_s17 + $0x158] sm:$0xff] }
 0x34d   : > { %8389 = vmatprep.subr.bf16.mxu0 %v13739_v21  ;;  %8819 = vmatprep.subr.bf16.mxu1 %v13741_v22  ;;  %v647_v21 = vld [vmem:[%s15548_s17 + $0x178] sm:$0xff]  ;;  %v12582_v22 = vcombine.low %v634_v10, %v638_v11  ;;  %v12591_v24 = vcombine.high %v642_v18, %v646_v19  ;;  %v698_v11 = vld [vmem:[%s15548_s17 + $0x310] sm:$0xff] }
 0x34e   : > { %v12593_v25 = vcombine.high %v643_v20, %v647_v21  ;;  %v12592_v31 = vcombine.low %v643_v20, %v647_v21  ;;  %v710_v20 = vld [vmem:[%s15548_s17 + $0x370] sm:$0xff]  ;;  %v707_v21 = vld [vmem:[%s15548_s17 + $0x358] sm:$0xff] }
 0x350   : > { %8390 = vmatpush1.bf16.msra.mxu0 %v13738_v27  ;;  %8820 = vmatpush1.bf16.msra.mxu1 %v13740_v28  ;;  %v654_v27 = vld [vmem:[%s15548_s17 + $0x1b0] sm:$0xff]  ;;  %v651_v28 = vld [vmem:[%s15548_s17 + $0x198] sm:$0xff] }
 0x351   : > { %8391 = vmatprep.subr.bf16.mxu0 %v13747_v29  ;;  %8821 = vmatprep.subr.bf16.mxu1 %v13749_v30  ;;  %v655_v29 = vld [vmem:[%s15548_s17 + $0x1b8] sm:$0xff]  ;;  %v12590_v30 = vcombine.low %v642_v18, %v646_v19  ;;  %v12599_v32 = vcombine.high %v650_v26, %v654_v27  ;;  %v706_v19 = vld [vmem:[%s15548_s17 + $0x350] sm:$0xff] }
 0x352   : > { %v12601_v33 = vcombine.high %v651_v28, %v655_v29  ;;  %v12600_v39 = vcombine.low %v651_v28, %v655_v29  ;;  %v718_v28 = vld [vmem:[%s15548_s17 + $0x3b0] sm:$0xff]  ;;  %v715_v29 = vld [vmem:[%s15548_s17 + $0x398] sm:$0xff] }
 0x354   : > { %8392 = vmatpush1.bf16.msra.mxu0 %v13746_v35  ;;  %8822 = vmatpush1.bf16.msra.mxu1 %v13748_v36  ;;  %v662_v35 = vld [vmem:[%s15548_s17 + $0x1f0] sm:$0xff]  ;;  %v659_v36 = vld [vmem:[%s15548_s17 + $0x1d8] sm:$0xff] }
 0x355   : > { %8393 = vmatprep.subr.bf16.mxu0 %v13755_v37  ;;  %8823 = vmatprep.subr.bf16.mxu1 %v13757_v38  ;;  %v663_v37 = vld [vmem:[%s15548_s17 + $0x1f8] sm:$0xff]  ;;  %v12598_v38 = vcombine.low %v650_v26, %v654_v27  ;;  %v12607_v40 = vcombine.high %v658_v34, %v662_v35  ;;  %v714_v27 = vld [vmem:[%s15548_s17 + $0x390] sm:$0xff] }
 0x356   : > { %v12609_v41 = vcombine.high %v659_v36, %v663_v37  ;;  %v12608_v47 = vcombine.low %v659_v36, %v663_v37  ;;  %v726_v36 = vld [vmem:[%s15548_s17 + $0x3f0] sm:$0xff]  ;;  %v723_v37 = vld [vmem:[%s15548_s17 + $0x3d8] sm:$0xff] }
 0x358   : > { %8394 = vmatpush1.bf16.msra.mxu0 %v13754_v43  ;;  %8824 = vmatpush1.bf16.msra.mxu1 %v13756_v44  ;;  %v670_v43 = vld [vmem:[%s15548_s17 + $0x230] sm:$0xff]  ;;  %v667_v44 = vld [vmem:[%s15548_s17 + $0x218] sm:$0xff] }
 0x359   : > { %8852 = vmatprep.subr.bf16.mxu0 %v12551_v45  ;;  %9282 = vmatprep.subr.bf16.mxu1 %v12553_v46  ;;  %v671_v45 = vld [vmem:[%s15548_s17 + $0x238] sm:$0xff]  ;;  %v12606_v46 = vcombine.low %v658_v34, %v662_v35  ;;  %v12615_v48 = vcombine.high %v666_v42, %v670_v43  ;;  %v722_v35 = vld [vmem:[%s15548_s17 + $0x3d0] sm:$0xff] }
 0x35b   : > { %8412 = vmatmul.mubr.bf16.vlgmr.msra.gmra.mrb[0].mxu0 %v14428_v49  ;;  %8842 = vmatmul.mubr.bf16.vlgmr.msra.gmra.mrb[0].mxu1 %v14428_v49  ;;  %v12617_v49 = vcombine.high %v667_v44, %v671_v45 }
 0x35c   : > { %8853 = vmatpush1.bf16.msra.mxu0 %v12550_v52  ;;  %9283 = vmatpush1.bf16.msra.mxu1 %v12552_v53  ;;  %v675_v52 = vld [vmem:[%s15548_s17 + $0x258] sm:$0xff] }
 0x35d   : > { %8854 = vmatprep.subr.bf16.mxu0 %v12559_v54  ;;  %9284 = vmatprep.subr.bf16.mxu1 %v12561_v55  ;;  %v679_v53 = vld [vmem:[%s15548_s17 + $0x278] sm:$0xff]  ;;  %v12614_v54 = vcombine.low %v666_v42, %v670_v43  ;;  %v12616_v55 = vcombine.low %v667_v44, %v671_v45  ;;  %v730_v43 = vld [vmem:[%s15548_s17 + $0x410] sm:$0xff] }
 0x35e   : > { %8884 = vmatprep.mubr.bf16.mxu0 %v14429_v3  ;;  %9314 = vmatprep.mubr.bf16.mxu1 %v14429_v3  ;;  %v12625_v57 = vcombine.high %v675_v52, %v679_v53  ;;  %v690_v3 = vld [vmem:[%s15548_s17 + $0x2d0] sm:$0xff]  ;;  %v731_v45 = vld [vmem:[%s15548_s17 + $0x418] sm:$0xff] }
 0x35f   : > { %v734_v44 = vld [vmem:[%s15548_s17 + $0x430] sm:$0xff] }
 0x360   : > { %8855 = vmatpush1.bf16.msra.mxu0 %v12558_v60  ;;  %9285 = vmatpush1.bf16.msra.mxu1 %v12560_v61  ;;  %v683_v60 = vld [vmem:[%s15548_s17 + $0x298] sm:$0xff] }
 0x361   : > { %8856 = vmatprep.subr.bf16.mxu0 %v12567_v62  ;;  %9286 = vmatprep.subr.bf16.mxu1 %v12569_v63  ;;  %v687_v61 = vld [vmem:[%s15548_s17 + $0x2b8] sm:$0xff]  ;;  %v12622_v62 = vcombine.low %v674_v50, %v678_v51  ;;  %v12624_v63 = vcombine.low %v675_v52, %v679_v53  ;;  %v738_v51 = vld [vmem:[%s15548_s17 + $0x450] sm:$0xff] }
 0x362   : > { %v12633_v2 = vcombine.high %v683_v60, %v687_v61  ;;  %v742_v52 = vld [vmem:[%s15548_s17 + $0x470] sm:$0xff]  ;;  %v739_v53 = vld [vmem:[%s15548_s17 + $0x458] sm:$0xff] }
 0x364   : > { %8857 = vmatpush1.bf16.msra.mxu0 %v12566_v6  ;;  %9287 = vmatpush1.bf16.msra.mxu1 %v12568_v7  ;;  %v695_v6 = vld [vmem:[%s15548_s17 + $0x2f8] sm:$0xff]  ;;  %v12630_v7 = vcombine.low %v682_v58, %v686_v59  ;;  %v746_v59 = vld [vmem:[%s15548_s17 + $0x490] sm:$0xff] }
 0x365   : > { %8858 = vmatprep.subr.bf16.mxu0 %v12575_v8  ;;  %9288 = vmatprep.subr.bf16.mxu1 %v12577_v9  ;;  %v12632_v8 = vcombine.low %v683_v60, %v687_v61  ;;  %v12639_v9 = vcombine.high %v690_v3, %v694_v4  ;;  %v12641_v10 = vcombine.high %v691_v5, %v695_v6  ;;  %v750_v60 = vld [vmem:[%s15548_s17 + $0x4b0] sm:$0xff] }
 0x366   : > { %v14430_v61 = vld [vmem:[%s15546_s9] ss:$76 sps:$4 sm:$0xff]  }
 0x368   : > { %8859 = vmatpush1.bf16.msra.mxu0 %v12574_v14  ;;  %9289 = vmatpush1.bf16.msra.mxu1 %v12576_v15  ;;  %v703_v14 = vld [vmem:[%s15548_s17 + $0x338] sm:$0xff]  ;;  %v12638_v15 = vcombine.low %v690_v3, %v694_v4  ;;  %v12695_v3 = vcombine.high %v746_v59, %v750_v60 }
 0x369   : > { %8860 = vmatprep.subr.bf16.mxu0 %v12583_v16  ;;  %9290 = vmatprep.subr.bf16.mxu1 %v12585_v17  ;;  %v12640_v16 = vcombine.low %v691_v5, %v695_v6  ;;  %v12647_v17 = vcombine.high %v698_v11, %v702_v12  ;;  %v12649_v18 = vcombine.high %v699_v13, %v703_v14  ;;  %v754_v5 = vld [vmem:[%s15548_s17 + $0x4d0] sm:$0xff] }
 0x36a   : > { %v758_v6 = vld [vmem:[%s15548_s17 + $0x4f0] sm:$0xff] }
 0x36c   : > { %8861 = vmatpush1.bf16.msra.mxu0 %v12582_v22  ;;  %9291 = vmatpush1.bf16.msra.mxu1 %v12584_v23  ;;  %v711_v22 = vld [vmem:[%s15548_s17 + $0x378] sm:$0xff]  ;;  %v12646_v23 = vcombine.low %v698_v11, %v702_v12  ;;  %v12703_v12 = vcombine.high %v754_v5, %v758_v6 }
 0x36d   : > { %8862 = vmatprep.subr.bf16.mxu0 %v12591_v24  ;;  %9292 = vmatprep.subr.bf16.mxu1 %v12593_v25  ;;  %v12648_v24 = vcombine.low %v699_v13, %v703_v14  ;;  %v12655_v25 = vcombine.high %v706_v19, %v710_v20  ;;  %v12657_v26 = vcombine.high %v707_v21, %v711_v22  ;;  %v762_v14 = vld [vmem:[%s15548_s17 + $0x510] sm:$0xff] }
 0x370   : > { %8863 = vmatpush1.bf16.msra.mxu0 %v12590_v30  ;;  %9293 = vmatpush1.bf16.msra.mxu1 %v12592_v31  ;;  %v719_v30 = vld [vmem:[%s15548_s17 + $0x3b8] sm:$0xff]  ;;  %v12654_v31 = vcombine.low %v706_v19, %v710_v20 }
 0x371   : > { %8864 = vmatprep.subr.bf16.mxu0 %v12599_v32  ;;  %9294 = vmatprep.subr.bf16.mxu1 %v12601_v33  ;;  %v12656_v32 = vcombine.low %v707_v21, %v711_v22  ;;  %v12663_v33 = vcombine.high %v714_v27, %v718_v28  ;;  %v12665_v34 = vcombine.high %v715_v29, %v719_v30  ;;  %v770_v22 = vld [vmem:[%s15548_s17 + $0x550] sm:$0xff] }
 0x374   : > { %8865 = vmatpush1.bf16.msra.mxu0 %v12598_v38  ;;  %9295 = vmatpush1.bf16.msra.mxu1 %v12600_v39  ;;  %v727_v38 = vld [vmem:[%s15548_s17 + $0x3f8] sm:$0xff]  ;;  %v12662_v39 = vcombine.low %v714_v27, %v718_v28 }
 0x375   : > { %8866 = vmatprep.subr.bf16.mxu0 %v12607_v40  ;;  %9296 = vmatprep.subr.bf16.mxu1 %v12609_v41  ;;  %v12664_v40 = vcombine.low %v715_v29, %v719_v30  ;;  %v12671_v41 = vcombine.high %v722_v35, %v726_v36  ;;  %v12673_v42 = vcombine.high %v723_v37, %v727_v38  ;;  %v778_v30 = vld [vmem:[%s15548_s17 + $0x590] sm:$0xff] }
 0x378   : > { %8867 = vmatpush1.bf16.msra.mxu0 %v12606_v46  ;;  %9297 = vmatpush1.bf16.msra.mxu1 %v12608_v47  ;;  %v735_v46 = vld [vmem:[%s15548_s17 + $0x438] sm:$0xff]  ;;  %v12670_v47 = vcombine.low %v722_v35, %v726_v36 }
 0x379   : > { %8868 = vmatprep.subr.bf16.mxu0 %v12615_v48  ;;  %9298 = vmatprep.subr.bf16.mxu1 %v12617_v49  ;;  %v12672_v48 = vcombine.low %v723_v37, %v727_v38  ;;  %v12679_v49 = vcombine.high %v730_v43, %v734_v44  ;;  %v12681_v50 = vcombine.high %v731_v45, %v735_v46  ;;  %v786_v38 = vld [vmem:[%s15548_s17 + $0x5d0] sm:$0xff] }
 0x37c   : > { %8869 = vmatpush1.bf16.msra.mxu0 %v12614_v54  ;;  %9299 = vmatpush1.bf16.msra.mxu1 %v12616_v55  ;;  %v743_v54 = vld [vmem:[%s15548_s17 + $0x478] sm:$0xff]  ;;  %v12678_v55 = vcombine.low %v730_v43, %v734_v44 }
 0x37d   : > { %8870 = vmatprep.subr.bf16.mxu0 %v12623_v56  ;;  %9300 = vmatprep.subr.bf16.mxu1 %v12625_v57  ;;  %v12680_v56 = vcombine.low %v731_v45, %v735_v46  ;;  %v12687_v57 = vcombine.high %v738_v51, %v742_v52  ;;  %v12689_v58 = vcombine.high %v739_v53, %v743_v54  ;;  %v794_v46 = vld [vmem:[%s15548_s17 + $0x610] sm:$0xff] }
 0x380   : > { %8871 = vmatpush1.bf16.msra.mxu0 %v12622_v62  ;;  %9301 = vmatpush1.bf16.msra.mxu1 %v12624_v63  ;;  %v747_v62 = vld [vmem:[%s15548_s17 + $0x498] sm:$0xff] }
 0x381   : > { %8872 = vmatprep.subr.bf16.mxu0 %v12631_v1  ;;  %9302 = vmatprep.subr.bf16.mxu1 %v12633_v2  ;;  %v751_v63 = vld [vmem:[%s15548_s17 + $0x4b8] sm:$0xff]  ;;  %v12686_v1 = vcombine.low %v738_v51, %v742_v52  ;;  %v12688_v2 = vcombine.low %v739_v53, %v743_v54  ;;  %v802_v54 = vld [vmem:[%s15548_s17 + $0x650] sm:$0xff] }
 0x382   : > { %v12697_v4 = vcombine.high %v747_v62, %v751_v63  ;;  %v12696_v11 = vcombine.low %v747_v62, %v751_v63  ;;  %v810_v62 = vld [vmem:[%s15548_s17 + $0x690] sm:$0xff] }
 0x383   : > { %v814_v63 = vld [vmem:[%s15548_s17 + $0x6b0] sm:$0xff] }
 0x384   : > { %8873 = vmatpush1.bf16.msra.mxu0 %v12630_v7  ;;  %9303 = vmatpush1.bf16.msra.mxu1 %v12632_v8  ;;  %v14431_v7 = vld [vmem:[%s15546_s9 + $0xc] ss:$76 sps:$4 sm:$0xff]  }
 0x385   : > { %8874 = vmatprep.subr.bf16.mxu0 %v12639_v9  ;;  %9304 = vmatprep.subr.bf16.mxu1 %v12641_v10  ;;  %v755_v8 = vld [vmem:[%s15548_s17 + $0x4d8] sm:$0xff]  ;;  %v12694_v10 = vcombine.low %v746_v59, %v750_v60 }
 0x386   : > { %v759_v9 = vld [vmem:[%s15548_s17 + $0x4f8] sm:$0xff] }
 0x387   : > { %v12705_v13 = vcombine.high %v755_v8, %v759_v9  ;;  %v12704_v19 = vcombine.low %v755_v8, %v759_v9  ;;  %v822_v8 = vld [vmem:[%s15548_s17 + $0x6f0] sm:$0xff]  ;;  %v819_v9 = vld [vmem:[%s15548_s17 + $0x6d8] sm:$0xff] }
 0x388   : > { %8875 = vmatpush1.bf16.msra.mxu0 %v12638_v15  ;;  %9305 = vmatpush1.bf16.msra.mxu1 %v12640_v16  ;;  %v766_v15 = vld [vmem:[%s15548_s17 + $0x530] sm:$0xff]  ;;  %v763_v16 = vld [vmem:[%s15548_s17 + $0x518] sm:$0xff] }
 0x389   : > { %8876 = vmatprep.subr.bf16.mxu0 %v12647_v17  ;;  %9306 = vmatprep.subr.bf16.mxu1 %v12649_v18  ;;  %v767_v17 = vld [vmem:[%s15548_s17 + $0x538] sm:$0xff]  ;;  %v12702_v18 = vcombine.low %v754_v5, %v758_v6  ;;  %v12711_v20 = vcombine.high %v762_v14, %v766_v15  ;;  %v12759_v5 = vcombine.high %v810_v62, %v814_v63 }
 0x38a   : > { %v12713_v21 = vcombine.high %v763_v16, %v767_v17  ;;  %v12712_v27 = vcombine.low %v763_v16, %v767_v17  ;;  %v830_v16 = vld [vmem:[%s15548_s17 + $0x730] sm:$0xff]  ;;  %v827_v17 = vld [vmem:[%s15548_s17 + $0x718] sm:$0xff] }
 0x38c   : > { %8877 = vmatpush1.bf16.msra.mxu0 %v12646_v23  ;;  %9307 = vmatpush1.bf16.msra.mxu1 %v12648_v24  ;;  %v774_v23 = vld [vmem:[%s15548_s17 + $0x570] sm:$0xff]  ;;  %v771_v24 = vld [vmem:[%s15548_s17 + $0x558] sm:$0xff] }
 0x38d   : > { %8878 = vmatprep.subr.bf16.mxu0 %v12655_v25  ;;  %9308 = vmatprep.subr.bf16.mxu1 %v12657_v26  ;;  %v775_v25 = vld [vmem:[%s15548_s17 + $0x578] sm:$0xff]  ;;  %v12710_v26 = vcombine.low %v762_v14, %v766_v15  ;;  %v12719_v28 = vcombine.high %v770_v22, %v774_v23  ;;  %v826_v15 = vld [vmem:[%s15548_s17 + $0x710] sm:$0xff] }
 0x38e   : > { %v12721_v29 = vcombine.high %v771_v24, %v775_v25  ;;  %v12720_v35 = vcombine.low %v771_v24, %v775_v25  ;;  %v838_v24 = vld [vmem:[%s15548_s17 + $0x770] sm:$0xff]  ;;  %v835_v25 = vld [vmem:[%s15548_s17 + $0x758] sm:$0xff] }
 0x390   : > { %8879 = vmatpush1.bf16.msra.mxu0 %v12654_v31  ;;  %9309 = vmatpush1.bf16.msra.mxu1 %v12656_v32  ;;  %v782_v31 = vld [vmem:[%s15548_s17 + $0x5b0] sm:$0xff]  ;;  %v779_v32 = vld [vmem:[%s15548_s17 + $0x598] sm:$0xff] }
 0x391   : > { %8880 = vmatprep.subr.bf16.mxu0 %v12663_v33  ;;  %9310 = vmatprep.subr.bf16.mxu1 %v12665_v34  ;;  %v783_v33 = vld [vmem:[%s15548_s17 + $0x5b8] sm:$0xff]  ;;  %v12718_v34 = vcombine.low %v770_v22, %v774_v23  ;;  %v12727_v36 = vcombine.high %v778_v30, %v782_v31  ;;  %v834_v23 = vld [vmem:[%s15548_s17 + $0x750] sm:$0xff] }
 0x392   : > { %v12729_v37 = vcombine.high %v779_v32, %v783_v33  ;;  %v12728_v43 = vcombine.low %v779_v32, %v783_v33  ;;  %v846_v32 = vld [vmem:[%s15548_s17 + $0x7b0] sm:$0xff]  ;;  %v843_v33 = vld [vmem:[%s15548_s17 + $0x798] sm:$0xff] }
 0x394   : > { %8881 = vmatpush1.bf16.msra.mxu0 %v12662_v39  ;;  %9311 = vmatpush1.bf16.msra.mxu1 %v12664_v40  ;;  %v790_v39 = vld [vmem:[%s15548_s17 + $0x5f0] sm:$0xff]  ;;  %v787_v40 = vld [vmem:[%s15548_s17 + $0x5d8] sm:$0xff] }
 0x395   : > { %8882 = vmatprep.subr.bf16.mxu0 %v12671_v41  ;;  %9312 = vmatprep.subr.bf16.mxu1 %v12673_v42  ;;  %v791_v41 = vld [vmem:[%s15548_s17 + $0x5f8] sm:$0xff]  ;;  %v12726_v42 = vcombine.low %v778_v30, %v782_v31  ;;  %v12735_v44 = vcombine.high %v786_v38, %v790_v39  ;;  %v842_v31 = vld [vmem:[%s15548_s17 + $0x790] sm:$0xff] }
 0x396   : > { %v12737_v45 = vcombine.high %v787_v40, %v791_v41  ;;  %v12736_v51 = vcombine.low %v787_v40, %v791_v41  ;;  %v854_v40 = vld [vmem:[%s15548_s17 + $0x7f0] sm:$0xff]  ;;  %v851_v41 = vld [vmem:[%s15548_s17 + $0x7d8] sm:$0xff] }
 0x398   : > { %8883 = vmatpush1.bf16.msra.mxu0 %v12670_v47  ;;  %9313 = vmatpush1.bf16.msra.mxu1 %v12672_v48  ;;  %v798_v47 = vld [vmem:[%s15548_s17 + $0x630] sm:$0xff]  ;;  %v795_v48 = vld [vmem:[%s15548_s17 + $0x618] sm:$0xff] }
 0x399   : > { %8895 = vmatprep.subr.bf16.mxu0 %v12679_v49  ;;  %9325 = vmatprep.subr.bf16.mxu1 %v12681_v50  ;;  %v799_v49 = vld [vmem:[%s15548_s17 + $0x638] sm:$0xff]  ;;  %v12734_v50 = vcombine.low %v786_v38, %v790_v39  ;;  %v12743_v52 = vcombine.high %v794_v46, %v798_v47  ;;  %v850_v39 = vld [vmem:[%s15548_s17 + $0x7d0] sm:$0xff] }
 0x39a   : > { %v12745_v53 = vcombine.high %v795_v48, %v799_v49  ;;  %v12744_v59 = vcombine.low %v795_v48, %v799_v49  ;;  %v862_v48 = vld [vmem:[%s15548_s17 + $0x830] sm:$0xff]  ;;  %v859_v49 = vld [vmem:[%s15548_s17 + $0x818] sm:$0xff] }
 0x39b   : > { %8885 = vmatmul.mubr.bf16.vlgmr.msra.gmra.mrb[4].mxu0 %v14430_v61  ;;  %9315 = vmatmul.mubr.bf16.vlgmr.msra.gmra.mrb[4].mxu1 %v14430_v61 }
 0x39c   : > { %8896 = vmatpush1.bf16.msra.mxu0 %v12678_v55  ;;  %9326 = vmatpush1.bf16.msra.mxu1 %v12680_v56  ;;  %v806_v55 = vld [vmem:[%s15548_s17 + $0x670] sm:$0xff]  ;;  %v803_v56 = vld [vmem:[%s15548_s17 + $0x658] sm:$0xff] }
 0x39d   : > { %8897 = vmatprep.subr.bf16.mxu0 %v12687_v57  ;;  %9327 = vmatprep.subr.bf16.mxu1 %v12689_v58  ;;  %v807_v57 = vld [vmem:[%s15548_s17 + $0x678] sm:$0xff]  ;;  %v12742_v58 = vcombine.low %v794_v46, %v798_v47  ;;  %v12751_v60 = vcombine.high %v802_v54, %v806_v55  ;;  %v858_v47 = vld [vmem:[%s15548_s17 + $0x810] sm:$0xff] }
 0x39e   : > { %8927 = vmatprep.mubr.bf16.mxu0 %v14431_v7  ;;  %9357 = vmatprep.mubr.bf16.mxu1 %v14431_v7  ;;  %v12753_v61 = vcombine.high %v803_v56, %v807_v57  ;;  %v818_v7 = vld [vmem:[%s15548_s17 + $0x6d0] sm:$0xff] }
 0x3a0   : > { %8898 = vmatpush1.bf16.msra.mxu0 %v12686_v1  ;;  %9328 = vmatpush1.bf16.msra.mxu1 %v12688_v2  ;;  %v811_v1 = vld [vmem:[%s15548_s17 + $0x698] sm:$0xff] }
 0x3a1   : > { %8899 = vmatprep.subr.bf16.mxu0 %v12695_v3  ;;  %9329 = vmatprep.subr.bf16.mxu1 %v12697_v4  ;;  %v815_v2 = vld [vmem:[%s15548_s17 + $0x6b8] sm:$0xff]  ;;  %v12750_v3 = vcombine.low %v802_v54, %v806_v55  ;;  %v12752_v4 = vcombine.low %v803_v56, %v807_v57  ;;  %v866_v55 = vld [vmem:[%s15548_s17 + $0x850] sm:$0xff] }
 0x3a2   : > { %v12761_v6 = vcombine.high %v811_v1, %v815_v2  ;;  %v870_v56 = vld [vmem:[%s15548_s17 + $0x870] sm:$0xff]  ;;  %v867_v57 = vld [vmem:[%s15548_s17 + $0x858] sm:$0xff] }
 0x3a4   : > { %8900 = vmatpush1.bf16.msra.mxu0 %v12694_v10  ;;  %9330 = vmatpush1.bf16.msra.mxu1 %v12696_v11  ;;  %v823_v10 = vld [vmem:[%s15548_s17 + $0x6f8] sm:$0xff]  ;;  %v12758_v11 = vcombine.low %v810_v62, %v814_v63  ;;  %v874_v63 = vld [vmem:[%s15548_s17 + $0x890] sm:$0xff] }
 0x3a5   : > { %8901 = vmatprep.subr.bf16.mxu0 %v12703_v12  ;;  %9331 = vmatprep.subr.bf16.mxu1 %v12705_v13  ;;  %v12760_v12 = vcombine.low %v811_v1, %v815_v2  ;;  %v12767_v13 = vcombine.high %v818_v7, %v822_v8  ;;  %v12769_v14 = vcombine.high %v819_v9, %v823_v10  ;;  %v878_v1 = vld [vmem:[%s15548_s17 + $0x8b0] sm:$0xff] }
 0x3a6   : > { %v14432_v2 = vld [vmem:[%s15546_s9 + $0x8] ss:$76 sps:$4 sm:$0xff]  }
 0x3a8   : > { %8902 = vmatpush1.bf16.msra.mxu0 %v12702_v18  ;;  %9332 = vmatpush1.bf16.msra.mxu1 %v12704_v19  ;;  %v831_v18 = vld [vmem:[%s15548_s17 + $0x738] sm:$0xff]  ;;  %v12766_v19 = vcombine.low %v818_v7, %v822_v8  ;;  %v12823_v7 = vcombine.high %v874_v63, %v878_v1 }
 0x3a9   : > { %8903 = vmatprep.subr.bf16.mxu0 %v12711_v20  ;;  %9333 = vmatprep.subr.bf16.mxu1 %v12713_v21  ;;  %v12768_v20 = vcombine.low %v819_v9, %v823_v10  ;;  %v12775_v21 = vcombine.high %v826_v15, %v830_v16  ;;  %v12777_v22 = vcombine.high %v827_v17, %v831_v18  ;;  %v882_v9 = vld [vmem:[%s15548_s17 + $0x8d0] sm:$0xff] }
 0x3aa   : > { %v886_v10 = vld [vmem:[%s15548_s17 + $0x8f0] sm:$0xff] }
 0x3ac   : > { %8904 = vmatpush1.bf16.msra.mxu0 %v12710_v26  ;;  %9334 = vmatpush1.bf16.msra.mxu1 %v12712_v27  ;;  %v839_v26 = vld [vmem:[%s15548_s17 + $0x778] sm:$0xff]  ;;  %v12774_v27 = vcombine.low %v826_v15, %v830_v16  ;;  %v12831_v16 = vcombine.high %v882_v9, %v886_v10 }
 0x3ad   : > { %8905 = vmatprep.subr.bf16.mxu0 %v12719_v28  ;;  %9335 = vmatprep.subr.bf16.mxu1 %v12721_v29  ;;  %v12776_v28 = vcombine.low %v827_v17, %v831_v18  ;;  %v12783_v29 = vcombine.high %v834_v23, %v838_v24  ;;  %v12785_v30 = vcombine.high %v835_v25, %v839_v26  ;;  %v890_v18 = vld [vmem:[%s15548_s17 + $0x910] sm:$0xff] }
 0x3b0   : > { %8906 = vmatpush1.bf16.msra.mxu0 %v12718_v34  ;;  %9336 = vmatpush1.bf16.msra.mxu1 %v12720_v35  ;;  %v847_v34 = vld [vmem:[%s15548_s17 + $0x7b8] sm:$0xff]  ;;  %v12782_v35 = vcombine.low %v834_v23, %v838_v24 }
 0x3b1   : > { %8907 = vmatprep.subr.bf16.mxu0 %v12727_v36  ;;  %9337 = vmatprep.subr.bf16.mxu1 %v12729_v37  ;;  %v12784_v36 = vcombine.low %v835_v25, %v839_v26  ;;  %v12791_v37 = vcombine.high %v842_v31, %v846_v32  ;;  %v12793_v38 = vcombine.high %v843_v33, %v847_v34  ;;  %v898_v26 = vld [vmem:[%s15548_s17 + $0x950] sm:$0xff] }
 0x3b4   : > { %8908 = vmatpush1.bf16.msra.mxu0 %v12726_v42  ;;  %9338 = vmatpush1.bf16.msra.mxu1 %v12728_v43  ;;  %v855_v42 = vld [vmem:[%s15548_s17 + $0x7f8] sm:$0xff]  ;;  %v12790_v43 = vcombine.low %v842_v31, %v846_v32 }
 0x3b5   : > { %8909 = vmatprep.subr.bf16.mxu0 %v12735_v44  ;;  %9339 = vmatprep.subr.bf16.mxu1 %v12737_v45  ;;  %v12792_v44 = vcombine.low %v843_v33, %v847_v34  ;;  %v12799_v45 = vcombine.high %v850_v39, %v854_v40  ;;  %v12801_v46 = vcombine.high %v851_v41, %v855_v42  ;;  %v906_v34 = vld [vmem:[%s15548_s17 + $0x990] sm:$0xff] }
 0x3b8   : > { %8910 = vmatpush1.bf16.msra.mxu0 %v12734_v50  ;;  %9340 = vmatpush1.bf16.msra.mxu1 %v12736_v51  ;;  %v863_v50 = vld [vmem:[%s15548_s17 + $0x838] sm:$0xff]  ;;  %v12798_v51 = vcombine.low %v850_v39, %v854_v40 }
 0x3b9   : > { %8911 = vmatprep.subr.bf16.mxu0 %v12743_v52  ;;  %9341 = vmatprep.subr.bf16.mxu1 %v12745_v53  ;;  %v12800_v52 = vcombine.low %v851_v41, %v855_v42  ;;  %v12807_v53 = vcombine.high %v858_v47, %v862_v48  ;;  %v12809_v54 = vcombine.high %v859_v49, %v863_v50  ;;  %v914_v42 = vld [vmem:[%s15548_s17 + $0x9d0] sm:$0xff] }
 0x3bc   : > { %8912 = vmatpush1.bf16.msra.mxu0 %v12742_v58  ;;  %9342 = vmatpush1.bf16.msra.mxu1 %v12744_v59  ;;  %v871_v58 = vld [vmem:[%s15548_s17 + $0x878] sm:$0xff]  ;;  %v12806_v59 = vcombine.low %v858_v47, %v862_v48 }
 0x3bd   : > { %8913 = vmatprep.subr.bf16.mxu0 %v12751_v60  ;;  %9343 = vmatprep.subr.bf16.mxu1 %v12753_v61  ;;  %v12808_v60 = vcombine.low %v859_v49, %v863_v50  ;;  %v12815_v61 = vcombine.high %v866_v55, %v870_v56  ;;  %v12817_v62 = vcombine.high %v867_v57, %v871_v58  ;;  %v922_v50 = vld [vmem:[%s15548_s17 + $0xa10] sm:$0xff] }
 0x3c0   : > { %8914 = vmatpush1.bf16.msra.mxu0 %v12750_v3  ;;  %9344 = vmatpush1.bf16.msra.mxu1 %v12752_v4  ;;  %v875_v3 = vld [vmem:[%s15548_s17 + $0x898] sm:$0xff] }
 0x3c1   : > { %8915 = vmatprep.subr.bf16.mxu0 %v12759_v5  ;;  %9345 = vmatprep.subr.bf16.mxu1 %v12761_v6  ;;  %v879_v4 = vld [vmem:[%s15548_s17 + $0x8b8] sm:$0xff]  ;;  %v12814_v5 = vcombine.low %v866_v55, %v870_v56  ;;  %v12816_v6 = vcombine.low %v867_v57, %v871_v58  ;;  %v930_v58 = vld [vmem:[%s15548_s17 + $0xa50] sm:$0xff] }
 0x3c2   : > { %v12825_v8 = vcombine.high %v875_v3, %v879_v4  ;;  %v12824_v15 = vcombine.low %v875_v3, %v879_v4  ;;  %v938_v3 = vld [vmem:[%s15548_s17 + $0xa90] sm:$0xff] }
 0x3c3   : > { %v942_v4 = vld [vmem:[%s15548_s17 + $0xab0] sm:$0xff] }
 0x3c4   : > { %8916 = vmatpush1.bf16.msra.mxu0 %v12758_v11  ;;  %9346 = vmatpush1.bf16.msra.mxu1 %v12760_v12  ;;  %v14433_v11 = vld [vmem:[%s15546_s9 + $0x14] ss:$76 sps:$4 sm:$0xff]  }
 0x3c5   : > { %8917 = vmatprep.subr.bf16.mxu0 %v12767_v13  ;;  %9347 = vmatprep.subr.bf16.mxu1 %v12769_v14  ;;  %v883_v12 = vld [vmem:[%s15548_s17 + $0x8d8] sm:$0xff]  ;;  %v12822_v14 = vcombine.low %v874_v63, %v878_v1 }
 0x3c6   : > { %v887_v13 = vld [vmem:[%s15548_s17 + $0x8f8] sm:$0xff] }
 0x3c7   : > { %v12833_v17 = vcombine.high %v883_v12, %v887_v13  ;;  %v12832_v23 = vcombine.low %v883_v12, %v887_v13  ;;  %v950_v12 = vld [vmem:[%s15548_s17 + $0xaf0] sm:$0xff]  ;;  %v947_v13 = vld [vmem:[%s15548_s17 + $0xad8] sm:$0xff] }
 0x3c8   : > { %8918 = vmatpush1.bf16.msra.mxu0 %v12766_v19  ;;  %9348 = vmatpush1.bf16.msra.mxu1 %v12768_v20  ;;  %v894_v19 = vld [vmem:[%s15548_s17 + $0x930] sm:$0xff]  ;;  %v891_v20 = vld [vmem:[%s15548_s17 + $0x918] sm:$0xff] }
 0x3c9   : > { %8919 = vmatprep.subr.bf16.mxu0 %v12775_v21  ;;  %9349 = vmatprep.subr.bf16.mxu1 %v12777_v22  ;;  %v895_v21 = vld [vmem:[%s15548_s17 + $0x938] sm:$0xff]  ;;  %v12830_v22 = vcombine.low %v882_v9, %v886_v10  ;;  %v12839_v24 = vcombine.high %v890_v18, %v894_v19  ;;  %v12887_v9 = vcombine.high %v938_v3, %v942_v4 }
 0x3ca   : > { %v12841_v25 = vcombine.high %v891_v20, %v895_v21  ;;  %v12840_v31 = vcombine.low %v891_v20, %v895_v21  ;;  %v958_v20 = vld [vmem:[%s15548_s17 + $0xb30] sm:$0xff]  ;;  %v955_v21 = vld [vmem:[%s15548_s17 + $0xb18] sm:$0xff] }
 0x3cc   : > { %8920 = vmatpush1.bf16.msra.mxu0 %v12774_v27  ;;  %9350 = vmatpush1.bf16.msra.mxu1 %v12776_v28  ;;  %v902_v27 = vld [vmem:[%s15548_s17 + $0x970] sm:$0xff]  ;;  %v899_v28 = vld [vmem:[%s15548_s17 + $0x958] sm:$0xff] }
 0x3cd   : > { %8921 = vmatprep.subr.bf16.mxu0 %v12783_v29  ;;  %9351 = vmatprep.subr.bf16.mxu1 %v12785_v30  ;;  %v903_v29 = vld [vmem:[%s15548_s17 + $0x978] sm:$0xff]  ;;  %v12838_v30 = vcombine.low %v890_v18, %v894_v19  ;;  %v12847_v32 = vcombine.high %v898_v26, %v902_v27  ;;  %v954_v19 = vld [vmem:[%s15548_s17 + $0xb10] sm:$0xff] }
 0x3ce   : > { %v12849_v33 = vcombine.high %v899_v28, %v903_v29  ;;  %v12848_v39 = vcombine.low %v899_v28, %v903_v29  ;;  %v966_v28 = vld [vmem:[%s15548_s17 + $0xb70] sm:$0xff]  ;;  %v963_v29 = vld [vmem:[%s15548_s17 + $0xb58] sm:$0xff] }
 0x3d0   : > { %8922 = vmatpush1.bf16.msra.mxu0 %v12782_v35  ;;  %9352 = vmatpush1.bf16.msra.mxu1 %v12784_v36  ;;  %v910_v35 = vld [vmem:[%s15548_s17 + $0x9b0] sm:$0xff]  ;;  %v907_v36 = vld [vmem:[%s15548_s17 + $0x998] sm:$0xff] }
 0x3d1   : > { %8923 = vmatprep.subr.bf16.mxu0 %v12791_v37  ;;  %9353 = vmatprep.subr.bf16.mxu1 %v12793_v38  ;;  %v911_v37 = vld [vmem:[%s15548_s17 + $0x9b8] sm:$0xff]  ;;  %v12846_v38 = vcombine.low %v898_v26, %v902_v27  ;;  %v12855_v40 = vcombine.high %v906_v34, %v910_v35  ;;  %v962_v27 = vld [vmem:[%s15548_s17 + $0xb50] sm:$0xff] }
 0x3d2   : > { %v12857_v41 = vcombine.high %v907_v36, %v911_v37  ;;  %v12856_v47 = vcombine.low %v907_v36, %v911_v37  ;;  %v974_v36 = vld [vmem:[%s15548_s17 + $0xbb0] sm:$0xff]  ;;  %v971_v37 = vld [vmem:[%s15548_s17 + $0xb98] sm:$0xff] }
 0x3d4   : > { %8924 = vmatpush1.bf16.msra.mxu0 %v12790_v43  ;;  %9354 = vmatpush1.bf16.msra.mxu1 %v12792_v44  ;;  %v918_v43 = vld [vmem:[%s15548_s17 + $0x9f0] sm:$0xff]  ;;  %v915_v44 = vld [vmem:[%s15548_s17 + $0x9d8] sm:$0xff] }
 0x3d5   : > { %8925 = vmatprep.subr.bf16.mxu0 %v12799_v45  ;;  %9355 = vmatprep.subr.bf16.mxu1 %v12801_v46  ;;  %v919_v45 = vld [vmem:[%s15548_s17 + $0x9f8] sm:$0xff]  ;;  %v12854_v46 = vcombine.low %v906_v34, %v910_v35  ;;  %v12863_v48 = vcombine.high %v914_v42, %v918_v43  ;;  %v970_v35 = vld [vmem:[%s15548_s17 + $0xb90] sm:$0xff] }
 0x3d6   : > { %v12865_v49 = vcombine.high %v915_v44, %v919_v45  ;;  %v12864_v55 = vcombine.low %v915_v44, %v919_v45  ;;  %v982_v44 = vld [vmem:[%s15548_s17 + $0xbf0] sm:$0xff]  ;;  %v979_v45 = vld [vmem:[%s15548_s17 + $0xbd8] sm:$0xff] }
 0x3d8   : > { %8926 = vmatpush1.bf16.msra.mxu0 %v12798_v51  ;;  %9356 = vmatpush1.bf16.msra.mxu1 %v12800_v52  ;;  %v926_v51 = vld [vmem:[%s15548_s17 + $0xa30] sm:$0xff]  ;;  %v923_v52 = vld [vmem:[%s15548_s17 + $0xa18] sm:$0xff] }
 0x3d9   : > { %8938 = vmatprep.subr.bf16.mxu0 %v12807_v53  ;;  %9368 = vmatprep.subr.bf16.mxu1 %v12809_v54  ;;  %v927_v53 = vld [vmem:[%s15548_s17 + $0xa38] sm:$0xff]  ;;  %v12862_v54 = vcombine.low %v914_v42, %v918_v43  ;;  %v12871_v56 = vcombine.high %v922_v50, %v926_v51  ;;  %v978_v43 = vld [vmem:[%s15548_s17 + $0xbd0] sm:$0xff] }
 0x3da   : > { %v12873_v57 = vcombine.high %v923_v52, %v927_v53  ;;  %v12872_v63 = vcombine.low %v923_v52, %v927_v53  ;;  %v990_v52 = vld [vmem:[%s15548_s17 + $0xc30] sm:$0xff]  ;;  %v987_v53 = vld [vmem:[%s15548_s17 + $0xc18] sm:$0xff] }
 0x3db   : > { %8928 = vmatmul.mubr.bf16.vlgmr.msra.gmra.mrb[4].mxu0 %v14432_v2  ;;  %9358 = vmatmul.mubr.bf16.vlgmr.msra.gmra.mrb[4].mxu1 %v14432_v2 }
 0x3dc   : > { %8939 = vmatpush1.bf16.msra.mxu0 %v12806_v59  ;;  %9369 = vmatpush1.bf16.msra.mxu1 %v12808_v60  ;;  %v934_v59 = vld [vmem:[%s15548_s17 + $0xa70] sm:$0xff]  ;;  %v931_v60 = vld [vmem:[%s15548_s17 + $0xa58] sm:$0xff] }
 0x3dd   : > { %8940 = vmatprep.subr.bf16.mxu0 %v12815_v61  ;;  %9370 = vmatprep.subr.bf16.mxu1 %v12817_v62  ;;  %v935_v61 = vld [vmem:[%s15548_s17 + $0xa78] sm:$0xff]  ;;  %v12870_v62 = vcombine.low %v922_v50, %v926_v51  ;;  %v12879_v1 = vcombine.high %v930_v58, %v934_v59  ;;  %v986_v51 = vld [vmem:[%s15548_s17 + $0xc10] sm:$0xff] }
 0x3de   : > { %8970 = vmatprep.mubr.bf16.mxu0 %v14433_v11  ;;  %9400 = vmatprep.mubr.bf16.mxu1 %v14433_v11  ;;  %v12881_v2 = vcombine.high %v931_v60, %v935_v61  ;;  %v946_v11 = vld [vmem:[%s15548_s17 + $0xad0] sm:$0xff] }
 0x3e0   : > { %8941 = vmatpush1.bf16.msra.mxu0 %v12814_v5  ;;  %9371 = vmatpush1.bf16.msra.mxu1 %v12816_v6  ;;  %v939_v5 = vld [vmem:[%s15548_s17 + $0xa98] sm:$0xff] }
 0x3e1   : > { %8942 = vmatprep.subr.bf16.mxu0 %v12823_v7  ;;  %9372 = vmatprep.subr.bf16.mxu1 %v12825_v8  ;;  %v943_v6 = vld [vmem:[%s15548_s17 + $0xab8] sm:$0xff]  ;;  %v12878_v7 = vcombine.low %v930_v58, %v934_v59  ;;  %v12880_v8 = vcombine.low %v931_v60, %v935_v61  ;;  %v994_v59 = vld [vmem:[%s15548_s17 + $0xc50] sm:$0xff] }
 0x3e2   : > { %v12889_v10 = vcombine.high %v939_v5, %v943_v6  ;;  %v998_v60 = vld [vmem:[%s15548_s17 + $0xc70] sm:$0xff]  ;;  %v995_v61 = vld [vmem:[%s15548_s17 + $0xc58] sm:$0xff] }
 0x3e4   : > { %8943 = vmatpush1.bf16.msra.mxu0 %v12822_v14  ;;  %9373 = vmatpush1.bf16.msra.mxu1 %v12824_v15  ;;  %v951_v14 = vld [vmem:[%s15548_s17 + $0xaf8] sm:$0xff]  ;;  %v12886_v15 = vcombine.low %v938_v3, %v942_v4  ;;  %v1002_v4 = vld [vmem:[%s15548_s17 + $0xc90] sm:$0xff] }
 0x3e5   : > { %8944 = vmatprep.subr.bf16.mxu0 %v12831_v16  ;;  %9374 = vmatprep.subr.bf16.mxu1 %v12833_v17  ;;  %v12888_v16 = vcombine.low %v939_v5, %v943_v6  ;;  %v12895_v17 = vcombine.high %v946_v11, %v950_v12  ;;  %v12897_v18 = vcombine.high %v947_v13, %v951_v14  ;;  %v1006_v5 = vld [vmem:[%s15548_s17 + $0xcb0] sm:$0xff]  ;;  %v14434_v6 = vld [vmem:[%s15546_s9 + $0x10] ss:$76 sps:$4 sm:$0xff]  }
 0x3e8   : > { %8945 = vmatpush1.bf16.msra.mxu0 %v12830_v22  ;;  %9375 = vmatpush1.bf16.msra.mxu1 %v12832_v23  ;;  %v959_v22 = vld [vmem:[%s15548_s17 + $0xb38] sm:$0xff]  ;;  %v12894_v23 = vcombine.low %v946_v11, %v950_v12  ;;  %v12951_v11 = vcombine.high %v1002_v4, %v1006_v5 }
 0x3e9   : > { %8946 = vmatprep.subr.bf16.mxu0 %v12839_v24  ;;  %9376 = vmatprep.subr.bf16.mxu1 %v12841_v25  ;;  %v12896_v24 = vcombine.low %v947_v13, %v951_v14  ;;  %v12903_v25 = vcombine.high %v954_v19, %v958_v20  ;;  %v12905_v26 = vcombine.high %v955_v21, %v959_v22  ;;  %v1010_v13 = vld [vmem:[%s15548_s17 + $0xcd0] sm:$0xff] }
 0x3ea   : > { %v1014_v14 = vld [vmem:[%s15548_s17 + $0xcf0] sm:$0xff] }
 0x3ec   : > { %8947 = vmatpush1.bf16.msra.mxu0 %v12838_v30  ;;  %9377 = vmatpush1.bf16.msra.mxu1 %v12840_v31  ;;  %v967_v30 = vld [vmem:[%s15548_s17 + $0xb78] sm:$0xff]  ;;  %v12902_v31 = vcombine.low %v954_v19, %v958_v20  ;;  %v12959_v20 = vcombine.high %v1010_v13, %v1014_v14 }
 0x3ed   : > { %8948 = vmatprep.subr.bf16.mxu0 %v12847_v32  ;;  %9378 = vmatprep.subr.bf16.mxu1 %v12849_v33  ;;  %v12904_v32 = vcombine.low %v955_v21, %v959_v22  ;;  %v12911_v33 = vcombine.high %v962_v27, %v966_v28  ;;  %v12913_v34 = vcombine.high %v963_v29, %v967_v30  ;;  %v1018_v22 = vld [vmem:[%s15548_s17 + $0xd10] sm:$0xff] }
 0x3f0   : > { %8949 = vmatpush1.bf16.msra.mxu0 %v12846_v38  ;;  %9379 = vmatpush1.bf16.msra.mxu1 %v12848_v39  ;;  %v975_v38 = vld [vmem:[%s15548_s17 + $0xbb8] sm:$0xff]  ;;  %v12910_v39 = vcombine.low %v962_v27, %v966_v28 }
 0x3f1   : > { %8950 = vmatprep.subr.bf16.mxu0 %v12855_v40  ;;  %9380 = vmatprep.subr.bf16.mxu1 %v12857_v41  ;;  %v12912_v40 = vcombine.low %v963_v29, %v967_v30  ;;  %v12919_v41 = vcombine.high %v970_v35, %v974_v36  ;;  %v12921_v42 = vcombine.high %v971_v37, %v975_v38  ;;  %v1026_v30 = vld [vmem:[%s15548_s17 + $0xd50] sm:$0xff] }
 0x3f4   : > { %8951 = vmatpush1.bf16.msra.mxu0 %v12854_v46  ;;  %9381 = vmatpush1.bf16.msra.mxu1 %v12856_v47  ;;  %v983_v46 = vld [vmem:[%s15548_s17 + $0xbf8] sm:$0xff]  ;;  %v12918_v47 = vcombine.low %v970_v35, %v974_v36 }
 0x3f5   : > { %8952 = vmatprep.subr.bf16.mxu0 %v12863_v48  ;;  %9382 = vmatprep.subr.bf16.mxu1 %v12865_v49  ;;  %v12920_v48 = vcombine.low %v971_v37, %v975_v38  ;;  %v12927_v49 = vcombine.high %v978_v43, %v982_v44  ;;  %v12929_v50 = vcombine.high %v979_v45, %v983_v46  ;;  %v1034_v38 = vld [vmem:[%s15548_s17 + $0xd90] sm:$0xff] }
 0x3f8   : > { %8953 = vmatpush1.bf16.msra.mxu0 %v12862_v54  ;;  %9383 = vmatpush1.bf16.msra.mxu1 %v12864_v55  ;;  %v991_v54 = vld [vmem:[%s15548_s17 + $0xc38] sm:$0xff]  ;;  %v12926_v55 = vcombine.low %v978_v43, %v982_v44 }
 0x3f9   : > { %8954 = vmatprep.subr.bf16.mxu0 %v12871_v56  ;;  %9384 = vmatprep.subr.bf16.mxu1 %v12873_v57  ;;  %v12928_v56 = vcombine.low %v979_v45, %v983_v46  ;;  %v12935_v57 = vcombine.high %v986_v51, %v990_v52  ;;  %v12937_v58 = vcombine.high %v987_v53, %v991_v54  ;;  %v566_v43 = vld [vmem:[#allocation2 + $0x10] sm:$0xff]  ;;  %v565_v45 = vld [vmem:[#allocation2 + $0x8] sm:$0xff]  ;;  %v567_v46 = vld [vmem:[#allocation2 + $0x18] sm:$0xff] }
 0x3fc   : > { %8955 = vmatpush1.bf16.msra.mxu0 %v12870_v62  ;;  %9385 = vmatpush1.bf16.msra.mxu1 %v12872_v63  ;;  %v999_v62 = vld [vmem:[%s15548_s17 + $0xc78] sm:$0xff]  ;;  %v12934_v63 = vcombine.low %v986_v51, %v990_v52 }
 0x3fd   : > { %8956 = vmatprep.subr.bf16.mxu0 %v12879_v1  ;;  %9386 = vmatprep.subr.bf16.mxu1 %v12881_v2  ;;  %v12936_v1 = vcombine.low %v987_v53, %v991_v54  ;;  %v12943_v2 = vcombine.high %v994_v59, %v998_v60  ;;  %v12945_v3 = vcombine.high %v995_v61, %v999_v62  ;;  %v574_v51 = vld [vmem:[#allocation2 + $0x50] sm:$0xff]  ;;  %v1042_v53 = vld [vmem:[%s15548_s17 + $0xdd0] sm:$0xff] }
 0x3fe   : > { %v1046_v54 = vld [vmem:[%s15548_s17 + $0xdf0] sm:$0xff] }
 0x400   : > { %8957 = vmatpush1.bf16.msra.mxu0 %v12878_v7  ;;  %9387 = vmatpush1.bf16.msra.mxu1 %v12880_v8  ;;  %v1003_v7 = vld [vmem:[%s15548_s17 + $0xc98] sm:$0xff] }
 0x401   : > { %8958 = vmatprep.subr.bf16.mxu0 %v12887_v9  ;;  %9388 = vmatprep.subr.bf16.mxu1 %v12889_v10  ;;  %v1007_v8 = vld [vmem:[%s15548_s17 + $0xcb8] sm:$0xff]  ;;  %v12942_v9 = vcombine.low %v994_v59, %v998_v60  ;;  %v12944_v10 = vcombine.low %v995_v61, %v999_v62 }
 0x402   : > { %v12953_v12 = vcombine.high %v1003_v7, %v1007_v8  ;;  %v12952_v19 = vcombine.low %v1003_v7, %v1007_v8  ;;  %v1043_v59 = vld [vmem:[%s15548_s17 + $0xdd8] sm:$0xff] }
 0x403   : > { %v1047_v60 = vld [vmem:[%s15548_s17 + $0xdf8] sm:$0xff] }
 0x404   : > { %8959 = vmatpush1.bf16.msra.mxu0 %v12886_v15  ;;  %9389 = vmatpush1.bf16.msra.mxu1 %v12888_v16  ;;  %v14435_v15 = vld [vmem:[%s15546_s9 + $0x1c] ss:$76 sps:$4 sm:$0xff]  }
 0x405   : > { %8960 = vmatprep.subr.bf16.mxu0 %v12895_v17  ;;  %9390 = vmatprep.subr.bf16.mxu1 %v12897_v18  ;;  %v1011_v16 = vld [vmem:[%s15548_s17 + $0xcd8] sm:$0xff]  ;;  %v12950_v18 = vcombine.low %v1002_v4, %v1006_v5 }
 0x406   : > { %v1015_v17 = vld [vmem:[%s15548_s17 + $0xcf8] sm:$0xff] }
 0x407   : > { %v12961_v21 = vcombine.high %v1011_v16, %v1015_v17  ;;  %v12960_v27 = vcombine.low %v1011_v16, %v1015_v17  ;;  %v1051_v17 = vld [vmem:[%s15548_s17 + $0xe18] sm:$0xff] }
 0x408   : > { %8961 = vmatpush1.bf16.msra.mxu0 %v12894_v23  ;;  %9391 = vmatpush1.bf16.msra.mxu1 %v12896_v24  ;;  %v1022_v23 = vld [vmem:[%s15548_s17 + $0xd30] sm:$0xff]  ;;  %v1019_v24 = vld [vmem:[%s15548_s17 + $0xd18] sm:$0xff] }
 0x409   : > { %8962 = vmatprep.subr.bf16.mxu0 %v12903_v25  ;;  %9392 = vmatprep.subr.bf16.mxu1 %v12905_v26  ;;  %v1023_v25 = vld [vmem:[%s15548_s17 + $0xd38] sm:$0xff]  ;;  %v12958_v26 = vcombine.low %v1010_v13, %v1014_v14  ;;  %v12967_v28 = vcombine.high %v1018_v22, %v1022_v23  ;;  %v12993_v13 = vcombine.high %v1043_v59, %v1047_v60  ;;  %v1050_v14 = vld [vmem:[%s15548_s17 + $0xe10] sm:$0xff] }
 0x40a   : > { %v12969_v29 = vcombine.high %v1019_v24, %v1023_v25  ;;  %v12968_v35 = vcombine.low %v1019_v24, %v1023_v25  ;;  %v1062_v24 = vld [vmem:[%s15548_s17 + $0xe70] sm:$0xff]  ;;  %v1059_v25 = vld [vmem:[%s15548_s17 + $0xe58] sm:$0xff] }
 0x40c   : > { %8963 = vmatpush1.bf16.msra.mxu0 %v12902_v31  ;;  %9393 = vmatpush1.bf16.msra.mxu1 %v12904_v32  ;;  %v1030_v31 = vld [vmem:[%s15548_s17 + $0xd70] sm:$0xff]  ;;  %v1027_v32 = vld [vmem:[%s15548_s17 + $0xd58] sm:$0xff] }
 0x40d   : > { %8964 = vmatprep.subr.bf16.mxu0 %v12911_v33  ;;  %9394 = vmatprep.subr.bf16.mxu1 %v12913_v34  ;;  %v1031_v33 = vld [vmem:[%s15548_s17 + $0xd78] sm:$0xff]  ;;  %v12966_v34 = vcombine.low %v1018_v22, %v1022_v23  ;;  %v12975_v36 = vcombine.high %v1026_v30, %v1030_v31  ;;  %v12974_v44 = vcombine.low %v1026_v30, %v1030_v31  ;;  %v1058_v23 = vld [vmem:[%s15548_s17 + $0xe50] sm:$0xff] }
 0x40e   : > { %v12977_v37 = vcombine.high %v1027_v32, %v1031_v33  ;;  %v1066_v31 = vld [vmem:[%s15548_s17 + $0xe90] sm:$0xff] }
 0x410   : > { %8965 = vmatpush1.bf16.msra.mxu0 %v12910_v39  ;;  %9395 = vmatpush1.bf16.msra.mxu1 %v12912_v40  ;;  %v1038_v39 = vld [vmem:[%s15548_s17 + $0xdb0] sm:$0xff]  ;;  %v1035_v40 = vld [vmem:[%s15548_s17 + $0xd98] sm:$0xff] }
 0x411   : > { %8966 = vmatprep.subr.bf16.mxu0 %v12919_v41  ;;  %9396 = vmatprep.subr.bf16.mxu1 %v12921_v42  ;;  %v1039_v41 = vld [vmem:[%s15548_s17 + $0xdb8] sm:$0xff]  ;;  %v564_v42 = vld [vmem:[#allocation2] sm:$0xff] }
 0x412   : > { %v12985_v52 = vcombine.high %v1035_v40, %v1039_v41  ;;  %v12984_v4 = vcombine.low %v1035_v40, %v1039_v41  ;;  %v1078_v40 = vld [vmem:[%s15548_s17 + $0xef0] sm:$0xff]  ;;  %v1075_v41 = vld [vmem:[%s15548_s17 + $0xed8] sm:$0xff] }
 0x414   : > { %8967 = vmatpush1.bf16.msra.mxu0 %v12918_v47  ;;  %9397 = vmatpush1.bf16.msra.mxu1 %v12920_v48  ;;  %v12976_v47 = vcombine.low %v1027_v32, %v1031_v33  ;;  %v572_v48 = vld [vmem:[#allocation2 + $0x40] sm:$0xff]  ;;  %v1067_v33 = vld [vmem:[%s15548_s17 + $0xe98] sm:$0xff] }
 0x415   : > { %8968 = vmatprep.subr.bf16.mxu0 %v12927_v49  ;;  %9398 = vmatprep.subr.bf16.mxu1 %v12929_v50  ;;  %v12983_v49 = vcombine.high %v1034_v38, %v1038_v39  ;;  %v1070_v32 = vld [vmem:[%s15548_s17 + $0xeb0] sm:$0xff] }
 0x418   : > { %8969 = vmatpush1.bf16.msra.mxu0 %v12926_v55  ;;  %9399 = vmatpush1.bf16.msra.mxu1 %v12928_v56 }
 0x419   : > { %8981 = vmatprep.subr.bf16.mxu0 %v12935_v57  ;;  %9411 = vmatprep.subr.bf16.mxu1 %v12937_v58  ;;  %v573_v58 = vld [vmem:[#allocation2 + $0x48] sm:$0xff] }
 0x41b   : > { %8971 = vmatmul.mubr.bf16.vlgmr.msra.gmra.mrb[4].mxu0 %v14434_v6  ;;  %9401 = vmatmul.mubr.bf16.vlgmr.msra.gmra.mrb[4].mxu1 %v14434_v6 }
 0x41c   : > { %8982 = vmatpush1.bf16.msra.mxu0 %v12934_v63  ;;  %9412 = vmatpush1.bf16.msra.mxu1 %v12936_v1 }
 0x41d   : > { %8983 = vmatprep.subr.bf16.mxu0 %v12943_v2  ;;  %9413 = vmatprep.subr.bf16.mxu1 %v12945_v3  ;;  %v575_v2 = vld [vmem:[#allocation2 + $0x58] sm:$0xff]  ;;  %v12982_v3 = vcombine.low %v1034_v38, %v1038_v39  ;;  %v1074_v39 = vld [vmem:[%s15548_s17 + $0xed0] sm:$0xff] }
 0x41e   : > { %9013 = vmatprep.mubr.bf16.mxu0 %v14435_v15  ;;  %9443 = vmatprep.mubr.bf16.mxu1 %v14435_v15  ;;  %v1054_v15 = vld [vmem:[%s15548_s17 + $0xe30] sm:$0xff] }
 0x420   : > { %8984 = vmatpush1.bf16.msra.mxu0 %v12942_v9  ;;  %9414 = vmatpush1.bf16.msra.mxu1 %v12944_v10  ;;  %v12991_v9 = vcombine.high %v1042_v53, %v1046_v54 }
 0x421   : > { %8985 = vmatprep.subr.bf16.mxu0 %v12951_v11  ;;  %9415 = vmatprep.subr.bf16.mxu1 %v12953_v12 }
 0x424   : > { %8986 = vmatpush1.bf16.msra.mxu0 %v12950_v18  ;;  %9416 = vmatpush1.bf16.msra.mxu1 %v12952_v19  ;;  %v1055_v18 = vld [vmem:[%s15548_s17 + $0xe38] sm:$0xff]  ;;  %v12990_v19 = vcombine.low %v1042_v53, %v1046_v54 }
 0x425   : > { %8987 = vmatprep.subr.bf16.mxu0 %v12959_v20  ;;  %9417 = vmatprep.subr.bf16.mxu1 %v12961_v21  ;;  %v12992_v20 = vcombine.low %v1043_v59, %v1047_v60  ;;  %v12999_v21 = vcombine.high %v1050_v14, %v1054_v15  ;;  %v13001_v22 = vcombine.high %v1051_v17, %v1055_v18 }
 0x428   : > { %8988 = vmatpush1.bf16.msra.mxu0 %v12958_v26  ;;  %9418 = vmatpush1.bf16.msra.mxu1 %v12960_v27  ;;  %v1063_v26 = vld [vmem:[%s15548_s17 + $0xe78] sm:$0xff]  ;;  %v12998_v27 = vcombine.low %v1050_v14, %v1054_v15 }
 0x429   : > { %8989 = vmatprep.subr.bf16.mxu0 %v12967_v28  ;;  %9419 = vmatprep.subr.bf16.mxu1 %v12969_v29  ;;  %v13000_v28 = vcombine.low %v1051_v17, %v1055_v18  ;;  %v13007_v29 = vcombine.high %v1058_v23, %v1062_v24  ;;  %v13009_v30 = vcombine.high %v1059_v25, %v1063_v26  ;;  %v1118_v17 = vld [vmem:[%s15548_s17 + $0x1030] sm:$0xff]  ;;  %v1115_v18 = vld [vmem:[%s15548_s17 + $0x1018] sm:$0xff] }
 0x42c   : > { %8990 = vmatpush1.bf16.msra.mxu0 %v12966_v34  ;;  %9420 = vmatpush1.bf16.msra.mxu1 %v12968_v35  ;;  %v1071_v34 = vld [vmem:[%s15548_s17 + $0xeb8] sm:$0xff]  ;;  %v13006_v35 = vcombine.low %v1058_v23, %v1062_v24  ;;  %v1122_v24 = vld [vmem:[%s15548_s17 + $0x1050] sm:$0xff] }
 0x42d   : > { %8991 = vmatprep.subr.bf16.mxu0 %v12975_v36  ;;  %9421 = vmatprep.subr.bf16.mxu1 %v12977_v37  ;;  %v13008_v36 = vcombine.low %v1059_v25, %v1063_v26  ;;  %v13015_v37 = vcombine.high %v1066_v31, %v1070_v32  ;;  %v13017_v38 = vcombine.high %v1067_v33, %v1071_v34  ;;  %v1126_v25 = vld [vmem:[%s15548_s17 + $0x1070] sm:$0xff]  ;;  %v1123_v26 = vld [vmem:[%s15548_s17 + $0x1058] sm:$0xff] }
 0x42e   : > { %v8413_v50 = vpop.f32.mrb[0].mxu0  ;;  %v8843_v56 = vpop.f32.mrb[0].mxu1 }
 0x42f   : > { %v9712_v55 = vadd.f32 %v8413_v50, %v564_v42  ;;  %v8415_v57 = vpop.f32.mrb[1].mxu0  ;;  %v9714_v61 = vadd.f32 %v8843_v56, %v566_v43  ;;  %v8845_v63 = vpop.f32.mrb[1].mxu1  ;;  %v1079_v42 = vld [vmem:[%s15548_s17 + $0xef8] sm:$0xff]  ;;  %v13014_v43 = vcombine.low %v1066_v31, %v1070_v32  ;;  %v1094_v56 = vld [vmem:[%s15548_s17 + $0xf70] sm:$0xff] }
 0x430   : > { %v9713_v62 = vadd.f32 %v8415_v57, %v565_v45  ;;  %v8417_v1 = vpop.f32.mrb[2].mxu0  ;;  %8992 = vmatpush1.bf16.msra.mxu0 %v12974_v44  ;;  %v9715_v5 = vadd.f32 %v8845_v63, %v567_v46  ;;  %v8847_v7 = vpop.f32.mrb[2].mxu1  ;;  %9422 = vmatpush1.bf16.msra.mxu1 %v12976_v47  ;;  %v13016_v44 = vcombine.low %v1067_v33, %v1071_v34  ;;  %v1082_v47 = vld [vmem:[%s15548_s17 + $0xf10] sm:$0xff]  ;;  %v1087_v50 = vld [vmem:[%s15548_s17 + $0xf38] sm:$0xff] }
 0x431   : > { %9728 = vst [vmem:[#allocation2] sm:$0xff] %v9712_v55  ;;  %v9720_v6 = vadd.f32 %v8417_v1, %v572_v48  ;;  %v8419_v8 = vpop.f32.mrb[3].mxu0  ;;  %8993 = vmatprep.subr.bf16.mxu0 %v12983_v49  ;;  %9730 = vst [vmem:[#allocation2 + $0x10] sm:$0xff] %v9714_v61  ;;  %v9722_v10 = vadd.f32 %v8847_v7, %v574_v51  ;;  %v8849_v12 = vpop.f32.mrb[3].mxu1  ;;  %9423 = vmatprep.subr.bf16.mxu1 %v12985_v52  ;;  %v1086_v48 = vld [vmem:[%s15548_s17 + $0xf30] sm:$0xff]  ;;  %v1083_v49 = vld [vmem:[%s15548_s17 + $0xf18] sm:$0xff] }
 0x432   : > { %9729 = vst [vmem:[#allocation2 + $0x8] sm:$0xff] %v9713_v62  ;;  %v9721_v11 = vadd.f32 %v8419_v8, %v573_v58  ;;  %9731 = vst [vmem:[#allocation2 + $0x18] sm:$0xff] %v9715_v5  ;;  %v9723_v16 = vadd.f32 %v8849_v12, %v575_v2  ;;  %v13023_v45 = vcombine.high %v1074_v39, %v1078_v40  ;;  %v1090_v55 = vld [vmem:[%s15548_s17 + $0xf50] sm:$0xff]  ;;  %v1091_v57 = vld [vmem:[%s15548_s17 + $0xf58] sm:$0xff] }
 0x433   : > { %9736 = vst [vmem:[#allocation2 + $0x40] sm:$0xff] %v9720_v6  ;;  %9738 = vst [vmem:[#allocation2 + $0x50] sm:$0xff] %v9722_v10  ;;  %v13025_v46 = vcombine.high %v1075_v41, %v1079_v42  ;;  %v13022_v51 = vcombine.low %v1074_v39, %v1078_v40  ;;  %v13024_v52 = vcombine.low %v1075_v41, %v1079_v42  ;;  %v1095_v58 = vld [vmem:[%s15548_s17 + $0xf78] sm:$0xff]  ;;  %v1098_v63 = vld [vmem:[%s15548_s17 + $0xf90] sm:$0xff] }
 0x434   : > { %9737 = vst [vmem:[#allocation2 + $0x48] sm:$0xff] %v9721_v11  ;;  %8994 = vmatpush1.bf16.msra.mxu0 %v12982_v3  ;;  %9739 = vst [vmem:[#allocation2 + $0x58] sm:$0xff] %v9723_v16  ;;  %9424 = vmatpush1.bf16.msra.mxu1 %v12984_v4  ;;  %v13031_v53 = vcombine.high %v1082_v47, %v1086_v48  ;;  %v13033_v54 = vcombine.high %v1083_v49, %v1087_v50  ;;  %v1102_v1 = vld [vmem:[%s15548_s17 + $0xfb0] sm:$0xff]  ;;  %v1099_v2 = vld [vmem:[%s15548_s17 + $0xf98] sm:$0xff] }
 0x435   : > { %8995 = vmatprep.subr.bf16.mxu0 %v12991_v9  ;;  %9425 = vmatprep.subr.bf16.mxu1 %v12993_v13  ;;  %v13030_v59 = vcombine.low %v1082_v47, %v1086_v48  ;;  %v13032_v60 = vcombine.low %v1083_v49, %v1087_v50  ;;  %v13039_v61 = vcombine.high %v1090_v55, %v1094_v56  ;;  %v1103_v3 = vld [vmem:[%s15548_s17 + $0xfb8] sm:$0xff]  ;;  %v1106_v8 = vld [vmem:[%s15548_s17 + $0xfd0] sm:$0xff] }
 0x436   : > { %v13041_v62 = vcombine.high %v1091_v57, %v1095_v58  ;;  %v13038_v4 = vcombine.low %v1090_v55, %v1094_v56  ;;  %v13040_v5 = vcombine.low %v1091_v57, %v1095_v58  ;;  %v13047_v6 = vcombine.high %v1098_v63, %v1102_v1  ;;  %v1110_v9 = vld [vmem:[%s15548_s17 + $0xff0] sm:$0xff]  ;;  %v1107_v10 = vld [vmem:[%s15548_s17 + $0xfd8] sm:$0xff] }
 0x437   : > { %v13049_v7 = vcombine.high %v1099_v2, %v1103_v3  ;;  %v1111_v11 = vld [vmem:[%s15548_s17 + $0xff8] sm:$0xff]  ;;  %v13046_v12 = vcombine.low %v1098_v63, %v1102_v1  ;;  %v13048_v13 = vcombine.low %v1099_v2, %v1103_v3  ;;  %v13055_v14 = vcombine.high %v1106_v8, %v1110_v9  ;;  %v1114_v16 = vld [vmem:[%s15548_s17 + $0x1010] sm:$0xff] }
 0x438   : > { %8996 = vmatpush1.bf16.msra.mxu0 %v12990_v19  ;;  %9426 = vmatpush1.bf16.msra.mxu1 %v12992_v20  ;;  %v13057_v15 = vcombine.high %v1107_v10, %v1111_v11  ;;  %v1119_v19 = vld [vmem:[%s15548_s17 + $0x1038] sm:$0xff]  ;;  %v13054_v20 = vcombine.low %v1106_v8, %v1110_v9  ;;  %v1130_v32 = vld [vmem:[%s15548_s17 + $0x1090] sm:$0xff] }
 0x439   : > { %8997 = vmatprep.subr.bf16.mxu0 %v12999_v21  ;;  %9427 = vmatprep.subr.bf16.mxu1 %v13001_v22  ;;  %v13056_v21 = vcombine.low %v1107_v10, %v1111_v11  ;;  %v13063_v22 = vcombine.high %v1114_v16, %v1118_v17  ;;  %v13065_v23 = vcombine.high %v1115_v18, %v1119_v19  ;;  %v1134_v33 = vld [vmem:[%s15548_s17 + $0x10b0] sm:$0xff] }
 0x43a   : > { %v14436_v34 = vld [vmem:[%s15546_s9 + $0x18] ss:$76 sps:$4 sm:$0xff]   ;;  %v13079_v39 = vcombine.high %v1130_v32, %v1134_v33 }
 0x43b   : > { %v1138_v41 = vld [vmem:[%s15548_s17 + $0x10d0] sm:$0xff] }
 0x43c   : > { %8998 = vmatpush1.bf16.msra.mxu0 %v12998_v27  ;;  %9428 = vmatpush1.bf16.msra.mxu1 %v13000_v28  ;;  %v1127_v27 = vld [vmem:[%s15548_s17 + $0x1078] sm:$0xff]  ;;  %v13062_v28 = vcombine.low %v1114_v16, %v1118_v17  ;;  %v1142_v42 = vld [vmem:[%s15548_s17 + $0x10f0] sm:$0xff] }
 0x43d   : > { %8999 = vmatprep.subr.bf16.mxu0 %v13007_v29  ;;  %9429 = vmatprep.subr.bf16.mxu1 %v13009_v30  ;;  %v13064_v29 = vcombine.low %v1115_v18, %v1119_v19  ;;  %v13071_v30 = vcombine.high %v1122_v24, %v1126_v25  ;;  %v13073_v31 = vcombine.high %v1123_v26, %v1127_v27  ;;  %v1146_v50 = vld [vmem:[%s15548_s17 + $0x1110] sm:$0xff] }
 0x43e   : > { %v13087_v48 = vcombine.high %v1138_v41, %v1142_v42  ;;  %v1154_v58 = vld [vmem:[%s15548_s17 + $0x1150] sm:$0xff] }
 0x43f   : > { %v1162_v3 = vld [vmem:[%s15548_s17 + $0x1190] sm:$0xff] }
 0x440   : > { %9000 = vmatpush1.bf16.msra.mxu0 %v13006_v35  ;;  %9430 = vmatpush1.bf16.msra.mxu1 %v13008_v36  ;;  %v1131_v35 = vld [vmem:[%s15548_s17 + $0x1098] sm:$0xff]  ;;  %v1170_v11 = vld [vmem:[%s15548_s17 + $0x11d0] sm:$0xff] }
 0x441   : > { %9001 = vmatprep.subr.bf16.mxu0 %v13015_v37  ;;  %9431 = vmatprep.subr.bf16.mxu1 %v13017_v38  ;;  %v1135_v36 = vld [vmem:[%s15548_s17 + $0x10b8] sm:$0xff]  ;;  %v13070_v37 = vcombine.low %v1122_v24, %v1126_v25  ;;  %v13072_v38 = vcombine.low %v1123_v26, %v1127_v27  ;;  %v1178_v19 = vld [vmem:[%s15548_s17 + $0x1210] sm:$0xff] }
 0x442   : > { %v13081_v40 = vcombine.high %v1131_v35, %v1135_v36  ;;  %v13080_v47 = vcombine.low %v1131_v35, %v1135_v36  ;;  %v1186_v27 = vld [vmem:[%s15548_s17 + $0x1250] sm:$0xff] }
 0x443   : > { %v1194_v35 = vld [vmem:[%s15548_s17 + $0x1290] sm:$0xff] }
 0x444   : > { %9002 = vmatpush1.bf16.msra.mxu0 %v13014_v43  ;;  %9432 = vmatpush1.bf16.msra.mxu1 %v13016_v44  ;;  %v14437_v43 = vld [vmem:[%s15546_s9 + $0x24] ss:$76 sps:$4 sm:$0xff]  }
 0x445   : > { %9003 = vmatprep.subr.bf16.mxu0 %v13023_v45  ;;  %9433 = vmatprep.subr.bf16.mxu1 %v13025_v46  ;;  %v1139_v44 = vld [vmem:[%s15548_s17 + $0x10d8] sm:$0xff]  ;;  %v13078_v46 = vcombine.low %v1130_v32, %v1134_v33  ;;  %v1198_v36 = vld [vmem:[%s15548_s17 + $0x12b0] sm:$0xff] }
 0x446   : > { %v1143_v45 = vld [vmem:[%s15548_s17 + $0x10f8] sm:$0xff] }
 0x447   : > { %v13089_v49 = vcombine.high %v1139_v44, %v1143_v45  ;;  %v13088_v55 = vcombine.low %v1139_v44, %v1143_v45  ;;  %v1206_v44 = vld [vmem:[%s15548_s17 + $0x12f0] sm:$0xff]  ;;  %v1203_v45 = vld [vmem:[%s15548_s17 + $0x12d8] sm:$0xff] }
 0x448   : > { %9004 = vmatpush1.bf16.msra.mxu0 %v13022_v51  ;;  %9434 = vmatpush1.bf16.msra.mxu1 %v13024_v52  ;;  %v1150_v51 = vld [vmem:[%s15548_s17 + $0x1130] sm:$0xff]  ;;  %v1147_v52 = vld [vmem:[%s15548_s17 + $0x1118] sm:$0xff] }
 0x449   : > { %9005 = vmatprep.subr.bf16.mxu0 %v13031_v53  ;;  %9435 = vmatprep.subr.bf16.mxu1 %v13033_v54  ;;  %v1151_v53 = vld [vmem:[%s15548_s17 + $0x1138] sm:$0xff]  ;;  %v13086_v54 = vcombine.low %v1138_v41, %v1142_v42  ;;  %v13095_v56 = vcombine.high %v1146_v50, %v1150_v51  ;;  %v13143_v41 = vcombine.high %v1194_v35, %v1198_v36 }
 0x44a   : > { %v13097_v57 = vcombine.high %v1147_v52, %v1151_v53  ;;  %v13096_v63 = vcombine.low %v1147_v52, %v1151_v53  ;;  %v1214_v52 = vld [vmem:[%s15548_s17 + $0x1330] sm:$0xff]  ;;  %v1211_v53 = vld [vmem:[%s15548_s17 + $0x1318] sm:$0xff] }
 0x44c   : > { %9006 = vmatpush1.bf16.msra.mxu0 %v13030_v59  ;;  %9436 = vmatpush1.bf16.msra.mxu1 %v13032_v60  ;;  %v1158_v59 = vld [vmem:[%s15548_s17 + $0x1170] sm:$0xff]  ;;  %v1155_v60 = vld [vmem:[%s15548_s17 + $0x1158] sm:$0xff] }
 0x44d   : > { %9007 = vmatprep.subr.bf16.mxu0 %v13039_v61  ;;  %9437 = vmatprep.subr.bf16.mxu1 %v13041_v62  ;;  %v1159_v61 = vld [vmem:[%s15548_s17 + $0x1178] sm:$0xff]  ;;  %v13094_v62 = vcombine.low %v1146_v50, %v1150_v51  ;;  %v13103_v1 = vcombine.high %v1154_v58, %v1158_v59  ;;  %v1210_v51 = vld [vmem:[%s15548_s17 + $0x1310] sm:$0xff] }
 0x44e   : > { %v13105_v2 = vcombine.high %v1155_v60, %v1159_v61  ;;  %v13104_v8 = vcombine.low %v1155_v60, %v1159_v61  ;;  %v1222_v60 = vld [vmem:[%s15548_s17 + $0x1370] sm:$0xff]  ;;  %v1219_v61 = vld [vmem:[%s15548_s17 + $0x1358] sm:$0xff] }
 0x450   : > { %9008 = vmatpush1.bf16.msra.mxu0 %v13038_v4  ;;  %9438 = vmatpush1.bf16.msra.mxu1 %v13040_v5  ;;  %v1166_v4 = vld [vmem:[%s15548_s17 + $0x11b0] sm:$0xff]  ;;  %v1163_v5 = vld [vmem:[%s15548_s17 + $0x1198] sm:$0xff] }
 0x451   : > { %9009 = vmatprep.subr.bf16.mxu0 %v13047_v6  ;;  %9439 = vmatprep.subr.bf16.mxu1 %v13049_v7  ;;  %v1167_v6 = vld [vmem:[%s15548_s17 + $0x11b8] sm:$0xff]  ;;  %v13102_v7 = vcombine.low %v1154_v58, %v1158_v59  ;;  %v13111_v9 = vcombine.high %v1162_v3, %v1166_v4  ;;  %v1218_v59 = vld [vmem:[%s15548_s17 + $0x1350] sm:$0xff] }
 0x452   : > { %v13113_v10 = vcombine.high %v1163_v5, %v1167_v6  ;;  %v13112_v16 = vcombine.low %v1163_v5, %v1167_v6  ;;  %v1230_v5 = vld [vmem:[%s15548_s17 + $0x13b0] sm:$0xff]  ;;  %v1227_v6 = vld [vmem:[%s15548_s17 + $0x1398] sm:$0xff] }
 0x454   : > { %9010 = vmatpush1.bf16.msra.mxu0 %v13046_v12  ;;  %9440 = vmatpush1.bf16.msra.mxu1 %v13048_v13  ;;  %v1174_v12 = vld [vmem:[%s15548_s17 + $0x11f0] sm:$0xff]  ;;  %v1171_v13 = vld [vmem:[%s15548_s17 + $0x11d8] sm:$0xff] }
 0x455   : > { %9011 = vmatprep.subr.bf16.mxu0 %v13055_v14  ;;  %9441 = vmatprep.subr.bf16.mxu1 %v13057_v15  ;;  %v1175_v14 = vld [vmem:[%s15548_s17 + $0x11f8] sm:$0xff]  ;;  %v13110_v15 = vcombine.low %v1162_v3, %v1166_v4  ;;  %v13119_v17 = vcombine.high %v1170_v11, %v1174_v12  ;;  %v1226_v4 = vld [vmem:[%s15548_s17 + $0x1390] sm:$0xff] }
 0x456   : > { %v13121_v18 = vcombine.high %v1171_v13, %v1175_v14  ;;  %v13120_v24 = vcombine.low %v1171_v13, %v1175_v14  ;;  %v1238_v13 = vld [vmem:[%s15548_s17 + $0x13f0] sm:$0xff]  ;;  %v1235_v14 = vld [vmem:[%s15548_s17 + $0x13d8] sm:$0xff] }
 0x458   : > { %9012 = vmatpush1.bf16.msra.mxu0 %v13054_v20  ;;  %9442 = vmatpush1.bf16.msra.mxu1 %v13056_v21  ;;  %v1182_v20 = vld [vmem:[%s15548_s17 + $0x1230] sm:$0xff]  ;;  %v1179_v21 = vld [vmem:[%s15548_s17 + $0x1218] sm:$0xff] }
 0x459   : > { %9024 = vmatprep.subr.bf16.mxu0 %v13063_v22  ;;  %9454 = vmatprep.subr.bf16.mxu1 %v13065_v23  ;;  %v1183_v22 = vld [vmem:[%s15548_s17 + $0x1238] sm:$0xff]  ;;  %v13118_v23 = vcombine.low %v1170_v11, %v1174_v12  ;;  %v13127_v25 = vcombine.high %v1178_v19, %v1182_v20  ;;  %v1234_v12 = vld [vmem:[%s15548_s17 + $0x13d0] sm:$0xff] }
 0x45a   : > { %v13129_v26 = vcombine.high %v1179_v21, %v1183_v22  ;;  %v13128_v32 = vcombine.low %v1179_v21, %v1183_v22  ;;  %v1246_v21 = vld [vmem:[%s15548_s17 + $0x1430] sm:$0xff]  ;;  %v1243_v22 = vld [vmem:[%s15548_s17 + $0x1418] sm:$0xff] }
 0x45b   : > { %9014 = vmatmul.mubr.bf16.vlgmr.msra.gmra.mrb[4].mxu0 %v14436_v34  ;;  %9444 = vmatmul.mubr.bf16.vlgmr.msra.gmra.mrb[4].mxu1 %v14436_v34 }
 0x45c   : > { %9025 = vmatpush1.bf16.msra.mxu0 %v13062_v28  ;;  %9455 = vmatpush1.bf16.msra.mxu1 %v13064_v29  ;;  %v1190_v28 = vld [vmem:[%s15548_s17 + $0x1270] sm:$0xff]  ;;  %v1187_v29 = vld [vmem:[%s15548_s17 + $0x1258] sm:$0xff] }
 0x45d   : > { %9026 = vmatprep.subr.bf16.mxu0 %v13071_v30  ;;  %9456 = vmatprep.subr.bf16.mxu1 %v13073_v31  ;;  %v1191_v30 = vld [vmem:[%s15548_s17 + $0x1278] sm:$0xff]  ;;  %v13126_v31 = vcombine.low %v1178_v19, %v1182_v20  ;;  %v13135_v33 = vcombine.high %v1186_v27, %v1190_v28  ;;  %v1242_v20 = vld [vmem:[%s15548_s17 + $0x1410] sm:$0xff] }
 0x45e   : > { %9056 = vmatprep.mubr.bf16.mxu0 %v14437_v43  ;;  %9486 = vmatprep.mubr.bf16.mxu1 %v14437_v43  ;;  %v13137_v34 = vcombine.high %v1187_v29, %v1191_v30  ;;  %v1202_v43 = vld [vmem:[%s15548_s17 + $0x12d0] sm:$0xff] }
 0x460   : > { %9027 = vmatpush1.bf16.msra.mxu0 %v13070_v37  ;;  %9457 = vmatpush1.bf16.msra.mxu1 %v13072_v38  ;;  %v1195_v37 = vld [vmem:[%s15548_s17 + $0x1298] sm:$0xff] }
 0x461   : > { %9028 = vmatprep.subr.bf16.mxu0 %v13079_v39  ;;  %9458 = vmatprep.subr.bf16.mxu1 %v13081_v40  ;;  %v1199_v38 = vld [vmem:[%s15548_s17 + $0x12b8] sm:$0xff]  ;;  %v13134_v39 = vcombine.low %v1186_v27, %v1190_v28  ;;  %v13136_v40 = vcombine.low %v1187_v29, %v1191_v30  ;;  %v1250_v28 = vld [vmem:[%s15548_s17 + $0x1450] sm:$0xff] }
 0x462   : > { %v13145_v42 = vcombine.high %v1195_v37, %v1199_v38  ;;  %v1254_v29 = vld [vmem:[%s15548_s17 + $0x1470] sm:$0xff]  ;;  %v1251_v30 = vld [vmem:[%s15548_s17 + $0x1458] sm:$0xff] }
 0x464   : > { %9029 = vmatpush1.bf16.msra.mxu0 %v13078_v46  ;;  %9459 = vmatpush1.bf16.msra.mxu1 %v13080_v47  ;;  %v1207_v46 = vld [vmem:[%s15548_s17 + $0x12f8] sm:$0xff]  ;;  %v13142_v47 = vcombine.low %v1194_v35, %v1198_v36  ;;  %v1258_v36 = vld [vmem:[%s15548_s17 + $0x1490] sm:$0xff] }
 0x465   : > { %9030 = vmatprep.subr.bf16.mxu0 %v13087_v48  ;;  %9460 = vmatprep.subr.bf16.mxu1 %v13089_v49  ;;  %v13144_v48 = vcombine.low %v1195_v37, %v1199_v38  ;;  %v13151_v49 = vcombine.high %v1202_v43, %v1206_v44  ;;  %v13153_v50 = vcombine.high %v1203_v45, %v1207_v46  ;;  %v1262_v37 = vld [vmem:[%s15548_s17 + $0x14b0] sm:$0xff] }
 0x466   : > { %v14438_v38 = vld [vmem:[%s15546_s9 + $0x20] ss:$76 sps:$4 sm:$0xff]  }
 0x468   : > { %9031 = vmatpush1.bf16.msra.mxu0 %v13086_v54  ;;  %9461 = vmatpush1.bf16.msra.mxu1 %v13088_v55  ;;  %v1215_v54 = vld [vmem:[%s15548_s17 + $0x1338] sm:$0xff]  ;;  %v13150_v55 = vcombine.low %v1202_v43, %v1206_v44  ;;  %v13207_v43 = vcombine.high %v1258_v36, %v1262_v37 }
 0x469   : > { %9032 = vmatprep.subr.bf16.mxu0 %v13095_v56  ;;  %9462 = vmatprep.subr.bf16.mxu1 %v13097_v57  ;;  %v13152_v56 = vcombine.low %v1203_v45, %v1207_v46  ;;  %v13159_v57 = vcombine.high %v1210_v51, %v1214_v52  ;;  %v13161_v58 = vcombine.high %v1211_v53, %v1215_v54  ;;  %v1266_v45 = vld [vmem:[%s15548_s17 + $0x14d0] sm:$0xff] }
 0x46a   : > { %v1270_v46 = vld [vmem:[%s15548_s17 + $0x14f0] sm:$0xff] }
 0x46c   : > { %9033 = vmatpush1.bf16.msra.mxu0 %v13094_v62  ;;  %9463 = vmatpush1.bf16.msra.mxu1 %v13096_v63  ;;  %v1223_v62 = vld [vmem:[%s15548_s17 + $0x1378] sm:$0xff]  ;;  %v13158_v63 = vcombine.low %v1210_v51, %v1214_v52  ;;  %v13215_v52 = vcombine.high %v1266_v45, %v1270_v46 }
 0x46d   : > { %9034 = vmatprep.subr.bf16.mxu0 %v13103_v1  ;;  %9464 = vmatprep.subr.bf16.mxu1 %v13105_v2  ;;  %v13160_v1 = vcombine.low %v1211_v53, %v1215_v54  ;;  %v13167_v2 = vcombine.high %v1218_v59, %v1222_v60  ;;  %v13169_v3 = vcombine.high %v1219_v61, %v1223_v62  ;;  %v1274_v54 = vld [vmem:[%s15548_s17 + $0x1510] sm:$0xff] }
 0x470   : > { %9035 = vmatpush1.bf16.msra.mxu0 %v13102_v7  ;;  %9465 = vmatpush1.bf16.msra.mxu1 %v13104_v8  ;;  %v1231_v7 = vld [vmem:[%s15548_s17 + $0x13b8] sm:$0xff]  ;;  %v13166_v8 = vcombine.low %v1218_v59, %v1222_v60 }
 0x471   : > { %9036 = vmatprep.subr.bf16.mxu0 %v13111_v9  ;;  %9466 = vmatprep.subr.bf16.mxu1 %v13113_v10  ;;  %v13168_v9 = vcombine.low %v1219_v61, %v1223_v62  ;;  %v13175_v10 = vcombine.high %v1226_v4, %v1230_v5  ;;  %v13177_v11 = vcombine.high %v1227_v6, %v1231_v7  ;;  %v1282_v62 = vld [vmem:[%s15548_s17 + $0x1550] sm:$0xff] }
 0x474   : > { %9037 = vmatpush1.bf16.msra.mxu0 %v13110_v15  ;;  %9467 = vmatpush1.bf16.msra.mxu1 %v13112_v16  ;;  %v1239_v15 = vld [vmem:[%s15548_s17 + $0x13f8] sm:$0xff]  ;;  %v13174_v16 = vcombine.low %v1226_v4, %v1230_v5 }
 0x475   : > { %9038 = vmatprep.subr.bf16.mxu0 %v13119_v17  ;;  %9468 = vmatprep.subr.bf16.mxu1 %v13121_v18  ;;  %v13176_v17 = vcombine.low %v1227_v6, %v1231_v7  ;;  %v13183_v18 = vcombine.high %v1234_v12, %v1238_v13  ;;  %v13185_v19 = vcombine.high %v1235_v14, %v1239_v15  ;;  %v1290_v7 = vld [vmem:[%s15548_s17 + $0x1590] sm:$0xff] }
 0x478   : > { %9039 = vmatpush1.bf16.msra.mxu0 %v13118_v23  ;;  %9469 = vmatpush1.bf16.msra.mxu1 %v13120_v24  ;;  %v1247_v23 = vld [vmem:[%s15548_s17 + $0x1438] sm:$0xff]  ;;  %v13182_v24 = vcombine.low %v1234_v12, %v1238_v13 }
 0x479   : > { %9040 = vmatprep.subr.bf16.mxu0 %v13127_v25  ;;  %9470 = vmatprep.subr.bf16.mxu1 %v13129_v26  ;;  %v13184_v25 = vcombine.low %v1235_v14, %v1239_v15  ;;  %v13191_v26 = vcombine.high %v1242_v20, %v1246_v21  ;;  %v13193_v27 = vcombine.high %v1243_v22, %v1247_v23  ;;  %v1298_v15 = vld [vmem:[%s15548_s17 + $0x15d0] sm:$0xff] }
 0x47c   : > { %9041 = vmatpush1.bf16.msra.mxu0 %v13126_v31  ;;  %9471 = vmatpush1.bf16.msra.mxu1 %v13128_v32  ;;  %v1255_v31 = vld [vmem:[%s15548_s17 + $0x1478] sm:$0xff]  ;;  %v13190_v32 = vcombine.low %v1242_v20, %v1246_v21 }
 0x47d   : > { %9042 = vmatprep.subr.bf16.mxu0 %v13135_v33  ;;  %9472 = vmatprep.subr.bf16.mxu1 %v13137_v34  ;;  %v13192_v33 = vcombine.low %v1243_v22, %v1247_v23  ;;  %v13199_v34 = vcombine.high %v1250_v28, %v1254_v29  ;;  %v13201_v35 = vcombine.high %v1251_v30, %v1255_v31  ;;  %v1306_v23 = vld [vmem:[%s15548_s17 + $0x1610] sm:$0xff] }
 0x480   : > { %9043 = vmatpush1.bf16.msra.mxu0 %v13134_v39  ;;  %9473 = vmatpush1.bf16.msra.mxu1 %v13136_v40  ;;  %v1259_v39 = vld [vmem:[%s15548_s17 + $0x1498] sm:$0xff] }
 0x481   : > { %9044 = vmatprep.subr.bf16.mxu0 %v13143_v41  ;;  %9474 = vmatprep.subr.bf16.mxu1 %v13145_v42  ;;  %v1263_v40 = vld [vmem:[%s15548_s17 + $0x14b8] sm:$0xff]  ;;  %v13198_v41 = vcombine.low %v1250_v28, %v1254_v29  ;;  %v13200_v42 = vcombine.low %v1251_v30, %v1255_v31  ;;  %v1314_v31 = vld [vmem:[%s15548_s17 + $0x1650] sm:$0xff] }
 0x482   : > { %v13209_v44 = vcombine.high %v1259_v39, %v1263_v40  ;;  %v13208_v51 = vcombine.low %v1259_v39, %v1263_v40  ;;  %v1322_v39 = vld [vmem:[%s15548_s17 + $0x1690] sm:$0xff] }
 0x483   : > { %v1326_v40 = vld [vmem:[%s15548_s17 + $0x16b0] sm:$0xff] }
 0x484   : > { %9045 = vmatpush1.bf16.msra.mxu0 %v13142_v47  ;;  %9475 = vmatpush1.bf16.msra.mxu1 %v13144_v48  ;;  %v14439_v47 = vld [vmem:[%s15546_s9 + $0x2c] ss:$76 sps:$4 sm:$0xff]  }
 0x485   : > { %9046 = vmatprep.subr.bf16.mxu0 %v13151_v49  ;;  %9476 = vmatprep.subr.bf16.mxu1 %v13153_v50  ;;  %v1267_v48 = vld [vmem:[%s15548_s17 + $0x14d8] sm:$0xff]  ;;  %v13206_v50 = vcombine.low %v1258_v36, %v1262_v37 }
 0x486   : > { %v1271_v49 = vld [vmem:[%s15548_s17 + $0x14f8] sm:$0xff] }
 0x487   : > { %v13217_v53 = vcombine.high %v1267_v48, %v1271_v49  ;;  %v13216_v59 = vcombine.low %v1267_v48, %v1271_v49  ;;  %v1334_v48 = vld [vmem:[%s15548_s17 + $0x16f0] sm:$0xff]  ;;  %v1331_v49 = vld [vmem:[%s15548_s17 + $0x16d8] sm:$0xff] }
 0x488   : > { %9047 = vmatpush1.bf16.msra.mxu0 %v13150_v55  ;;  %9477 = vmatpush1.bf16.msra.mxu1 %v13152_v56  ;;  %v1278_v55 = vld [vmem:[%s15548_s17 + $0x1530] sm:$0xff]  ;;  %v1275_v56 = vld [vmem:[%s15548_s17 + $0x1518] sm:$0xff] }
 0x489   : > { %9048 = vmatprep.subr.bf16.mxu0 %v13159_v57  ;;  %9478 = vmatprep.subr.bf16.mxu1 %v13161_v58  ;;  %v1279_v57 = vld [vmem:[%s15548_s17 + $0x1538] sm:$0xff]  ;;  %v13214_v58 = vcombine.low %v1266_v45, %v1270_v46  ;;  %v13223_v60 = vcombine.high %v1274_v54, %v1278_v55  ;;  %v13271_v45 = vcombine.high %v1322_v39, %v1326_v40 }
 0x48a   : > { %v13225_v61 = vcombine.high %v1275_v56, %v1279_v57  ;;  %v13224_v4 = vcombine.low %v1275_v56, %v1279_v57  ;;  %v1342_v56 = vld [vmem:[%s15548_s17 + $0x1730] sm:$0xff]  ;;  %v1339_v57 = vld [vmem:[%s15548_s17 + $0x1718] sm:$0xff] }
 0x48c   : > { %9049 = vmatpush1.bf16.msra.mxu0 %v13158_v63  ;;  %9479 = vmatpush1.bf16.msra.mxu1 %v13160_v1  ;;  %v1286_v63 = vld [vmem:[%s15548_s17 + $0x1570] sm:$0xff]  ;;  %v1283_v1 = vld [vmem:[%s15548_s17 + $0x1558] sm:$0xff] }
 0x48d   : > { %9050 = vmatprep.subr.bf16.mxu0 %v13167_v2  ;;  %9480 = vmatprep.subr.bf16.mxu1 %v13169_v3  ;;  %v1287_v2 = vld [vmem:[%s15548_s17 + $0x1578] sm:$0xff]  ;;  %v13222_v3 = vcombine.low %v1274_v54, %v1278_v55  ;;  %v13231_v5 = vcombine.high %v1282_v62, %v1286_v63  ;;  %v1338_v55 = vld [vmem:[%s15548_s17 + $0x1710] sm:$0xff] }
 0x48e   : > { %v13233_v6 = vcombine.high %v1283_v1, %v1287_v2  ;;  %v13232_v12 = vcombine.low %v1283_v1, %v1287_v2  ;;  %v1350_v1 = vld [vmem:[%s15548_s17 + $0x1770] sm:$0xff]  ;;  %v1347_v2 = vld [vmem:[%s15548_s17 + $0x1758] sm:$0xff] }
 0x490   : > { %9051 = vmatpush1.bf16.msra.mxu0 %v13166_v8  ;;  %9481 = vmatpush1.bf16.msra.mxu1 %v13168_v9  ;;  %v1294_v8 = vld [vmem:[%s15548_s17 + $0x15b0] sm:$0xff]  ;;  %v1291_v9 = vld [vmem:[%s15548_s17 + $0x1598] sm:$0xff] }
 0x491   : > { %9052 = vmatprep.subr.bf16.mxu0 %v13175_v10  ;;  %9482 = vmatprep.subr.bf16.mxu1 %v13177_v11  ;;  %v1295_v10 = vld [vmem:[%s15548_s17 + $0x15b8] sm:$0xff]  ;;  %v13230_v11 = vcombine.low %v1282_v62, %v1286_v63  ;;  %v13239_v13 = vcombine.high %v1290_v7, %v1294_v8  ;;  %v1346_v63 = vld [vmem:[%s15548_s17 + $0x1750] sm:$0xff] }
 0x492   : > { %v13241_v14 = vcombine.high %v1291_v9, %v1295_v10  ;;  %v13240_v20 = vcombine.low %v1291_v9, %v1295_v10  ;;  %v1358_v9 = vld [vmem:[%s15548_s17 + $0x17b0] sm:$0xff]  ;;  %v1355_v10 = vld [vmem:[%s15548_s17 + $0x1798] sm:$0xff] }
 0x494   : > { %9053 = vmatpush1.bf16.msra.mxu0 %v13174_v16  ;;  %9483 = vmatpush1.bf16.msra.mxu1 %v13176_v17  ;;  %v1302_v16 = vld [vmem:[%s15548_s17 + $0x15f0] sm:$0xff]  ;;  %v1299_v17 = vld [vmem:[%s15548_s17 + $0x15d8] sm:$0xff] }
 0x495   : > { %9054 = vmatprep.subr.bf16.mxu0 %v13183_v18  ;;  %9484 = vmatprep.subr.bf16.mxu1 %v13185_v19  ;;  %v1303_v18 = vld [vmem:[%s15548_s17 + $0x15f8] sm:$0xff]  ;;  %v13238_v19 = vcombine.low %v1290_v7, %v1294_v8  ;;  %v13247_v21 = vcombine.high %v1298_v15, %v1302_v16  ;;  %v1354_v8 = vld [vmem:[%s15548_s17 + $0x1790] sm:$0xff] }
 0x496   : > { %v13249_v22 = vcombine.high %v1299_v17, %v1303_v18  ;;  %v13248_v28 = vcombine.low %v1299_v17, %v1303_v18  ;;  %v1366_v17 = vld [vmem:[%s15548_s17 + $0x17f0] sm:$0xff]  ;;  %v1363_v18 = vld [vmem:[%s15548_s17 + $0x17d8] sm:$0xff] }
 0x498   : > { %9055 = vmatpush1.bf16.msra.mxu0 %v13182_v24  ;;  %9485 = vmatpush1.bf16.msra.mxu1 %v13184_v25  ;;  %v1310_v24 = vld [vmem:[%s15548_s17 + $0x1630] sm:$0xff]  ;;  %v1307_v25 = vld [vmem:[%s15548_s17 + $0x1618] sm:$0xff] }
 0x499   : > { %9067 = vmatprep.subr.bf16.mxu0 %v13191_v26  ;;  %9497 = vmatprep.subr.bf16.mxu1 %v13193_v27  ;;  %v1311_v26 = vld [vmem:[%s15548_s17 + $0x1638] sm:$0xff]  ;;  %v13246_v27 = vcombine.low %v1298_v15, %v1302_v16  ;;  %v13255_v29 = vcombine.high %v1306_v23, %v1310_v24  ;;  %v1362_v16 = vld [vmem:[%s15548_s17 + $0x17d0] sm:$0xff] }
 0x49a   : > { %v13257_v30 = vcombine.high %v1307_v25, %v1311_v26  ;;  %v13256_v36 = vcombine.low %v1307_v25, %v1311_v26  ;;  %v1374_v25 = vld [vmem:[%s15548_s17 + $0x1830] sm:$0xff]  ;;  %v1371_v26 = vld [vmem:[%s15548_s17 + $0x1818] sm:$0xff] }
 0x49b   : > { %9057 = vmatmul.mubr.bf16.vlgmr.msra.gmra.mrb[4].mxu0 %v14438_v38  ;;  %9487 = vmatmul.mubr.bf16.vlgmr.msra.gmra.mrb[4].mxu1 %v14438_v38 }
 0x49c   : > { %9068 = vmatpush1.bf16.msra.mxu0 %v13190_v32  ;;  %9498 = vmatpush1.bf16.msra.mxu1 %v13192_v33  ;;  %v1318_v32 = vld [vmem:[%s15548_s17 + $0x1670] sm:$0xff]  ;;  %v1315_v33 = vld [vmem:[%s15548_s17 + $0x1658] sm:$0xff] }
 0x49d   : > { %9069 = vmatprep.subr.bf16.mxu0 %v13199_v34  ;;  %9499 = vmatprep.subr.bf16.mxu1 %v13201_v35  ;;  %v1319_v34 = vld [vmem:[%s15548_s17 + $0x1678] sm:$0xff]  ;;  %v13254_v35 = vcombine.low %v1306_v23, %v1310_v24  ;;  %v13263_v37 = vcombine.high %v1314_v31, %v1318_v32  ;;  %v1370_v24 = vld [vmem:[%s15548_s17 + $0x1810] sm:$0xff] }
 0x49e   : > { %9099 = vmatprep.mubr.bf16.mxu0 %v14439_v47  ;;  %9529 = vmatprep.mubr.bf16.mxu1 %v14439_v47  ;;  %v13265_v38 = vcombine.high %v1315_v33, %v1319_v34  ;;  %v1330_v47 = vld [vmem:[%s15548_s17 + $0x16d0] sm:$0xff] }
 0x4a0   : > { %9070 = vmatpush1.bf16.msra.mxu0 %v13198_v41  ;;  %9500 = vmatpush1.bf16.msra.mxu1 %v13200_v42  ;;  %v1323_v41 = vld [vmem:[%s15548_s17 + $0x1698] sm:$0xff] }
 0x4a1   : > { %9071 = vmatprep.subr.bf16.mxu0 %v13207_v43  ;;  %9501 = vmatprep.subr.bf16.mxu1 %v13209_v44  ;;  %v1327_v42 = vld [vmem:[%s15548_s17 + $0x16b8] sm:$0xff]  ;;  %v13262_v43 = vcombine.low %v1314_v31, %v1318_v32  ;;  %v13264_v44 = vcombine.low %v1315_v33, %v1319_v34  ;;  %v1378_v32 = vld [vmem:[%s15548_s17 + $0x1850] sm:$0xff] }
 0x4a2   : > { %v13273_v46 = vcombine.high %v1323_v41, %v1327_v42  ;;  %v1382_v33 = vld [vmem:[%s15548_s17 + $0x1870] sm:$0xff]  ;;  %v1379_v34 = vld [vmem:[%s15548_s17 + $0x1858] sm:$0xff] }
 0x4a4   : > { %9072 = vmatpush1.bf16.msra.mxu0 %v13206_v50  ;;  %9502 = vmatpush1.bf16.msra.mxu1 %v13208_v51  ;;  %v1335_v50 = vld [vmem:[%s15548_s17 + $0x16f8] sm:$0xff]  ;;  %v13270_v51 = vcombine.low %v1322_v39, %v1326_v40  ;;  %v1386_v40 = vld [vmem:[%s15548_s17 + $0x1890] sm:$0xff] }
 0x4a5   : > { %9073 = vmatprep.subr.bf16.mxu0 %v13215_v52  ;;  %9503 = vmatprep.subr.bf16.mxu1 %v13217_v53  ;;  %v13272_v52 = vcombine.low %v1323_v41, %v1327_v42  ;;  %v13279_v53 = vcombine.high %v1330_v47, %v1334_v48  ;;  %v13281_v54 = vcombine.high %v1331_v49, %v1335_v50  ;;  %v1390_v41 = vld [vmem:[%s15548_s17 + $0x18b0] sm:$0xff] }
 0x4a6   : > { %v14440_v42 = vld [vmem:[%s15546_s9 + $0x28] ss:$76 sps:$4 sm:$0xff]  }
 0x4a8   : > { %9074 = vmatpush1.bf16.msra.mxu0 %v13214_v58  ;;  %9504 = vmatpush1.bf16.msra.mxu1 %v13216_v59  ;;  %v1343_v58 = vld [vmem:[%s15548_s17 + $0x1738] sm:$0xff]  ;;  %v13278_v59 = vcombine.low %v1330_v47, %v1334_v48  ;;  %v13335_v47 = vcombine.high %v1386_v40, %v1390_v41 }
 0x4a9   : > { %9075 = vmatprep.subr.bf16.mxu0 %v13223_v60  ;;  %9505 = vmatprep.subr.bf16.mxu1 %v13225_v61  ;;  %v13280_v60 = vcombine.low %v1331_v49, %v1335_v50  ;;  %v13287_v61 = vcombine.high %v1338_v55, %v1342_v56  ;;  %v13289_v62 = vcombine.high %v1339_v57, %v1343_v58  ;;  %v1394_v49 = vld [vmem:[%s15548_s17 + $0x18d0] sm:$0xff] }
 0x4aa   : > { %v1398_v50 = vld [vmem:[%s15548_s17 + $0x18f0] sm:$0xff] }
 0x4ac   : > { %9076 = vmatpush1.bf16.msra.mxu0 %v13222_v3  ;;  %9506 = vmatpush1.bf16.msra.mxu1 %v13224_v4  ;;  %v1351_v3 = vld [vmem:[%s15548_s17 + $0x1778] sm:$0xff]  ;;  %v13286_v4 = vcombine.low %v1338_v55, %v1342_v56  ;;  %v13343_v56 = vcombine.high %v1394_v49, %v1398_v50 }
 0x4ad   : > { %9077 = vmatprep.subr.bf16.mxu0 %v13231_v5  ;;  %9507 = vmatprep.subr.bf16.mxu1 %v13233_v6  ;;  %v13288_v5 = vcombine.low %v1339_v57, %v1343_v58  ;;  %v13295_v6 = vcombine.high %v1346_v63, %v1350_v1  ;;  %v13297_v7 = vcombine.high %v1347_v2, %v1351_v3  ;;  %v1402_v58 = vld [vmem:[%s15548_s17 + $0x1910] sm:$0xff] }
 0x4b0   : > { %9078 = vmatpush1.bf16.msra.mxu0 %v13230_v11  ;;  %9508 = vmatpush1.bf16.msra.mxu1 %v13232_v12  ;;  %v1359_v11 = vld [vmem:[%s15548_s17 + $0x17b8] sm:$0xff]  ;;  %v13294_v12 = vcombine.low %v1346_v63, %v1350_v1 }
 0x4b1   : > { %9079 = vmatprep.subr.bf16.mxu0 %v13239_v13  ;;  %9509 = vmatprep.subr.bf16.mxu1 %v13241_v14  ;;  %v13296_v13 = vcombine.low %v1347_v2, %v1351_v3  ;;  %v13303_v14 = vcombine.high %v1354_v8, %v1358_v9  ;;  %v13305_v15 = vcombine.high %v1355_v10, %v1359_v11  ;;  %v1410_v3 = vld [vmem:[%s15548_s17 + $0x1950] sm:$0xff] }
 0x4b4   : > { %9080 = vmatpush1.bf16.msra.mxu0 %v13238_v19  ;;  %9510 = vmatpush1.bf16.msra.mxu1 %v13240_v20  ;;  %v1367_v19 = vld [vmem:[%s15548_s17 + $0x17f8] sm:$0xff]  ;;  %v13302_v20 = vcombine.low %v1354_v8, %v1358_v9 }
 0x4b5   : > { %9081 = vmatprep.subr.bf16.mxu0 %v13247_v21  ;;  %9511 = vmatprep.subr.bf16.mxu1 %v13249_v22  ;;  %v13304_v21 = vcombine.low %v1355_v10, %v1359_v11  ;;  %v13311_v22 = vcombine.high %v1362_v16, %v1366_v17  ;;  %v13313_v23 = vcombine.high %v1363_v18, %v1367_v19  ;;  %v1418_v11 = vld [vmem:[%s15548_s17 + $0x1990] sm:$0xff] }
 0x4b8   : > { %9082 = vmatpush1.bf16.msra.mxu0 %v13246_v27  ;;  %9512 = vmatpush1.bf16.msra.mxu1 %v13248_v28  ;;  %v1375_v27 = vld [vmem:[%s15548_s17 + $0x1838] sm:$0xff]  ;;  %v13310_v28 = vcombine.low %v1362_v16, %v1366_v17 }
 0x4b9   : > { %9083 = vmatprep.subr.bf16.mxu0 %v13255_v29  ;;  %9513 = vmatprep.subr.bf16.mxu1 %v13257_v30  ;;  %v13312_v29 = vcombine.low %v1363_v18, %v1367_v19  ;;  %v13319_v30 = vcombine.high %v1370_v24, %v1374_v25  ;;  %v13321_v31 = vcombine.high %v1371_v26, %v1375_v27  ;;  %v1426_v19 = vld [vmem:[%s15548_s17 + $0x19d0] sm:$0xff] }
 0x4bc   : > { %9084 = vmatpush1.bf16.msra.mxu0 %v13254_v35  ;;  %9514 = vmatpush1.bf16.msra.mxu1 %v13256_v36  ;;  %v1383_v35 = vld [vmem:[%s15548_s17 + $0x1878] sm:$0xff]  ;;  %v13318_v36 = vcombine.low %v1370_v24, %v1374_v25 }
 0x4bd   : > { %9085 = vmatprep.subr.bf16.mxu0 %v13263_v37  ;;  %9515 = vmatprep.subr.bf16.mxu1 %v13265_v38  ;;  %v13320_v37 = vcombine.low %v1371_v26, %v1375_v27  ;;  %v13327_v38 = vcombine.high %v1378_v32, %v1382_v33  ;;  %v13329_v39 = vcombine.high %v1379_v34, %v1383_v35  ;;  %v1434_v27 = vld [vmem:[%s15548_s17 + $0x1a10] sm:$0xff] }
 0x4c0   : > { %9086 = vmatpush1.bf16.msra.mxu0 %v13262_v43  ;;  %9516 = vmatpush1.bf16.msra.mxu1 %v13264_v44  ;;  %v1387_v43 = vld [vmem:[%s15548_s17 + $0x1898] sm:$0xff] }
 0x4c1   : > { %9087 = vmatprep.subr.bf16.mxu0 %v13271_v45  ;;  %9517 = vmatprep.subr.bf16.mxu1 %v13273_v46  ;;  %v1391_v44 = vld [vmem:[%s15548_s17 + $0x18b8] sm:$0xff]  ;;  %v13326_v45 = vcombine.low %v1378_v32, %v1382_v33  ;;  %v13328_v46 = vcombine.low %v1379_v34, %v1383_v35  ;;  %v1442_v35 = vld [vmem:[%s15548_s17 + $0x1a50] sm:$0xff] }
 0x4c2   : > { %v13337_v48 = vcombine.high %v1387_v43, %v1391_v44  ;;  %v13336_v55 = vcombine.low %v1387_v43, %v1391_v44  ;;  %v1450_v43 = vld [vmem:[%s15548_s17 + $0x1a90] sm:$0xff] }
 0x4c3   : > { %v1454_v44 = vld [vmem:[%s15548_s17 + $0x1ab0] sm:$0xff] }
 0x4c4   : > { %9088 = vmatpush1.bf16.msra.mxu0 %v13270_v51  ;;  %9518 = vmatpush1.bf16.msra.mxu1 %v13272_v52  ;;  %v14441_v51 = vld [vmem:[%s15546_s9 + $0x34] ss:$76 sps:$4 sm:$0xff]  }
 0x4c5   : > { %9089 = vmatprep.subr.bf16.mxu0 %v13279_v53  ;;  %9519 = vmatprep.subr.bf16.mxu1 %v13281_v54  ;;  %v1395_v52 = vld [vmem:[%s15548_s17 + $0x18d8] sm:$0xff]  ;;  %v13334_v54 = vcombine.low %v1386_v40, %v1390_v41 }
 0x4c6   : > { %v1399_v53 = vld [vmem:[%s15548_s17 + $0x18f8] sm:$0xff] }
 0x4c7   : > { %v13345_v57 = vcombine.high %v1395_v52, %v1399_v53  ;;  %v13344_v63 = vcombine.low %v1395_v52, %v1399_v53  ;;  %v1462_v52 = vld [vmem:[%s15548_s17 + $0x1af0] sm:$0xff]  ;;  %v1459_v53 = vld [vmem:[%s15548_s17 + $0x1ad8] sm:$0xff] }
 0x4c8   : > { %9090 = vmatpush1.bf16.msra.mxu0 %v13278_v59  ;;  %9520 = vmatpush1.bf16.msra.mxu1 %v13280_v60  ;;  %v1406_v59 = vld [vmem:[%s15548_s17 + $0x1930] sm:$0xff]  ;;  %v1403_v60 = vld [vmem:[%s15548_s17 + $0x1918] sm:$0xff] }
 0x4c9   : > { %9091 = vmatprep.subr.bf16.mxu0 %v13287_v61  ;;  %9521 = vmatprep.subr.bf16.mxu1 %v13289_v62  ;;  %v1407_v61 = vld [vmem:[%s15548_s17 + $0x1938] sm:$0xff]  ;;  %v13342_v62 = vcombine.low %v1394_v49, %v1398_v50  ;;  %v13351_v1 = vcombine.high %v1402_v58, %v1406_v59  ;;  %v13399_v49 = vcombine.high %v1450_v43, %v1454_v44 }
 0x4ca   : > { %v13353_v2 = vcombine.high %v1403_v60, %v1407_v61  ;;  %v13352_v8 = vcombine.low %v1403_v60, %v1407_v61  ;;  %v1470_v60 = vld [vmem:[%s15548_s17 + $0x1b30] sm:$0xff]  ;;  %v1467_v61 = vld [vmem:[%s15548_s17 + $0x1b18] sm:$0xff] }
 0x4cc   : > { %9092 = vmatpush1.bf16.msra.mxu0 %v13286_v4  ;;  %9522 = vmatpush1.bf16.msra.mxu1 %v13288_v5  ;;  %v1414_v4 = vld [vmem:[%s15548_s17 + $0x1970] sm:$0xff]  ;;  %v1411_v5 = vld [vmem:[%s15548_s17 + $0x1958] sm:$0xff] }
 0x4cd   : > { %9093 = vmatprep.subr.bf16.mxu0 %v13295_v6  ;;  %9523 = vmatprep.subr.bf16.mxu1 %v13297_v7  ;;  %v1415_v6 = vld [vmem:[%s15548_s17 + $0x1978] sm:$0xff]  ;;  %v13350_v7 = vcombine.low %v1402_v58, %v1406_v59  ;;  %v13359_v9 = vcombine.high %v1410_v3, %v1414_v4  ;;  %v1466_v59 = vld [vmem:[%s15548_s17 + $0x1b10] sm:$0xff] }
 0x4ce   : > { %v13361_v10 = vcombine.high %v1411_v5, %v1415_v6  ;;  %v13360_v16 = vcombine.low %v1411_v5, %v1415_v6  ;;  %v1478_v5 = vld [vmem:[%s15548_s17 + $0x1b70] sm:$0xff]  ;;  %v1475_v6 = vld [vmem:[%s15548_s17 + $0x1b58] sm:$0xff] }
 0x4d0   : > { %9094 = vmatpush1.bf16.msra.mxu0 %v13294_v12  ;;  %9524 = vmatpush1.bf16.msra.mxu1 %v13296_v13  ;;  %v1422_v12 = vld [vmem:[%s15548_s17 + $0x19b0] sm:$0xff]  ;;  %v1419_v13 = vld [vmem:[%s15548_s17 + $0x1998] sm:$0xff] }
 0x4d1   : > { %9095 = vmatprep.subr.bf16.mxu0 %v13303_v14  ;;  %9525 = vmatprep.subr.bf16.mxu1 %v13305_v15  ;;  %v1423_v14 = vld [vmem:[%s15548_s17 + $0x19b8] sm:$0xff]  ;;  %v13358_v15 = vcombine.low %v1410_v3, %v1414_v4  ;;  %v13367_v17 = vcombine.high %v1418_v11, %v1422_v12  ;;  %v1474_v4 = vld [vmem:[%s15548_s17 + $0x1b50] sm:$0xff] }
 0x4d2   : > { %v13369_v18 = vcombine.high %v1419_v13, %v1423_v14  ;;  %v13368_v24 = vcombine.low %v1419_v13, %v1423_v14  ;;  %v1486_v13 = vld [vmem:[%s15548_s17 + $0x1bb0] sm:$0xff]  ;;  %v1483_v14 = vld [vmem:[%s15548_s17 + $0x1b98] sm:$0xff] }
 0x4d4   : > { %9096 = vmatpush1.bf16.msra.mxu0 %v13302_v20  ;;  %9526 = vmatpush1.bf16.msra.mxu1 %v13304_v21  ;;  %v1430_v20 = vld [vmem:[%s15548_s17 + $0x19f0] sm:$0xff]  ;;  %v1427_v21 = vld [vmem:[%s15548_s17 + $0x19d8] sm:$0xff] }
 0x4d5   : > { %9097 = vmatprep.subr.bf16.mxu0 %v13311_v22  ;;  %9527 = vmatprep.subr.bf16.mxu1 %v13313_v23  ;;  %v1431_v22 = vld [vmem:[%s15548_s17 + $0x19f8] sm:$0xff]  ;;  %v13366_v23 = vcombine.low %v1418_v11, %v1422_v12  ;;  %v13375_v25 = vcombine.high %v1426_v19, %v1430_v20  ;;  %v1482_v12 = vld [vmem:[%s15548_s17 + $0x1b90] sm:$0xff] }
 0x4d6   : > { %v13377_v26 = vcombine.high %v1427_v21, %v1431_v22  ;;  %v13376_v32 = vcombine.low %v1427_v21, %v1431_v22  ;;  %v1494_v21 = vld [vmem:[%s15548_s17 + $0x1bf0] sm:$0xff]  ;;  %v1491_v22 = vld [vmem:[%s15548_s17 + $0x1bd8] sm:$0xff] }
 0x4d8   : > { %9098 = vmatpush1.bf16.msra.mxu0 %v13310_v28  ;;  %9528 = vmatpush1.bf16.msra.mxu1 %v13312_v29  ;;  %v1438_v28 = vld [vmem:[%s15548_s17 + $0x1a30] sm:$0xff]  ;;  %v1435_v29 = vld [vmem:[%s15548_s17 + $0x1a18] sm:$0xff] }
 0x4d9   : > { %9110 = vmatprep.subr.bf16.mxu0 %v13319_v30  ;;  %9540 = vmatprep.subr.bf16.mxu1 %v13321_v31  ;;  %v1439_v30 = vld [vmem:[%s15548_s17 + $0x1a38] sm:$0xff]  ;;  %v13374_v31 = vcombine.low %v1426_v19, %v1430_v20  ;;  %v13383_v33 = vcombine.high %v1434_v27, %v1438_v28  ;;  %v1490_v20 = vld [vmem:[%s15548_s17 + $0x1bd0] sm:$0xff] }
 0x4da   : > { %v13385_v34 = vcombine.high %v1435_v29, %v1439_v30  ;;  %v13384_v40 = vcombine.low %v1435_v29, %v1439_v30  ;;  %v1502_v29 = vld [vmem:[%s15548_s17 + $0x1c30] sm:$0xff]  ;;  %v1499_v30 = vld [vmem:[%s15548_s17 + $0x1c18] sm:$0xff] }
 0x4db   : > { %9100 = vmatmul.mubr.bf16.vlgmr.msra.gmra.mrb[4].mxu0 %v14440_v42  ;;  %9530 = vmatmul.mubr.bf16.vlgmr.msra.gmra.mrb[4].mxu1 %v14440_v42 }
 0x4dc   : > { %9111 = vmatpush1.bf16.msra.mxu0 %v13318_v36  ;;  %9541 = vmatpush1.bf16.msra.mxu1 %v13320_v37  ;;  %v1446_v36 = vld [vmem:[%s15548_s17 + $0x1a70] sm:$0xff]  ;;  %v1443_v37 = vld [vmem:[%s15548_s17 + $0x1a58] sm:$0xff] }
 0x4dd   : > { %9112 = vmatprep.subr.bf16.mxu0 %v13327_v38  ;;  %9542 = vmatprep.subr.bf16.mxu1 %v13329_v39  ;;  %v1447_v38 = vld [vmem:[%s15548_s17 + $0x1a78] sm:$0xff]  ;;  %v13382_v39 = vcombine.low %v1434_v27, %v1438_v28  ;;  %v13391_v41 = vcombine.high %v1442_v35, %v1446_v36  ;;  %v1498_v28 = vld [vmem:[%s15548_s17 + $0x1c10] sm:$0xff] }
 0x4de   : > { %9142 = vmatprep.mubr.bf16.mxu0 %v14441_v51  ;;  %9572 = vmatprep.mubr.bf16.mxu1 %v14441_v51  ;;  %v13393_v42 = vcombine.high %v1443_v37, %v1447_v38  ;;  %v1458_v51 = vld [vmem:[%s15548_s17 + $0x1ad0] sm:$0xff] }
 0x4e0   : > { %9113 = vmatpush1.bf16.msra.mxu0 %v13326_v45  ;;  %9543 = vmatpush1.bf16.msra.mxu1 %v13328_v46  ;;  %v1451_v45 = vld [vmem:[%s15548_s17 + $0x1a98] sm:$0xff] }
 0x4e1   : > { %9114 = vmatprep.subr.bf16.mxu0 %v13335_v47  ;;  %9544 = vmatprep.subr.bf16.mxu1 %v13337_v48  ;;  %v1455_v46 = vld [vmem:[%s15548_s17 + $0x1ab8] sm:$0xff]  ;;  %v13390_v47 = vcombine.low %v1442_v35, %v1446_v36  ;;  %v13392_v48 = vcombine.low %v1443_v37, %v1447_v38  ;;  %v1506_v36 = vld [vmem:[%s15548_s17 + $0x1c50] sm:$0xff] }
 0x4e2   : > { %v13401_v50 = vcombine.high %v1451_v45, %v1455_v46  ;;  %v1510_v37 = vld [vmem:[%s15548_s17 + $0x1c70] sm:$0xff]  ;;  %v1507_v38 = vld [vmem:[%s15548_s17 + $0x1c58] sm:$0xff] }
 0x4e4   : > { %9115 = vmatpush1.bf16.msra.mxu0 %v13334_v54  ;;  %9545 = vmatpush1.bf16.msra.mxu1 %v13336_v55  ;;  %v1463_v54 = vld [vmem:[%s15548_s17 + $0x1af8] sm:$0xff]  ;;  %v13398_v55 = vcombine.low %v1450_v43, %v1454_v44  ;;  %v1514_v44 = vld [vmem:[%s15548_s17 + $0x1c90] sm:$0xff] }
 0x4e5   : > { %9116 = vmatprep.subr.bf16.mxu0 %v13343_v56  ;;  %9546 = vmatprep.subr.bf16.mxu1 %v13345_v57  ;;  %v13400_v56 = vcombine.low %v1451_v45, %v1455_v46  ;;  %v13407_v57 = vcombine.high %v1458_v51, %v1462_v52  ;;  %v13409_v58 = vcombine.high %v1459_v53, %v1463_v54  ;;  %v1518_v45 = vld [vmem:[%s15548_s17 + $0x1cb0] sm:$0xff]  ;;  %v14442_v46 = vld [vmem:[%s15546_s9 + $0x30] ss:$76 sps:$4 sm:$0xff]  }
 0x4e8   : > { %9117 = vmatpush1.bf16.msra.mxu0 %v13342_v62  ;;  %9547 = vmatpush1.bf16.msra.mxu1 %v13344_v63  ;;  %v1471_v62 = vld [vmem:[%s15548_s17 + $0x1b38] sm:$0xff]  ;;  %v13406_v63 = vcombine.low %v1458_v51, %v1462_v52  ;;  %v13463_v51 = vcombine.high %v1514_v44, %v1518_v45 }
 0x4e9   : > { %9118 = vmatprep.subr.bf16.mxu0 %v13351_v1  ;;  %9548 = vmatprep.subr.bf16.mxu1 %v13353_v2  ;;  %v13408_v1 = vcombine.low %v1459_v53, %v1463_v54  ;;  %v13415_v2 = vcombine.high %v1466_v59, %v1470_v60  ;;  %v13417_v3 = vcombine.high %v1467_v61, %v1471_v62  ;;  %v1522_v53 = vld [vmem:[%s15548_s17 + $0x1cd0] sm:$0xff] }
 0x4ea   : > { %v1526_v54 = vld [vmem:[%s15548_s17 + $0x1cf0] sm:$0xff] }
 0x4ec   : > { %9119 = vmatpush1.bf16.msra.mxu0 %v13350_v7  ;;  %9549 = vmatpush1.bf16.msra.mxu1 %v13352_v8  ;;  %v1479_v7 = vld [vmem:[%s15548_s17 + $0x1b78] sm:$0xff]  ;;  %v13414_v8 = vcombine.low %v1466_v59, %v1470_v60  ;;  %v13471_v60 = vcombine.high %v1522_v53, %v1526_v54 }
 0x4ed   : > { %9120 = vmatprep.subr.bf16.mxu0 %v13359_v9  ;;  %9550 = vmatprep.subr.bf16.mxu1 %v13361_v10  ;;  %v13416_v9 = vcombine.low %v1467_v61, %v1471_v62  ;;  %v13423_v10 = vcombine.high %v1474_v4, %v1478_v5  ;;  %v13425_v11 = vcombine.high %v1475_v6, %v1479_v7  ;;  %v1530_v62 = vld [vmem:[%s15548_s17 + $0x1d10] sm:$0xff] }
 0x4f0   : > { %9121 = vmatpush1.bf16.msra.mxu0 %v13358_v15  ;;  %9551 = vmatpush1.bf16.msra.mxu1 %v13360_v16  ;;  %v1487_v15 = vld [vmem:[%s15548_s17 + $0x1bb8] sm:$0xff]  ;;  %v13422_v16 = vcombine.low %v1474_v4, %v1478_v5 }
 0x4f1   : > { %9122 = vmatprep.subr.bf16.mxu0 %v13367_v17  ;;  %9552 = vmatprep.subr.bf16.mxu1 %v13369_v18  ;;  %v13424_v17 = vcombine.low %v1475_v6, %v1479_v7  ;;  %v13431_v18 = vcombine.high %v1482_v12, %v1486_v13  ;;  %v13433_v19 = vcombine.high %v1483_v14, %v1487_v15  ;;  %v1538_v7 = vld [vmem:[%s15548_s17 + $0x1d50] sm:$0xff] }
 0x4f4   : > { %9123 = vmatpush1.bf16.msra.mxu0 %v13366_v23  ;;  %9553 = vmatpush1.bf16.msra.mxu1 %v13368_v24  ;;  %v1495_v23 = vld [vmem:[%s15548_s17 + $0x1bf8] sm:$0xff]  ;;  %v13430_v24 = vcombine.low %v1482_v12, %v1486_v13 }
 0x4f5   : > { %9124 = vmatprep.subr.bf16.mxu0 %v13375_v25  ;;  %9554 = vmatprep.subr.bf16.mxu1 %v13377_v26  ;;  %v13432_v25 = vcombine.low %v1483_v14, %v1487_v15  ;;  %v13439_v26 = vcombine.high %v1490_v20, %v1494_v21  ;;  %v13441_v27 = vcombine.high %v1491_v22, %v1495_v23  ;;  %v1546_v15 = vld [vmem:[%s15548_s17 + $0x1d90] sm:$0xff] }
 0x4f8   : > { %9125 = vmatpush1.bf16.msra.mxu0 %v13374_v31  ;;  %9555 = vmatpush1.bf16.msra.mxu1 %v13376_v32  ;;  %v1503_v31 = vld [vmem:[%s15548_s17 + $0x1c38] sm:$0xff]  ;;  %v13438_v32 = vcombine.low %v1490_v20, %v1494_v21 }
 0x4f9   : > { %9126 = vmatprep.subr.bf16.mxu0 %v13383_v33  ;;  %9556 = vmatprep.subr.bf16.mxu1 %v13385_v34  ;;  %v13440_v33 = vcombine.low %v1491_v22, %v1495_v23  ;;  %v13447_v34 = vcombine.high %v1498_v28, %v1502_v29  ;;  %v13449_v35 = vcombine.high %v1499_v30, %v1503_v31  ;;  %v1554_v23 = vld [vmem:[%s15548_s17 + $0x1dd0] sm:$0xff] }
 0x4fc   : > { %9127 = vmatpush1.bf16.msra.mxu0 %v13382_v39  ;;  %9557 = vmatpush1.bf16.msra.mxu1 %v13384_v40  ;;  %v1511_v39 = vld [vmem:[%s15548_s17 + $0x1c78] sm:$0xff]  ;;  %v13446_v40 = vcombine.low %v1498_v28, %v1502_v29 }
 0x4fd   : > { %9128 = vmatprep.subr.bf16.mxu0 %v13391_v41  ;;  %9558 = vmatprep.subr.bf16.mxu1 %v13393_v42  ;;  %v13448_v41 = vcombine.low %v1499_v30, %v1503_v31  ;;  %v13455_v42 = vcombine.high %v1506_v36, %v1510_v37  ;;  %v13457_v43 = vcombine.high %v1507_v38, %v1511_v39  ;;  %v1562_v31 = vld [vmem:[%s15548_s17 + $0x1e10] sm:$0xff] }
 0x500   : > { %9129 = vmatpush1.bf16.msra.mxu0 %v13390_v47  ;;  %9559 = vmatpush1.bf16.msra.mxu1 %v13392_v48  ;;  %v1515_v47 = vld [vmem:[%s15548_s17 + $0x1c98] sm:$0xff] }
 0x501   : > { %9130 = vmatprep.subr.bf16.mxu0 %v13399_v49  ;;  %9560 = vmatprep.subr.bf16.mxu1 %v13401_v50  ;;  %v1519_v48 = vld [vmem:[%s15548_s17 + $0x1cb8] sm:$0xff]  ;;  %v13454_v49 = vcombine.low %v1506_v36, %v1510_v37  ;;  %v13456_v50 = vcombine.low %v1507_v38, %v1511_v39  ;;  %v1570_v39 = vld [vmem:[%s15548_s17 + $0x1e50] sm:$0xff] }
 0x502   : > { %v13465_v52 = vcombine.high %v1515_v47, %v1519_v48  ;;  %v13464_v59 = vcombine.low %v1515_v47, %v1519_v48  ;;  %v1578_v47 = vld [vmem:[%s15548_s17 + $0x1e90] sm:$0xff] }
 0x503   : > { %v1582_v48 = vld [vmem:[%s15548_s17 + $0x1eb0] sm:$0xff] }
 0x504   : > { %9131 = vmatpush1.bf16.msra.mxu0 %v13398_v55  ;;  %9561 = vmatpush1.bf16.msra.mxu1 %v13400_v56  ;;  %v14443_v55 = vld [vmem:[%s15546_s9 + $0x3c] ss:$76 sps:$4 sm:$0xff]  }
 0x505   : > { %9132 = vmatprep.subr.bf16.mxu0 %v13407_v57  ;;  %9562 = vmatprep.subr.bf16.mxu1 %v13409_v58  ;;  %v1523_v56 = vld [vmem:[%s15548_s17 + $0x1cd8] sm:$0xff]  ;;  %v13462_v58 = vcombine.low %v1514_v44, %v1518_v45 }
 0x506   : > { %v1527_v57 = vld [vmem:[%s15548_s17 + $0x1cf8] sm:$0xff] }
 0x507   : > { %v13473_v61 = vcombine.high %v1523_v56, %v1527_v57  ;;  %v13472_v4 = vcombine.low %v1523_v56, %v1527_v57  ;;  %v1590_v56 = vld [vmem:[%s15548_s17 + $0x1ef0] sm:$0xff]  ;;  %v1587_v57 = vld [vmem:[%s15548_s17 + $0x1ed8] sm:$0xff] }
 0x508   : > { %9133 = vmatpush1.bf16.msra.mxu0 %v13406_v63  ;;  %9563 = vmatpush1.bf16.msra.mxu1 %v13408_v1  ;;  %v1534_v63 = vld [vmem:[%s15548_s17 + $0x1d30] sm:$0xff]  ;;  %v1531_v1 = vld [vmem:[%s15548_s17 + $0x1d18] sm:$0xff] }
 0x509   : > { %9134 = vmatprep.subr.bf16.mxu0 %v13415_v2  ;;  %9564 = vmatprep.subr.bf16.mxu1 %v13417_v3  ;;  %v1535_v2 = vld [vmem:[%s15548_s17 + $0x1d38] sm:$0xff]  ;;  %v13470_v3 = vcombine.low %v1522_v53, %v1526_v54  ;;  %v13479_v5 = vcombine.high %v1530_v62, %v1534_v63  ;;  %v13527_v53 = vcombine.high %v1578_v47, %v1582_v48 }
 0x50a   : > { %v13481_v6 = vcombine.high %v1531_v1, %v1535_v2  ;;  %v13480_v12 = vcombine.low %v1531_v1, %v1535_v2  ;;  %v1598_v1 = vld [vmem:[%s15548_s17 + $0x1f30] sm:$0xff]  ;;  %v1595_v2 = vld [vmem:[%s15548_s17 + $0x1f18] sm:$0xff] }
 0x50c   : > { %9135 = vmatpush1.bf16.msra.mxu0 %v13414_v8  ;;  %9565 = vmatpush1.bf16.msra.mxu1 %v13416_v9  ;;  %v1542_v8 = vld [vmem:[%s15548_s17 + $0x1d70] sm:$0xff]  ;;  %v1539_v9 = vld [vmem:[%s15548_s17 + $0x1d58] sm:$0xff] }
 0x50d   : > { %9136 = vmatprep.subr.bf16.mxu0 %v13423_v10  ;;  %9566 = vmatprep.subr.bf16.mxu1 %v13425_v11  ;;  %v1543_v10 = vld [vmem:[%s15548_s17 + $0x1d78] sm:$0xff]  ;;  %v13478_v11 = vcombine.low %v1530_v62, %v1534_v63  ;;  %v13487_v13 = vcombine.high %v1538_v7, %v1542_v8  ;;  %v1594_v63 = vld [vmem:[%s15548_s17 + $0x1f10] sm:$0xff] }
 0x50e   : > { %v13489_v14 = vcombine.high %v1539_v9, %v1543_v10  ;;  %v13488_v20 = vcombine.low %v1539_v9, %v1543_v10  ;;  %v1606_v9 = vld [vmem:[%s15548_s17 + $0x1f70] sm:$0xff]  ;;  %v1603_v10 = vld [vmem:[%s15548_s17 + $0x1f58] sm:$0xff] }
 0x510   : > { %9137 = vmatpush1.bf16.msra.mxu0 %v13422_v16  ;;  %9567 = vmatpush1.bf16.msra.mxu1 %v13424_v17  ;;  %v1550_v16 = vld [vmem:[%s15548_s17 + $0x1db0] sm:$0xff]  ;;  %v1547_v17 = vld [vmem:[%s15548_s17 + $0x1d98] sm:$0xff] }
 0x511   : > { %9138 = vmatprep.subr.bf16.mxu0 %v13431_v18  ;;  %9568 = vmatprep.subr.bf16.mxu1 %v13433_v19  ;;  %v1551_v18 = vld [vmem:[%s15548_s17 + $0x1db8] sm:$0xff]  ;;  %v13486_v19 = vcombine.low %v1538_v7, %v1542_v8  ;;  %v13495_v21 = vcombine.high %v1546_v15, %v1550_v16  ;;  %v1602_v8 = vld [vmem:[%s15548_s17 + $0x1f50] sm:$0xff] }
 0x512   : > { %v13497_v22 = vcombine.high %v1547_v17, %v1551_v18  ;;  %v13496_v28 = vcombine.low %v1547_v17, %v1551_v18  ;;  %v1614_v17 = vld [vmem:[%s15548_s17 + $0x1fb0] sm:$0xff]  ;;  %v1611_v18 = vld [vmem:[%s15548_s17 + $0x1f98] sm:$0xff] }
 0x514   : > { %9139 = vmatpush1.bf16.msra.mxu0 %v13430_v24  ;;  %9569 = vmatpush1.bf16.msra.mxu1 %v13432_v25  ;;  %v1558_v24 = vld [vmem:[%s15548_s17 + $0x1df0] sm:$0xff]  ;;  %v1555_v25 = vld [vmem:[%s15548_s17 + $0x1dd8] sm:$0xff] }
 0x515   : > { %9140 = vmatprep.subr.bf16.mxu0 %v13439_v26  ;;  %9570 = vmatprep.subr.bf16.mxu1 %v13441_v27  ;;  %v1559_v26 = vld [vmem:[%s15548_s17 + $0x1df8] sm:$0xff]  ;;  %v13494_v27 = vcombine.low %v1546_v15, %v1550_v16  ;;  %v13503_v29 = vcombine.high %v1554_v23, %v1558_v24  ;;  %v1610_v16 = vld [vmem:[%s15548_s17 + $0x1f90] sm:$0xff] }
 0x516   : > { %v13505_v30 = vcombine.high %v1555_v25, %v1559_v26  ;;  %v13504_v36 = vcombine.low %v1555_v25, %v1559_v26  ;;  %v1622_v25 = vld [vmem:[%s15548_s17 + $0x1ff0] sm:$0xff]  ;;  %v1619_v26 = vld [vmem:[%s15548_s17 + $0x1fd8] sm:$0xff] }
 0x518   : > { %9141 = vmatpush1.bf16.msra.mxu0 %v13438_v32  ;;  %9571 = vmatpush1.bf16.msra.mxu1 %v13440_v33  ;;  %v1566_v32 = vld [vmem:[%s15548_s17 + $0x1e30] sm:$0xff]  ;;  %v1563_v33 = vld [vmem:[%s15548_s17 + $0x1e18] sm:$0xff] }
 0x519   : > { %9153 = vmatprep.subr.bf16.mxu0 %v13447_v34  ;;  %9583 = vmatprep.subr.bf16.mxu1 %v13449_v35  ;;  %v1567_v34 = vld [vmem:[%s15548_s17 + $0x1e38] sm:$0xff]  ;;  %v13502_v35 = vcombine.low %v1554_v23, %v1558_v24  ;;  %v13511_v37 = vcombine.high %v1562_v31, %v1566_v32  ;;  %v1618_v24 = vld [vmem:[%s15548_s17 + $0x1fd0] sm:$0xff] }
 0x51a   : > { %v13513_v38 = vcombine.high %v1563_v33, %v1567_v34  ;;  %v13512_v44 = vcombine.low %v1563_v33, %v1567_v34  ;;  %v1630_v33 = vld [vmem:[%s15548_s17 + $0x2030] sm:$0xff]  ;;  %v1627_v34 = vld [vmem:[%s15548_s17 + $0x2018] sm:$0xff] }
 0x51b   : > { %9143 = vmatmul.mubr.bf16.vlgmr.msra.gmra.mrb[4].mxu0 %v14442_v46  ;;  %9573 = vmatmul.mubr.bf16.vlgmr.msra.gmra.mrb[4].mxu1 %v14442_v46 }
 0x51c   : > { %9154 = vmatpush1.bf16.msra.mxu0 %v13446_v40  ;;  %9584 = vmatpush1.bf16.msra.mxu1 %v13448_v41  ;;  %v1574_v40 = vld [vmem:[%s15548_s17 + $0x1e70] sm:$0xff]  ;;  %v1571_v41 = vld [vmem:[%s15548_s17 + $0x1e58] sm:$0xff] }
 0x51d   : > { %9155 = vmatprep.subr.bf16.mxu0 %v13455_v42  ;;  %9585 = vmatprep.subr.bf16.mxu1 %v13457_v43  ;;  %v1575_v42 = vld [vmem:[%s15548_s17 + $0x1e78] sm:$0xff]  ;;  %v13510_v43 = vcombine.low %v1562_v31, %v1566_v32  ;;  %v13519_v45 = vcombine.high %v1570_v39, %v1574_v40  ;;  %v1626_v32 = vld [vmem:[%s15548_s17 + $0x2010] sm:$0xff] }
 0x51e   : > { %9185 = vmatprep.mubr.bf16.mxu0 %v14443_v55  ;;  %9615 = vmatprep.mubr.bf16.mxu1 %v14443_v55  ;;  %v13521_v46 = vcombine.high %v1571_v41, %v1575_v42  ;;  %v1586_v55 = vld [vmem:[%s15548_s17 + $0x1ed0] sm:$0xff] }
 0x520   : > { %9156 = vmatpush1.bf16.msra.mxu0 %v13454_v49  ;;  %9586 = vmatpush1.bf16.msra.mxu1 %v13456_v50  ;;  %v1579_v49 = vld [vmem:[%s15548_s17 + $0x1e98] sm:$0xff] }
 0x521   : > { %9157 = vmatprep.subr.bf16.mxu0 %v13463_v51  ;;  %9587 = vmatprep.subr.bf16.mxu1 %v13465_v52  ;;  %v1583_v50 = vld [vmem:[%s15548_s17 + $0x1eb8] sm:$0xff]  ;;  %v13518_v51 = vcombine.low %v1570_v39, %v1574_v40  ;;  %v13520_v52 = vcombine.low %v1571_v41, %v1575_v42  ;;  %v1634_v40 = vld [vmem:[%s15548_s17 + $0x2050] sm:$0xff] }
 0x522   : > { %v13529_v54 = vcombine.high %v1579_v49, %v1583_v50  ;;  %v1638_v41 = vld [vmem:[%s15548_s17 + $0x2070] sm:$0xff]  ;;  %v1635_v42 = vld [vmem:[%s15548_s17 + $0x2058] sm:$0xff] }
 0x524   : > { %9158 = vmatpush1.bf16.msra.mxu0 %v13462_v58  ;;  %9588 = vmatpush1.bf16.msra.mxu1 %v13464_v59  ;;  %v1591_v58 = vld [vmem:[%s15548_s17 + $0x1ef8] sm:$0xff]  ;;  %v13526_v59 = vcombine.low %v1578_v47, %v1582_v48  ;;  %v1642_v48 = vld [vmem:[%s15548_s17 + $0x2090] sm:$0xff] }
 0x525   : > { %9159 = vmatprep.subr.bf16.mxu0 %v13471_v60  ;;  %9589 = vmatprep.subr.bf16.mxu1 %v13473_v61  ;;  %v13528_v60 = vcombine.low %v1579_v49, %v1583_v50  ;;  %v13535_v61 = vcombine.high %v1586_v55, %v1590_v56  ;;  %v13537_v62 = vcombine.high %v1587_v57, %v1591_v58  ;;  %v1646_v49 = vld [vmem:[%s15548_s17 + $0x20b0] sm:$0xff] }
 0x526   : > { %v14444_v50 = vld [vmem:[%s15546_s9 + $0x38] ss:$76 sps:$4 sm:$0xff]  }
 0x528   : > { %9160 = vmatpush1.bf16.msra.mxu0 %v13470_v3  ;;  %9590 = vmatpush1.bf16.msra.mxu1 %v13472_v4  ;;  %v1599_v3 = vld [vmem:[%s15548_s17 + $0x1f38] sm:$0xff]  ;;  %v13534_v4 = vcombine.low %v1586_v55, %v1590_v56  ;;  %v13591_v55 = vcombine.high %v1642_v48, %v1646_v49 }
 0x529   : > { %9161 = vmatprep.subr.bf16.mxu0 %v13479_v5  ;;  %9591 = vmatprep.subr.bf16.mxu1 %v13481_v6  ;;  %v13536_v5 = vcombine.low %v1587_v57, %v1591_v58  ;;  %v13543_v6 = vcombine.high %v1594_v63, %v1598_v1  ;;  %v13545_v7 = vcombine.high %v1595_v2, %v1599_v3  ;;  %v1650_v57 = vld [vmem:[%s15548_s17 + $0x20d0] sm:$0xff] }
 0x52a   : > { %v1654_v58 = vld [vmem:[%s15548_s17 + $0x20f0] sm:$0xff] }
 0x52c   : > { %9162 = vmatpush1.bf16.msra.mxu0 %v13478_v11  ;;  %9592 = vmatpush1.bf16.msra.mxu1 %v13480_v12  ;;  %v1607_v11 = vld [vmem:[%s15548_s17 + $0x1f78] sm:$0xff]  ;;  %v13542_v12 = vcombine.low %v1594_v63, %v1598_v1  ;;  %v13599_v1 = vcombine.high %v1650_v57, %v1654_v58 }
 0x52d   : > { %9163 = vmatprep.subr.bf16.mxu0 %v13487_v13  ;;  %9593 = vmatprep.subr.bf16.mxu1 %v13489_v14  ;;  %v13544_v13 = vcombine.low %v1595_v2, %v1599_v3  ;;  %v13551_v14 = vcombine.high %v1602_v8, %v1606_v9  ;;  %v13553_v15 = vcombine.high %v1603_v10, %v1607_v11  ;;  %v1658_v3 = vld [vmem:[%s15548_s17 + $0x2110] sm:$0xff] }
 0x530   : > { %9164 = vmatpush1.bf16.msra.mxu0 %v13486_v19  ;;  %9594 = vmatpush1.bf16.msra.mxu1 %v13488_v20  ;;  %v1615_v19 = vld [vmem:[%s15548_s17 + $0x1fb8] sm:$0xff]  ;;  %v13550_v20 = vcombine.low %v1602_v8, %v1606_v9 }
 0x531   : > { %9165 = vmatprep.subr.bf16.mxu0 %v13495_v21  ;;  %9595 = vmatprep.subr.bf16.mxu1 %v13497_v22  ;;  %v13552_v21 = vcombine.low %v1603_v10, %v1607_v11  ;;  %v13559_v22 = vcombine.high %v1610_v16, %v1614_v17  ;;  %v13561_v23 = vcombine.high %v1611_v18, %v1615_v19  ;;  %v1666_v11 = vld [vmem:[%s15548_s17 + $0x2150] sm:$0xff] }
 0x534   : > { %9166 = vmatpush1.bf16.msra.mxu0 %v13494_v27  ;;  %9596 = vmatpush1.bf16.msra.mxu1 %v13496_v28  ;;  %v1623_v27 = vld [vmem:[%s15548_s17 + $0x1ff8] sm:$0xff]  ;;  %v13558_v28 = vcombine.low %v1610_v16, %v1614_v17 }
 0x535   : > { %9167 = vmatprep.subr.bf16.mxu0 %v13503_v29  ;;  %9597 = vmatprep.subr.bf16.mxu1 %v13505_v30  ;;  %v13560_v29 = vcombine.low %v1611_v18, %v1615_v19  ;;  %v13567_v30 = vcombine.high %v1618_v24, %v1622_v25  ;;  %v13569_v31 = vcombine.high %v1619_v26, %v1623_v27  ;;  %v1674_v19 = vld [vmem:[%s15548_s17 + $0x2190] sm:$0xff] }
 0x538   : > { %9168 = vmatpush1.bf16.msra.mxu0 %v13502_v35  ;;  %9598 = vmatpush1.bf16.msra.mxu1 %v13504_v36  ;;  %v1631_v35 = vld [vmem:[%s15548_s17 + $0x2038] sm:$0xff]  ;;  %v13566_v36 = vcombine.low %v1618_v24, %v1622_v25 }
 0x539   : > { %9169 = vmatprep.subr.bf16.mxu0 %v13511_v37  ;;  %9599 = vmatprep.subr.bf16.mxu1 %v13513_v38  ;;  %v13568_v37 = vcombine.low %v1619_v26, %v1623_v27  ;;  %v13575_v38 = vcombine.high %v1626_v32, %v1630_v33  ;;  %v13577_v39 = vcombine.high %v1627_v34, %v1631_v35  ;;  %v1682_v27 = vld [vmem:[%s15548_s17 + $0x21d0] sm:$0xff] }
 0x53c   : > { %9170 = vmatpush1.bf16.msra.mxu0 %v13510_v43  ;;  %9600 = vmatpush1.bf16.msra.mxu1 %v13512_v44  ;;  %v1639_v43 = vld [vmem:[%s15548_s17 + $0x2078] sm:$0xff]  ;;  %v13574_v44 = vcombine.low %v1626_v32, %v1630_v33 }
 0x53d   : > { %9171 = vmatprep.subr.bf16.mxu0 %v13519_v45  ;;  %9601 = vmatprep.subr.bf16.mxu1 %v13521_v46  ;;  %v13576_v45 = vcombine.low %v1627_v34, %v1631_v35  ;;  %v13583_v46 = vcombine.high %v1634_v40, %v1638_v41  ;;  %v13585_v47 = vcombine.high %v1635_v42, %v1639_v43  ;;  %v1690_v35 = vld [vmem:[%s15548_s17 + $0x2210] sm:$0xff] }
 0x540   : > { %9172 = vmatpush1.bf16.msra.mxu0 %v13518_v51  ;;  %9602 = vmatpush1.bf16.msra.mxu1 %v13520_v52  ;;  %v1643_v51 = vld [vmem:[%s15548_s17 + $0x2098] sm:$0xff] }
 0x541   : > { %9173 = vmatprep.subr.bf16.mxu0 %v13527_v53  ;;  %9603 = vmatprep.subr.bf16.mxu1 %v13529_v54  ;;  %v1647_v52 = vld [vmem:[%s15548_s17 + $0x20b8] sm:$0xff]  ;;  %v13582_v53 = vcombine.low %v1634_v40, %v1638_v41  ;;  %v13584_v54 = vcombine.low %v1635_v42, %v1639_v43  ;;  %v1698_v43 = vld [vmem:[%s15548_s17 + $0x2250] sm:$0xff] }
 0x542   : > { %v13593_v56 = vcombine.high %v1643_v51, %v1647_v52  ;;  %v13592_v63 = vcombine.low %v1643_v51, %v1647_v52  ;;  %v1706_v51 = vld [vmem:[%s15548_s17 + $0x2290] sm:$0xff] }
 0x543   : > { %v1710_v52 = vld [vmem:[%s15548_s17 + $0x22b0] sm:$0xff] }
 0x544   : > { %9174 = vmatpush1.bf16.msra.mxu0 %v13526_v59  ;;  %9604 = vmatpush1.bf16.msra.mxu1 %v13528_v60  ;;  %v14445_v59 = vld [vmem:[%s15546_s9 + $0x44] ss:$76 sps:$4 sm:$0xff]  }
 0x545   : > { %9175 = vmatprep.subr.bf16.mxu0 %v13535_v61  ;;  %9605 = vmatprep.subr.bf16.mxu1 %v13537_v62  ;;  %v1651_v60 = vld [vmem:[%s15548_s17 + $0x20d8] sm:$0xff]  ;;  %v13590_v62 = vcombine.low %v1642_v48, %v1646_v49 }
 0x546   : > { %v1655_v61 = vld [vmem:[%s15548_s17 + $0x20f8] sm:$0xff] }
 0x547   : > { %v13601_v2 = vcombine.high %v1651_v60, %v1655_v61  ;;  %v13600_v8 = vcombine.low %v1651_v60, %v1655_v61  ;;  %v1718_v60 = vld [vmem:[%s15548_s17 + $0x22f0] sm:$0xff]  ;;  %v1715_v61 = vld [vmem:[%s15548_s17 + $0x22d8] sm:$0xff] }
 0x548   : > { %9176 = vmatpush1.bf16.msra.mxu0 %v13534_v4  ;;  %9606 = vmatpush1.bf16.msra.mxu1 %v13536_v5  ;;  %v1662_v4 = vld [vmem:[%s15548_s17 + $0x2130] sm:$0xff]  ;;  %v1659_v5 = vld [vmem:[%s15548_s17 + $0x2118] sm:$0xff] }
 0x549   : > { %9177 = vmatprep.subr.bf16.mxu0 %v13543_v6  ;;  %9607 = vmatprep.subr.bf16.mxu1 %v13545_v7  ;;  %v1663_v6 = vld [vmem:[%s15548_s17 + $0x2138] sm:$0xff]  ;;  %v13598_v7 = vcombine.low %v1650_v57, %v1654_v58  ;;  %v13607_v9 = vcombine.high %v1658_v3, %v1662_v4  ;;  %v13655_v57 = vcombine.high %v1706_v51, %v1710_v52 }
 0x54a   : > { %v13609_v10 = vcombine.high %v1659_v5, %v1663_v6  ;;  %v13608_v16 = vcombine.low %v1659_v5, %v1663_v6  ;;  %v1726_v5 = vld [vmem:[%s15548_s17 + $0x2330] sm:$0xff]  ;;  %v1723_v6 = vld [vmem:[%s15548_s17 + $0x2318] sm:$0xff] }
 0x54c   : > { %9178 = vmatpush1.bf16.msra.mxu0 %v13542_v12  ;;  %9608 = vmatpush1.bf16.msra.mxu1 %v13544_v13  ;;  %v1670_v12 = vld [vmem:[%s15548_s17 + $0x2170] sm:$0xff]  ;;  %v1667_v13 = vld [vmem:[%s15548_s17 + $0x2158] sm:$0xff] }
 0x54d   : > { %9179 = vmatprep.subr.bf16.mxu0 %v13551_v14  ;;  %9609 = vmatprep.subr.bf16.mxu1 %v13553_v15  ;;  %v1671_v14 = vld [vmem:[%s15548_s17 + $0x2178] sm:$0xff]  ;;  %v13606_v15 = vcombine.low %v1658_v3, %v1662_v4  ;;  %v13615_v17 = vcombine.high %v1666_v11, %v1670_v12  ;;  %v1722_v4 = vld [vmem:[%s15548_s17 + $0x2310] sm:$0xff] }
 0x54e   : > { %v13617_v18 = vcombine.high %v1667_v13, %v1671_v14  ;;  %v13616_v24 = vcombine.low %v1667_v13, %v1671_v14  ;;  %v1734_v13 = vld [vmem:[%s15548_s17 + $0x2370] sm:$0xff]  ;;  %v1731_v14 = vld [vmem:[%s15548_s17 + $0x2358] sm:$0xff] }
 0x550   : > { %9180 = vmatpush1.bf16.msra.mxu0 %v13550_v20  ;;  %9610 = vmatpush1.bf16.msra.mxu1 %v13552_v21  ;;  %v1678_v20 = vld [vmem:[%s15548_s17 + $0x21b0] sm:$0xff]  ;;  %v1675_v21 = vld [vmem:[%s15548_s17 + $0x2198] sm:$0xff] }
 0x551   : > { %9181 = vmatprep.subr.bf16.mxu0 %v13559_v22  ;;  %9611 = vmatprep.subr.bf16.mxu1 %v13561_v23  ;;  %v1679_v22 = vld [vmem:[%s15548_s17 + $0x21b8] sm:$0xff]  ;;  %v13614_v23 = vcombine.low %v1666_v11, %v1670_v12  ;;  %v13623_v25 = vcombine.high %v1674_v19, %v1678_v20  ;;  %v1730_v12 = vld [vmem:[%s15548_s17 + $0x2350] sm:$0xff] }
 0x552   : > { %v13625_v26 = vcombine.high %v1675_v21, %v1679_v22  ;;  %v13624_v32 = vcombine.low %v1675_v21, %v1679_v22  ;;  %v1742_v21 = vld [vmem:[%s15548_s17 + $0x23b0] sm:$0xff]  ;;  %v1739_v22 = vld [vmem:[%s15548_s17 + $0x2398] sm:$0xff] }
 0x554   : > { %9182 = vmatpush1.bf16.msra.mxu0 %v13558_v28  ;;  %9612 = vmatpush1.bf16.msra.mxu1 %v13560_v29  ;;  %v1686_v28 = vld [vmem:[%s15548_s17 + $0x21f0] sm:$0xff]  ;;  %v1683_v29 = vld [vmem:[%s15548_s17 + $0x21d8] sm:$0xff] }
 0x555   : > { %9183 = vmatprep.subr.bf16.mxu0 %v13567_v30  ;;  %9613 = vmatprep.subr.bf16.mxu1 %v13569_v31  ;;  %v1687_v30 = vld [vmem:[%s15548_s17 + $0x21f8] sm:$0xff]  ;;  %v13622_v31 = vcombine.low %v1674_v19, %v1678_v20  ;;  %v13631_v33 = vcombine.high %v1682_v27, %v1686_v28  ;;  %v1738_v20 = vld [vmem:[%s15548_s17 + $0x2390] sm:$0xff] }
 0x556   : > { %v13633_v34 = vcombine.high %v1683_v29, %v1687_v30  ;;  %v13632_v40 = vcombine.low %v1683_v29, %v1687_v30  ;;  %v1750_v29 = vld [vmem:[%s15548_s17 + $0x23f0] sm:$0xff]  ;;  %v1747_v30 = vld [vmem:[%s15548_s17 + $0x23d8] sm:$0xff] }
 0x558   : > { %9184 = vmatpush1.bf16.msra.mxu0 %v13566_v36  ;;  %9614 = vmatpush1.bf16.msra.mxu1 %v13568_v37  ;;  %v1694_v36 = vld [vmem:[%s15548_s17 + $0x2230] sm:$0xff]  ;;  %v1691_v37 = vld [vmem:[%s15548_s17 + $0x2218] sm:$0xff] }
 0x559   : > { %9196 = vmatprep.subr.bf16.mxu0 %v13575_v38  ;;  %9626 = vmatprep.subr.bf16.mxu1 %v13577_v39  ;;  %v1695_v38 = vld [vmem:[%s15548_s17 + $0x2238] sm:$0xff]  ;;  %v13630_v39 = vcombine.low %v1682_v27, %v1686_v28  ;;  %v13639_v41 = vcombine.high %v1690_v35, %v1694_v36  ;;  %v1746_v28 = vld [vmem:[%s15548_s17 + $0x23d0] sm:$0xff] }
 0x55a   : > { %v13641_v42 = vcombine.high %v1691_v37, %v1695_v38  ;;  %v13640_v48 = vcombine.low %v1691_v37, %v1695_v38  ;;  %v1758_v37 = vld [vmem:[%s15548_s17 + $0x2430] sm:$0xff]  ;;  %v1755_v38 = vld [vmem:[%s15548_s17 + $0x2418] sm:$0xff] }
 0x55b   : > { %9186 = vmatmul.mubr.bf16.vlgmr.msra.gmra.mrb[4].mxu0 %v14444_v50  ;;  %9616 = vmatmul.mubr.bf16.vlgmr.msra.gmra.mrb[4].mxu1 %v14444_v50 }
 0x55c   : > { %9197 = vmatpush1.bf16.msra.mxu0 %v13574_v44  ;;  %9627 = vmatpush1.bf16.msra.mxu1 %v13576_v45  ;;  %v1702_v44 = vld [vmem:[%s15548_s17 + $0x2270] sm:$0xff]  ;;  %v1699_v45 = vld [vmem:[%s15548_s17 + $0x2258] sm:$0xff] }
 0x55d   : > { %9198 = vmatprep.subr.bf16.mxu0 %v13583_v46  ;;  %9628 = vmatprep.subr.bf16.mxu1 %v13585_v47  ;;  %v1703_v46 = vld [vmem:[%s15548_s17 + $0x2278] sm:$0xff]  ;;  %v13638_v47 = vcombine.low %v1690_v35, %v1694_v36  ;;  %v13647_v49 = vcombine.high %v1698_v43, %v1702_v44  ;;  %v1754_v36 = vld [vmem:[%s15548_s17 + $0x2410] sm:$0xff] }
 0x55e   : > { %9228 = vmatprep.mubr.bf16.mxu0 %v14445_v59  ;;  %9658 = vmatprep.mubr.bf16.mxu1 %v14445_v59  ;;  %v13649_v50 = vcombine.high %v1699_v45, %v1703_v46  ;;  %v1714_v59 = vld [vmem:[%s15548_s17 + $0x22d0] sm:$0xff] }
 0x560   : > { %9199 = vmatpush1.bf16.msra.mxu0 %v13582_v53  ;;  %9629 = vmatpush1.bf16.msra.mxu1 %v13584_v54  ;;  %v1707_v53 = vld [vmem:[%s15548_s17 + $0x2298] sm:$0xff] }
 0x561   : > { %9200 = vmatprep.subr.bf16.mxu0 %v13591_v55  ;;  %9630 = vmatprep.subr.bf16.mxu1 %v13593_v56  ;;  %v1711_v54 = vld [vmem:[%s15548_s17 + $0x22b8] sm:$0xff]  ;;  %v13646_v55 = vcombine.low %v1698_v43, %v1702_v44  ;;  %v13648_v56 = vcombine.low %v1699_v45, %v1703_v46  ;;  %v1762_v44 = vld [vmem:[%s15548_s17 + $0x2450] sm:$0xff] }
 0x562   : > { %v13657_v58 = vcombine.high %v1707_v53, %v1711_v54  ;;  %v1766_v45 = vld [vmem:[%s15548_s17 + $0x2470] sm:$0xff]  ;;  %v1763_v46 = vld [vmem:[%s15548_s17 + $0x2458] sm:$0xff] }
 0x564   : > { %9201 = vmatpush1.bf16.msra.mxu0 %v13590_v62  ;;  %9631 = vmatpush1.bf16.msra.mxu1 %v13592_v63  ;;  %v1719_v62 = vld [vmem:[%s15548_s17 + $0x22f8] sm:$0xff]  ;;  %v13654_v63 = vcombine.low %v1706_v51, %v1710_v52  ;;  %v1770_v52 = vld [vmem:[%s15548_s17 + $0x2490] sm:$0xff] }
 0x565   : > { %9202 = vmatprep.subr.bf16.mxu0 %v13599_v1  ;;  %9632 = vmatprep.subr.bf16.mxu1 %v13601_v2  ;;  %v13656_v1 = vcombine.low %v1707_v53, %v1711_v54  ;;  %v13663_v2 = vcombine.high %v1714_v59, %v1718_v60  ;;  %v13665_v3 = vcombine.high %v1715_v61, %v1719_v62  ;;  %v1774_v53 = vld [vmem:[%s15548_s17 + $0x24b0] sm:$0xff] }
 0x566   : > { %v14446_v54 = vld [vmem:[%s15546_s9 + $0x40] ss:$76 sps:$4 sm:$0xff]  }
 0x568   : > { %9203 = vmatpush1.bf16.msra.mxu0 %v13598_v7  ;;  %9633 = vmatpush1.bf16.msra.mxu1 %v13600_v8  ;;  %v1727_v7 = vld [vmem:[%s15548_s17 + $0x2338] sm:$0xff]  ;;  %v13662_v8 = vcombine.low %v1714_v59, %v1718_v60  ;;  %v13719_v59 = vcombine.high %v1770_v52, %v1774_v53 }
 0x569   : > { %9204 = vmatprep.subr.bf16.mxu0 %v13607_v9  ;;  %9634 = vmatprep.subr.bf16.mxu1 %v13609_v10  ;;  %v13664_v9 = vcombine.low %v1715_v61, %v1719_v62  ;;  %v13671_v10 = vcombine.high %v1722_v4, %v1726_v5  ;;  %v13673_v11 = vcombine.high %v1723_v6, %v1727_v7  ;;  %v1778_v61 = vld [vmem:[%s15548_s17 + $0x24d0] sm:$0xff] }
 0x56a   : > { %v1782_v62 = vld [vmem:[%s15548_s17 + $0x24f0] sm:$0xff] }
 0x56c   : > { %9205 = vmatpush1.bf16.msra.mxu0 %v13606_v15  ;;  %9635 = vmatpush1.bf16.msra.mxu1 %v13608_v16  ;;  %v1735_v15 = vld [vmem:[%s15548_s17 + $0x2378] sm:$0xff]  ;;  %v13670_v16 = vcombine.low %v1722_v4, %v1726_v5  ;;  %v13727_v4 = vcombine.high %v1778_v61, %v1782_v62 }
 0x56d   : > { %9206 = vmatprep.subr.bf16.mxu0 %v13615_v17  ;;  %9636 = vmatprep.subr.bf16.mxu1 %v13617_v18  ;;  %v13672_v17 = vcombine.low %v1723_v6, %v1727_v7  ;;  %v13679_v18 = vcombine.high %v1730_v12, %v1734_v13  ;;  %v13681_v19 = vcombine.high %v1731_v14, %v1735_v15  ;;  %v1786_v6 = vld [vmem:[%s15548_s17 + $0x2510] sm:$0xff] }
 0x56e   : > { %v1790_v7 = vld [vmem:[%s15548_s17 + $0x2530] sm:$0xff] }
 0x570   : > { %9207 = vmatpush1.bf16.msra.mxu0 %v13614_v23  ;;  %9637 = vmatpush1.bf16.msra.mxu1 %v13616_v24  ;;  %v1743_v23 = vld [vmem:[%s15548_s17 + $0x23b8] sm:$0xff]  ;;  %v13678_v24 = vcombine.low %v1730_v12, %v1734_v13  ;;  %v1794_v13 = vld [vmem:[%s15548_s17 + $0x2550] sm:$0xff] }
 0x571   : > { %9208 = vmatprep.subr.bf16.mxu0 %v13623_v25  ;;  %9638 = vmatprep.subr.bf16.mxu1 %v13625_v26  ;;  %v13680_v25 = vcombine.low %v1731_v14, %v1735_v15  ;;  %v13687_v26 = vcombine.high %v1738_v20, %v1742_v21  ;;  %v13689_v27 = vcombine.high %v1739_v22, %v1743_v23  ;;  %v1798_v14 = vld [vmem:[%s15548_s17 + $0x2570] sm:$0xff]  ;;  %v1795_v15 = vld [vmem:[%s15548_s17 + $0x2558] sm:$0xff] }
 0x574   : > { %9209 = vmatpush1.bf16.msra.mxu0 %v13622_v31  ;;  %9639 = vmatpush1.bf16.msra.mxu1 %v13624_v32  ;;  %v1751_v31 = vld [vmem:[%s15548_s17 + $0x23f8] sm:$0xff]  ;;  %v13686_v32 = vcombine.low %v1738_v20, %v1742_v21  ;;  %v1802_v21 = vld [vmem:[%s15548_s17 + $0x2590] sm:$0xff] }
 0x575   : > { %9210 = vmatprep.subr.bf16.mxu0 %v13631_v33  ;;  %9640 = vmatprep.subr.bf16.mxu1 %v13633_v34  ;;  %v13688_v33 = vcombine.low %v1739_v22, %v1743_v23  ;;  %v13695_v34 = vcombine.high %v1746_v28, %v1750_v29  ;;  %v13697_v35 = vcombine.high %v1747_v30, %v1751_v31  ;;  %v1806_v22 = vld [vmem:[%s15548_s17 + $0x25b0] sm:$0xff]  ;;  %v1803_v23 = vld [vmem:[%s15548_s17 + $0x2598] sm:$0xff] }
 0x578   : > { %9211 = vmatpush1.bf16.msra.mxu0 %v13630_v39  ;;  %9641 = vmatpush1.bf16.msra.mxu1 %v13632_v40  ;;  %v1759_v39 = vld [vmem:[%s15548_s17 + $0x2438] sm:$0xff]  ;;  %v13694_v40 = vcombine.low %v1746_v28, %v1750_v29  ;;  %v1810_v29 = vld [vmem:[%s15548_s17 + $0x25d0] sm:$0xff] }
 0x579   : > { %9212 = vmatprep.subr.bf16.mxu0 %v13639_v41  ;;  %9642 = vmatprep.subr.bf16.mxu1 %v13641_v42  ;;  %v13696_v41 = vcombine.low %v1747_v30, %v1751_v31  ;;  %v13703_v42 = vcombine.high %v1754_v36, %v1758_v37  ;;  %v13705_v43 = vcombine.high %v1755_v38, %v1759_v39  ;;  %v1814_v30 = vld [vmem:[%s15548_s17 + $0x25f0] sm:$0xff]  ;;  %v1811_v31 = vld [vmem:[%s15548_s17 + $0x25d8] sm:$0xff] }
 0x57c   : > { %9213 = vmatpush1.bf16.msra.mxu0 %v13638_v47  ;;  %9643 = vmatpush1.bf16.msra.mxu1 %v13640_v48  ;;  %v1767_v47 = vld [vmem:[%s15548_s17 + $0x2478] sm:$0xff]  ;;  %v13702_v48 = vcombine.low %v1754_v36, %v1758_v37  ;;  %v13758_v37 = vcombine.low %v1810_v29, %v1814_v30 }
 0x57d   : > { %9214 = vmatprep.subr.bf16.mxu0 %v13647_v49  ;;  %9644 = vmatprep.subr.bf16.mxu1 %v13649_v50  ;;  %v13704_v49 = vcombine.low %v1755_v38, %v1759_v39  ;;  %v13711_v50 = vcombine.high %v1762_v44, %v1766_v45  ;;  %v13713_v51 = vcombine.high %v1763_v46, %v1767_v47  ;;  %v14447_v39 = vld [vmem:[%s15546_s9 + $0x48] ss:$76 sps:$4 sm:$0xff]  }
 0x580   : > { %9215 = vmatpush1.bf16.msra.mxu0 %v13646_v55  ;;  %9645 = vmatpush1.bf16.msra.mxu1 %v13648_v56  ;;  %v1771_v55 = vld [vmem:[%s15548_s17 + $0x2498] sm:$0xff] }
 0x581   : > { %9216 = vmatprep.subr.bf16.mxu0 %v13655_v57  ;;  %9646 = vmatprep.subr.bf16.mxu1 %v13657_v58  ;;  %v1775_v56 = vld [vmem:[%s15548_s17 + $0x24b8] sm:$0xff]  ;;  %v13710_v57 = vcombine.low %v1762_v44, %v1766_v45  ;;  %v13712_v58 = vcombine.low %v1763_v46, %v1767_v47  ;;  %v571_v44 = vld [vmem:[#allocation2 + $0x38] sm:$0xff]  ;;  %v576_v45 = vld [vmem:[#allocation2 + $0x60] sm:$0xff] }
 0x582   : > { %v13721_v60 = vcombine.high %v1771_v55, %v1775_v56 }
 0x584   : > { %9217 = vmatpush1.bf16.msra.mxu0 %v13654_v63  ;;  %9647 = vmatpush1.bf16.msra.mxu1 %v13656_v1  ;;  %v1779_v63 = vld [vmem:[%s15548_s17 + $0x24d8] sm:$0xff] }
 0x585   : > { %9218 = vmatprep.subr.bf16.mxu0 %v13663_v2  ;;  %9648 = vmatprep.subr.bf16.mxu1 %v13665_v3  ;;  %v1783_v1 = vld [vmem:[%s15548_s17 + $0x24f8] sm:$0xff]  ;;  %v13718_v2 = vcombine.low %v1770_v52, %v1774_v53  ;;  %v13720_v3 = vcombine.low %v1771_v55, %v1775_v56  ;;  %v579_v55 = vld [vmem:[#allocation2 + $0x78] sm:$0xff] }
 0x586   : > { %v13729_v5 = vcombine.high %v1779_v63, %v1783_v1 }
 0x588   : > { %9219 = vmatpush1.bf16.msra.mxu0 %v13662_v8  ;;  %9649 = vmatpush1.bf16.msra.mxu1 %v13664_v9  ;;  %v1787_v8 = vld [vmem:[%s15548_s17 + $0x2518] sm:$0xff] }
 0x589   : > { %9220 = vmatprep.subr.bf16.mxu0 %v13671_v10  ;;  %9650 = vmatprep.subr.bf16.mxu1 %v13673_v11  ;;  %v1791_v9 = vld [vmem:[%s15548_s17 + $0x2538] sm:$0xff]  ;;  %v13726_v10 = vcombine.low %v1778_v61, %v1782_v62  ;;  %v13735_v11 = vcombine.high %v1786_v6, %v1790_v7 }
 0x58a   : > { %v13737_v12 = vcombine.high %v1787_v8, %v1791_v9 }
 0x58c   : > { %9221 = vmatpush1.bf16.msra.mxu0 %v13670_v16  ;;  %9651 = vmatpush1.bf16.msra.mxu1 %v13672_v17  ;;  %v1799_v16 = vld [vmem:[%s15548_s17 + $0x2578] sm:$0xff]  ;;  %v13734_v17 = vcombine.low %v1786_v6, %v1790_v7 }
 0x58d   : > { %9222 = vmatprep.subr.bf16.mxu0 %v13679_v18  ;;  %9652 = vmatprep.subr.bf16.mxu1 %v13681_v19  ;;  %v13736_v18 = vcombine.low %v1787_v8, %v1791_v9  ;;  %v13743_v19 = vcombine.high %v1794_v13, %v1798_v14  ;;  %v13745_v20 = vcombine.high %v1795_v15, %v1799_v16  ;;  %v14456_v6 = vld [vmem:[#allocation9 + $0x224] ss:$16 sps:$4 sm:$0xff] (!%p13762_p4)   ;;  %v14458_v7 = vld [vmem:[#allocation9 + $0x20] ss:$16 sps:$4 sm:$0xff] (!%p13762_p4)  }
 0x58e   : > { %v14459_v8 = vld [vmem:[#allocation9 + $0x220] ss:$16 sps:$4 sm:$0xff] (!%p13762_p4)   ;;  %v14460_v9 = vld [vmem:[#allocation9 + $0x44] ss:$16 sps:$4 sm:$0xff] (!%p13762_p4)  }
 0x590   : > { %9223 = vmatpush1.bf16.msra.mxu0 %v13678_v24  ;;  %9653 = vmatpush1.bf16.msra.mxu1 %v13680_v25  ;;  %v1807_v24 = vld [vmem:[%s15548_s17 + $0x25b8] sm:$0xff]  ;;  %v13742_v25 = vcombine.low %v1794_v13, %v1798_v14 }
 0x591   : > { %9224 = vmatprep.subr.bf16.mxu0 %v13687_v26  ;;  %9654 = vmatprep.subr.bf16.mxu1 %v13689_v27  ;;  %v13744_v26 = vcombine.low %v1795_v15, %v1799_v16  ;;  %v13751_v27 = vcombine.high %v1802_v21, %v1806_v22  ;;  %v13753_v28 = vcombine.high %v1803_v23, %v1807_v24  ;;  %v14468_v13 = vld [vmem:[#allocation9 + $0x264] ss:$16 sps:$4 sm:$0xff] (!%p13762_p4)   ;;  %v14470_v14 = vld [vmem:[#allocation9 + $0x60] ss:$16 sps:$4 sm:$0xff] (!%p13762_p4)  }
 0x592   : > { %v14471_v15 = vld [vmem:[#allocation9 + $0x260] ss:$16 sps:$4 sm:$0xff] (!%p13762_p4)   ;;  %v14472_v16 = vld [vmem:[#allocation9 + $0x84] ss:$16 sps:$4 sm:$0xff] (!%p13762_p4)  }
 0x594   : > { %9225 = vmatpush1.bf16.msra.mxu0 %v13686_v32  ;;  %9655 = vmatpush1.bf16.msra.mxu1 %v13688_v33  ;;  %v1815_v32 = vld [vmem:[%s15548_s17 + $0x25f8] sm:$0xff]  ;;  %v13750_v33 = vcombine.low %v1802_v21, %v1806_v22 }
 0x595   : > { %9226 = vmatprep.subr.bf16.mxu0 %v13695_v34  ;;  %9656 = vmatprep.subr.bf16.mxu1 %v13697_v35  ;;  %v13752_v34 = vcombine.low %v1803_v23, %v1807_v24  ;;  %v13759_v35 = vcombine.high %v1810_v29, %v1814_v30  ;;  %v13761_v36 = vcombine.high %v1811_v31, %v1815_v32  ;;  %v14480_v21 = vld [vmem:[#allocation9 + $0x2a4] ss:$16 sps:$4 sm:$0xff] (!%p13762_p4)   ;;  %v14482_v22 = vld [vmem:[#allocation9 + $0xa0] ss:$16 sps:$4 sm:$0xff] (!%p13762_p4)  }
 0x596   : > { %v13760_v38 = vcombine.low %v1811_v31, %v1815_v32  ;;  %v14483_v23 = vld [vmem:[#allocation9 + $0x2a0] ss:$16 sps:$4 sm:$0xff] (!%p13762_p4)   ;;  %v14484_v24 = vld [vmem:[#allocation9 + $0xc4] ss:$16 sps:$4 sm:$0xff] (!%p13762_p4)  }
 0x597   : > { %v14492_v29 = vld [vmem:[#allocation9 + $0x2e4] ss:$16 sps:$4 sm:$0xff] (!%p13762_p4)   ;;  %v14494_v30 = vld [vmem:[#allocation9 + $0xe0] ss:$16 sps:$4 sm:$0xff] (!%p13762_p4)  }
 0x598   : > { %9227 = vmatpush1.bf16.msra.mxu0 %v13694_v40  ;;  %9657 = vmatpush1.bf16.msra.mxu1 %v13696_v41  ;;  %v568_v40 = vld [vmem:[#allocation2 + $0x20] sm:$0xff]  ;;  %v570_v41 = vld [vmem:[#allocation2 + $0x30] sm:$0xff]  ;;  %v14495_v31 = vld [vmem:[#allocation9 + $0x2e0] ss:$16 sps:$4 sm:$0xff] (!%p13762_p4)  }
 0x599   : > { %9239 = vmatprep.subr.bf16.mxu0 %v13703_v42  ;;  %9669 = vmatprep.subr.bf16.mxu1 %v13705_v43  ;;  %v569_v42 = vld [vmem:[#allocation2 + $0x28] sm:$0xff] }
 0x59a   : > { %v14496_v32 = vld [vmem:[#allocation9 + $0x104] ss:$16 sps:$4 sm:$0xff] (!%p13762_p4)  }
 0x59b   : > { %9229 = vmatmul.mubr.bf16.vlgmr.msra.gmra.mrb[4].mxu0 %v14446_v54  ;;  %9659 = vmatmul.mubr.bf16.vlgmr.msra.gmra.mrb[4].mxu1 %v14446_v54 }
 0x59c   : > { %9240 = vmatpush1.bf16.msra.mxu0 %v13702_v48  ;;  %9670 = vmatpush1.bf16.msra.mxu1 %v13704_v49  ;;  %v578_v49 = vld [vmem:[#allocation2 + $0x70] sm:$0xff] }
 0x59d   : > { %9241 = vmatprep.subr.bf16.mxu0 %v13711_v50  ;;  %9671 = vmatprep.subr.bf16.mxu1 %v13713_v51  ;;  %v577_v50 = vld [vmem:[#allocation2 + $0x68] sm:$0xff] }
 0x59e   : > { %9271 = vmatprep.mubr.bf16.mxu0 %v15210_v0  ;;  %9701 = vmatprep.mubr.bf16.mxu1 %v15210_v0  ;;  %v13728_v0 = vcombine.low %v1779_v63, %v1783_v1  ;;  %v14448_v1 = vld [vmem:[#allocation9 + $0x4] ss:$16 sps:$4 sm:$0xff] (!%p13762_p4)  }
 0x5a0   : > { %9242 = vmatpush1.bf16.msra.mxu0 %v13710_v57  ;;  %9672 = vmatpush1.bf16.msra.mxu1 %v13712_v58 }
 0x5a1   : > { %9243 = vmatprep.subr.bf16.mxu0 %v13719_v59  ;;  %9673 = vmatprep.subr.bf16.mxu1 %v13721_v60 }
 0x5a4   : > { %9244 = vmatpush1.bf16.msra.mxu0 %v13718_v2  ;;  %9674 = vmatpush1.bf16.msra.mxu1 %v13720_v3  ;;  %v14450_v2 = vld [vmem:[#allocation9 + $0x204] ss:$16 sps:$4 sm:$0xff] (!%p13762_p4)   ;;  %v14452_v3 = vld [vmem:[#allocation9] ss:$16 sps:$4 sm:$0xff] (!%p13762_p4)  }
 0x5a5   : > { %9245 = vmatprep.subr.bf16.mxu0 %v13727_v4  ;;  %9675 = vmatprep.subr.bf16.mxu1 %v13729_v5  ;;  %v14453_v4 = vld [vmem:[#allocation9 + $0x200] ss:$16 sps:$4 sm:$0xff] (!%p13762_p4)   ;;  %v14454_v5 = vld [vmem:[#allocation9 + $0x24] ss:$16 sps:$4 sm:$0xff] (!%p13762_p4)  }
 0x5a8   : > { %9246 = vmatpush1.bf16.msra.mxu0 %v13726_v10  ;;  %9676 = vmatpush1.bf16.msra.mxu1 %v13728_v0  ;;  %v14462_v10 = vld [vmem:[#allocation9 + $0x244] ss:$16 sps:$4 sm:$0xff] (!%p13762_p4)   ;;  %v14464_v0 = vld [vmem:[#allocation9 + $0x40] ss:$16 sps:$4 sm:$0xff] (!%p13762_p4)  }
 0x5a9   : > { %9247 = vmatprep.subr.bf16.mxu0 %v13735_v11  ;;  %9677 = vmatprep.subr.bf16.mxu1 %v13737_v12  ;;  %v14465_v11 = vld [vmem:[#allocation9 + $0x240] ss:$16 sps:$4 sm:$0xff] (!%p13762_p4)   ;;  %v14466_v12 = vld [vmem:[#allocation9 + $0x64] ss:$16 sps:$4 sm:$0xff] (!%p13762_p4)  }
 0x5ac   : > { %9248 = vmatpush1.bf16.msra.mxu0 %v13734_v17  ;;  %9678 = vmatpush1.bf16.msra.mxu1 %v13736_v18  ;;  %v14474_v17 = vld [vmem:[#allocation9 + $0x284] ss:$16 sps:$4 sm:$0xff] (!%p13762_p4)   ;;  %v14476_v18 = vld [vmem:[#allocation9 + $0x80] ss:$16 sps:$4 sm:$0xff] (!%p13762_p4)  }
 0x5ad   : > { %9249 = vmatprep.subr.bf16.mxu0 %v13743_v19  ;;  %9679 = vmatprep.subr.bf16.mxu1 %v13745_v20  ;;  %v14477_v19 = vld [vmem:[#allocation9 + $0x280] ss:$16 sps:$4 sm:$0xff] (!%p13762_p4)   ;;  %v14478_v20 = vld [vmem:[#allocation9 + $0xa4] ss:$16 sps:$4 sm:$0xff] (!%p13762_p4)  }
 0x5b0   : > { %9250 = vmatpush1.bf16.msra.mxu0 %v13742_v25  ;;  %9680 = vmatpush1.bf16.msra.mxu1 %v13744_v26  ;;  %v14486_v25 = vld [vmem:[#allocation9 + $0x2c4] ss:$16 sps:$4 sm:$0xff] (!%p13762_p4)   ;;  %v14488_v26 = vld [vmem:[#allocation9 + $0xc0] ss:$16 sps:$4 sm:$0xff] (!%p13762_p4)  }
 0x5b1   : > { %9251 = vmatprep.subr.bf16.mxu0 %v13751_v27  ;;  %9681 = vmatprep.subr.bf16.mxu1 %v13753_v28  ;;  %v14489_v27 = vld [vmem:[#allocation9 + $0x2c0] ss:$16 sps:$4 sm:$0xff] (!%p13762_p4)   ;;  %v14490_v28 = vld [vmem:[#allocation9 + $0xe4] ss:$16 sps:$4 sm:$0xff] (!%p13762_p4)  }
 0x5b4   : > { %9252 = vmatpush1.bf16.msra.mxu0 %v13750_v33  ;;  %9682 = vmatpush1.bf16.msra.mxu1 %v13752_v34  ;;  %v14498_v33 = vld [vmem:[#allocation9 + $0x304] ss:$16 sps:$4 sm:$0xff] (!%p13762_p4)   ;;  %v14500_v34 = vld [vmem:[#allocation9 + $0x100] ss:$16 sps:$4 sm:$0xff] (!%p13762_p4)  }
 0x5b5   : > { %9253 = vmatprep.subr.bf16.mxu0 %v13759_v35  ;;  %9683 = vmatprep.subr.bf16.mxu1 %v13761_v36  ;;  %v14501_v35 = vld [vmem:[#allocation9 + $0x300] ss:$16 sps:$4 sm:$0xff] (!%p13762_p4)   ;;  %v14502_v36 = vld [vmem:[#allocation9 + $0x124] ss:$16 sps:$4 sm:$0xff] (!%p13762_p4)  }
 0x5b8   : > { %9254 = vmatpush1.bf16.msra.mxu0 %v13758_v37  ;;  %9684 = vmatpush1.bf16.msra.mxu1 %v13760_v38  ;;  %v9766_v37 = vlaneseq (!%p13762_p4)  ;;  %v14504_v38 = vld [vmem:[#allocation9 + $0x324] ss:$16 sps:$4 sm:$0xff] (!%p13762_p4)  }
 0x5b9   : > { %11436 = vmatprep.subr.bf16.mxu1 (!%p13762_p4), %v14448_v1  ;;  %11479 = vmatprep.subr.bf16.mxu0 (!%p13762_p4), %v14450_v2  ;;  %v14524_v2 = vld [vmem:[#allocation9 + $0x180] ss:$16 sps:$4 sm:$0xff] (!%p13762_p4)  }
 0x5bb   : > { %9272 = vmatmul.mubr.bf16.vlgmr.msra.gmra.mrb[4].mxu0 %v14447_v39  ;;  %9702 = vmatmul.mubr.bf16.vlgmr.msra.gmra.mrb[4].mxu1 %v14447_v39  ;;  %v14506_v39 = vld [vmem:[#allocation9 + $0x120] ss:$16 sps:$4 sm:$0xff] (!%p13762_p4)  }
 0x5bc   : > { %11437 = vmatpush1.bf16.msra.mxu1 (!%p13762_p4), %v14452_v3  ;;  %11480 = vmatpush1.bf16.msra.mxu0 (!%p13762_p4), %v14453_v4 }
 0x5bd   : > { %11438 = vmatprep.subr.bf16.mxu1 (!%p13762_p4), %v14454_v5  ;;  %11481 = vmatprep.subr.bf16.mxu0 (!%p13762_p4), %v14456_v6  ;;  %v14525_v6 = vld [vmem:[#allocation9 + $0x380] ss:$16 sps:$4 sm:$0xff] (!%p13762_p4)  }
 0x5c0   : > { %11439 = vmatpush1.bf16.msra.mxu1 (!%p13762_p4), %v14458_v7  ;;  %11482 = vmatpush1.bf16.msra.mxu0 (!%p13762_p4), %v14459_v8  ;;  %v9748_v7 = vld [vmem:[#allocation2] sm:$0xff] (!%p13762_p4) }
 0x5c1   : > { %11440 = vmatprep.subr.bf16.mxu1 (!%p13762_p4), %v14460_v9  ;;  %11483 = vmatprep.subr.bf16.mxu0 (!%p13762_p4), %v14462_v10  ;;  %v9756_v8 = vld [vmem:[#allocation2 + $0x40] sm:$0xff] (!%p13762_p4) }
 0x5c4   : > { %11441 = vmatpush1.bf16.msra.mxu1 (!%p13762_p4), %v14464_v0  ;;  %11484 = vmatpush1.bf16.msra.mxu0 (!%p13762_p4), %v14465_v11 }
 0x5c5   : > { %11442 = vmatprep.subr.bf16.mxu1 (!%p13762_p4), %v14466_v12  ;;  %11485 = vmatprep.subr.bf16.mxu0 (!%p13762_p4), %v14468_v13  ;;  %v14526_v13 = vld [vmem:[#allocation9 + $0x1a4] ss:$16 sps:$4 sm:$0xff] (!%p13762_p4)  }
 0x5c8   : > { %11443 = vmatpush1.bf16.msra.mxu1 (!%p13762_p4), %v14470_v14  ;;  %11486 = vmatpush1.bf16.msra.mxu0 (!%p13762_p4), %v14471_v15  ;;  %v14528_v14 = vld [vmem:[#allocation9 + $0x3a4] ss:$16 sps:$4 sm:$0xff] (!%p13762_p4)  }
 0x5c9   : > { %11444 = vmatprep.subr.bf16.mxu1 (!%p13762_p4), %v14472_v16  ;;  %11487 = vmatprep.subr.bf16.mxu0 (!%p13762_p4), %v14474_v17  ;;  %v9750_v15 = vld [vmem:[#allocation2 + $0x10] sm:$0xff] (!%p13762_p4)  ;;  %v14530_v16 = vld [vmem:[#allocation9 + $0x1a0] ss:$16 sps:$4 sm:$0xff] (!%p13762_p4)  }
 0x5cc   : > { %11445 = vmatpush1.bf16.msra.mxu1 (!%p13762_p4), %v14476_v18  ;;  %11488 = vmatpush1.bf16.msra.mxu0 (!%p13762_p4), %v14477_v19 }
 0x5cd   : > { %11446 = vmatprep.subr.bf16.mxu1 (!%p13762_p4), %v14478_v20  ;;  %11489 = vmatprep.subr.bf16.mxu0 (!%p13762_p4), %v14480_v21  ;;  %v9758_v20 = vld [vmem:[#allocation2 + $0x50] sm:$0xff] (!%p13762_p4)  ;;  %v14531_v21 = vld [vmem:[#allocation9 + $0x3a0] ss:$16 sps:$4 sm:$0xff] (!%p13762_p4)  }
 0x5d0   : > { %11447 = vmatpush1.bf16.msra.mxu1 (!%p13762_p4), %v14482_v22  ;;  %11490 = vmatpush1.bf16.msra.mxu0 (!%p13762_p4), %v14483_v23 }
 0x5d1   : > { %11448 = vmatprep.subr.bf16.mxu1 (!%p13762_p4), %v14484_v24  ;;  %11491 = vmatprep.subr.bf16.mxu0 (!%p13762_p4), %v14486_v25  ;;  %v14532_v25 = vld [vmem:[#allocation9 + $0x1c4] ss:$16 sps:$4 sm:$0xff] (!%p13762_p4)  }
 0x5d4   : > { %11449 = vmatpush1.bf16.msra.mxu1 (!%p13762_p4), %v14488_v26  ;;  %11492 = vmatpush1.bf16.msra.mxu0 (!%p13762_p4), %v14489_v27 }
 0x5d5   : > { %11450 = vmatprep.subr.bf16.mxu1 (!%p13762_p4), %v14490_v28  ;;  %11493 = vmatprep.subr.bf16.mxu0 (!%p13762_p4), %v14492_v29  ;;  %v14534_v29 = vld [vmem:[#allocation9 + $0x3c4] ss:$16 sps:$4 sm:$0xff] (!%p13762_p4)  }
 0x5d8   : > { %11451 = vmatpush1.bf16.msra.mxu1 (!%p13762_p4), %v14494_v30  ;;  %11494 = vmatpush1.bf16.msra.mxu0 (!%p13762_p4), %v14495_v31  ;;  %v14536_v31 = vld [vmem:[#allocation9 + $0x1c0] ss:$16 sps:$4 sm:$0xff] (!%p13762_p4)  }
 0x5d9   : > { %11452 = vmatprep.subr.bf16.mxu1 (!%p13762_p4), %v14496_v32  ;;  %11495 = vmatprep.subr.bf16.mxu0 (!%p13762_p4), %v14498_v33  ;;  %v14537_v32 = vld [vmem:[#allocation9 + $0x3c0] ss:$16 sps:$4 sm:$0xff] (!%p13762_p4)  }
 0x5dc   : > { %11453 = vmatpush1.bf16.msra.mxu1 (!%p13762_p4), %v14500_v34  ;;  %11496 = vmatpush1.bf16.msra.mxu0 (!%p13762_p4), %v14501_v35  ;;  %v14538_v34 = vld [vmem:[#allocation9 + $0x1e4] ss:$16 sps:$4 sm:$0xff] (!%p13762_p4)  }
 0x5dd   : > { %11454 = vmatprep.subr.bf16.mxu1 (!%p13762_p4), %v14502_v36  ;;  %11497 = vmatprep.subr.bf16.mxu0 (!%p13762_p4), %v14504_v38  ;;  %v14540_v35 = vld [vmem:[#allocation9 + $0x3e4] ss:$16 sps:$4 sm:$0xff] (!%p13762_p4)  }
 0x5e0   : > { %11455 = vmatpush1.bf16.msra.mxu1 (!%p13762_p4), %v14506_v39 }
 0x68e   : > { %v9273_v43 = vpop.f32.mrb[4].mxu0  ;;  %v9703_v47 = vpop.f32.mrb[4].mxu1  ;;  %9747 = sbr.rel (%p13762_p4) target bundleno = 2581 (0xa15), region = 118 }
 0x68f   : > { %v9716_v46 = vadd.f32 %v9273_v43, %v568_v40  ;;  %v9275_v48 = vpop.f32.mrb[5].mxu0  ;;  %v9718_v51 = vadd.f32 %v9703_v47, %v570_v41  ;;  %v9705_v53 = vpop.f32.mrb[5].mxu1  ;;  %v14507_v40 = vld [vmem:[#allocation9 + $0x320] ss:$16 sps:$4 sm:$0xff] (!%p13762_p4)   ;;  %v14508_v41 = vld [vmem:[#allocation9 + $0x144] ss:$16 sps:$4 sm:$0xff] (!%p13762_p4)  }
 0x690   : > { %v9717_v52 = vadd.f32 %v9275_v48, %v569_v42  ;;  %v9277_v54 = vpop.f32.mrb[6].mxu0  ;;  %v9719_v56 = vadd.f32 %v9705_v53, %v571_v44  ;;  %v9707_v58 = vpop.f32.mrb[6].mxu1  ;;  %v16826_v42 = vshrl.u32 (!%p13762_p4), %v9766_v37, 7  ;;  %v14510_v43 = vld [vmem:[#allocation9 + $0x344] ss:$16 sps:$4 sm:$0xff] (!%p13762_p4)   ;;  %11498 = vmatpush1.bf16.msra.mxu0 (!%p13762_p4), %v14507_v40  ;;  %11456 = vmatprep.subr.bf16.mxu1 (!%p13762_p4), %v14508_v41 }
 0x691   : > { %9732 = vst [vmem:[#allocation2 + $0x20] sm:$0xff] %v9716_v46  ;;  %v9724_v57 = vadd.f32 %v9277_v54, %v576_v45  ;;  %v9279_v59 = vpop.f32.mrb[7].mxu0  ;;  %9734 = vst [vmem:[#allocation2 + $0x30] sm:$0xff] %v9718_v51  ;;  %v9726_v60 = vadd.f32 %v9707_v58, %v578_v49  ;;  %v9709_v62 = vpop.f32.mrb[7].mxu1  ;;  %v14512_v44 = vld [vmem:[#allocation9 + $0x140] ss:$16 sps:$4 sm:$0xff] (!%p13762_p4)   ;;  %11499 = vmatprep.subr.bf16.mxu0 (!%p13762_p4), %v14510_v43 }
 0x692   : > { %9733 = vst [vmem:[#allocation2 + $0x28] sm:$0xff] %v9717_v52  ;;  %v9725_v61 = vadd.f32 %v9279_v59, %v577_v50  ;;  %9735 = vst [vmem:[#allocation2 + $0x38] sm:$0xff] %v9719_v56  ;;  %v9727_v63 = vadd.f32 %v9709_v62, %v579_v55  ;;  %v14513_v45 = vld [vmem:[#allocation9 + $0x340] ss:$16 sps:$4 sm:$0xff] (!%p13762_p4)   ;;  %v14514_v46 = vld [vmem:[#allocation9 + $0x164] ss:$16 sps:$4 sm:$0xff] (!%p13762_p4)   ;;  %11457 = vmatpush1.bf16.msra.mxu1 (!%p13762_p4), %v14512_v44 }
 0x693   : > { %9740 = vst [vmem:[#allocation2 + $0x60] sm:$0xff] %v9724_v57  ;;  %9742 = vst [vmem:[#allocation2 + $0x70] sm:$0xff] %v9726_v60  ;;  %v16829_v47 = vsub.s32 (!%p13762_p4), 1, %v16826_v42  ;;  %v9780_v48 = vsub.s32 (!%p13762_p4), 3, %v16826_v42  ;;  %v14516_v49 = vld [vmem:[#allocation9 + $0x364] ss:$16 sps:$4 sm:$0xff] (!%p13762_p4)   ;;  %11458 = vmatprep.subr.bf16.mxu1 (!%p13762_p4), %v14514_v46 }
 0x694   : > { %9741 = vst [vmem:[#allocation2 + $0x68] sm:$0xff] %v9725_v61  ;;  %9743 = vst [vmem:[#allocation2 + $0x78] sm:$0xff] %v9727_v63  ;;  %v9784_v50 = vsub.s32 (!%p13762_p4), 4, %v16826_v42  ;;  %v14518_v51 = vld [vmem:[#allocation9 + $0x160] ss:$16 sps:$4 sm:$0xff] (!%p13762_p4)   ;;  %v16834_v53 = vsub.s32 (!%p13762_p4), 0, %v16826_v42  ;;  %11500 = vmatpush1.bf16.msra.mxu0 (!%p13762_p4), %v14513_v45 }
 0x695   : > { %v14519_v52 = vld [vmem:[#allocation9 + $0x360] ss:$16 sps:$4 sm:$0xff]   ;;  %v16836_v56 = vld [vmem:[#allocation7] sm:$0xff]  ;;  %v9776_v57 = vsub.s32 2, %v16826_v42  ;;  %v14520_v58 = vld [vmem:[#allocation9 + $0x184] ss:$16 sps:$4 sm:$0xff]   ;;  %11501 = vmatprep.subr.bf16.mxu0 %v14516_v49 }
 0x696   : > { %v9749_v54 = vld [vmem:[#allocation2 + $0x8] sm:$0xff]  ;;  %v9773_v59 = vrot.slane %v16836_v56, %v16829_v47  ;;  %v9751_v60 = vld [vmem:[#allocation2 + $0x18] sm:$0xff]  ;;  %v9781_v62 = vrot.slane %v16836_v56, %v9780_v48  ;;  %v16845_v1 = vrot.slane %v16836_v56, %v9784_v50  ;;  %v9769_v5 = vrot.slane %v16836_v56, %v16834_v53  ;;  %11459 = vmatpush1.bf16.msra.mxu1 %v14518_v51 }
 0x697   : > { %v9757_v55 = vld [vmem:[#allocation2 + $0x48] sm:$0xff]  ;;  %v9759_v61 = vld [vmem:[#allocation2 + $0x58] sm:$0xff]  ;;  %v9777_v0 = vrot.slane %v16836_v56, %v9776_v57  ;;  %11460 = vmatprep.subr.bf16.mxu1 %v14520_v58  ;;  %v9796_v41 = vsub.s32 7, %v16826_v42  ;;  %v9792_v43 = vsub.s32 6, %v16826_v42 }
 0x698   : > { %v14522_v63 = vld [vmem:[#allocation9 + $0x384] ss:$16 sps:$4 sm:$0xff]   ;;  %v9807_v3 = vadd.f32 %v9773_v59, %v9749_v54  ;;  %v9815_v4 = vadd.f32 %v9773_v59, %v9757_v55  ;;  %v9809_v9 = vadd.f32 %v9781_v62, %v9751_v60  ;;  %v9817_v10 = vadd.f32 %v9781_v62, %v9759_v61  ;;  %11502 = vmatpush1.bf16.msra.mxu0 %v14519_v52  ;;  %v14542_v49 = vld [vmem:[#allocation9 + $0x1e0] ss:$16 sps:$4 sm:$0xff]   ;;  %v14549_v58 = vld [vmem:[#allocation9 + $0xc] ss:$16 sps:$4 sm:$0xff]  }
 0x699   : > { %11503 = vmatprep.subr.bf16.mxu0 %v14522_v63  ;;  %v9806_v19 = vadd.f32 %v9769_v5, %v9748_v7  ;;  %v9814_v23 = vadd.f32 %v9769_v5, %v9756_v8  ;;  %v9808_v27 = vadd.f32 %v9777_v0, %v9750_v15  ;;  %v9816_v28 = vadd.f32 %v9777_v0, %v9758_v20  ;;  %v14543_v50 = vld [vmem:[#allocation9 + $0x3e0] ss:$16 sps:$4 sm:$0xff]   ;;  %v14546_v55 = vld [vmem:[#allocation9 + $0x404] ss:$16 sps:$4 sm:$0xff]   ;;  %v14547_v62 = vld [vmem:[#allocation9 + $0x8] ss:$16 sps:$4 sm:$0xff]  }
 0x69a   : > { %vm9823_vm0 = vcmp.gt.f32.partialorder %v9807_v3, 0.0  ;;  %vm9831_vm1 = vcmp.gt.f32.partialorder %v9815_v4, 0.0  ;;  %v9839_v11 = vmul.f32 0.2, %v9807_v3  ;;  %v9847_v12 = vmul.f32 0.2, %v9815_v4  ;;  %11461 = vmatpush1.bf16.msra.mxu1 %v14524_v2 }
 0x69b   : > { %vm9825_vm2 = vcmp.gt.f32.partialorder %v9809_v9, 0.0  ;;  %vm9833_vm3 = vcmp.gt.f32.partialorder %v9817_v10, 0.0  ;;  %v9841_v24 = vmul.f32 0.2, %v9809_v9  ;;  %v9849_v26 = vmul.f32 0.2, %v9817_v10  ;;  %11462 = vmatprep.subr.bf16.mxu1 %v14526_v13 }
 0x69c   : > { %v9855_v17 = vsel %vm9823_vm0, %v9807_v3, %v9839_v11  ;;  %v9863_v18 = vsel %vm9831_vm1, %v9815_v4, %v9847_v12  ;;  %11504 = vmatpush1.bf16.msra.mxu0 %v14525_v6  ;;  %vm9822_vm4 = vcmp.gt.f32.partialorder %v9806_v19, 0.0  ;;  %v9838_v36 = vmul.f32 0.2, %v9806_v19  ;;  %v14544_v61 = vld [vmem:[#allocation9 + $0x400] ss:$16 sps:$4 sm:$0xff]  }
 0x69d   : > { %v16852_v22 = vpack.c.bf16 %v9863_v18, %v9855_v17  ;;  %11505 = vmatprep.subr.bf16.mxu0 %v14528_v14  ;;  %v9857_v30 = vsel %vm9825_vm2, %v9809_v9, %v9841_v24  ;;  %v9865_v33 = vsel %vm9833_vm3, %v9817_v10, %v9849_v26  ;;  %v9846_v37 = vmul.f32 0.2, %v9814_v23  ;;  %v14552_v63 = vld [vmem:[#allocation9 + $0x424] ss:$16 sps:$4 sm:$0xff]   ;;  %v14555_v2 = vld [vmem:[#allocation9 + $0x2c] ss:$16 sps:$4 sm:$0xff]  }
 0x69e   : > { %v16857_v38 = vpack.c.bf16 %v9865_v33, %v9857_v30  ;;  %11463 = vmatpush1.bf16.msra.mxu1 %v14530_v16  ;;  %v9840_v39 = vmul.f32 0.2, %v9808_v27  ;;  %v9848_v40 = vmul.f32 0.2, %v9816_v28  ;;  %vm9830_vm5 = vcmp.gt.f32.partialorder %v9814_v23, 0.0  ;;  %v9753_v30 = vld [vmem:[#allocation2 + $0x28] sm:$0xff] }
 0x69f   : > { %11468 = vmatprep.mubr.bf16.mxu1 %v16852_v22  ;;  %11464 = vmatprep.subr.bf16.mxu1 %v14532_v25  ;;  %vm9824_vm6 = vcmp.gt.f32.partialorder %v9808_v27, 0.0  ;;  %vm9832_vm7 = vcmp.gt.f32.partialorder %v9816_v28, 0.0  ;;  %v16863_v44 = vrot.slane %v16836_v56, %v9796_v41  ;;  %v9854_v45 = vsel %vm9822_vm4, %v9806_v19, %v9838_v36  ;;  %v14550_v3 = vld [vmem:[#allocation9 + $0x420] ss:$16 sps:$4 sm:$0xff]   ;;  %v14553_v4 = vld [vmem:[#allocation9 + $0x28] ss:$16 sps:$4 sm:$0xff]  }
 0x6a0   : > { %11506 = vmatpush1.bf16.msra.mxu0 %v14531_v21  ;;  %11511 = vmatprep.mubr.bf16.mxu0 %v16857_v38  ;;  %v16867_v46 = vrot.slane %v16836_v56, %v9792_v43  ;;  %v9862_v51 = vsel %vm9830_vm5, %v9814_v23, %v9846_v37  ;;  %v9856_v52 = vsel %vm9824_vm6, %v9808_v27, %v9840_v39  ;;  %v14558_v5 = vld [vmem:[#allocation9 + $0x444] ss:$16 sps:$4 sm:$0xff]   ;;  %v14561_v6 = vld [vmem:[#allocation9 + $0x4c] ss:$16 sps:$4 sm:$0xff]   ;;  %v14556_v7 = vld [vmem:[#allocation9 + $0x440] ss:$16 sps:$4 sm:$0xff]  }
 0x6a1   : > { %11507 = vmatprep.subr.bf16.mxu0 %v14534_v29  ;;  %v9864_v54 = vsel %vm9832_vm7, %v9816_v28, %v9848_v40  ;;  %v16869_v59 = vpack.c.bf16 %v9862_v51, %v9854_v45  ;;  %v14559_v8 = vld [vmem:[#allocation9 + $0x48] ss:$16 sps:$4 sm:$0xff]   ;;  %v14564_v9 = vld [vmem:[#allocation9 + $0x464] ss:$16 sps:$4 sm:$0xff]   ;;  %v14567_v10 = vld [vmem:[#allocation9 + $0x6c] ss:$16 sps:$4 sm:$0xff]  }
 0x6a2   : > { %11465 = vmatpush1.bf16.msra.mxu1 %v14536_v31  ;;  %v16871_v60 = vpack.c.bf16 %v9864_v54, %v9856_v52  ;;  %v14562_v0 = vld [vmem:[#allocation9 + $0x460] ss:$16 sps:$4 sm:$0xff]   ;;  %v14565_v11 = vld [vmem:[#allocation9 + $0x68] ss:$16 sps:$4 sm:$0xff]   ;;  %v14570_v12 = vld [vmem:[#allocation9 + $0x484] ss:$16 sps:$4 sm:$0xff]  }
 0x6a3   : > { %11466 = vmatprep.subr.bf16.mxu1 %v14538_v34  ;;  %v14573_v13 = vld [vmem:[#allocation9 + $0x8c] ss:$16 sps:$4 sm:$0xff]   ;;  %v14568_v14 = vld [vmem:[#allocation9 + $0x480] ss:$16 sps:$4 sm:$0xff]   ;;  %v14571_v15 = vld [vmem:[#allocation9 + $0x88] ss:$16 sps:$4 sm:$0xff]  }
 0x6a4   : > { %11508 = vmatpush1.bf16.msra.mxu0 %v14537_v32  ;;  %v14576_v16 = vld [vmem:[#allocation9 + $0x4a4] ss:$16 sps:$4 sm:$0xff]   ;;  %v14579_v17 = vld [vmem:[#allocation9 + $0xac] ss:$16 sps:$4 sm:$0xff]   ;;  %v14574_v18 = vld [vmem:[#allocation9 + $0x4a0] ss:$16 sps:$4 sm:$0xff]  }
 0x6a5   : > { %11509 = vmatprep.subr.bf16.mxu0 %v14540_v35  ;;  %v14577_v19 = vld [vmem:[#allocation9 + $0xa8] ss:$16 sps:$4 sm:$0xff]   ;;  %v9788_v20 = vsub.s32 5, %v16826_v42  ;;  %v14582_v21 = vld [vmem:[#allocation9 + $0x4c4] ss:$16 sps:$4 sm:$0xff]  }
 0x6a6   : > { %11467 = vmatpush1.bf16.msra.mxu1 %v14542_v49  ;;  %v14580_v23 = vld [vmem:[#allocation9 + $0x4c0] ss:$16 sps:$4 sm:$0xff]   ;;  %v14583_v24 = vld [vmem:[#allocation9 + $0xc8] ss:$16 sps:$4 sm:$0xff]   ;;  %v14588_v26 = vld [vmem:[#allocation9 + $0x4e4] ss:$16 sps:$4 sm:$0xff]  }
 0x6a7   : > { %11608 = vmatprep.subr.bf16.mxu1 %v14549_v58  ;;  %v9789_v25 = vrot.slane %v16836_v56, %v9788_v20  ;;  %v14591_v27 = vld [vmem:[#allocation9 + $0xec] ss:$16 sps:$4 sm:$0xff]   ;;  %v14586_v28 = vld [vmem:[#allocation9 + $0x4e0] ss:$16 sps:$4 sm:$0xff]   ;;  %v14589_v29 = vld [vmem:[#allocation9 + $0xe8] ss:$16 sps:$4 sm:$0xff]  }
 0x6a8   : > { %11510 = vmatpush1.bf16.msra.mxu0 %v14543_v50  ;;  %v9761_v31 = vld [vmem:[#allocation2 + $0x68] sm:$0xff]  ;;  %v14595_v39 = vld [vmem:[#allocation9 + $0x108] ss:$16 sps:$4 sm:$0xff]  }
 0x6a9   : > { %11522 = vmatprep.subr.bf16.mxu0 %v14546_v55  ;;  %11469 = vmatmul.mubr.bf16.vlgmr.msra.gmra.mrb[0].mxu1 %v16869_v59  ;;  %v14594_v32 = vld [vmem:[#allocation9 + $0x504] ss:$16 sps:$4 sm:$0xff]   ;;  %v9811_v33 = vadd.f32 %v9789_v25, %v9753_v30  ;;  %v9819_v34 = vadd.f32 %v9789_v25, %v9761_v31  ;;  %v14597_v35 = vld [vmem:[#allocation9 + $0x10c] ss:$16 sps:$4 sm:$0xff]   ;;  %v14592_v37 = vld [vmem:[#allocation9 + $0x500] ss:$16 sps:$4 sm:$0xff]  }
 0x6aa   : > { %11609 = vmatpush1.bf16.msra.mxu1 %v14547_v62  ;;  %11640 = vmatprep.mubr.bf16.mxu1 %v16852_v22  ;;  %v14585_v22 = vld [vmem:[#allocation9 + $0xcc] ss:$16 sps:$4 sm:$0xff]   ;;  %v14600_v43 = vld [vmem:[#allocation9 + $0x524] ss:$16 sps:$4 sm:$0xff]   ;;  %v14598_v50 = vld [vmem:[#allocation9 + $0x520] ss:$16 sps:$4 sm:$0xff]  }
 0x6ab   : > { %11512 = vmatmul.mubr.bf16.vlgmr.msra.gmra.mrb[0].mxu0 %v16871_v60  ;;  %11610 = vmatprep.subr.bf16.mxu1 %v14555_v2  ;;  %vm9827_vm8 = vcmp.gt.f32.partialorder %v9811_v33, 0.0  ;;  %vm9835_vm9 = vcmp.gt.f32.partialorder %v9819_v34, 0.0  ;;  %v9843_v36 = vmul.f32 0.2, %v9811_v33  ;;  %v9851_v56 = vmul.f32 0.2, %v9819_v34 }
 0x6ac   : > { %11523 = vmatpush1.bf16.msra.mxu0 %v14544_v61  ;;  %v14603_v45 = vld [vmem:[#allocation9 + $0x12c] ss:$16 sps:$4 sm:$0xff]   ;;  %v14601_v51 = vld [vmem:[#allocation9 + $0x128] ss:$16 sps:$4 sm:$0xff]   ;;  %v14606_v52 = vld [vmem:[#allocation9 + $0x544] ss:$16 sps:$4 sm:$0xff]  }
 0x6ad   : > { %11524 = vmatprep.subr.bf16.mxu0 %v14552_v63  ;;  %v9859_v40 = vsel %vm9827_vm8, %v9811_v33, %v9843_v36  ;;  %v9867_v41 = vsel %vm9835_vm9, %v9819_v34, %v9851_v56  ;;  %v14609_v54 = vld [vmem:[#allocation9 + $0x14c] ss:$16 sps:$4 sm:$0xff]   ;;  %v14604_v55 = vld [vmem:[#allocation9 + $0x540] ss:$16 sps:$4 sm:$0xff]   ;;  %v14607_v58 = vld [vmem:[#allocation9 + $0x148] ss:$16 sps:$4 sm:$0xff]  }
 0x6ae   : > { %11611 = vmatpush1.bf16.msra.mxu1 %v14553_v4  ;;  %v16878_v49 = vpack.c.bf16 %v9867_v41, %v9859_v40  ;;  %v14612_v61 = vld [vmem:[#allocation9 + $0x564] ss:$16 sps:$4 sm:$0xff]   ;;  %v14615_v62 = vld [vmem:[#allocation9 + $0x16c] ss:$16 sps:$4 sm:$0xff]   ;;  %v14610_v63 = vld [vmem:[#allocation9 + $0x560] ss:$16 sps:$4 sm:$0xff]  }
 0x6af   : > { %11612 = vmatprep.subr.bf16.mxu1 %v14561_v6  ;;  %v14613_v2 = vld [vmem:[#allocation9 + $0x168] ss:$16 sps:$4 sm:$0xff]   ;;  %v14621_v4 = vld [vmem:[#allocation9 + $0x18c] ss:$16 sps:$4 sm:$0xff]   ;;  %v14648_v30 = vld [vmem:[#allocation9 + $0x624] ss:$16 sps:$4 sm:$0xff]  }
 0x6b0   : > { %11525 = vmatpush1.bf16.msra.mxu0 %v14550_v3  ;;  %11554 = vmatprep.mubr.bf16.mxu0 %v16878_v49  ;;  %v14618_v3 = vld [vmem:[#allocation9 + $0x584] ss:$16 sps:$4 sm:$0xff]   ;;  %v14619_v6 = vld [vmem:[#allocation9 + $0x188] ss:$16 sps:$4 sm:$0xff]   ;;  %v14651_v31 = vld [vmem:[#allocation9 + $0x22c] ss:$16 sps:$4 sm:$0xff]  }
 0x6b1   : > { %11526 = vmatprep.subr.bf16.mxu0 %v14558_v5  ;;  %v14616_v5 = vld [vmem:[#allocation9 + $0x580] ss:$16 sps:$4 sm:$0xff]   ;;  %v14649_v33 = vld [vmem:[#allocation9 + $0x228] ss:$16 sps:$4 sm:$0xff]   ;;  %v14654_v34 = vld [vmem:[#allocation9 + $0x644] ss:$16 sps:$4 sm:$0xff]  }
 0x6b2   : > { %11613 = vmatpush1.bf16.msra.mxu1 %v14559_v8  ;;  %v14627_v8 = vld [vmem:[#allocation9 + $0x1ac] ss:$16 sps:$4 sm:$0xff]   ;;  %v14652_v36 = vld [vmem:[#allocation9 + $0x640] ss:$16 sps:$4 sm:$0xff]   ;;  %v14655_v56 = vld [vmem:[#allocation9 + $0x248] ss:$16 sps:$4 sm:$0xff]  }
 0x6b3   : > { %11614 = vmatprep.subr.bf16.mxu1 %v14567_v10  ;;  %v9760_v10 = vld [vmem:[#allocation2 + $0x60] sm:$0xff]  ;;  %v9755_v40 = vld [vmem:[#allocation2 + $0x38] sm:$0xff] }
 0x6b4   : > { %11527 = vmatpush1.bf16.msra.mxu0 %v14556_v7  ;;  %v14624_v7 = vld [vmem:[#allocation9 + $0x5a4] ss:$16 sps:$4 sm:$0xff]   ;;  %v9813_v41 = vadd.f32 %v16863_v44, %v9755_v40 }
 0x6b5   : > { %11528 = vmatprep.subr.bf16.mxu0 %v14564_v9  ;;  %v9752_v9 = vld [vmem:[#allocation2 + $0x20] sm:$0xff] }
 0x6b6   : > { %11615 = vmatpush1.bf16.msra.mxu1 %v14565_v11  ;;  %v14625_v11 = vld [vmem:[#allocation9 + $0x1a8] ss:$16 sps:$4 sm:$0xff]   ;;  %vm9829_vm12 = vcmp.gt.f32.partialorder %v9813_v41, 0.0 }
 0x6b7   : > { %11616 = vmatprep.subr.bf16.mxu1 %v14573_v13  ;;  %v9810_v13 = vadd.f32 %v16845_v1, %v9752_v9  ;;  %v14684_v9 = vld [vmem:[#allocation9 + $0x6e4] ss:$16 sps:$4 sm:$0xff]  }
 0x6b8   : > { %11529 = vmatpush1.bf16.msra.mxu0 %v14562_v0  ;;  %v14622_v0 = vld [vmem:[#allocation9 + $0x5a0] ss:$16 sps:$4 sm:$0xff]  }
 0x6b9   : > { %11530 = vmatprep.subr.bf16.mxu0 %v14570_v12  ;;  %v14630_v12 = vld [vmem:[#allocation9 + $0x5c4] ss:$16 sps:$4 sm:$0xff]   ;;  %vm9826_vm10 = vcmp.gt.f32.partialorder %v9810_v13, 0.0 }
 0x6ba   : > { %11617 = vmatpush1.bf16.msra.mxu1 %v14571_v15  ;;  %v14633_v15 = vld [vmem:[#allocation9 + $0x1cc] ss:$16 sps:$4 sm:$0xff]  }
 0x6bb   : > { %11618 = vmatprep.subr.bf16.mxu1 %v14579_v17  ;;  %v14631_v17 = vld [vmem:[#allocation9 + $0x1c8] ss:$16 sps:$4 sm:$0xff]  }
 0x6bc   : > { %11531 = vmatpush1.bf16.msra.mxu0 %v14568_v14  ;;  %v9818_v14 = vadd.f32 %v16845_v1, %v9760_v10  ;;  %v14642_v1 = vld [vmem:[#allocation9 + $0x604] ss:$16 sps:$4 sm:$0xff]   ;;  %v14687_v10 = vld [vmem:[#allocation9 + $0x2ec] ss:$16 sps:$4 sm:$0xff]  }
 0x6bd   : > { %11532 = vmatprep.subr.bf16.mxu0 %v14576_v16  ;;  %v14628_v16 = vld [vmem:[#allocation9 + $0x5c0] ss:$16 sps:$4 sm:$0xff]  }
 0x6be   : > { %11619 = vmatpush1.bf16.msra.mxu1 %v14577_v19  ;;  %v9842_v19 = vmul.f32 0.2, %v9810_v13  ;;  %v9850_v20 = vmul.f32 0.2, %v9818_v14  ;;  %vm9834_vm11 = vcmp.gt.f32.partialorder %v9818_v14, 0.0 }
 0x6bf   : > { %11620 = vmatprep.subr.bf16.mxu1 %v14585_v22  ;;  %v14634_v22 = vld [vmem:[#allocation9 + $0x5e0] ss:$16 sps:$4 sm:$0xff]  }
 0x6c0   : > { %11533 = vmatpush1.bf16.msra.mxu0 %v14574_v18  ;;  %v14636_v18 = vld [vmem:[#allocation9 + $0x5e4] ss:$16 sps:$4 sm:$0xff]   ;;  %v9866_v25 = vsel %vm9834_vm11, %v9818_v14, %v9850_v20  ;;  %v14688_v14 = vld [vmem:[#allocation9 + $0x700] ss:$16 sps:$4 sm:$0xff]  }
 0x6c1   : > { %11534 = vmatprep.subr.bf16.mxu0 %v14582_v21  ;;  %v14639_v21 = vld [vmem:[#allocation9 + $0x1ec] ss:$16 sps:$4 sm:$0xff]   ;;  %v14702_v20 = vld [vmem:[#allocation9 + $0x744] ss:$16 sps:$4 sm:$0xff]  }
 0x6c2   : > { %11621 = vmatpush1.bf16.msra.mxu1 %v14583_v24  ;;  %v9858_v24 = vsel %vm9826_vm10, %v9810_v13, %v9842_v19  ;;  %v14693_v13 = vld [vmem:[#allocation9 + $0x30c] ss:$16 sps:$4 sm:$0xff]   ;;  %v14697_v19 = vld [vmem:[#allocation9 + $0x328] ss:$16 sps:$4 sm:$0xff]  }
 0x6c3   : > { %11622 = vmatprep.subr.bf16.mxu1 %v14591_v27  ;;  %v14640_v27 = vld [vmem:[#allocation9 + $0x600] ss:$16 sps:$4 sm:$0xff]  }
 0x6c4   : > { %11535 = vmatpush1.bf16.msra.mxu0 %v14580_v23  ;;  %v14637_v23 = vld [vmem:[#allocation9 + $0x1e8] ss:$16 sps:$4 sm:$0xff]  }
 0x6c5   : > { %11536 = vmatprep.subr.bf16.mxu0 %v14588_v26  ;;  %v14645_v26 = vld [vmem:[#allocation9 + $0x20c] ss:$16 sps:$4 sm:$0xff]  }
 0x6c6   : > { %11623 = vmatpush1.bf16.msra.mxu1 %v14589_v29  ;;  %v14643_v29 = vld [vmem:[#allocation9 + $0x208] ss:$16 sps:$4 sm:$0xff]  }
 0x6c7   : > { %11624 = vmatprep.subr.bf16.mxu1 %v14597_v35  ;;  %v14657_v35 = vld [vmem:[#allocation9 + $0x24c] ss:$16 sps:$4 sm:$0xff]  }
 0x6c8   : > { %11537 = vmatpush1.bf16.msra.mxu0 %v14586_v28  ;;  %v16883_v28 = vpack.c.bf16 %v9866_v25, %v9858_v24  ;;  %v14711_v24 = vld [vmem:[#allocation9 + $0x36c] ss:$16 sps:$4 sm:$0xff]   ;;  %v14706_v25 = vld [vmem:[#allocation9 + $0x760] ss:$16 sps:$4 sm:$0xff]  }
 0x6c9   : > { %11538 = vmatprep.subr.bf16.mxu0 %v14594_v32  ;;  %v14646_v32 = vld [vmem:[#allocation9 + $0x620] ss:$16 sps:$4 sm:$0xff]  }
 0x6ca   : > { %11625 = vmatpush1.bf16.msra.mxu1 %v14595_v39  ;;  %v14663_v39 = vld [vmem:[#allocation9 + $0x26c] ss:$16 sps:$4 sm:$0xff]  }
 0x6cb   : > { %11626 = vmatprep.subr.bf16.mxu1 %v14603_v45  ;;  %v14658_v45 = vld [vmem:[#allocation9 + $0x660] ss:$16 sps:$4 sm:$0xff]  }
 0x6cc   : > { %11539 = vmatpush1.bf16.msra.mxu0 %v14592_v37  ;;  %v14660_v37 = vld [vmem:[#allocation9 + $0x664] ss:$16 sps:$4 sm:$0xff]  }
 0x6cd   : > { %11540 = vmatprep.subr.bf16.mxu0 %v14600_v43 }
 0x6ce   : > { %11627 = vmatpush1.bf16.msra.mxu1 %v14601_v51 }
 0x6cf   : > { %11628 = vmatprep.subr.bf16.mxu1 %v14609_v54  ;;  %v14669_v54 = vld [vmem:[#allocation9 + $0x28c] ss:$16 sps:$4 sm:$0xff]  }
 0x6d0   : > { %11541 = vmatpush1.bf16.msra.mxu0 %v14598_v50  ;;  %v14661_v50 = vld [vmem:[#allocation9 + $0x268] ss:$16 sps:$4 sm:$0xff]  }
 0x6d1   : > { %11542 = vmatprep.subr.bf16.mxu0 %v14606_v52  ;;  %v14666_v52 = vld [vmem:[#allocation9 + $0x684] ss:$16 sps:$4 sm:$0xff]  }
 0x6d2   : > { %11629 = vmatpush1.bf16.msra.mxu1 %v14607_v58 }
 0x6d3   : > { %11630 = vmatprep.subr.bf16.mxu1 %v14615_v62 }
 0x6d4   : > { %11543 = vmatpush1.bf16.msra.mxu0 %v14604_v55 }
 0x6d5   : > { %11544 = vmatprep.subr.bf16.mxu0 %v14612_v61  ;;  %v14664_v61 = vld [vmem:[#allocation9 + $0x680] ss:$16 sps:$4 sm:$0xff]  }
 0x6d6   : > { %11631 = vmatpush1.bf16.msra.mxu1 %v14613_v2  ;;  %v14675_v2 = vld [vmem:[#allocation9 + $0x2ac] ss:$16 sps:$4 sm:$0xff]  }
 0x6d7   : > { %11632 = vmatprep.subr.bf16.mxu1 %v14621_v4  ;;  %v14673_v4 = vld [vmem:[#allocation9 + $0x2a8] ss:$16 sps:$4 sm:$0xff]  }
 0x6d8   : > { %11545 = vmatpush1.bf16.msra.mxu0 %v14610_v63  ;;  %v14672_v63 = vld [vmem:[#allocation9 + $0x6a4] ss:$16 sps:$4 sm:$0xff]  }
 0x6d9   : > { %11546 = vmatprep.subr.bf16.mxu0 %v14618_v3  ;;  %v14670_v3 = vld [vmem:[#allocation9 + $0x6a0] ss:$16 sps:$4 sm:$0xff]  }
 0x6da   : > { %11633 = vmatpush1.bf16.msra.mxu1 %v14619_v6  ;;  %v14681_v6 = vld [vmem:[#allocation9 + $0x2cc] ss:$16 sps:$4 sm:$0xff]  }
 0x6db   : > { %11634 = vmatprep.subr.bf16.mxu1 %v14627_v8  ;;  %v14679_v8 = vld [vmem:[#allocation9 + $0x2c8] ss:$16 sps:$4 sm:$0xff]  }
 0x6dc   : > { %11547 = vmatpush1.bf16.msra.mxu0 %v14616_v5  ;;  %v14678_v5 = vld [vmem:[#allocation9 + $0x6c4] ss:$16 sps:$4 sm:$0xff]  }
 0x6dd   : > { %11548 = vmatprep.subr.bf16.mxu0 %v14624_v7  ;;  %v14676_v7 = vld [vmem:[#allocation9 + $0x6c0] ss:$16 sps:$4 sm:$0xff]  }
 0x6de   : > { %11635 = vmatpush1.bf16.msra.mxu1 %v14625_v11  ;;  %v14685_v11 = vld [vmem:[#allocation9 + $0x2e8] ss:$16 sps:$4 sm:$0xff]  }
 0x6df   : > { %11636 = vmatprep.subr.bf16.mxu1 %v14633_v15  ;;  %v14691_v15 = vld [vmem:[#allocation9 + $0x308] ss:$16 sps:$4 sm:$0xff]  }
 0x6e0   : > { %11549 = vmatpush1.bf16.msra.mxu0 %v14622_v0  ;;  %v14682_v0 = vld [vmem:[#allocation9 + $0x6e0] ss:$16 sps:$4 sm:$0xff]  }
 0x6e1   : > { %11550 = vmatprep.subr.bf16.mxu0 %v14630_v12  ;;  %v14690_v12 = vld [vmem:[#allocation9 + $0x704] ss:$16 sps:$4 sm:$0xff]  }
 0x6e2   : > { %11637 = vmatpush1.bf16.msra.mxu1 %v14631_v17  ;;  %v14699_v17 = vld [vmem:[#allocation9 + $0x32c] ss:$16 sps:$4 sm:$0xff]  }
 0x6e3   : > { %11638 = vmatprep.subr.bf16.mxu1 %v14639_v21  ;;  %v14705_v21 = vld [vmem:[#allocation9 + $0x34c] ss:$16 sps:$4 sm:$0xff]  }
 0x6e4   : > { %11551 = vmatpush1.bf16.msra.mxu0 %v14628_v16  ;;  %v14696_v16 = vld [vmem:[#allocation9 + $0x724] ss:$16 sps:$4 sm:$0xff]  }
 0x6e5   : > { %11552 = vmatprep.subr.bf16.mxu0 %v14636_v18  ;;  %v14694_v18 = vld [vmem:[#allocation9 + $0x720] ss:$16 sps:$4 sm:$0xff]  }
 0x6e6   : > { %11639 = vmatpush1.bf16.msra.mxu1 %v14637_v23  ;;  %v14703_v23 = vld [vmem:[#allocation9 + $0x348] ss:$16 sps:$4 sm:$0xff]  }
 0x6e7   : > { %11651 = vmatprep.subr.bf16.mxu1 %v14645_v26  ;;  %v14709_v26 = vld [vmem:[#allocation9 + $0x368] ss:$16 sps:$4 sm:$0xff]  }
 0x6e8   : > { %11553 = vmatpush1.bf16.msra.mxu0 %v14634_v22  ;;  %v14700_v22 = vld [vmem:[#allocation9 + $0x740] ss:$16 sps:$4 sm:$0xff]  }
 0x6e9   : > { %11565 = vmatprep.subr.bf16.mxu0 %v14642_v1  ;;  %11641 = vmatmul.mubr.bf16.vlgmr.msra.gmra.mrb[4].mxu1 %v16869_v59  ;;  %v9763_v59 = vld [vmem:[#allocation2 + $0x78] sm:$0xff] }
 0x6ea   : > { %11652 = vmatpush1.bf16.msra.mxu1 %v14643_v29  ;;  %11683 = vmatprep.mubr.bf16.mxu1 %v16857_v38  ;;  %v9821_v43 = vadd.f32 %v16863_v44, %v9763_v59  ;;  %v9845_v38 = vmul.f32 0.2, %v9813_v41  ;;  %v14667_v44 = vld [vmem:[#allocation9 + $0x288] ss:$16 sps:$4 sm:$0xff]   ;;  %v14708_v1 = vld [vmem:[#allocation9 + $0x764] ss:$16 sps:$4 sm:$0xff]  }
 0x6eb   : > { %11555 = vmatmul.mubr.bf16.vlgmr.msra.gmra.mrb[0].mxu0 %v16883_v28  ;;  %11653 = vmatprep.subr.bf16.mxu1 %v14651_v31  ;;  %v14717_v29 = vld [vmem:[#allocation9 + $0x38c] ss:$16 sps:$4 sm:$0xff]   ;;  %v14715_v31 = vld [vmem:[#allocation9 + $0x388] ss:$16 sps:$4 sm:$0xff]  }
 0x6ec   : > { %11566 = vmatpush1.bf16.msra.mxu0 %v14640_v27  ;;  %vm9837_vm13 = vcmp.gt.f32.partialorder %v9821_v43, 0.0  ;;  %v9853_v51 = vmul.f32 0.2, %v9821_v43  ;;  %v9861_v55 = vsel %vm9829_vm12, %v9813_v41, %v9845_v38  ;;  %v14714_v27 = vld [vmem:[#allocation9 + $0x784] ss:$16 sps:$4 sm:$0xff]   ;;  %vm12345_vm12 = vcmask 7168  }
 0x6ed   : > { %11567 = vmatprep.subr.bf16.mxu0 %v14648_v30  ;;  %v14712_v30 = vld [vmem:[#allocation9 + $0x780] ss:$16 sps:$4 sm:$0xff]  }
 0x6ee   : > { %11654 = vmatpush1.bf16.msra.mxu1 %v14649_v33  ;;  %v9869_v58 = vsel %vm9837_vm13, %v9821_v43, %v9853_v51  ;;  %v14723_v33 = vld [vmem:[#allocation9 + $0x3ac] ss:$16 sps:$4 sm:$0xff]   ;;  %v14724_v41 = vld [vmem:[#allocation9 + $0x7c0] ss:$16 sps:$4 sm:$0xff]   ;;  %v14727_v43 = vld [vmem:[#allocation9 + $0x3c8] ss:$16 sps:$4 sm:$0xff]  }
 0x6ef   : > { %11655 = vmatprep.subr.bf16.mxu1 %v14657_v35  ;;  %v16890_v62 = vpack.c.bf16 %v9869_v58, %v9861_v55  ;;  %v9762_v35 = vld [vmem:[#allocation2 + $0x70] sm:$0xff] }
 0x6f0   : > { %11568 = vmatpush1.bf16.msra.mxu0 %v14646_v32  ;;  %v14720_v32 = vld [vmem:[#allocation9 + $0x7a4] ss:$16 sps:$4 sm:$0xff]   ;;  %v9820_v59 = vadd.f32 %v16867_v46, %v9762_v35  ;;  %v14738_v58 = vld [vmem:[#allocation9 + $0x40c] ss:$16 sps:$4 sm:$0xff]  }
 0x6f1   : > { %11569 = vmatprep.subr.bf16.mxu0 %v14654_v34  ;;  %11597 = vmatprep.mubr.bf16.mxu0 %v16890_v62  ;;  %v9754_v34 = vld [vmem:[#allocation2 + $0x30] sm:$0xff] }
 0x6f2   : > { %11656 = vmatpush1.bf16.msra.mxu1 %v14655_v56  ;;  %v14721_v56 = vld [vmem:[#allocation9 + $0x3a8] ss:$16 sps:$4 sm:$0xff]   ;;  %v9812_v40 = vadd.f32 %v16867_v46, %v9754_v34  ;;  %v9852_v51 = vmul.f32 0.2, %v9820_v59  ;;  %vm9836_vm15 = vcmp.gt.f32.partialorder %v9820_v59, 0.0 }
 0x6f3   : > { %11657 = vmatprep.subr.bf16.mxu1 %v14663_v39  ;;  %v14729_v39 = vld [vmem:[#allocation9 + $0x3cc] ss:$16 sps:$4 sm:$0xff]   ;;  %v14763_v34 = vld [vmem:[#allocation9 + $0x528] ss:$16 sps:$4 sm:$0xff]  }
 0x6f4   : > { %11570 = vmatpush1.bf16.msra.mxu0 %v14652_v36  ;;  %v14718_v36 = vld [vmem:[#allocation9 + $0x7a0] ss:$16 sps:$4 sm:$0xff]   ;;  %v9844_v38 = vmul.f32 0.2, %v9812_v40  ;;  %vm9828_vm14 = vcmp.gt.f32.partialorder %v9812_v40, 0.0  ;;  %v9868_v46 = vsel %vm9836_vm15, %v9820_v59, %v9852_v51 }
 0x6f5   : > { %11571 = vmatprep.subr.bf16.mxu0 %v14660_v37  ;;  %v14726_v37 = vld [vmem:[#allocation9 + $0x7c4] ss:$16 sps:$4 sm:$0xff]   ;;  %v14768_v35 = vld [vmem:[#allocation9 + $0x54c] ss:$16 sps:$4 sm:$0xff]   ;;  %v14867_v59 = vld [vmem:[#allocation12 + $0xb4] ss:$8 sps:$4 sm:$0xff]  }
 0x6f6   : > { %11658 = vmatpush1.bf16.msra.mxu1 %v14661_v50  ;;  %v14735_v50 = vld [vmem:[#allocation9 + $0x3ec] ss:$16 sps:$4 sm:$0xff]   ;;  %v9860_v55 = vsel %vm9828_vm14, %v9812_v40, %v9844_v38  ;;  %v14772_v38 = vld [vmem:[#allocation9 + $0x588] ss:$16 sps:$4 sm:$0xff]  }
 0x6f7   : > { %11659 = vmatprep.subr.bf16.mxu1 %v14669_v54  ;;  %v14733_v54 = vld [vmem:[#allocation9 + $0x3e8] ss:$16 sps:$4 sm:$0xff]   ;;  %v14862_v40 = vld [vmem:[#allocation12 + $0xa0] ss:$8 sps:$4 sm:$0xff]  }
 0x6f8   : > { %11572 = vmatpush1.bf16.msra.mxu0 %v14658_v45  ;;  %v14732_v45 = vld [vmem:[#allocation9 + $0x7e4] ss:$16 sps:$4 sm:$0xff]   ;;  %v14777_v51 = vld [vmem:[#allocation9 + $0x5ac] ss:$16 sps:$4 sm:$0xff]  }
 0x6f9   : > { %11573 = vmatprep.subr.bf16.mxu0 %v14666_v52  ;;  %v14730_v52 = vld [vmem:[#allocation9 + $0x7e0] ss:$16 sps:$4 sm:$0xff]  }
 0x6fa   : > { %11660 = vmatpush1.bf16.msra.mxu1 %v14667_v44  ;;  %v16895_v44 = vpack.c.bf16 %v9868_v46, %v9860_v55  ;;  %v14780_v55 = vld [vmem:[#allocation9 + $0x5cc] ss:$16 sps:$4 sm:$0xff]   ;;  %v14778_v46 = vld [vmem:[#allocation9 + $0x5c8] ss:$16 sps:$4 sm:$0xff]  }
 0x6fb   : > { %11661 = vmatprep.subr.bf16.mxu1 %v14675_v2  ;;  %v14832_v2 = vld [vmem:[#allocation12] ss:$8 sps:$4 sm:$0xff]  }
 0x6fc   : > { %11574 = vmatpush1.bf16.msra.mxu0 %v14664_v61  ;;  %v14736_v61 = vld [vmem:[#allocation9 + $0x408] ss:$16 sps:$4 sm:$0xff]  }
 0x6fd   : > { %11575 = vmatprep.subr.bf16.mxu0 %v14672_v63  ;;  %v14741_v63 = vld [vmem:[#allocation9 + $0x42c] ss:$16 sps:$4 sm:$0xff]  }
 0x6fe   : > { %11662 = vmatpush1.bf16.msra.mxu1 %v14673_v4  ;;  %v14739_v4 = vld [vmem:[#allocation9 + $0x428] ss:$16 sps:$4 sm:$0xff]  }
 0x6ff   : > { %11663 = vmatprep.subr.bf16.mxu1 %v14681_v6  ;;  %v14744_v6 = vld [vmem:[#allocation9 + $0x44c] ss:$16 sps:$4 sm:$0xff]  }
 0x700   : > { %11576 = vmatpush1.bf16.msra.mxu0 %v14670_v3  ;;  %v14834_v3 = vld [vmem:[#allocation12 + $0x4] ss:$8 sps:$4 sm:$0xff]  }
 0x701   : > { %11577 = vmatprep.subr.bf16.mxu0 %v14678_v5  ;;  %v14837_v5 = vld [vmem:[#allocation12 + $0x14] ss:$8 sps:$4 sm:$0xff]  }
 0x702   : > { %11664 = vmatpush1.bf16.msra.mxu1 %v14679_v8  ;;  %v14840_v8 = vld [vmem:[#allocation12 + $0x24] ss:$8 sps:$4 sm:$0xff]  }
 0x703   : > { %11665 = vmatprep.subr.bf16.mxu1 %v14687_v10  ;;  %v14747_v10 = vld [vmem:[#allocation9 + $0x46c] ss:$16 sps:$4 sm:$0xff]  }
 0x704   : > { %11578 = vmatpush1.bf16.msra.mxu0 %v14676_v7  ;;  %v14835_v7 = vld [vmem:[#allocation12 + $0x10] ss:$8 sps:$4 sm:$0xff]  }
 0x705   : > { %11579 = vmatprep.subr.bf16.mxu0 %v14684_v9  ;;  %v14742_v9 = vld [vmem:[#allocation9 + $0x448] ss:$16 sps:$4 sm:$0xff]  }
 0x706   : > { %11666 = vmatpush1.bf16.msra.mxu1 %v14685_v11  ;;  %v14750_v11 = vld [vmem:[#allocation9 + $0x48c] ss:$16 sps:$4 sm:$0xff]  }
 0x707   : > { %11667 = vmatprep.subr.bf16.mxu1 %v14693_v13  ;;  %v14846_v13 = vld [vmem:[#allocation12 + $0x44] ss:$8 sps:$4 sm:$0xff]  }
 0x708   : > { %11580 = vmatpush1.bf16.msra.mxu0 %v14682_v0  ;;  %v14745_v0 = vld [vmem:[#allocation9 + $0x468] ss:$16 sps:$4 sm:$0xff]  }
 0x709   : > { %11581 = vmatprep.subr.bf16.mxu0 %v14690_v12  ;;  %v14843_v12 = vld [vmem:[#allocation12 + $0x34] ss:$8 sps:$4 sm:$0xff]  }
 0x70a   : > { %11668 = vmatpush1.bf16.msra.mxu1 %v14691_v15  ;;  %v14753_v15 = vld [vmem:[#allocation9 + $0x4ac] ss:$16 sps:$4 sm:$0xff]  }
 0x70b   : > { %11669 = vmatprep.subr.bf16.mxu1 %v14699_v17  ;;  %v14849_v17 = vld [vmem:[#allocation12 + $0x54] ss:$8 sps:$4 sm:$0xff]  }
 0x70c   : > { %11582 = vmatpush1.bf16.msra.mxu0 %v14688_v14  ;;  %v14748_v14 = vld [vmem:[#allocation9 + $0x488] ss:$16 sps:$4 sm:$0xff]  }
 0x70d   : > { %11583 = vmatprep.subr.bf16.mxu0 %v14696_v16  ;;  %v14844_v16 = vld [vmem:[#allocation12 + $0x40] ss:$8 sps:$4 sm:$0xff]  }
 0x70e   : > { %11670 = vmatpush1.bf16.msra.mxu1 %v14697_v19  ;;  %v14756_v19 = vld [vmem:[#allocation9 + $0x4cc] ss:$16 sps:$4 sm:$0xff]  }
 0x70f   : > { %11671 = vmatprep.subr.bf16.mxu1 %v14705_v21  ;;  %v14852_v21 = vld [vmem:[#allocation12 + $0x64] ss:$8 sps:$4 sm:$0xff]  }
 0x710   : > { %11584 = vmatpush1.bf16.msra.mxu0 %v14694_v18  ;;  %v14751_v18 = vld [vmem:[#allocation9 + $0x4a8] ss:$16 sps:$4 sm:$0xff]  }
 0x711   : > { %11585 = vmatprep.subr.bf16.mxu0 %v14702_v20  ;;  %v14847_v20 = vld [vmem:[#allocation12 + $0x50] ss:$8 sps:$4 sm:$0xff]  }
 0x712   : > { %11672 = vmatpush1.bf16.msra.mxu1 %v14703_v23  ;;  %v14759_v23 = vld [vmem:[#allocation9 + $0x4ec] ss:$16 sps:$4 sm:$0xff]  }
 0x713   : > { %11673 = vmatprep.subr.bf16.mxu1 %v14711_v24  ;;  %v14855_v24 = vld [vmem:[#allocation12 + $0x74] ss:$8 sps:$4 sm:$0xff]  }
 0x714   : > { %11586 = vmatpush1.bf16.msra.mxu0 %v14700_v22  ;;  %v14754_v22 = vld [vmem:[#allocation9 + $0x4c8] ss:$16 sps:$4 sm:$0xff]  }
 0x715   : > { %11587 = vmatprep.subr.bf16.mxu0 %v14708_v1  ;;  %v14850_v1 = vld [vmem:[#allocation12 + $0x60] ss:$8 sps:$4 sm:$0xff]  }
 0x716   : > { %11674 = vmatpush1.bf16.msra.mxu1 %v14709_v26  ;;  %v14762_v26 = vld [vmem:[#allocation9 + $0x50c] ss:$16 sps:$4 sm:$0xff]  }
 0x717   : > { %11675 = vmatprep.subr.bf16.mxu1 %v14717_v29  ;;  %v14858_v29 = vld [vmem:[#allocation12 + $0x84] ss:$8 sps:$4 sm:$0xff]  }
 0x718   : > { %11588 = vmatpush1.bf16.msra.mxu0 %v14706_v25  ;;  %v14757_v25 = vld [vmem:[#allocation9 + $0x4e8] ss:$16 sps:$4 sm:$0xff]  }
 0x719   : > { %11589 = vmatprep.subr.bf16.mxu0 %v14714_v27  ;;  %v14853_v27 = vld [vmem:[#allocation12 + $0x70] ss:$8 sps:$4 sm:$0xff]  }
 0x71a   : > { %11676 = vmatpush1.bf16.msra.mxu1 %v14715_v31  ;;  %v14765_v31 = vld [vmem:[#allocation9 + $0x52c] ss:$16 sps:$4 sm:$0xff]  }
 0x71b   : > { %11677 = vmatprep.subr.bf16.mxu1 %v14723_v33  ;;  %v14861_v33 = vld [vmem:[#allocation12 + $0x94] ss:$8 sps:$4 sm:$0xff]  }
 0x71c   : > { %11590 = vmatpush1.bf16.msra.mxu0 %v14712_v30  ;;  %v14760_v30 = vld [vmem:[#allocation9 + $0x508] ss:$16 sps:$4 sm:$0xff]  }
 0x71d   : > { %11591 = vmatprep.subr.bf16.mxu0 %v14720_v32  ;;  %v14856_v32 = vld [vmem:[#allocation12 + $0x80] ss:$8 sps:$4 sm:$0xff]  }
 0x71e   : > { %11678 = vmatpush1.bf16.msra.mxu1 %v14721_v56  ;;  %v14864_v56 = vld [vmem:[#allocation12 + $0xa4] ss:$8 sps:$4 sm:$0xff]  }
 0x71f   : > { %11679 = vmatprep.subr.bf16.mxu1 %v14729_v39  ;;  %v14771_v39 = vld [vmem:[#allocation9 + $0x56c] ss:$16 sps:$4 sm:$0xff]  }
 0x720   : > { %11592 = vmatpush1.bf16.msra.mxu0 %v14718_v36  ;;  %v14859_v36 = vld [vmem:[#allocation12 + $0x90] ss:$8 sps:$4 sm:$0xff]  }
 0x721   : > { %11593 = vmatprep.subr.bf16.mxu0 %v14726_v37  ;;  %v14766_v37 = vld [vmem:[#allocation9 + $0x548] ss:$16 sps:$4 sm:$0xff]  }
 0x722   : > { %11680 = vmatpush1.bf16.msra.mxu1 %v14727_v43  ;;  %v14774_v43 = vld [vmem:[#allocation9 + $0x58c] ss:$16 sps:$4 sm:$0xff]  }
 0x723   : > { %11681 = vmatprep.subr.bf16.mxu1 %v14735_v50  ;;  %v14870_v50 = vld [vmem:[#allocation12 + $0xc4] ss:$8 sps:$4 sm:$0xff]  }
 0x724   : > { %11594 = vmatpush1.bf16.msra.mxu0 %v14724_v41  ;;  %v14769_v41 = vld [vmem:[#allocation9 + $0x568] ss:$16 sps:$4 sm:$0xff]  }
 0x725   : > { %11595 = vmatprep.subr.bf16.mxu0 %v14732_v45  ;;  %v14865_v45 = vld [vmem:[#allocation12 + $0xb0] ss:$8 sps:$4 sm:$0xff]  }
 0x726   : > { %11682 = vmatpush1.bf16.msra.mxu1 %v14733_v54  ;;  %v14775_v54 = vld [vmem:[#allocation9 + $0x5a8] ss:$16 sps:$4 sm:$0xff]  }
 0x727   : > { %11694 = vmatprep.subr.bf16.mxu1 %v14738_v58  ;;  %v14783_v58 = vld [vmem:[#allocation9 + $0x5ec] ss:$16 sps:$4 sm:$0xff]  }
 0x728   : > { %11596 = vmatpush1.bf16.msra.mxu0 %v14730_v52  ;;  %v14868_v52 = vld [vmem:[#allocation12 + $0xc0] ss:$8 sps:$4 sm:$0xff]  }
 0x729   : > { %11684 = vmatmul.mubr.bf16.vlgmr.msra.gmra.mrb[4].mxu1 %v16871_v60  ;;  %12204 = vmatprep.subr.bf16.mxu0 %v14834_v3  ;;  %v14838_v60 = vld [vmem:[#allocation12 + $0x20] ss:$8 sps:$4 sm:$0xff]  }
 0x72a   : > { %11695 = vmatpush1.bf16.msra.mxu1 %v14736_v61  ;;  %11726 = vmatprep.mubr.bf16.mxu1 %v16878_v49  ;;  %v14841_v49 = vld [vmem:[#allocation12 + $0x30] ss:$8 sps:$4 sm:$0xff]   ;;  %v14781_v61 = vld [vmem:[#allocation9 + $0x5e8] ss:$16 sps:$4 sm:$0xff]  }
 0x72b   : > { %11598 = vmatmul.mubr.bf16.vlgmr.msra.gmra.mrb[0].mxu0 %v16895_v44  ;;  %11696 = vmatprep.subr.bf16.mxu1 %v14741_v63  ;;  %v14786_v63 = vld [vmem:[#allocation9 + $0x60c] ss:$16 sps:$4 sm:$0xff]  }
 0x72c   : > { %12205 = vmatpush1.bf16.msra.mxu0 %v14832_v2  ;;  %v14784_v2 = vld [vmem:[#allocation9 + $0x608] ss:$16 sps:$4 sm:$0xff]   ;;  %v14789_v3 = vld [vmem:[#allocation9 + $0x62c] ss:$16 sps:$4 sm:$0xff]  }
 0x72d   : > { %12206 = vmatprep.subr.bf16.mxu0 %v14837_v5  ;;  %v14792_v5 = vld [vmem:[#allocation9 + $0x64c] ss:$16 sps:$4 sm:$0xff]  }
 0x72e   : > { %11697 = vmatpush1.bf16.msra.mxu1 %v14739_v4  ;;  %v14787_v4 = vld [vmem:[#allocation9 + $0x628] ss:$16 sps:$4 sm:$0xff]  }
 0x72f   : > { %11698 = vmatprep.subr.bf16.mxu1 %v14744_v6  ;;  %v14790_v6 = vld [vmem:[#allocation9 + $0x648] ss:$16 sps:$4 sm:$0xff]  }
 0x730   : > { %12207 = vmatpush1.bf16.msra.mxu0 %v14835_v7  ;;  %v14795_v7 = vld [vmem:[#allocation9 + $0x66c] ss:$16 sps:$4 sm:$0xff]  }
 0x731   : > { %12208 = vmatprep.subr.bf16.mxu0 %v14840_v8  ;;  %v14793_v8 = vld [vmem:[#allocation9 + $0x668] ss:$16 sps:$4 sm:$0xff]  }
 0x732   : > { %11699 = vmatpush1.bf16.msra.mxu1 %v14742_v9  ;;  %v14798_v9 = vld [vmem:[#allocation9 + $0x68c] ss:$16 sps:$4 sm:$0xff]  }
 0x733   : > { %11700 = vmatprep.subr.bf16.mxu1 %v14747_v10  ;;  %v14796_v10 = vld [vmem:[#allocation9 + $0x688] ss:$16 sps:$4 sm:$0xff]  }
 0x734   : > { %12209 = vmatpush1.bf16.msra.mxu0 %v14838_v60  ;;  %v14873_v60 = vld [vmem:[#allocation12 + $0xd4] ss:$8 sps:$4 sm:$0xff]  }
 0x735   : > { %12210 = vmatprep.subr.bf16.mxu0 %v14843_v12 }
 0x736   : > { %11701 = vmatpush1.bf16.msra.mxu1 %v14745_v0  ;;  %v14801_v0 = vld [vmem:[#allocation9 + $0x6ac] ss:$16 sps:$4 sm:$0xff]  }
 0x737   : > { %11702 = vmatprep.subr.bf16.mxu1 %v14750_v11  ;;  %v14804_v11 = vld [vmem:[#allocation9 + $0x6cc] ss:$16 sps:$4 sm:$0xff]  }
 0x738   : > { %12211 = vmatpush1.bf16.msra.mxu0 %v14841_v49 }
 0x739   : > { %12212 = vmatprep.subr.bf16.mxu0 %v14846_v13 }
 0x73a   : > { %11703 = vmatpush1.bf16.msra.mxu1 %v14748_v14  ;;  %v14802_v14 = vld [vmem:[#allocation9 + $0x6c8] ss:$16 sps:$4 sm:$0xff]  }
 0x73b   : > { %11704 = vmatprep.subr.bf16.mxu1 %v14753_v15  ;;  %v14876_v15 = vld [vmem:[#allocation12 + $0xe4] ss:$8 sps:$4 sm:$0xff]  }
 0x73c   : > { %12213 = vmatpush1.bf16.msra.mxu0 %v14844_v16 }
 0x73d   : > { %12214 = vmatprep.subr.bf16.mxu0 %v14849_v17  ;;  %v14807_v17 = vld [vmem:[#allocation9 + $0x6ec] ss:$16 sps:$4 sm:$0xff]  }
 0x73e   : > { %11705 = vmatpush1.bf16.msra.mxu1 %v14751_v18  ;;  %v14874_v18 = vld [vmem:[#allocation12 + $0xe0] ss:$8 sps:$4 sm:$0xff]  }
 0x73f   : > { %11706 = vmatprep.subr.bf16.mxu1 %v14756_v19  ;;  %v14805_v19 = vld [vmem:[#allocation9 + $0x6e8] ss:$16 sps:$4 sm:$0xff]  }
 0x740   : > { %12215 = vmatpush1.bf16.msra.mxu0 %v14847_v20  ;;  %v14879_v20 = vld [vmem:[#allocation12 + $0xf4] ss:$8 sps:$4 sm:$0xff]  }
 0x741   : > { %12216 = vmatprep.subr.bf16.mxu0 %v14852_v21  ;;  %v14810_v21 = vld [vmem:[#allocation9 + $0x70c] ss:$16 sps:$4 sm:$0xff]  }
 0x742   : > { %11707 = vmatpush1.bf16.msra.mxu1 %v14754_v22  ;;  %v14877_v22 = vld [vmem:[#allocation12 + $0xf0] ss:$8 sps:$4 sm:$0xff]  }
 0x743   : > { %11708 = vmatprep.subr.bf16.mxu1 %v14759_v23  ;;  %v14808_v23 = vld [vmem:[#allocation9 + $0x708] ss:$16 sps:$4 sm:$0xff]  }
 0x744   : > { %12217 = vmatpush1.bf16.msra.mxu0 %v14850_v1  ;;  %v14813_v1 = vld [vmem:[#allocation9 + $0x72c] ss:$16 sps:$4 sm:$0xff]  }
 0x745   : > { %12218 = vmatprep.subr.bf16.mxu0 %v14855_v24  ;;  %v14882_v24 = vld [vmem:[#allocation12 + $0x104] ss:$8 sps:$4 sm:$0xff]  }
 0x746   : > { %11709 = vmatpush1.bf16.msra.mxu1 %v14757_v25  ;;  %v14811_v25 = vld [vmem:[#allocation9 + $0x728] ss:$16 sps:$4 sm:$0xff]  }
 0x747   : > { %11710 = vmatprep.subr.bf16.mxu1 %v14762_v26  ;;  %v14816_v26 = vld [vmem:[#allocation9 + $0x74c] ss:$16 sps:$4 sm:$0xff]  }
 0x748   : > { %12219 = vmatpush1.bf16.msra.mxu0 %v14853_v27  ;;  %v14814_v27 = vld [vmem:[#allocation9 + $0x748] ss:$16 sps:$4 sm:$0xff]  }
 0x749   : > { %12220 = vmatprep.subr.bf16.mxu0 %v14858_v29  ;;  %v14819_v29 = vld [vmem:[#allocation9 + $0x76c] ss:$16 sps:$4 sm:$0xff]  }
 0x74a   : > { %11711 = vmatpush1.bf16.msra.mxu1 %v14760_v30  ;;  %v14817_v30 = vld [vmem:[#allocation9 + $0x768] ss:$16 sps:$4 sm:$0xff]  }
 0x74b   : > { %11712 = vmatprep.subr.bf16.mxu1 %v14765_v31  ;;  %v14822_v31 = vld [vmem:[#allocation9 + $0x78c] ss:$16 sps:$4 sm:$0xff]  }
 0x74c   : > { %12221 = vmatpush1.bf16.msra.mxu0 %v14856_v32  ;;  %v14820_v32 = vld [vmem:[#allocation9 + $0x788] ss:$16 sps:$4 sm:$0xff]  }
 0x74d   : > { %12222 = vmatprep.subr.bf16.mxu0 %v14861_v33  ;;  %v14825_v33 = vld [vmem:[#allocation9 + $0x7ac] ss:$16 sps:$4 sm:$0xff]  }
 0x74e   : > { %11713 = vmatpush1.bf16.msra.mxu1 %v14763_v34  ;;  %v14823_v34 = vld [vmem:[#allocation9 + $0x7a8] ss:$16 sps:$4 sm:$0xff]  }
 0x74f   : > { %11714 = vmatprep.subr.bf16.mxu1 %v14768_v35  ;;  %v14828_v35 = vld [vmem:[#allocation9 + $0x7cc] ss:$16 sps:$4 sm:$0xff]  }
 0x750   : > { %12223 = vmatpush1.bf16.msra.mxu0 %v14859_v36  ;;  %v14826_v36 = vld [vmem:[#allocation9 + $0x7c8] ss:$16 sps:$4 sm:$0xff]  }
 0x751   : > { %12224 = vmatprep.subr.bf16.mxu0 %v14864_v56  ;;  %v14831_v56 = vld [vmem:[#allocation9 + $0x7ec] ss:$16 sps:$4 sm:$0xff]  }
 0x752   : > { %11715 = vmatpush1.bf16.msra.mxu1 %v14766_v37  ;;  %v14829_v37 = vld [vmem:[#allocation9 + $0x7e8] ss:$16 sps:$4 sm:$0xff]  }
 0x753   : > { %11716 = vmatprep.subr.bf16.mxu1 %v14771_v39  ;;  %v16903_v39 = vld [vmem:[#allocation10] sm:$0xf] }
 0x754   : > { %12225 = vmatpush1.bf16.msra.mxu0 %v14862_v40  ;;  %v10139_v40 = vrot.slane %v16903_v39, %v16834_v53 }
 0x755   : > { %12226 = vmatprep.subr.bf16.mxu0 %v14867_v59  ;;  %v10143_v59 = vrot.slane %v16903_v39, %v16829_v47 }
 0x756   : > { %11717 = vmatpush1.bf16.msra.mxu1 %v14769_v41 }
 0x757   : > { %11718 = vmatprep.subr.bf16.mxu1 %v14774_v43 }
 0x758   : > { %12227 = vmatpush1.bf16.msra.mxu0 %v14865_v45 }
 0x759   : > { %12228 = vmatprep.subr.bf16.mxu0 %v14870_v50 }
 0x75a   : > { %11719 = vmatpush1.bf16.msra.mxu1 %v14772_v38 }
 0x75b   : > { %11720 = vmatprep.subr.bf16.mxu1 %v14777_v51 }
 0x75c   : > { %12229 = vmatpush1.bf16.msra.mxu0 %v14868_v52 }
 0x75d   : > { %12230 = vmatprep.subr.bf16.mxu0 %v14873_v60  ;;  %v14888_v60 = vld [vmem:[#allocation12 + $0x124] ss:$8 sps:$4 sm:$0xff]  }
 0x75e   : > { %11721 = vmatpush1.bf16.msra.mxu1 %v14775_v54 }
 0x75f   : > { %11722 = vmatprep.subr.bf16.mxu1 %v14780_v55 }
 0x762   : > { %11723 = vmatpush1.bf16.msra.mxu1 %v14778_v46 }
 0x763   : > { %11724 = vmatprep.subr.bf16.mxu1 %v14783_v58 }
 0x766   : > { %11725 = vmatpush1.bf16.msra.mxu1 %v14781_v61 }
 0x767   : > { %11737 = vmatprep.subr.bf16.mxu1 %v14786_v63 }
 0x769   : > { %11727 = vmatmul.mubr.bf16.vlgmr.msra.gmra.mrb[4].mxu1 %v16883_v28  ;;  %v14799_v28 = vld [vmem:[#allocation9 + $0x6a8] ss:$16 sps:$4 sm:$0xff]  }
 0x76a   : > { %11738 = vmatpush1.bf16.msra.mxu1 %v14784_v2  ;;  %11769 = vmatprep.mubr.bf16.mxu1 %v16890_v62  ;;  %v14871_v62 = vld [vmem:[#allocation12 + $0xd0] ss:$8 sps:$4 sm:$0xff]  }
 0x76b   : > { %11739 = vmatprep.subr.bf16.mxu1 %v14789_v3  ;;  %12231 = vmatpush1.bf16.msra.mxu0 %v14871_v62  ;;  %v14891_v62 = vld [vmem:[#allocation12 + $0x134] ss:$8 sps:$4 sm:$0xff]  }
 0x76c   : > { %12232 = vmatprep.subr.bf16.mxu0 %v14876_v15  ;;  %v14895_v15 = vld [vmem:[#allocation12 + $0x150] ss:$8 sps:$4 sm:$0xff]  }
 0x76e   : > { %11740 = vmatpush1.bf16.msra.mxu1 %v14787_v4 }
 0x76f   : > { %11741 = vmatprep.subr.bf16.mxu1 %v14792_v5  ;;  %12233 = vmatpush1.bf16.msra.mxu0 %v14874_v18  ;;  %v14903_v18 = vld [vmem:[#allocation12 + $0x174] ss:$8 sps:$4 sm:$0xff]  }
 0x770   : > { %12234 = vmatprep.subr.bf16.mxu0 %v14879_v20  ;;  %v14906_v20 = vld [vmem:[#allocation12 + $0x184] ss:$8 sps:$4 sm:$0xff]  }
 0x772   : > { %11742 = vmatpush1.bf16.msra.mxu1 %v14790_v6 }
 0x773   : > { %11743 = vmatprep.subr.bf16.mxu1 %v14795_v7  ;;  %12235 = vmatpush1.bf16.msra.mxu0 %v14877_v22  ;;  %v14909_v22 = vld [vmem:[#allocation12 + $0x194] ss:$8 sps:$4 sm:$0xff]  }
 0x774   : > { %12247 = vmatprep.subr.bf16.mxu0 %v14882_v24  ;;  %v14910_v24 = vld [vmem:[#allocation12 + $0x1a0] ss:$8 sps:$4 sm:$0xff]  }
 0x776   : > { %11744 = vmatpush1.bf16.msra.mxu1 %v14793_v8 }
 0x777   : > { %11745 = vmatprep.subr.bf16.mxu1 %v14798_v9 }
 0x77a   : > { %11746 = vmatpush1.bf16.msra.mxu1 %v14796_v10  ;;  %v14880_v10 = vld [vmem:[#allocation12 + $0x100] ss:$8 sps:$4 sm:$0xff]  }
 0x77b   : > { %11747 = vmatprep.subr.bf16.mxu1 %v14801_v0  ;;  %v14885_v0 = vld [vmem:[#allocation12 + $0x114] ss:$8 sps:$4 sm:$0xff]  }
 0x77c   : > { %v11470_v12 = vpop.f32.mrb[0].mxu1 }
 0x77d   : > { %v11472_v49 = vpop.f32.mrb[1].mxu1  ;;  %v11471_v41 = vadd.f32 %v11470_v12, %v10139_v40  ;;  %v14889_v12 = vld [vmem:[#allocation12 + $0x130] ss:$8 sps:$4 sm:$0xff]  }
 0x77e   : > { %v11474_v13 = vpop.f32.mrb[2].mxu1  ;;  %11748 = vmatpush1.bf16.msra.mxu1 %v14799_v28  ;;  %v11473_v43 = vadd.f32 %v11472_v49, %v10143_v59  ;;  %v14883_v28 = vld [vmem:[#allocation12 + $0x110] ss:$8 sps:$4 sm:$0xff]   ;;  %v14894_v49 = vld [vmem:[#allocation12 + $0x144] ss:$8 sps:$4 sm:$0xff]  }
 0x77f   : > { %v11476_v16 = vpop.f32.mrb[3].mxu1  ;;  %11749 = vmatprep.subr.bf16.mxu1 %v14804_v11  ;;  %v11475_v50 = vadd.f32 %v11474_v13, %v10139_v40  ;;  %v14886_v11 = vld [vmem:[#allocation12 + $0x120] ss:$8 sps:$4 sm:$0xff]  }
 0x780   : > { %v11477_v52 = vadd.f32 %v11476_v16, %v10143_v59  ;;  %v14892_v13 = vld [vmem:[#allocation12 + $0x140] ss:$8 sps:$4 sm:$0xff]   ;;  %v14900_v16 = vld [vmem:[#allocation12 + $0x164] ss:$8 sps:$4 sm:$0xff]  }
 0x782   : > { %11750 = vmatpush1.bf16.msra.mxu1 %v14802_v14  ;;  %v14897_v14 = vld [vmem:[#allocation12 + $0x154] ss:$8 sps:$4 sm:$0xff]  }
 0x783   : > { %11751 = vmatprep.subr.bf16.mxu1 %v14807_v17  ;;  %v14898_v17 = vld [vmem:[#allocation12 + $0x160] ss:$8 sps:$4 sm:$0xff]  }
 0x786   : > { %11752 = vmatpush1.bf16.msra.mxu1 %v14805_v19  ;;  %v14901_v19 = vld [vmem:[#allocation12 + $0x170] ss:$8 sps:$4 sm:$0xff]  }
 0x787   : > { %11753 = vmatprep.subr.bf16.mxu1 %v14810_v21  ;;  %v14904_v21 = vld [vmem:[#allocation12 + $0x180] ss:$8 sps:$4 sm:$0xff]  }
 0x78a   : > { %11754 = vmatpush1.bf16.msra.mxu1 %v14808_v23  ;;  %v14907_v23 = vld [vmem:[#allocation12 + $0x190] ss:$8 sps:$4 sm:$0xff]  }
 0x78b   : > { %11755 = vmatprep.subr.bf16.mxu1 %v14813_v1  ;;  %v14912_v1 = vld [vmem:[#allocation12 + $0x1a4] ss:$8 sps:$4 sm:$0xff]  }
 0x78e   : > { %11756 = vmatpush1.bf16.msra.mxu1 %v14811_v25  ;;  %v14915_v25 = vld [vmem:[#allocation12 + $0x1b4] ss:$8 sps:$4 sm:$0xff]  }
 0x78f   : > { %11757 = vmatprep.subr.bf16.mxu1 %v14816_v26  ;;  %v14913_v26 = vld [vmem:[#allocation12 + $0x1b0] ss:$8 sps:$4 sm:$0xff]  }
 0x792   : > { %11758 = vmatpush1.bf16.msra.mxu1 %v14814_v27  ;;  %v14918_v27 = vld [vmem:[#allocation12 + $0x1c4] ss:$8 sps:$4 sm:$0xff]  }
 0x793   : > { %11759 = vmatprep.subr.bf16.mxu1 %v14819_v29  ;;  %v14916_v29 = vld [vmem:[#allocation12 + $0x1c0] ss:$8 sps:$4 sm:$0xff]  }
 0x796   : > { %11760 = vmatpush1.bf16.msra.mxu1 %v14817_v30  ;;  %v14921_v30 = vld [vmem:[#allocation12 + $0x1d4] ss:$8 sps:$4 sm:$0xff]  }
 0x797   : > { %11761 = vmatprep.subr.bf16.mxu1 %v14822_v31  ;;  %v14919_v31 = vld [vmem:[#allocation12 + $0x1d0] ss:$8 sps:$4 sm:$0xff]  }
 0x79a   : > { %11762 = vmatpush1.bf16.msra.mxu1 %v14820_v32  ;;  %v14924_v32 = vld [vmem:[#allocation12 + $0x1e4] ss:$8 sps:$4 sm:$0xff]  }
 0x79b   : > { %11763 = vmatprep.subr.bf16.mxu1 %v14825_v33  ;;  %v14922_v33 = vld [vmem:[#allocation12 + $0x1e0] ss:$8 sps:$4 sm:$0xff]  }
 0x79e   : > { %11764 = vmatpush1.bf16.msra.mxu1 %v14823_v34  ;;  %v14927_v34 = vld [vmem:[#allocation12 + $0x1f4] ss:$8 sps:$4 sm:$0xff]  }
 0x79f   : > { %11765 = vmatprep.subr.bf16.mxu1 %v14828_v35  ;;  %v14925_v35 = vld [vmem:[#allocation12 + $0x1f0] ss:$8 sps:$4 sm:$0xff]  }
 0x7a2   : > { %11766 = vmatpush1.bf16.msra.mxu1 %v14826_v36  ;;  %v10147_v36 = vrot.slane %v16903_v39, %v9776_v57 }
 0x7a3   : > { %11767 = vmatprep.subr.bf16.mxu1 %v14831_v56  ;;  %v10151_v56 = vrot.slane %v16903_v39, %v9780_v48 }
 0x7a6   : > { %11768 = vmatpush1.bf16.msra.mxu1 %v14829_v37 }
 0x7a9   : > { %11770 = vmatmul.mubr.bf16.vlgmr.msra.gmra.mrb[4].mxu1 %v16895_v44 }
 0x7fe   : > { %v11599_v45 = vpop.f32.mrb[0].mxu0 }
 0x7ff   : > { %v14239_v38 = vadd.f32 %v11599_v45, %v11471_v41  ;;  %v11601_v51 = vpop.f32.mrb[1].mxu0 }
 0x800   : > { %v14241_v54 = vadd.f32 %v11601_v51, %v11473_v43  ;;  %v11603_v55 = vpop.f32.mrb[2].mxu0 }
 0x801   : > { %v11788_v46 = vmul.f32 0.2, %v14239_v38  ;;  %v14243_v58 = vadd.f32 %v11603_v55, %v11475_v50  ;;  %v11605_v44 = vpop.f32.mrb[3].mxu0  ;;  %vm11780_vm0 = vcmp.gt.f32.partialorder %v14239_v38, 0.0 }
 0x802   : > { %v11789_v61 = vmul.f32 0.2, %v14241_v54  ;;  %v14245_v63 = vadd.f32 %v11605_v44, %v11477_v52  ;;  %vm11781_vm1 = vcmp.gt.f32.partialorder %v14241_v54, 0.0  ;;  %v11872_v44 = vld [vmem:[#allocation13] sm:$0x3] }
 0x803   : > { %vm11784_vm2 = vcmp.gt.f32.partialorder %v14243_v58, 0.0  ;;  %v11792_v2 = vmul.f32 0.2, %v14243_v58  ;;  %v11796_v4 = vsel %vm11780_vm0, %v14239_v38, %v11788_v46 }
 0x804   : > { %vm11785_vm3 = vcmp.gt.f32.partialorder %v14245_v63, 0.0  ;;  %v11793_v3 = vmul.f32 0.2, %v14245_v63  ;;  %v11797_v7 = vsel %vm11781_vm1, %v14241_v54, %v11789_v61  ;;  %v11877_v61 = vrot.slane %v11872_v44, %v16834_v53 }
 0x805   : > { %v11800_v5 = vsel %vm11784_vm2, %v14243_v58, %v11792_v2  ;;  %v12302_v2 = vld [vmem:[#allocation15] sm:$0x3] }
 0x806   : > { %v11804_v6 = vpack.c.bf16 %v11800_v5, %v11796_v4  ;;  %v11801_v8 = vsel %vm11785_vm3, %v14245_v63, %v11793_v3  ;;  %v11881_v63 = vrot.slane %v11872_v44, %v16829_v47 }
 0x807   : > { %v11805_v9 = vpack.c.bf16 %v11801_v8, %v11797_v7  ;;  %v12307_v8 = vrot.slane %v12302_v2, %v16834_v53 }
 0x809   : > { %12236 = vmatprep.mubr.bf16.mxu0 %v11805_v9 }
 0x80a   : > { %12237 = vmatmul.mubr.bf16.vlgmr.msra.gmra.mrb[4].mxu0 %v11804_v6 }
 0x80b   : > { %12248 = vmatpush1.bf16.msra.mxu0 %v14880_v10 }
 0x80c   : > { %12249 = vmatprep.subr.bf16.mxu0 %v14885_v0 }
 0x80f   : > { %12250 = vmatpush1.bf16.msra.mxu0 %v14883_v28  ;;  %v12311_v28 = vrot.slane %v12302_v2, %v16829_v47  ;;  %v14083_v47 = vld [vmem:[#allocation3] ss:$0 sm:$0xff] }
 0x810   : > { %12251 = vmatprep.subr.bf16.mxu0 %v14888_v60 }
 0x813   : > { %12252 = vmatpush1.bf16.msra.mxu0 %v14886_v11 }
 0x814   : > { %12253 = vmatprep.subr.bf16.mxu0 %v14891_v62 }
 0x817   : > { %12254 = vmatpush1.bf16.msra.mxu0 %v14889_v12 }
 0x818   : > { %12255 = vmatprep.subr.bf16.mxu0 %v14894_v49 }
 0x81b   : > { %12256 = vmatpush1.bf16.msra.mxu0 %v14892_v13 }
 0x81c   : > { %12257 = vmatprep.subr.bf16.mxu0 %v14897_v14 }
 0x81f   : > { %12258 = vmatpush1.bf16.msra.mxu0 %v14895_v15 }
 0x820   : > { %12259 = vmatprep.subr.bf16.mxu0 %v14900_v16 }
 0x823   : > { %12260 = vmatpush1.bf16.msra.mxu0 %v14898_v17 }
 0x824   : > { %12261 = vmatprep.subr.bf16.mxu0 %v14903_v18 }
 0x827   : > { %12262 = vmatpush1.bf16.msra.mxu0 %v14901_v19 }
 0x828   : > { %12263 = vmatprep.subr.bf16.mxu0 %v14906_v20 }
 0x82b   : > { %12264 = vmatpush1.bf16.msra.mxu0 %v14904_v21 }
 0x82c   : > { %12265 = vmatprep.subr.bf16.mxu0 %v14909_v22 }
 0x82f   : > { %12266 = vmatpush1.bf16.msra.mxu0 %v14907_v23 }
 0x830   : > { %12267 = vmatprep.subr.bf16.mxu0 %v14912_v1 }
 0x833   : > { %12268 = vmatpush1.bf16.msra.mxu0 %v14910_v24 }
 0x834   : > { %12269 = vmatprep.subr.bf16.mxu0 %v14915_v25 }
 0x837   : > { %12270 = vmatpush1.bf16.msra.mxu0 %v14913_v26 }
 0x838   : > { %12271 = vmatprep.subr.bf16.mxu0 %v14918_v27 }
 0x83b   : > { %12272 = vmatpush1.bf16.msra.mxu0 %v14916_v29 }
 0x83c   : > { %12273 = vmatprep.subr.bf16.mxu0 %v14921_v30 }
 0x83f   : > { %12274 = vmatpush1.bf16.msra.mxu0 %v14919_v31 }
 0x840   : > { %12275 = vmatprep.subr.bf16.mxu0 %v14924_v32 }
 0x843   : > { %12276 = vmatpush1.bf16.msra.mxu0 %v14922_v33 }
 0x844   : > { %12277 = vmatprep.subr.bf16.mxu0 %v14927_v34 }
 0x847   : > { %12278 = vmatpush1.bf16.msra.mxu0 %v14925_v35 }
 0x87c   : > { %v11771_v37 = vpop.f32.mrb[4].mxu1 }
 0x87d   : > { %v14246_v40 = vadd.f32 %v11771_v37, %v10147_v36  ;;  %v11773_v59 = vpop.f32.mrb[5].mxu1 }
 0x87e   : > { %v14247_v41 = vadd.f32 %v11773_v59, %v10151_v56  ;;  %v11775_v43 = vpop.f32.mrb[6].mxu1 }
 0x87f   : > { %v11790_v45 = vmul.f32 0.2, %v14246_v40  ;;  %v14248_v50 = vadd.f32 %v11775_v43, %v10147_v36  ;;  %v11777_v38 = vpop.f32.mrb[7].mxu1  ;;  %vm11782_vm4 = vcmp.gt.f32.partialorder %v14246_v40, 0.0 }
 0x880   : > { %v11791_v51 = vmul.f32 0.2, %v14247_v41  ;;  %v14249_v52 = vadd.f32 %v11777_v38, %v10151_v56  ;;  %vm11783_vm5 = vcmp.gt.f32.partialorder %v14247_v41, 0.0 }
 0x881   : > { %vm11786_vm6 = vcmp.gt.f32.partialorder %v14248_v50, 0.0  ;;  %v11794_v54 = vmul.f32 0.2, %v14248_v50  ;;  %v11798_v55 = vsel %vm11782_vm4, %v14246_v40, %v11790_v45 }
 0x882   : > { %vm11787_vm7 = vcmp.gt.f32.partialorder %v14249_v52, 0.0  ;;  %v11795_v57 = vmul.f32 0.2, %v14249_v52  ;;  %v11799_v48 = vsel %vm11783_vm5, %v14247_v41, %v11791_v51 }
 0x883   : > { %v11802_v42 = vsel %vm11786_vm6, %v14248_v50, %v11794_v54 }
 0x884   : > { %v11806_v46 = vpack.c.bf16 %v11802_v42, %v11798_v55  ;;  %v11803_v39 = vsel %vm11787_vm7, %v14249_v52, %v11795_v57 }
 0x885   : > { %v11807_v58 = vpack.c.bf16 %v11803_v39, %v11799_v48 }
 0x887   : > { %12279 = vmatprep.mubr.bf16.mxu0 %v11807_v58 }
 0x888   : > { %12280 = vmatmul.mubr.bf16.vlgmr.msra.gmra.mrb[4].mxu0 %v11806_v46 }
 0x95b   : > { %v12281_v3 = vpop.f32.mrb[4].mxu0 }
 0x95c   : > { %v14250_v4 = vadd.f32 %v12281_v3, %v11877_v61  ;;  %v12283_v5 = vpop.f32.mrb[5].mxu0 }
 0x95d   : > { %v14251_v6 = vadd.f32 %v12283_v5, %v11881_v63  ;;  %v12285_v7 = vpop.f32.mrb[6].mxu0 }
 0x95e   : > { %vm12290_vm8 = vcmp.gt.f32.partialorder %v14250_v4, 0.0  ;;  %v12294_v9 = vmul.f32 0.2, %v14250_v4  ;;  %v14252_v10 = vadd.f32 %v12285_v7, %v11877_v61  ;;  %v12287_v0 = vpop.f32.mrb[7].mxu0 }
 0x95f   : > { %vm12291_vm9 = vcmp.gt.f32.partialorder %v14251_v6, 0.0  ;;  %v12295_v60 = vmul.f32 0.2, %v14251_v6  ;;  %v14253_v11 = vadd.f32 %v12287_v0, %v11881_v63 }
 0x960   : > { %vm12292_vm10 = vcmp.gt.f32.partialorder %v14252_v10, 0.0  ;;  %v12296_v62 = vmul.f32 0.2, %v14252_v10  ;;  %v12298_v12 = vsel %vm12290_vm8, %v14250_v4, %v12294_v9 }
 0x961   : > { %vm12293_vm11 = vcmp.gt.f32.partialorder %v14253_v11, 0.0  ;;  %v12297_v49 = vmul.f32 0.2, %v14253_v11  ;;  %v12299_v13 = vsel %vm12291_vm9, %v14251_v6, %v12295_v60  ;;  %v12314_v14 = vmul.f32 %v12307_v8, %v12298_v12 }
 0x962   : > { %v12315_v15 = vmul.f32 %v12311_v28, %v12299_v13  ;;  %v12300_v16 = vsel %vm12292_vm10, %v14252_v10, %v12296_v62 }
 0x963   : > { %v12301_v17 = vsel %vm12293_vm11, %v14253_v11, %v12297_v49  ;;  %v12316_v53 = vmul.f32 %v12307_v8, %v12300_v16 }
 0x964   : > { %v12318_v18 = vadd.f32 %v12315_v15, %v12314_v14  ;;  %v12317_v19 = vmul.f32 %v12311_v28, %v12301_v17 }
 0x966   : > { %12319 = vadd.xlane.f32.xlu0 %v12318_v18  ;;  %v12321_v20 = vadd.f32 %v12317_v19, %v12316_v53 }
 0x96a   : > { %12322 = vadd.xlane.f32.xlu0 %v12321_v20 }
 0x9f3   : > { %v12320_v21 = vpop.xlane.xlu0 %12319 }
 0x9f4   : > { %v12331_v22 = vadd.f32 %v14083_v47, %v12320_v21 }
 0x9f6   : > { %v14084_v23 = vmul.f32 -1.442695, %v12331_v22 }
 0x9f7   : > { %v12323_v1 = vpop.xlane.xlu0 %12322 }
 0x9f8   : > { %14928 = vpow2.f32 %v14084_v23  ;;  %v12332_v24 = vadd.f32 %v14083_v47, %v12323_v1 }
 0x9fa   : > { %v14085_v25 = vmul.f32 -1.442695, %v12332_v24 }
 0x9fc   : > { %14930 = vpow2.f32 %v14085_v25 }
 0xa02   : > { %v14929_v26 = vpop.eup %14928 }
 0xa03   : > { %v12339_v27 = vadd.f32 1.0, %v14929_v26 }
 0xa05   : > { %14932 = vrcp.f32 %v12339_v27 }
 0xa06   : > { %v14931_v29 = vpop.eup %14930 }
 0xa07   : > { %v12340_v30 = vadd.f32 1.0, %v14931_v29 }
 0xa09   : > { %14934 = vrcp.f32 %v12340_v30 }
 0xa0f   : > { %v14933_v31 = vpop.eup %14932 }
 0xa10   : > { %12346 = vst.msk [vmem:[%s16978_s21] sm:$0xff] %vm12345_vm12, %v14933_v31 }
 0xa13   : > { %v14935_v32 = vpop.eup %14934 }
 0xa14   : > { %12347 = vst.msk [vmem:[%s16978_s21 + $0x8] sm:$0xff] %vm12345_vm12, %v14935_v32 }
 0xa15 PF: > { %s27_s16 = sadd.s32 1, %s15194_s16   ;;  %s16979_s20 = sld [smem:[#allocation21_spill]] }
 0xa16   : > { %p24_p6 = scmp.ge.s32.totalorder %s27_s16, 6   ;;  %s16980_s10 = sld [smem:[#allocation20_spill]] }
 0xa17   : > { %s16981_s11 = smov %s15178_s12  ;;  %s16982_s12 = smov %s15182_s13 }
 0xa18   : > { %s16984_s14 = smov %s15190_s15  ;;  %26 = sbr.rel (!%p24_p6) target bundleno = 11 (0xb), region = 168 }
 0xa1b   : > { %s16983_s13 = smov %s16979_s20 }
 0xa1c   : > { %s16985_s15 = smov %s16980_s10 }
 0xa1f   :  { %12370 = vsyncpa [#allocation6], 1 }
 0xa20   :  { %12372 = vsyncpa [#allocation6 + $0x1], 1 }
 0xa21   :  { %12373 = vsyncpa [#allocation8], 1 }
 0xa22   :  { %12374 = vsyncpa [#allocation11], 1 }
 0xa23   :  { %12375 = vsyncpa [#allocation14], 1 }

</bundles_post_ra>
